<compile_context>
chip_gen: v7x
topology: tpu7x:2x2x1
jax: 0.10.0
libtpu: 0.0.40
codegen_flags: <defaults>
</compile_context>

<pallas_src>
import functools

import jax
import jax.numpy as jnp
from jax.experimental import pallas as pl
from jax.experimental.pallas import tpu as pltpu

_H1, _H1_VALID = 1024, 1000   # width of decoder layers 1 & 2 (padded / valid)
_H3, _H3_VALID = 2048, 2000   # width of decoder layer 3   (padded / valid)
_LN_EPS = 1e-12               # nn.LayerNorm(1000, eps=1e-12) in the PyTorch module


def _vae_decoder_kernel(z_ref,
                        w1_ref, b1_ref, g1_ref, be1_ref,
                        w2_ref, b2_ref, g2_ref, be2_ref,
                        w3_hbm, b3_ref,
                        w4_hbm, b4_ref,
                        out_ref,
                        w3_vmem, w4_vmem, dma_sem,
                        *, max_len, vocab_len, ln_valid):
    first = pl.program_id(0) == 0

    # One-shot prefetch of the big weights into persistent VMEM scratch.  The grid
    # axis is "arbitrary" (sequential on one core), so guarding start/wait with
    # program_id==0 is sound and later grid steps reuse the resident copies.
    @pl.when(first)
    def _():
        pltpu.make_async_copy(w3_hbm, w3_vmem, dma_sem.at[0]).start()
        pltpu.make_async_copy(w4_hbm, w4_vmem, dma_sem.at[1]).start()

    z = z_ref[...]                                        # (TM, latent) f32

    def linear(x_f32, w_bf16, b_f32):
        # Native bf16 MXU matmul with f32 accumulation.
        return jnp.dot(x_f32.astype(jnp.bfloat16), w_bf16,
                       preferred_element_type=jnp.float32) + b_f32

    # LayerNorm column mask is identical for both LayerNorms -> build once.
    ln_cols = jax.lax.broadcasted_iota(jnp.int32, (z.shape[0], _H1), 1)
    ln_mask = ln_cols < ln_valid
    inv_n = 1.0 / float(ln_valid)

    def layernorm(h, g, b):
        # PyTorch LayerNorm (biased variance, eps inside sqrt) over the `ln_valid`
        # leading columns.  Padded columns of h are exactly 0, and gamma/beta are
        # zero-padded, so padded outputs stay exactly 0 for the next layer.
        m = jnp.sum(h, axis=-1, keepdims=True) * inv_n    # padded cols add 0
        c = jnp.where(ln_mask, h - m, 0.0)
        var = jnp.sum(c * c, axis=-1, keepdims=True) * inv_n
        return c * jax.lax.rsqrt(var + _LN_EPS) * g + b

    h = jnp.maximum(layernorm(linear(z, w1_ref[...], b1_ref[...]),
                              g1_ref[...], be1_ref[...]), 0.0)
    h = jnp.maximum(layernorm(linear(h, w2_ref[...], b2_ref[...]),
                              g2_ref[...], be2_ref[...]), 0.0)

    @pl.when(first)
    def _():
        pltpu.make_async_copy(w3_hbm, w3_vmem, dma_sem.at[0]).wait()
    h = jnp.maximum(linear(h, w3_vmem[...], b3_ref[...]), 0.0)

    @pl.when(first)
    def _():
        pltpu.make_async_copy(w4_hbm, w4_vmem, dma_sem.at[1]).wait()
    logits = linear(h, w4_vmem[...], b4_ref[...])         # (TM, Vp) f32

    # ---- log_softmax over each vocab_len-wide segment -----------------------
    # Segment masks are built once from a single iota and reused by both the max
    # scatter and the lse scatter; one full-width exp; ONE unmasked full-width
    # store.  (An MXU 0/1-segment-matrix formulation only pays off for much
    # larger max_len; at max_len=8 this is negligible next to the weight DMA.)
    vl = vocab_len
    col = jax.lax.broadcasted_iota(jnp.int32, logits.shape, 1)
    seg_masks = [jnp.logical_and(col >= p * vl, col < (p + 1) * vl)
                 for p in range(max_len)]
    seg_max = []
    max_full = jnp.zeros_like(logits)
    for p in range(max_len):
        m = jnp.max(logits[:, p * vl:(p + 1) * vl], axis=-1, keepdims=True)
        seg_max.append(m)
        max_full = jnp.where(seg_masks[p], m, max_full)
    e = jnp.exp(logits - max_full)                        # one full-width EUP pass
    lse_full = jnp.zeros_like(logits)
    for p in range(max_len):
        s = jnp.sum(e[:, p * vl:(p + 1) * vl], axis=-1, keepdims=True)
        lse_full = jnp.where(seg_masks[p], jnp.log(s) + seg_max[p], lse_full)
    out_ref[...] = logits - lse_full                      # single unmasked store


# -------------------------- parameter construction ---------------------------

def init_vae_params(key, latent_dim, max_len, vocab_len):
    """Deterministic PyTorch-style (uniform fan-in) init.  Weights are stored as
    bfloat16 (the kernel is weight-DMA bound, so halving weight bytes ~halves wall
    time); biases / LayerNorm affine params stay f32."""
    V = max_len * vocab_len

    def linear_init(key, fan_in, fan_out):
        kw, kb = jax.random.split(key)
        bound = 1.0 / jnp.sqrt(float(fan_in))
        w = jax.random.uniform(kw, (fan_in, fan_out), jnp.float32, -bound, bound)
        b = jax.random.uniform(kb, (fan_out,), jnp.float32, -bound, bound)
        return w.astype(jnp.bfloat16), b

    k1, k2, k3, k4 = jax.random.split(key, 4)
    w1, b1 = linear_init(k1, latent_dim, _H1_VALID)
    w2, b2 = linear_init(k2, _H1_VALID, _H1_VALID)
    w3, b3 = linear_init(k3, _H1_VALID, _H3_VALID)
    w4, b4 = linear_init(k4, _H3_VALID, V)
    ones = lambda n: jnp.ones((n,), jnp.float32)
    zeros = lambda n: jnp.zeros((n,), jnp.float32)
    return dict(w1=w1, b1=b1, g1=ones(_H1_VALID), be1=zeros(_H1_VALID),
                w2=w2, b2=b2, g2=ones(_H1_VALID), be2=zeros(_H1_VALID),
                w3=w3, b3=b3, w4=w4, b4=b4)


def _pad2d(a, rows, cols):
    return jnp.pad(a, ((0, rows - a.shape[0]), (0, cols - a.shape[1])))


def _pad_row(a, cols):
    a = a.reshape(1, -1)
    return jnp.pad(a, ((0, 0), (0, cols - a.shape[1])))


def _prepare_padded_params(params, latent_dim, v_pad):
    """Zero-pad hidden dims to lane-dense 1024/2048 and V to a 128 multiple.
    Zero padding (weights, biases, gamma, beta) is what keeps padded activation
    columns exactly 0, which the in-kernel LayerNorm masking relies on."""
    p = params
    return dict(
        w1=_pad2d(p["w1"], latent_dim, _H1),
        b1=_pad_row(p["b1"], _H1), g1=_pad_row(p["g1"], _H1), be1=_pad_row(p["be1"], _H1),
        w2=_pad2d(p["w2"], _H1, _H1),
        b2=_pad_row(p["b2"], _H1), g2=_pad_row(p["g2"], _H1), be2=_pad_row(p["be2"], _H1),
        w3=_pad2d(p["w3"], _H1, _H3), b3=_pad_row(p["b3"], _H3),
        w4=_pad2d(p["w4"], _H3, v_pad), b4=_pad_row(p["b4"], v_pad),
    )


# --------------------------------- forward -----------------------------------

def vae_forward(x, params, eps_key, *, latent_dim, max_len, vocab_len):
    """Mirrors VAE.forward: returns (log_probs, z, mu, log_var)."""
    V = max_len * vocab_len
    Vp = ((V + 127) // 128) * 128          # lane-dense logits / output tile

    xr = x.reshape(-1, 2, latent_dim)
    mu, log_var = xr[:, 0, :], xr[:, 1, :]
    B = mu.shape[0]

    # torch.randn_like(std) -> deterministic normal noise; reparameterization is a
    # tiny elementwise op, kept in XLA so the kernel gets one dense input.
    eps = jax.random.normal(eps_key, (B, latent_dim), jnp.float32)
    z = mu + eps * jnp.exp(0.5 * log_var)

    pp = _prepare_padded_params(params, latent_dim, Vp)

    # Batch tile: sublane multiple; 256 fills the 256-wide MXU on v6e/v7x when the
    # batch is large enough, 128 otherwise (v5e's MXU is 128 wide).
    if B >= 256:
        TM = 256
    elif B > 64:
        TM = 128
    else:
        TM = max(8, ((B + 7) // 8) * 8)
    Bp = ((B + TM - 1) // TM) * TM
    z_p = jnp.pad(z, ((0, Bp - B), (0, 0)))

    kernel = functools.partial(_vae_decoder_kernel, max_len=max_len,
                               vocab_len=vocab_len, ln_valid=_H1_VALID)

    row_map = lambda i: (i, 0)             # activation/output tiles advance with grid
    const_map = lambda i: (0, 0)           # small weights: same block -> DMA'd once
    ordered = ("w1", "b1", "g1", "be1", "w2", "b2", "g2", "be2",
               "w3", "b3", "w4", "b4")
    operands = [z_p] + [pp[k] for k in ordered]

    def spec_for(name):
        if name in ("w3", "w4"):
            # Big weights stay in HBM; the kernel DMAs them once into persistent
            # VMEM scratch, overlapped with layer-1/2 compute (single-buffered).
            return pl.BlockSpec(memory_space=pl.ANY)
        return pl.BlockSpec(pp[name].shape, const_map)

    in_specs = [pl.BlockSpec((TM, latent_dim), row_map)] + [spec_for(k) for k in ordered]
    out_specs = pl.BlockSpec((TM, Vp), row_map)

    # Explicit VMEM accounting: 2x (double-buffered) pipelined params + IO tiles,
    # 1x w3/w4 scratch, generous headroom for f32 intermediates.  Never below the
    # 32 MiB default; capped at 48 MiB (v7x has 64 MiB physical VMEM per core).
    nbytes = lambda a: int(a.size) * jnp.dtype(a.dtype).itemsize
    pipelined_bytes = sum(nbytes(pp[k]) for k in ordered if k not in ("w3", "w4"))
    io_bytes = TM * latent_dim * 4 + TM * Vp * 4
    scratch_bytes = nbytes(pp["w3"]) + nbytes(pp["w4"])
    act_bytes = 8 * TM * _H3 * 4
    vmem_limit = 2 * (pipelined_bytes + io_bytes) + scratch_bytes + act_bytes + (4 << 20)
    vmem_limit = int(min(48 << 20, max(32 << 20, vmem_limit)))

    out = pl.pallas_call(
        kernel,
        grid=(Bp // TM,),
        in_specs=in_specs,
        out_specs=out_specs,
        out_shape=jax.ShapeDtypeStruct((Bp, Vp), jnp.float32),
        scratch_shapes=[
            pltpu.VMEM((_H1, _H3), jnp.bfloat16),   # w3 resident copy
            pltpu.VMEM((_H3, Vp), jnp.bfloat16),    # w4 resident copy
            pltpu.SemaphoreType.DMA((2,)),
        ],
        compiler_params=pltpu.CompilerParams(
            # Sequential single-core grid: weight-DMA bound at these sizes, and it
            # makes the program_id==0-guarded one-shot weight prefetch sound.
            dimension_semantics=("arbitrary",),
            vmem_limit_bytes=vmem_limit),
    )(*operands)

    return out[:B, :V], z, mu, log_var


# ------------------------------ pure-JAX reference ---------------------------

def _reference_forward(x, params, eps_key, *, latent_dim, max_len, vocab_len):
    """Reference mirroring the kernel numerics (bf16 weights and bf16 matmul
    inputs with f32 accumulation, same as the MXU path; f32 LN/softmax)."""
    bf16 = jnp.bfloat16
    dot = lambda a, w: jnp.dot(a.astype(bf16), w.astype(bf16),
                               preferred_element_type=jnp.float32)
    p = params
    xr = x.reshape(-1, 2, latent_dim)
    mu, log_var = xr[:, 0, :], xr[:, 1, :]
    eps = jax.random.normal(eps_key, mu.shape, jnp.float32)
    z = mu + eps * jnp.exp(0.5 * log_var)

    def ln(h, g, b):
        m = jnp.mean(h, axis=-1, keepdims=True)
        v = jnp.mean((h - m) ** 2, axis=-1, keepdims=True)
        return (h - m) * jax.lax.rsqrt(v + _LN_EPS) * g + b

    h = jnp.maximum(ln(dot(z, p["w1"]) + p["b1"], p["g1"], p["be1"]), 0.0)
    h = jnp.maximum(ln(dot(h, p["w2"]) + p["b2"], p["g2"], p["be2"]), 0.0)
    h = jnp.maximum(dot(h, p["w3"]) + p["b3"], 0.0)
    logits = (dot(h, p["w4"]) + p["b4"]).reshape(-1, max_len, vocab_len)
    out = jax.nn.log_softmax(logits, axis=2).reshape(-1, max_len * vocab_len)
    return out, z, mu, log_var


if __name__ == "__main__":
    latent_dim, max_len, vocab_len, batch = 32, 8, 16, 2

    key = jax.random.PRNGKey(0)
    k_params, k_x, k_eps = jax.random.split(key, 3)

    params = init_vae_params(k_params, latent_dim, max_len, vocab_len)
    x = jax.random.normal(k_x, (batch, 2 * latent_dim), jnp.float32)

    out, z, mu, log_var = vae_forward(
        x, params, k_eps, latent_dim=latent_dim, max_len=max_len, vocab_len=vocab_len)
    jax.block_until_ready((out, z, mu, log_var))

    ref_out, ref_z, ref_mu, ref_lv = _reference_forward(
        x, params, k_eps, latent_dim=latent_dim, max_len=max_len, vocab_len=vocab_len)

    assert out.shape == (batch, max_len * vocab_len)
    assert z.shape == (batch, latent_dim)
    assert jnp.allclose(out, ref_out, atol=2e-3, rtol=2e-3), \
        float(jnp.max(jnp.abs(out - ref_out)))
    assert jnp.allclose(z, ref_z, atol=1e-6, rtol=1e-6)
    assert jnp.allclose(mu, ref_mu) and jnp.allclose(log_var, ref_lv)

    print("KERNEL_OK")
</pallas_src>

<mosaic_0001>
module attributes {stable_mosaic.version = 11 : i64} {
  func.func @_vae_decoder_kernel(%arg0: i32, %arg1: memref<8x32xf32, #tpu.memory_space<vmem>>, %arg2: memref<32x1024xbf16, #tpu.memory_space<vmem>>, %arg3: memref<1x1024xf32, #tpu.memory_space<vmem>>, %arg4: memref<1x1024xf32, #tpu.memory_space<vmem>>, %arg5: memref<1x1024xf32, #tpu.memory_space<vmem>>, %arg6: memref<1024x1024xbf16, #tpu.memory_space<vmem>>, %arg7: memref<1x1024xf32, #tpu.memory_space<vmem>>, %arg8: memref<1x1024xf32, #tpu.memory_space<vmem>>, %arg9: memref<1x1024xf32, #tpu.memory_space<vmem>>, %arg10: memref<1024x2048xbf16, #tpu.memory_space<any>>, %arg11: memref<1x2048xf32, #tpu.memory_space<vmem>>, %arg12: memref<2048x128xbf16, #tpu.memory_space<any>>, %arg13: memref<1x128xf32, #tpu.memory_space<vmem>>, %arg14: memref<8x128xf32, #tpu.memory_space<vmem>>, %arg15: memref<1024x2048xbf16, #tpu.memory_space<vmem>>, %arg16: memref<2048x128xbf16, #tpu.memory_space<vmem>>, %arg17: memref<2x!tpu.dma_semaphore, #tpu.memory_space<semaphore_mem>>) attributes {dimension_semantics = [#tpu.dimension_semantics<arbitrary>], iteration_bounds = array<i64: 1>, scalar_prefetch = 0 : i64, scratch_operands = 3 : i64, tpu.core_type = #tpu.core_type<tc>, window_params = [{transform_indices = @transform_0, window_bounds = array<i64: 8, 32>}, {pipeline_mode = #tpu.pipeline_mode<synchronous>, transform_indices = @transform_1, window_bounds = array<i64: 32, 1024>}, {pipeline_mode = #tpu.pipeline_mode<synchronous>, transform_indices = @transform_2, window_bounds = array<i64: 1, 1024>}, {pipeline_mode = #tpu.pipeline_mode<synchronous>, transform_indices = @transform_3, window_bounds = array<i64: 1, 1024>}, {pipeline_mode = #tpu.pipeline_mode<synchronous>, transform_indices = @transform_4, window_bounds = array<i64: 1, 1024>}, {pipeline_mode = #tpu.pipeline_mode<synchronous>, transform_indices = @transform_5, window_bounds = array<i64: 1024, 1024>}, {pipeline_mode = #tpu.pipeline_mode<synchronous>, transform_indices = @transform_6, window_bounds = array<i64: 1, 1024>}, {pipeline_mode = #tpu.pipeline_mode<synchronous>, transform_indices = @transform_7, window_bounds = array<i64: 1, 1024>}, {pipeline_mode = #tpu.pipeline_mode<synchronous>, transform_indices = @transform_8, window_bounds = array<i64: 1, 1024>}, {}, {pipeline_mode = #tpu.pipeline_mode<synchronous>, transform_indices = @transform_10, window_bounds = array<i64: 1, 2048>}, {}, {pipeline_mode = #tpu.pipeline_mode<synchronous>, transform_indices = @transform_12, window_bounds = array<i64: 1, 128>}, {transform_indices = @transform_13, window_bounds = array<i64: 8, 128>}]} {
    %c0_i32 = arith.constant 0 : i32
    %0 = arith.cmpi eq, %arg0, %c0_i32 : i32
    %1 = arith.extui %0 : i1 to i32
    %c0_i32_0 = arith.constant 0 : i32
    %2 = arith.cmpi ne, %1, %c0_i32_0 : i32
    scf.if %2 {
      %c0_i32_74 = arith.constant 0 : i32
      %248 = tpu.memref_slice %arg17[%c0_i32_74] : memref<2x!tpu.dma_semaphore, #tpu.memory_space<semaphore_mem>> -> memref<1x!tpu.dma_semaphore, #tpu.memory_space<semaphore_mem>>
      %249 = tpu.memref_squeeze %248 : memref<1x!tpu.dma_semaphore, #tpu.memory_space<semaphore_mem>> -> memref<!tpu.dma_semaphore, #tpu.memory_space<semaphore_mem>>
      tpu.enqueue_dma source(%arg10 : memref<1024x2048xbf16, #tpu.memory_space<any>>) target(%arg15 : memref<1024x2048xbf16, #tpu.memory_space<vmem>>) target_semaphore(%249 : memref<!tpu.dma_semaphore, #tpu.memory_space<semaphore_mem>>)
      %c1_i32 = arith.constant 1 : i32
      %250 = tpu.memref_slice %arg17[%c1_i32] : memref<2x!tpu.dma_semaphore, #tpu.memory_space<semaphore_mem>> -> memref<1x!tpu.dma_semaphore, #tpu.memory_space<semaphore_mem>>
      %251 = tpu.memref_squeeze %250 : memref<1x!tpu.dma_semaphore, #tpu.memory_space<semaphore_mem>> -> memref<!tpu.dma_semaphore, #tpu.memory_space<semaphore_mem>>
      tpu.enqueue_dma source(%arg12 : memref<2048x128xbf16, #tpu.memory_space<any>>) target(%arg16 : memref<2048x128xbf16, #tpu.memory_space<vmem>>) target_semaphore(%251 : memref<!tpu.dma_semaphore, #tpu.memory_space<semaphore_mem>>)
    } else {
    }
    %c0 = arith.constant 0 : index
    %c0_1 = arith.constant 0 : index
    %3 = vector.load %arg1[%c0, %c0_1] : memref<8x32xf32, #tpu.memory_space<vmem>>, vector<8x32xf32>
    %4 = tpu.iota {dimensions = array<i32: 1>} : vector<8x1024xi32>
    %c1000_i32 = arith.constant 1000 : i32
    %5 = vector.broadcast %c1000_i32 : i32 to vector<8x1024xi32>
    %6 = arith.cmpi slt, %4, %5 : vector<8x1024xi32>
    %c0_2 = arith.constant 0 : index
    %c0_3 = arith.constant 0 : index
    %7 = vector.load %arg2[%c0_2, %c0_3] : memref<32x1024xbf16, #tpu.memory_space<vmem>>, vector<32x1024xbf16>
    %c0_4 = arith.constant 0 : index
    %c0_5 = arith.constant 0 : index
    %8 = vector.load %arg3[%c0_4, %c0_5] : memref<1x1024xf32, #tpu.memory_space<vmem>>, vector<1x1024xf32>
    %9 = arith.truncf %3 : vector<8x32xf32> to vector<8x32xbf16>
    %cst = arith.constant dense<0.000000e+00> : vector<8x1024xf32>
    %10 = tpu.matmul %9, %7, %cst {dimension_numbers = #tpu.dot_dimension_numbers<[1], [0], [0], [1], [0, 0, 1, 1], [], []>} : vector<8x32xbf16>, vector<32x1024xbf16>, vector<8x1024xf32> -> vector<8x1024xf32>
    %11 = vector.broadcast %8 : vector<1x1024xf32> to vector<8x1024xf32>
    %12 = arith.addf %10, %11 : vector<8x1024xf32>
    %c0_6 = arith.constant 0 : index
    %c0_7 = arith.constant 0 : index
    %13 = vector.load %arg4[%c0_6, %c0_7] : memref<1x1024xf32, #tpu.memory_space<vmem>>, vector<1x1024xf32>
    %c0_8 = arith.constant 0 : index
    %c0_9 = arith.constant 0 : index
    %14 = vector.load %arg5[%c0_8, %c0_9] : memref<1x1024xf32, #tpu.memory_space<vmem>>, vector<1x1024xf32>
    %cst_10 = arith.constant dense<0.000000e+00> : vector<8xf32>
    %15 = vector.multi_reduction <add>, %12, %cst_10 [1] : vector<8x1024xf32> to vector<8xf32>
    %16 = vector.shape_cast %15 : vector<8xf32> to vector<8x1xf32>
    %cst_11 = arith.constant 1.000000e-03 : f32
    %17 = vector.broadcast %cst_11 : f32 to vector<8x1xf32>
    %18 = arith.mulf %16, %17 : vector<8x1xf32>
    %19 = vector.broadcast %18 : vector<8x1xf32> to vector<8x1024xf32>
    %20 = arith.subf %12, %19 : vector<8x1024xf32>
    %cst_12 = arith.constant 0.000000e+00 : f32
    %21 = vector.broadcast %cst_12 : f32 to vector<8x1024xf32>
    %22 = arith.select %6, %20, %21 : vector<8x1024xi1>, vector<8x1024xf32>
    %23 = arith.mulf %22, %22 : vector<8x1024xf32>
    %cst_13 = arith.constant dense<0.000000e+00> : vector<8xf32>
    %24 = vector.multi_reduction <add>, %23, %cst_13 [1] : vector<8x1024xf32> to vector<8xf32>
    %25 = vector.shape_cast %24 : vector<8xf32> to vector<8x1xf32>
    %cst_14 = arith.constant 1.000000e-03 : f32
    %26 = vector.broadcast %cst_14 : f32 to vector<8x1xf32>
    %27 = arith.mulf %25, %26 : vector<8x1xf32>
    %cst_15 = arith.constant 9.99999996E-13 : f32
    %28 = vector.broadcast %cst_15 : f32 to vector<8x1xf32>
    %29 = arith.addf %27, %28 : vector<8x1xf32>
    %30 = math.rsqrt %29 : vector<8x1xf32>
    %31 = vector.broadcast %30 : vector<8x1xf32> to vector<8x1024xf32>
    %32 = arith.mulf %22, %31 : vector<8x1024xf32>
    %33 = vector.broadcast %13 : vector<1x1024xf32> to vector<8x1024xf32>
    %34 = arith.mulf %32, %33 : vector<8x1024xf32>
    %35 = vector.broadcast %14 : vector<1x1024xf32> to vector<8x1024xf32>
    %36 = arith.addf %34, %35 : vector<8x1024xf32>
    %cst_16 = arith.constant 0.000000e+00 : f32
    %37 = vector.broadcast %cst_16 : f32 to vector<8x1024xf32>
    %38 = arith.maximumf %36, %37 : vector<8x1024xf32>
    %c0_17 = arith.constant 0 : index
    %c0_18 = arith.constant 0 : index
    %39 = vector.load %arg6[%c0_17, %c0_18] : memref<1024x1024xbf16, #tpu.memory_space<vmem>>, vector<1024x1024xbf16>
    %c0_19 = arith.constant 0 : index
    %c0_20 = arith.constant 0 : index
    %40 = vector.load %arg7[%c0_19, %c0_20] : memref<1x1024xf32, #tpu.memory_space<vmem>>, vector<1x1024xf32>
    %41 = arith.truncf %38 : vector<8x1024xf32> to vector<8x1024xbf16>
    %cst_21 = arith.constant dense<0.000000e+00> : vector<8x1024xf32>
    %42 = tpu.matmul %41, %39, %cst_21 {dimension_numbers = #tpu.dot_dimension_numbers<[1], [0], [0], [1], [0, 0, 1, 1], [], []>} : vector<8x1024xbf16>, vector<1024x1024xbf16>, vector<8x1024xf32> -> vector<8x1024xf32>
    %43 = vector.broadcast %40 : vector<1x1024xf32> to vector<8x1024xf32>
    %44 = arith.addf %42, %43 : vector<8x1024xf32>
    %c0_22 = arith.constant 0 : index
    %c0_23 = arith.constant 0 : index
    %45 = vector.load %arg8[%c0_22, %c0_23] : memref<1x1024xf32, #tpu.memory_space<vmem>>, vector<1x1024xf32>
    %c0_24 = arith.constant 0 : index
    %c0_25 = arith.constant 0 : index
    %46 = vector.load %arg9[%c0_24, %c0_25] : memref<1x1024xf32, #tpu.memory_space<vmem>>, vector<1x1024xf32>
    %cst_26 = arith.constant dense<0.000000e+00> : vector<8xf32>
    %47 = vector.multi_reduction <add>, %44, %cst_26 [1] : vector<8x1024xf32> to vector<8xf32>
    %48 = vector.shape_cast %47 : vector<8xf32> to vector<8x1xf32>
    %cst_27 = arith.constant 1.000000e-03 : f32
    %49 = vector.broadcast %cst_27 : f32 to vector<8x1xf32>
    %50 = arith.mulf %48, %49 : vector<8x1xf32>
    %51 = vector.broadcast %50 : vector<8x1xf32> to vector<8x1024xf32>
    %52 = arith.subf %44, %51 : vector<8x1024xf32>
    %cst_28 = arith.constant 0.000000e+00 : f32
    %53 = vector.broadcast %cst_28 : f32 to vector<8x1024xf32>
    %54 = arith.select %6, %52, %53 : vector<8x1024xi1>, vector<8x1024xf32>
    %55 = arith.mulf %54, %54 : vector<8x1024xf32>
    %cst_29 = arith.constant dense<0.000000e+00> : vector<8xf32>
    %56 = vector.multi_reduction <add>, %55, %cst_29 [1] : vector<8x1024xf32> to vector<8xf32>
    %57 = vector.shape_cast %56 : vector<8xf32> to vector<8x1xf32>
    %cst_30 = arith.constant 1.000000e-03 : f32
    %58 = vector.broadcast %cst_30 : f32 to vector<8x1xf32>
    %59 = arith.mulf %57, %58 : vector<8x1xf32>
    %cst_31 = arith.constant 9.99999996E-13 : f32
    %60 = vector.broadcast %cst_31 : f32 to vector<8x1xf32>
    %61 = arith.addf %59, %60 : vector<8x1xf32>
    %62 = math.rsqrt %61 : vector<8x1xf32>
    %63 = vector.broadcast %62 : vector<8x1xf32> to vector<8x1024xf32>
    %64 = arith.mulf %54, %63 : vector<8x1024xf32>
    %65 = vector.broadcast %45 : vector<1x1024xf32> to vector<8x1024xf32>
    %66 = arith.mulf %64, %65 : vector<8x1024xf32>
    %67 = vector.broadcast %46 : vector<1x1024xf32> to vector<8x1024xf32>
    %68 = arith.addf %66, %67 : vector<8x1024xf32>
    %cst_32 = arith.constant 0.000000e+00 : f32
    %69 = vector.broadcast %cst_32 : f32 to vector<8x1024xf32>
    %70 = arith.maximumf %68, %69 : vector<8x1024xf32>
    %71 = arith.extui %0 : i1 to i32
    %c0_i32_33 = arith.constant 0 : i32
    %72 = arith.cmpi ne, %71, %c0_i32_33 : i32
    scf.if %72 {
      %c0_i32_74 = arith.constant 0 : i32
      %248 = tpu.memref_slice %arg17[%c0_i32_74] : memref<2x!tpu.dma_semaphore, #tpu.memory_space<semaphore_mem>> -> memref<1x!tpu.dma_semaphore, #tpu.memory_space<semaphore_mem>>
      %249 = tpu.memref_squeeze %248 : memref<1x!tpu.dma_semaphore, #tpu.memory_space<semaphore_mem>> -> memref<!tpu.dma_semaphore, #tpu.memory_space<semaphore_mem>>
      tpu.wait_dma2 semaphore(%249 : memref<!tpu.dma_semaphore, #tpu.memory_space<semaphore_mem>>) src(%arg10 : memref<1024x2048xbf16, #tpu.memory_space<any>>) dst(%arg15 : memref<1024x2048xbf16, #tpu.memory_space<vmem>>)
    } else {
    }
    %c0_34 = arith.constant 0 : index
    %c0_35 = arith.constant 0 : index
    %73 = vector.load %arg15[%c0_34, %c0_35] : memref<1024x2048xbf16, #tpu.memory_space<vmem>>, vector<1024x2048xbf16>
    %c0_36 = arith.constant 0 : index
    %c0_37 = arith.constant 0 : index
    %74 = vector.load %arg11[%c0_36, %c0_37] : memref<1x2048xf32, #tpu.memory_space<vmem>>, vector<1x2048xf32>
    %75 = arith.truncf %70 : vector<8x1024xf32> to vector<8x1024xbf16>
    %cst_38 = arith.constant dense<0.000000e+00> : vector<8x2048xf32>
    %76 = tpu.matmul %75, %73, %cst_38 {dimension_numbers = #tpu.dot_dimension_numbers<[1], [0], [0], [1], [0, 0, 1, 1], [], []>} : vector<8x1024xbf16>, vector<1024x2048xbf16>, vector<8x2048xf32> -> vector<8x2048xf32>
    %77 = vector.broadcast %74 : vector<1x2048xf32> to vector<8x2048xf32>
    %78 = arith.addf %76, %77 : vector<8x2048xf32>
    %cst_39 = arith.constant 0.000000e+00 : f32
    %79 = vector.broadcast %cst_39 : f32 to vector<8x2048xf32>
    %80 = arith.maximumf %78, %79 : vector<8x2048xf32>
    %81 = arith.extui %0 : i1 to i32
    %c0_i32_40 = arith.constant 0 : i32
    %82 = arith.cmpi ne, %81, %c0_i32_40 : i32
    scf.if %82 {
      %c1_i32 = arith.constant 1 : i32
      %248 = tpu.memref_slice %arg17[%c1_i32] : memref<2x!tpu.dma_semaphore, #tpu.memory_space<semaphore_mem>> -> memref<1x!tpu.dma_semaphore, #tpu.memory_space<semaphore_mem>>
      %249 = tpu.memref_squeeze %248 : memref<1x!tpu.dma_semaphore, #tpu.memory_space<semaphore_mem>> -> memref<!tpu.dma_semaphore, #tpu.memory_space<semaphore_mem>>
      tpu.wait_dma2 semaphore(%249 : memref<!tpu.dma_semaphore, #tpu.memory_space<semaphore_mem>>) src(%arg12 : memref<2048x128xbf16, #tpu.memory_space<any>>) dst(%arg16 : memref<2048x128xbf16, #tpu.memory_space<vmem>>)
    } else {
    }
    %c0_41 = arith.constant 0 : index
    %c0_42 = arith.constant 0 : index
    %83 = vector.load %arg16[%c0_41, %c0_42] : memref<2048x128xbf16, #tpu.memory_space<vmem>>, vector<2048x128xbf16>
    %c0_43 = arith.constant 0 : index
    %c0_44 = arith.constant 0 : index
    %84 = vector.load %arg13[%c0_43, %c0_44] : memref<1x128xf32, #tpu.memory_space<vmem>>, vector<1x128xf32>
    %85 = arith.truncf %80 : vector<8x2048xf32> to vector<8x2048xbf16>
    %cst_45 = arith.constant dense<0.000000e+00> : vector<8x128xf32>
    %86 = tpu.matmul %85, %83, %cst_45 {dimension_numbers = #tpu.dot_dimension_numbers<[1], [0], [0], [1], [0, 0, 1, 1], [], []>} : vector<8x2048xbf16>, vector<2048x128xbf16>, vector<8x128xf32> -> vector<8x128xf32>
    %87 = vector.broadcast %84 : vector<1x128xf32> to vector<8x128xf32>
    %88 = arith.addf %86, %87 : vector<8x128xf32>
    %89 = tpu.iota {dimensions = array<i32: 1>} : vector<8x128xi32>
    %c0_i32_46 = arith.constant 0 : i32
    %90 = vector.broadcast %c0_i32_46 : i32 to vector<8x128xi32>
    %91 = arith.cmpi sge, %89, %90 : vector<8x128xi32>
    %c16_i32 = arith.constant 16 : i32
    %92 = vector.broadcast %c16_i32 : i32 to vector<8x128xi32>
    %93 = arith.cmpi slt, %89, %92 : vector<8x128xi32>
    %94 = arith.andi %91, %93 : vector<8x128xi1>
    %c16_i32_47 = arith.constant 16 : i32
    %95 = vector.broadcast %c16_i32_47 : i32 to vector<8x128xi32>
    %96 = arith.cmpi sge, %89, %95 : vector<8x128xi32>
    %c32_i32 = arith.constant 32 : i32
    %97 = vector.broadcast %c32_i32 : i32 to vector<8x128xi32>
    %98 = arith.cmpi slt, %89, %97 : vector<8x128xi32>
    %99 = arith.andi %96, %98 : vector<8x128xi1>
    %c32_i32_48 = arith.constant 32 : i32
    %100 = vector.broadcast %c32_i32_48 : i32 to vector<8x128xi32>
    %101 = arith.cmpi sge, %89, %100 : vector<8x128xi32>
    %c48_i32 = arith.constant 48 : i32
    %102 = vector.broadcast %c48_i32 : i32 to vector<8x128xi32>
    %103 = arith.cmpi slt, %89, %102 : vector<8x128xi32>
    %104 = arith.andi %101, %103 : vector<8x128xi1>
    %c48_i32_49 = arith.constant 48 : i32
    %105 = vector.broadcast %c48_i32_49 : i32 to vector<8x128xi32>
    %106 = arith.cmpi sge, %89, %105 : vector<8x128xi32>
    %c64_i32 = arith.constant 64 : i32
    %107 = vector.broadcast %c64_i32 : i32 to vector<8x128xi32>
    %108 = arith.cmpi slt, %89, %107 : vector<8x128xi32>
    %109 = arith.andi %106, %108 : vector<8x128xi1>
    %c64_i32_50 = arith.constant 64 : i32
    %110 = vector.broadcast %c64_i32_50 : i32 to vector<8x128xi32>
    %111 = arith.cmpi sge, %89, %110 : vector<8x128xi32>
    %c80_i32 = arith.constant 80 : i32
    %112 = vector.broadcast %c80_i32 : i32 to vector<8x128xi32>
    %113 = arith.cmpi slt, %89, %112 : vector<8x128xi32>
    %114 = arith.andi %111, %113 : vector<8x128xi1>
    %c80_i32_51 = arith.constant 80 : i32
    %115 = vector.broadcast %c80_i32_51 : i32 to vector<8x128xi32>
    %116 = arith.cmpi sge, %89, %115 : vector<8x128xi32>
    %c96_i32 = arith.constant 96 : i32
    %117 = vector.broadcast %c96_i32 : i32 to vector<8x128xi32>
    %118 = arith.cmpi slt, %89, %117 : vector<8x128xi32>
    %119 = arith.andi %116, %118 : vector<8x128xi1>
    %c96_i32_52 = arith.constant 96 : i32
    %120 = vector.broadcast %c96_i32_52 : i32 to vector<8x128xi32>
    %121 = arith.cmpi sge, %89, %120 : vector<8x128xi32>
    %c112_i32 = arith.constant 112 : i32
    %122 = vector.broadcast %c112_i32 : i32 to vector<8x128xi32>
    %123 = arith.cmpi slt, %89, %122 : vector<8x128xi32>
    %124 = arith.andi %121, %123 : vector<8x128xi1>
    %c112_i32_53 = arith.constant 112 : i32
    %125 = vector.broadcast %c112_i32_53 : i32 to vector<8x128xi32>
    %126 = arith.cmpi sge, %89, %125 : vector<8x128xi32>
    %c128_i32 = arith.constant 128 : i32
    %127 = vector.broadcast %c128_i32 : i32 to vector<8x128xi32>
    %128 = arith.cmpi slt, %89, %127 : vector<8x128xi32>
    %129 = arith.andi %126, %128 : vector<8x128xi1>
    %cst_54 = arith.constant 0.000000e+00 : f32
    %130 = vector.broadcast %cst_54 : f32 to vector<8x128xf32>
    %131 = vector.extract_strided_slice %88 {offsets = [0, 0], sizes = [8, 16], strides = [1, 1]} : vector<8x128xf32> to vector<8x16xf32>
    %cst_55 = arith.constant dense<0xFF800000> : vector<8xf32>
    %132 = vector.multi_reduction <maximumf>, %131, %cst_55 [1] : vector<8x16xf32> to vector<8xf32>
    %133 = vector.shape_cast %132 : vector<8xf32> to vector<8x1xf32>
    %134 = vector.shape_cast %133 : vector<8x1xf32> to vector<8x1xf32>
    %135 = vector.broadcast %134 : vector<8x1xf32> to vector<8x128xf32>
    %136 = arith.select %94, %135, %130 : vector<8x128xi1>, vector<8x128xf32>
    %137 = vector.extract_strided_slice %88 {offsets = [0, 16], sizes = [8, 16], strides = [1, 1]} : vector<8x128xf32> to vector<8x16xf32>
    %cst_56 = arith.constant dense<0xFF800000> : vector<8xf32>
    %138 = vector.multi_reduction <maximumf>, %137, %cst_56 [1] : vector<8x16xf32> to vector<8xf32>
    %139 = vector.shape_cast %138 : vector<8xf32> to vector<8x1xf32>
    %140 = vector.shape_cast %139 : vector<8x1xf32> to vector<8x1xf32>
    %141 = vector.broadcast %140 : vector<8x1xf32> to vector<8x128xf32>
    %142 = arith.select %99, %141, %136 : vector<8x128xi1>, vector<8x128xf32>
    %143 = vector.extract_strided_slice %88 {offsets = [0, 32], sizes = [8, 16], strides = [1, 1]} : vector<8x128xf32> to vector<8x16xf32>
    %cst_57 = arith.constant dense<0xFF800000> : vector<8xf32>
    %144 = vector.multi_reduction <maximumf>, %143, %cst_57 [1] : vector<8x16xf32> to vector<8xf32>
    %145 = vector.shape_cast %144 : vector<8xf32> to vector<8x1xf32>
    %146 = vector.shape_cast %145 : vector<8x1xf32> to vector<8x1xf32>
    %147 = vector.broadcast %146 : vector<8x1xf32> to vector<8x128xf32>
    %148 = arith.select %104, %147, %142 : vector<8x128xi1>, vector<8x128xf32>
    %149 = vector.extract_strided_slice %88 {offsets = [0, 48], sizes = [8, 16], strides = [1, 1]} : vector<8x128xf32> to vector<8x16xf32>
    %cst_58 = arith.constant dense<0xFF800000> : vector<8xf32>
    %150 = vector.multi_reduction <maximumf>, %149, %cst_58 [1] : vector<8x16xf32> to vector<8xf32>
    %151 = vector.shape_cast %150 : vector<8xf32> to vector<8x1xf32>
    %152 = vector.shape_cast %151 : vector<8x1xf32> to vector<8x1xf32>
    %153 = vector.broadcast %152 : vector<8x1xf32> to vector<8x128xf32>
    %154 = arith.select %109, %153, %148 : vector<8x128xi1>, vector<8x128xf32>
    %155 = vector.extract_strided_slice %88 {offsets = [0, 64], sizes = [8, 16], strides = [1, 1]} : vector<8x128xf32> to vector<8x16xf32>
    %cst_59 = arith.constant dense<0xFF800000> : vector<8xf32>
    %156 = vector.multi_reduction <maximumf>, %155, %cst_59 [1] : vector<8x16xf32> to vector<8xf32>
    %157 = vector.shape_cast %156 : vector<8xf32> to vector<8x1xf32>
    %158 = vector.shape_cast %157 : vector<8x1xf32> to vector<8x1xf32>
    %159 = vector.broadcast %158 : vector<8x1xf32> to vector<8x128xf32>
    %160 = arith.select %114, %159, %154 : vector<8x128xi1>, vector<8x128xf32>
    %161 = vector.extract_strided_slice %88 {offsets = [0, 80], sizes = [8, 16], strides = [1, 1]} : vector<8x128xf32> to vector<8x16xf32>
    %cst_60 = arith.constant dense<0xFF800000> : vector<8xf32>
    %162 = vector.multi_reduction <maximumf>, %161, %cst_60 [1] : vector<8x16xf32> to vector<8xf32>
    %163 = vector.shape_cast %162 : vector<8xf32> to vector<8x1xf32>
    %164 = vector.shape_cast %163 : vector<8x1xf32> to vector<8x1xf32>
    %165 = vector.broadcast %164 : vector<8x1xf32> to vector<8x128xf32>
    %166 = arith.select %119, %165, %160 : vector<8x128xi1>, vector<8x128xf32>
    %167 = vector.extract_strided_slice %88 {offsets = [0, 96], sizes = [8, 16], strides = [1, 1]} : vector<8x128xf32> to vector<8x16xf32>
    %cst_61 = arith.constant dense<0xFF800000> : vector<8xf32>
    %168 = vector.multi_reduction <maximumf>, %167, %cst_61 [1] : vector<8x16xf32> to vector<8xf32>
    %169 = vector.shape_cast %168 : vector<8xf32> to vector<8x1xf32>
    %170 = vector.shape_cast %169 : vector<8x1xf32> to vector<8x1xf32>
    %171 = vector.broadcast %170 : vector<8x1xf32> to vector<8x128xf32>
    %172 = arith.select %124, %171, %166 : vector<8x128xi1>, vector<8x128xf32>
    %173 = vector.extract_strided_slice %88 {offsets = [0, 112], sizes = [8, 16], strides = [1, 1]} : vector<8x128xf32> to vector<8x16xf32>
    %cst_62 = arith.constant dense<0xFF800000> : vector<8xf32>
    %174 = vector.multi_reduction <maximumf>, %173, %cst_62 [1] : vector<8x16xf32> to vector<8xf32>
    %175 = vector.shape_cast %174 : vector<8xf32> to vector<8x1xf32>
    %176 = vector.shape_cast %175 : vector<8x1xf32> to vector<8x1xf32>
    %177 = vector.broadcast %176 : vector<8x1xf32> to vector<8x128xf32>
    %178 = arith.select %129, %177, %172 : vector<8x128xi1>, vector<8x128xf32>
    %179 = arith.subf %88, %178 : vector<8x128xf32>
    %180 = math.exp %179 : vector<8x128xf32>
    %cst_63 = arith.constant 0.000000e+00 : f32
    %181 = vector.broadcast %cst_63 : f32 to vector<8x128xf32>
    %182 = vector.extract_strided_slice %180 {offsets = [0, 0], sizes = [8, 16], strides = [1, 1]} : vector<8x128xf32> to vector<8x16xf32>
    %cst_64 = arith.constant dense<0.000000e+00> : vector<8xf32>
    %183 = vector.multi_reduction <add>, %182, %cst_64 [1] : vector<8x16xf32> to vector<8xf32>
    %184 = vector.shape_cast %183 : vector<8xf32> to vector<8x1xf32>
    %185 = math.log %184 : vector<8x1xf32>
    %186 = arith.addf %185, %133 : vector<8x1xf32>
    %187 = vector.shape_cast %186 : vector<8x1xf32> to vector<8x1xf32>
    %188 = vector.broadcast %187 : vector<8x1xf32> to vector<8x128xf32>
    %189 = arith.select %94, %188, %181 : vector<8x128xi1>, vector<8x128xf32>
    %190 = vector.extract_strided_slice %180 {offsets = [0, 16], sizes = [8, 16], strides = [1, 1]} : vector<8x128xf32> to vector<8x16xf32>
    %cst_65 = arith.constant dense<0.000000e+00> : vector<8xf32>
    %191 = vector.multi_reduction <add>, %190, %cst_65 [1] : vector<8x16xf32> to vector<8xf32>
    %192 = vector.shape_cast %191 : vector<8xf32> to vector<8x1xf32>
    %193 = math.log %192 : vector<8x1xf32>
    %194 = arith.addf %193, %139 : vector<8x1xf32>
    %195 = vector.shape_cast %194 : vector<8x1xf32> to vector<8x1xf32>
    %196 = vector.broadcast %195 : vector<8x1xf32> to vector<8x128xf32>
    %197 = arith.select %99, %196, %189 : vector<8x128xi1>, vector<8x128xf32>
    %198 = vector.extract_strided_slice %180 {offsets = [0, 32], sizes = [8, 16], strides = [1, 1]} : vector<8x128xf32> to vector<8x16xf32>
    %cst_66 = arith.constant dense<0.000000e+00> : vector<8xf32>
    %199 = vector.multi_reduction <add>, %198, %cst_66 [1] : vector<8x16xf32> to vector<8xf32>
    %200 = vector.shape_cast %199 : vector<8xf32> to vector<8x1xf32>
    %201 = math.log %200 : vector<8x1xf32>
    %202 = arith.addf %201, %145 : vector<8x1xf32>
    %203 = vector.shape_cast %202 : vector<8x1xf32> to vector<8x1xf32>
    %204 = vector.broadcast %203 : vector<8x1xf32> to vector<8x128xf32>
    %205 = arith.select %104, %204, %197 : vector<8x128xi1>, vector<8x128xf32>
    %206 = vector.extract_strided_slice %180 {offsets = [0, 48], sizes = [8, 16], strides = [1, 1]} : vector<8x128xf32> to vector<8x16xf32>
    %cst_67 = arith.constant dense<0.000000e+00> : vector<8xf32>
    %207 = vector.multi_reduction <add>, %206, %cst_67 [1] : vector<8x16xf32> to vector<8xf32>
    %208 = vector.shape_cast %207 : vector<8xf32> to vector<8x1xf32>
    %209 = math.log %208 : vector<8x1xf32>
    %210 = arith.addf %209, %151 : vector<8x1xf32>
    %211 = vector.shape_cast %210 : vector<8x1xf32> to vector<8x1xf32>
    %212 = vector.broadcast %211 : vector<8x1xf32> to vector<8x128xf32>
    %213 = arith.select %109, %212, %205 : vector<8x128xi1>, vector<8x128xf32>
    %214 = vector.extract_strided_slice %180 {offsets = [0, 64], sizes = [8, 16], strides = [1, 1]} : vector<8x128xf32> to vector<8x16xf32>
    %cst_68 = arith.constant dense<0.000000e+00> : vector<8xf32>
    %215 = vector.multi_reduction <add>, %214, %cst_68 [1] : vector<8x16xf32> to vector<8xf32>
    %216 = vector.shape_cast %215 : vector<8xf32> to vector<8x1xf32>
    %217 = math.log %216 : vector<8x1xf32>
    %218 = arith.addf %217, %157 : vector<8x1xf32>
    %219 = vector.shape_cast %218 : vector<8x1xf32> to vector<8x1xf32>
    %220 = vector.broadcast %219 : vector<8x1xf32> to vector<8x128xf32>
    %221 = arith.select %114, %220, %213 : vector<8x128xi1>, vector<8x128xf32>
    %222 = vector.extract_strided_slice %180 {offsets = [0, 80], sizes = [8, 16], strides = [1, 1]} : vector<8x128xf32> to vector<8x16xf32>
    %cst_69 = arith.constant dense<0.000000e+00> : vector<8xf32>
    %223 = vector.multi_reduction <add>, %222, %cst_69 [1] : vector<8x16xf32> to vector<8xf32>
    %224 = vector.shape_cast %223 : vector<8xf32> to vector<8x1xf32>
    %225 = math.log %224 : vector<8x1xf32>
    %226 = arith.addf %225, %163 : vector<8x1xf32>
    %227 = vector.shape_cast %226 : vector<8x1xf32> to vector<8x1xf32>
    %228 = vector.broadcast %227 : vector<8x1xf32> to vector<8x128xf32>
    %229 = arith.select %119, %228, %221 : vector<8x128xi1>, vector<8x128xf32>
    %230 = vector.extract_strided_slice %180 {offsets = [0, 96], sizes = [8, 16], strides = [1, 1]} : vector<8x128xf32> to vector<8x16xf32>
    %cst_70 = arith.constant dense<0.000000e+00> : vector<8xf32>
    %231 = vector.multi_reduction <add>, %230, %cst_70 [1] : vector<8x16xf32> to vector<8xf32>
    %232 = vector.shape_cast %231 : vector<8xf32> to vector<8x1xf32>
    %233 = math.log %232 : vector<8x1xf32>
    %234 = arith.addf %233, %169 : vector<8x1xf32>
    %235 = vector.shape_cast %234 : vector<8x1xf32> to vector<8x1xf32>
    %236 = vector.broadcast %235 : vector<8x1xf32> to vector<8x128xf32>
    %237 = arith.select %124, %236, %229 : vector<8x128xi1>, vector<8x128xf32>
    %238 = vector.extract_strided_slice %180 {offsets = [0, 112], sizes = [8, 16], strides = [1, 1]} : vector<8x128xf32> to vector<8x16xf32>
    %cst_71 = arith.constant dense<0.000000e+00> : vector<8xf32>
    %239 = vector.multi_reduction <add>, %238, %cst_71 [1] : vector<8x16xf32> to vector<8xf32>
    %240 = vector.shape_cast %239 : vector<8xf32> to vector<8x1xf32>
    %241 = math.log %240 : vector<8x1xf32>
    %242 = arith.addf %241, %175 : vector<8x1xf32>
    %243 = vector.shape_cast %242 : vector<8x1xf32> to vector<8x1xf32>
    %244 = vector.broadcast %243 : vector<8x1xf32> to vector<8x128xf32>
    %245 = arith.select %129, %244, %237 : vector<8x128xi1>, vector<8x128xf32>
    %246 = arith.subf %88, %245 : vector<8x128xf32>
    %c0_72 = arith.constant 0 : index
    %c0_73 = arith.constant 0 : index
    %247 = vector.load %arg14[%c0_72, %c0_73] : memref<8x128xf32, #tpu.memory_space<vmem>>, vector<8x128xf32>
    tpu.vector_store %arg14[%c0_72, %c0_73], %246 {strides = array<i32>} : memref<8x128xf32, #tpu.memory_space<vmem>>, vector<8x128xf32>,
    return
  }
  func.func @transform_0(%arg0: i32) -> (i32, i32) {
    %c0_i32 = arith.constant 0 : i32
    %c0_i32_0 = arith.constant 0 : i32
    return %arg0, %c0_i32 : i32, i32
  }
  func.func @transform_1(%arg0: i32) -> (i32, i32) {
    %c0_i32 = arith.constant 0 : i32
    %c0_i32_0 = arith.constant 0 : i32
    %c0_i32_1 = arith.constant 0 : i32
    return %c0_i32, %c0_i32_0 : i32, i32
  }
  func.func @transform_2(%arg0: i32) -> (i32, i32) {
    %c0_i32 = arith.constant 0 : i32
    %c0_i32_0 = arith.constant 0 : i32
    %c0_i32_1 = arith.constant 0 : i32
    return %c0_i32, %c0_i32_0 : i32, i32
  }
  func.func @transform_3(%arg0: i32) -> (i32, i32) {
    %c0_i32 = arith.constant 0 : i32
    %c0_i32_0 = arith.constant 0 : i32
    %c0_i32_1 = arith.constant 0 : i32
    return %c0_i32, %c0_i32_0 : i32, i32
  }
  func.func @transform_4(%arg0: i32) -> (i32, i32) {
    %c0_i32 = arith.constant 0 : i32
    %c0_i32_0 = arith.constant 0 : i32
    %c0_i32_1 = arith.constant 0 : i32
    return %c0_i32, %c0_i32_0 : i32, i32
  }
  func.func @transform_5(%arg0: i32) -> (i32, i32) {
    %c0_i32 = arith.constant 0 : i32
    %c0_i32_0 = arith.constant 0 : i32
    %c0_i32_1 = arith.constant 0 : i32
    return %c0_i32, %c0_i32_0 : i32, i32
  }
  func.func @transform_6(%arg0: i32) -> (i32, i32) {
    %c0_i32 = arith.constant 0 : i32
    %c0_i32_0 = arith.constant 0 : i32
    %c0_i32_1 = arith.constant 0 : i32
    return %c0_i32, %c0_i32_0 : i32, i32
  }
  func.func @transform_7(%arg0: i32) -> (i32, i32) {
    %c0_i32 = arith.constant 0 : i32
    %c0_i32_0 = arith.constant 0 : i32
    %c0_i32_1 = arith.constant 0 : i32
    return %c0_i32, %c0_i32_0 : i32, i32
  }
  func.func @transform_8(%arg0: i32) -> (i32, i32) {
    %c0_i32 = arith.constant 0 : i32
    %c0_i32_0 = arith.constant 0 : i32
    %c0_i32_1 = arith.constant 0 : i32
    return %c0_i32, %c0_i32_0 : i32, i32
  }
  func.func @transform_10(%arg0: i32) -> (i32, i32) {
    %c0_i32 = arith.constant 0 : i32
    %c0_i32_0 = arith.constant 0 : i32
    %c0_i32_1 = arith.constant 0 : i32
    return %c0_i32, %c0_i32_0 : i32, i32
  }
  func.func @transform_12(%arg0: i32) -> (i32, i32) {
    %c0_i32 = arith.constant 0 : i32
    %c0_i32_0 = arith.constant 0 : i32
    %c0_i32_1 = arith.constant 0 : i32
    return %c0_i32, %c0_i32_0 : i32, i32
  }
  func.func @transform_13(%arg0: i32) -> (i32, i32) {
    %c0_i32 = arith.constant 0 : i32
    %c0_i32_0 = arith.constant 0 : i32
    return %arg0, %c0_i32 : i32, i32
  }
}

</mosaic_0001>

<bundles_post_ra>
// kernel: tpu_custom_call.1
= control target key start
LH: loop header
LB: loop body
LE: loop exit
PB: predicated region body
PF: predicated region fallthrough
CT: control target
= control target key end

     0   :  { %18 = vsyncpa [#allocation6], 0  ;;  %s9895_s0 = inlined_call_operand.hbm [shape: f32[8,32], index: 0, kind: input, shape index: {}]   ;;  %s9896_s1 = inlined_call_operand.hbm [shape: bf16[32,1024], index: 1, kind: input, shape index: {}]   ;;  %s9897_s2 = inlined_call_operand.hbm [shape: f32[1,1024], index: 2, kind: input, shape index: {}]   ;;  %s9898_s3 = inlined_call_operand.hbm [shape: f32[1,1024], index: 3, kind: input, shape index: {}]   ;;  %s9899_s4 = inlined_call_operand.hbm [shape: f32[1,1024], index: 4, kind: input, shape index: {}]   ;;  %s9900_s5 = inlined_call_operand.hbm [shape: bf16[1024,1024], index: 5, kind: input, shape index: {}]   ;;  %s9901_s6 = inlined_call_operand.hbm [shape: f32[1,1024], index: 6, kind: input, shape index: {}]   ;;  %s9902_s7 = inlined_call_operand.hbm [shape: f32[1,1024], index: 7, kind: input, shape index: {}]   ;;  %s9903_s8 = inlined_call_operand.hbm [shape: f32[1,1024], index: 8, kind: input, shape index: {}]   ;;  %s9904_s9 = inlined_call_operand.hbm [shape: bf16[1024,2048], index: 9, kind: input, shape index: {}]   ;;  %s9905_s10 = inlined_call_operand.hbm [shape: f32[1,2048], index: 10, kind: input, shape index: {}]   ;;  %s9906_s11 = inlined_call_operand.hbm [shape: bf16[2048,128], index: 11, kind: input, shape index: {}]   ;;  %s9907_s12 = inlined_call_operand.hbm [shape: f32[1,128], index: 12, kind: input, shape index: {}]   ;;  %s9908_s13 = inlined_call_operand.hbm [shape: f32[8,128], index: 13, kind: output, shape index: {}]  }
   0x1   :  { %19 = vsyncpa [#allocation9], 0 }
   0x2   :  { %20 = vsyncpa [#allocation12], 0 }
   0x3   :  { %21 = vsyncpa [#allocation15], 0 }
   0x4   :  { %22 = vsyncpa [#allocation18], 0 }
   0x5   :  { %23 = vsyncpa [#allocation21], 0 }
   0x6   :  { %24 = vsyncpa [#allocation7], 0  ;;  %s9001_s25 = smov [#allocation8]   ;;  %s8697_s29 = scalar_lea.hbm %s9896_s1, 2048 }
   0x7   :  { %s40_s26 = sshll.u32 %s9001_s25, 4  ;;  %p8698_p0 = scmp.ne.s32.totalorder %s9896_s1, %s8697_s29  ;;  %s41_s26 = int_to_ptr.vmem [resolvable:$true] %s40_s26 }
   0x8   :  { %p8701_p1 = scmp.lt.u32.totalorder %s8697_s29, %s9896_s1 }
   0xa   :  { %p8703_p2 = pnand %p8701_p1, %p8698_p0 }
   0xc   :  { %8706 = shalt.err (!%p8703_p2)
}
   0xd   :  { %s8707_s17 = scalar_lea.vmem %s41_s26, 2048  ;;  %p8712_p4 = scmp.lt.s32.totalorder %s41_s26, %s41_s26 }
   0xe   :  { %p8708_p3 = scmp.ne.s32.totalorder %s41_s26, %s8707_s17  ;;  %p8713_p5 = scmp.lt.s32.totalorder %s8707_s17, %s8707_s17 }
  0x10   :  { %p8714_p6 = por %p8713_p5, %p8712_p4 }
  0x12   :  { %p8715_p7 = pnand %p8714_p6, %p8708_p3 }
  0x14   :  { %8718 = shalt.err (!%p8715_p7)
}
  0x15   :  { %s9002_s18 = smov 512   ;;  %s9003_s19 = smov 32  }
  0x16   :  { %46 = dma.hbm_to_vmem [thread:$0]  %s9896_s1, 2048, %s41_s26, [#allocation9], %s9002_s18, %s9002_s18, %s9003_s19  }
  0x17   :  { %s9004_s22 = smov [#allocation11]   ;;  %s9005_s24 = smov [#allocation14]  }
  0x18   :  { %s63_s23 = sshll.u32 %s9004_s22, 4  ;;  %s82_s25 = sshll.u32 %s9005_s24, 4  ;;  %s64_s23 = int_to_ptr.vmem [resolvable:$true] %s63_s23  ;;  %s83_s25 = int_to_ptr.vmem [resolvable:$true] %s82_s25 }
  0x19   :  { %s8719_s29 = scalar_lea.hbm %s9898_s3, 128 }
  0x1a   :  { %p8720_p8 = scmp.ne.s32.totalorder %s9898_s3, %s8719_s29  ;;  %p8723_p9 = scmp.lt.u32.totalorder %s8719_s29, %s9898_s3 }
  0x1c   :  { %p8725_p10 = pnand %p8723_p9, %p8720_p8 }
  0x1e   :  { %8728 = shalt.err (!%p8725_p10)
}
  0x1f   :  { %s8729_s1 = scalar_lea.vmem %s64_s23, 128  ;;  %p8734_p12 = scmp.lt.s32.totalorder %s64_s23, %s64_s23 }
  0x20   :  { %p8730_p11 = scmp.ne.s32.totalorder %s64_s23, %s8729_s1  ;;  %p8735_p13 = scmp.lt.s32.totalorder %s8729_s1, %s8729_s1 }
  0x22   :  { %p8736_p0 = por %p8735_p13, %p8734_p12 }
  0x24   :  { %p8737_p1 = pnand %p8736_p0, %p8730_p11 }
  0x26   :  { %8740 = shalt.err (!%p8737_p1)
}
  0x27   :  { %66 = dma.hbm_to_vmem [thread:$0]  %s9898_s3, 128, %s64_s23, [#allocation12]  }
  0x28   :  { %s8741_s22 = scalar_lea.hbm %s9900_s5, 65536 }
  0x29   :  { %p8742_p2 = scmp.ne.s32.totalorder %s9900_s5, %s8741_s22  ;;  %p8745_p3 = scmp.lt.u32.totalorder %s8741_s22, %s9900_s5 }
  0x2b   :  { %p8747_p4 = pnand %p8745_p3, %p8742_p2 }
  0x2d   :  { %8750 = shalt.err (!%p8747_p4)
}
  0x2e   :  { %s8751_s30 = scalar_lea.vmem %s83_s25, 65536  ;;  %p8756_p6 = scmp.lt.s32.totalorder %s83_s25, %s83_s25 }
  0x2f   :  { %p8752_p5 = scmp.ne.s32.totalorder %s83_s25, %s8751_s30  ;;  %p8757_p7 = scmp.lt.s32.totalorder %s8751_s30, %s8751_s30 }
  0x31   :  { %p8758_p8 = por %p8757_p7, %p8756_p6 }
  0x33   :  { %p8759_p9 = pnand %p8758_p8, %p8752_p5 }
  0x35   :  { %8762 = shalt.err (!%p8759_p9)
}
  0x36   :  { %88 = dma.hbm_to_vmem [thread:$0]  %s9900_s5, 65536, %s83_s25, [#allocation15], %s9002_s18, %s9002_s18, %s9003_s19  }
  0x37   :  { %s9006_s14 = smov [#allocation17]   ;;  %s9007_s16 = smov [#allocation20]  }
  0x38   :  { %s105_s15 = sshll.u32 %s9006_s14, 4  ;;  %s125_s1 = sshll.u32 %s9007_s16, 4  ;;  %s106_s15 = int_to_ptr.vmem [resolvable:$true] %s105_s15  ;;  %s126_s1 = int_to_ptr.vmem [resolvable:$true] %s125_s1 }
  0x39   :  { %s8763_s20 = scalar_lea.hbm %s9902_s7, 128 }
  0x3a   :  { %p8764_p10 = scmp.ne.s32.totalorder %s9902_s7, %s8763_s20  ;;  %p8767_p11 = scmp.lt.u32.totalorder %s8763_s20, %s9902_s7 }
  0x3c   :  { %p8769_p12 = pnand %p8767_p11, %p8764_p10 }
  0x3e   :  { %8772 = shalt.err (!%p8769_p12)
}
  0x3f   :  { %s8773_s5 = scalar_lea.vmem %s106_s15, 128  ;;  %p8778_p0 = scmp.lt.s32.totalorder %s106_s15, %s106_s15 }
  0x40   :  { %p8774_p13 = scmp.ne.s32.totalorder %s106_s15, %s8773_s5  ;;  %p8779_p1 = scmp.lt.s32.totalorder %s8773_s5, %s8773_s5 }
  0x42   :  { %p8780_p2 = por %p8779_p1, %p8778_p0 }
  0x44   :  { %p8781_p3 = pnand %p8780_p2, %p8774_p13 }
  0x46   :  { %8784 = shalt.err (!%p8781_p3)
}
  0x47   :  { %108 = dma.hbm_to_vmem [thread:$0]  %s9902_s7, 128, %s106_s15, [#allocation18]  }
  0x48   :  { %s8785_s30 = scalar_lea.hbm %s9905_s10, 256 }
  0x49   :  { %p8786_p4 = scmp.ne.s32.totalorder %s9905_s10, %s8785_s30  ;;  %p8789_p5 = scmp.lt.u32.totalorder %s8785_s30, %s9905_s10 }
  0x4b   :  { %p8791_p6 = pnand %p8789_p5, %p8786_p4 }
  0x4d   :  { %8794 = shalt.err (!%p8791_p6)
}
  0x4e   :  { %s8795_s26 = scalar_lea.vmem %s126_s1, 256  ;;  %p8800_p8 = scmp.lt.s32.totalorder %s126_s1, %s126_s1 }
  0x4f   :  { %p8796_p7 = scmp.ne.s32.totalorder %s126_s1, %s8795_s26  ;;  %p8801_p9 = scmp.lt.s32.totalorder %s8795_s26, %s8795_s26 }
  0x51   :  { %p8802_p10 = por %p8801_p9, %p8800_p8 }
  0x53   :  { %p8803_p11 = pnand %p8802_p10, %p8796_p7 }
  0x55   :  { %8806 = shalt.err (!%p8803_p11)
}
  0x56   :  { %128 = dma.hbm_to_vmem [thread:$0]  %s9905_s10, 256, %s126_s1, [#allocation21]  }
  0x57   :  { %s9008_s17 = smov [#allocation5]   ;;  %s9009_s21 = smov [#allocation10]  }
  0x58   :  { %s31_s20 = sshll.u32 %s9008_s17, 4  ;;  %s53_s22 = sshll.u32 %s9009_s21, 4  ;;  %s32_s20 = int_to_ptr.vmem [resolvable:$true] %s31_s20  ;;  %s54_s22 = int_to_ptr.vmem [resolvable:$true] %s53_s22 }
  0x59   :  { %s8807_s5 = scalar_lea.hbm %s9895_s0, 128 }
  0x5a   :  { %p8808_p12 = scmp.ne.s32.totalorder %s9895_s0, %s8807_s5  ;;  %p8811_p13 = scmp.lt.u32.totalorder %s8807_s5, %s9895_s0 }
  0x5c   :  { %p8813_p0 = pnand %p8811_p13, %p8808_p12 }
  0x5e   :  { %8816 = shalt.err (!%p8813_p0)
}
  0x5f   :  { %s8817_s10 = scalar_lea.vmem %s32_s20, 128  ;;  %p8822_p2 = scmp.lt.s32.totalorder %s32_s20, %s32_s20 }
  0x60   :  { %p8818_p1 = scmp.ne.s32.totalorder %s32_s20, %s8817_s10  ;;  %p8823_p3 = scmp.lt.s32.totalorder %s8817_s10, %s8817_s10 }
  0x62   :  { %p8824_p4 = por %p8823_p3, %p8822_p2 }
  0x64   :  { %p8825_p5 = pnand %p8824_p4, %p8818_p1 }
  0x66   :  { %8828 = shalt.err (!%p8825_p5)
}
  0x67   :  { %34 = dma.hbm_to_vmem [thread:$0]  %s9895_s0, 128, %s32_s20, [#allocation6]  }
  0x68   :  { %s8829_s14 = scalar_lea.hbm %s9897_s2, 128 }
  0x69   :  { %p8830_p6 = scmp.ne.s32.totalorder %s9897_s2, %s8829_s14  ;;  %p8833_p7 = scmp.lt.u32.totalorder %s8829_s14, %s9897_s2 }
  0x6b   :  { %p8835_p8 = pnand %p8833_p7, %p8830_p6 }
  0x6d   :  { %8838 = shalt.err (!%p8835_p8)
}
  0x6e   :  { %s8839_s17 = scalar_lea.vmem %s54_s22, 128  ;;  %p8844_p10 = scmp.lt.s32.totalorder %s54_s22, %s54_s22 }
  0x6f   :  { %p8840_p9 = scmp.ne.s32.totalorder %s54_s22, %s8839_s17  ;;  %p8845_p11 = scmp.lt.s32.totalorder %s8839_s17, %s8839_s17 }
  0x71   :  { %p8846_p12 = por %p8845_p11, %p8844_p10 }
  0x73   :  { %p8847_p13 = pnand %p8846_p12, %p8840_p9 }
  0x75   :  { %8850 = shalt.err (!%p8847_p13)
}
  0x76   :  { %56 = dma.hbm_to_vmem [thread:$0]  %s9897_s2, 128, %s54_s22, [#allocation9]  }
  0x77   :  { %s9010_s21 = smov [#allocation13]   ;;  %s9011_s27 = smov [#allocation16]  }
  0x78   :  { %s73_s24 = sshll.u32 %s9010_s21, 4  ;;  %s95_s5 = sshll.u32 %s9011_s27, 4  ;;  %s74_s24 = int_to_ptr.vmem [resolvable:$true] %s73_s24  ;;  %s96_s5 = int_to_ptr.vmem [resolvable:$true] %s95_s5 }
  0x79   :  { %s8851_s28 = scalar_lea.hbm %s9899_s4, 128 }
  0x7a   :  { %p8852_p0 = scmp.ne.s32.totalorder %s9899_s4, %s8851_s28  ;;  %p8855_p1 = scmp.lt.u32.totalorder %s8851_s28, %s9899_s4 }
  0x7c   :  { %p8857_p2 = pnand %p8855_p1, %p8852_p0 }
  0x7e   :  { %8860 = shalt.err (!%p8857_p2)
}
  0x7f   :  { %s8861_s2 = scalar_lea.vmem %s74_s24, 128  ;;  %p8866_p4 = scmp.lt.s32.totalorder %s74_s24, %s74_s24 }
  0x80   :  { %p8862_p3 = scmp.ne.s32.totalorder %s74_s24, %s8861_s2  ;;  %p8867_p5 = scmp.lt.s32.totalorder %s8861_s2, %s8861_s2 }
  0x82   :  { %p8868_p6 = por %p8867_p5, %p8866_p4 }
  0x84   :  { %p8869_p7 = pnand %p8868_p6, %p8862_p3 }
  0x86   :  { %8872 = shalt.err (!%p8869_p7)
}
  0x87   :  { %76 = dma.hbm_to_vmem [thread:$0]  %s9899_s4, 128, %s74_s24, [#allocation12]  }
  0x88   :  { %s8873_s16 = scalar_lea.hbm %s9901_s6, 128 }
  0x89   :  { %p8874_p8 = scmp.ne.s32.totalorder %s9901_s6, %s8873_s16  ;;  %p8877_p9 = scmp.lt.u32.totalorder %s8873_s16, %s9901_s6 }
  0x8b   :  { %p8879_p10 = pnand %p8877_p9, %p8874_p8 }
  0x8d   :  { %8882 = shalt.err (!%p8879_p10)
}
  0x8e   :  { %s8883_s0 = scalar_lea.vmem %s96_s5, 128  ;;  %p8888_p12 = scmp.lt.s32.totalorder %s96_s5, %s96_s5 }
  0x8f   :  { %p8884_p11 = scmp.ne.s32.totalorder %s96_s5, %s8883_s0  ;;  %p8889_p13 = scmp.lt.s32.totalorder %s8883_s0, %s8883_s0 }
  0x91   :  { %p8890_p0 = por %p8889_p13, %p8888_p12 }
  0x93   :  { %p8891_p1 = pnand %p8890_p0, %p8884_p11 }
  0x95   :  { %8894 = shalt.err (!%p8891_p1)
}
  0x96   :  { %98 = dma.hbm_to_vmem [thread:$0]  %s9901_s6, 128, %s96_s5, [#allocation15]  }
  0x97   :  { %s9012_s21 = smov [#allocation19]   ;;  %s9013_s27 = smov [#allocation22]  }
  0x98   :  { %s115_s24 = sshll.u32 %s9012_s21, 4  ;;  %s135_s18 = sshll.u32 %s9013_s27, 4  ;;  %s116_s24 = int_to_ptr.vmem [resolvable:$true] %s115_s24  ;;  %s136_s18 = int_to_ptr.vmem [resolvable:$true] %s135_s18 }
  0x99   :  { %s8895_s29 = scalar_lea.hbm %s9903_s8, 128 }
  0x9a   :  { %p8896_p2 = scmp.ne.s32.totalorder %s9903_s8, %s8895_s29  ;;  %p8899_p3 = scmp.lt.u32.totalorder %s8895_s29, %s9903_s8 }
  0x9c   :  { %p8901_p4 = pnand %p8899_p3, %p8896_p2 }
  0x9e   :  { %8904 = shalt.err (!%p8901_p4)
}
  0x9f   :  { %s8905_s6 = scalar_lea.vmem %s116_s24, 128  ;;  %p8910_p6 = scmp.lt.s32.totalorder %s116_s24, %s116_s24 }
  0xa0   :  { %p8906_p5 = scmp.ne.s32.totalorder %s116_s24, %s8905_s6  ;;  %p8911_p7 = scmp.lt.s32.totalorder %s8905_s6, %s8905_s6 }
  0xa2   :  { %p8912_p8 = por %p8911_p7, %p8910_p6 }
  0xa4   :  { %p8913_p9 = pnand %p8912_p8, %p8906_p5 }
  0xa6   :  { %8916 = shalt.err (!%p8913_p9)
}
  0xa7   :  { %118 = dma.hbm_to_vmem [thread:$0]  %s9903_s8, 128, %s116_s24, [#allocation18]  }
  0xa8   :  { %s8917_s14 = scalar_lea.hbm %s9907_s12, 16 }
  0xa9   :  { %p8918_p10 = scmp.ne.s32.totalorder %s9907_s12, %s8917_s14  ;;  %p8921_p11 = scmp.lt.u32.totalorder %s8917_s14, %s9907_s12 }
  0xab   :  { %p8923_p12 = pnand %p8921_p11, %p8918_p10 }
  0xad   :  { %8926 = shalt.err (!%p8923_p12)
}
  0xae   :  { %s8927_s17 = scalar_lea.vmem %s136_s18, 16  ;;  %s8931_s0 = scalar_lea.vmem %s136_s18, 32 }
  0xaf   :  { %p8928_p13 = scmp.ne.s32.totalorder %s136_s18, %s8927_s17  ;;  %p8932_p0 = scmp.lt.s32.totalorder %s136_s18, %s136_s18 }
  0xb0   :  { %p8933_p1 = scmp.lt.s32.totalorder %s8931_s0, %s8927_s17 }
  0xb2   :  { %p8934_p2 = por %p8933_p1, %p8932_p0 }
  0xb4   :  { %p8935_p3 = pnand %p8934_p2, %p8928_p13 }
  0xb6   :  { %8938 = shalt.err (!%p8935_p3)
}
  0xb7   :  { %138 = dma.hbm_to_vmem [thread:$0]  %s9907_s12, 16, %s136_s18, [#allocation21]  }
  0xb8   :  { %8983 = dma.done.wait [#allocation6], 128  }
  0xb9   :  { %8984 = vsyncadd [#allocation6], 4294967168 }
  0xba   :  { %8985 = dma.done.wait [#allocation9], 2176  }
  0xbb   :  { %8986 = vsyncadd [#allocation9], 4294965120 }
  0xbc   :  { %8987 = dma.done.wait [#allocation12], 256  }
  0xbd   :  { %8988 = vsyncadd [#allocation12], 4294967040 }
  0xbe   :  { %8989 = dma.done.wait [#allocation15], 65664  }
  0xbf   :  { %8990 = vsyncadd [#allocation15], 4294901632 }
  0xc0   :  { %8991 = dma.done.wait [#allocation18], 256  }
  0xc1   :  { %8992 = vsyncadd [#allocation18], 4294967040 }
  0xc2   :  { %8993 = dma.done.wait [#allocation21], 272  }
  0xc3   :  { %8994 = vsyncadd [#allocation21], 4294967024 }
  0xc4   :  { %s181_s20 = sld [smem:[#allocation0]]   ;;  %s9014_s21 = smov [#allocation2]  }
  0xc5   :  { %s189_s24 = sshll.u32 %s9014_s21, 4  ;;  %s9015_s27 = smov 2048   ;;  %s190_s24 = int_to_ptr.vmem [resolvable:$true] %s189_s24 }
  0xc6   :  { %193 = sst [smem:[#allocation25]] %s9015_s27  ;;  %s9016_s12 = smov 16  }
  0xc7   :  { %195 = sst [smem:[#allocation25 + $0x1]] %s9015_s27  ;;  %s9017_s18 = smov 64  }
  0xc8   :  { %197 = sst [smem:[#allocation25 + $0x2]] %s9016_s12  ;;  %s9018_s28 = smov 128  }
  0xc9   :  { %199 = sst [smem:[#allocation25 + $0x3]] %s9017_s18  ;;  %s9019_s10 = smov 2  }
  0xca   :  { %s7761_s25 = sshll.u32 %s181_s20, 26  ;;  %201 = sst [smem:[#allocation25 + $0x4]] %s9018_s28 }
  0xcb   :  { %s7762_s29 = sadd.s32 134217728, %s7761_s25  ;;  %203 = sst [smem:[#allocation25 + $0x5]] %s9019_s10 }
  0xcc   :  { %s9020_s1 = smov 1024   ;;  %207 = sst [smem:[#allocation25 + $0x7]] %s9017_s18 }
  0xcd   :  { %205 = sst [smem:[#allocation25 + $0x6]] %s9020_s1  ;;  %s9021_s30 = smov 4  }
  0xce   :  { %209 = sst [smem:[#allocation25 + $0x8]] %s9021_s30  ;;  %s9022_s2 = smov [#allocation4]  }
  0xcf   :  { %s9023_s6 = smov [#allocation24]   ;;  %s9024_s3 = smov [#allocation3]  }
  0xd0   :  { %211 = dma.general %s9904_s9, 131072, %s190_s24, %s9022_s2, %s9023_s6, [#allocation25], %s7762_s29, 0  }
  0xd1   :  { %s220_s23 = sshll.u32 %s9024_s3, 4  ;;  %s8939_s26 = scalar_lea.hbm %s9906_s11, 16384  ;;  %s221_s23 = int_to_ptr.vmem [resolvable:$true] %s220_s23 }
  0xd2   :  { %p8940_p4 = scmp.ne.s32.totalorder %s9906_s11, %s8939_s26  ;;  %p8943_p5 = scmp.lt.u32.totalorder %s8939_s26, %s9906_s11 }
  0xd4   :  { %p8945_p6 = pnand %p8943_p5, %p8940_p4 }
  0xd6   :  { %8948 = shalt.err (!%p8945_p6)  }
  0xd7   :  { %s8949_s8 = scalar_lea.vmem %s221_s23, 16384  ;;  %p8954_p8 = scmp.lt.s32.totalorder %s221_s23, %s221_s23 }
  0xd8   :  { %p8950_p7 = scmp.ne.s32.totalorder %s221_s23, %s8949_s8  ;;  %p8955_p9 = scmp.lt.s32.totalorder %s8949_s8, %s8949_s8 }
  0xda   :  { %p8956_p10 = por %p8955_p9, %p8954_p8 }
  0xdc   :  { %p8957_p11 = pnand %p8956_p10, %p8950_p7 }
  0xde   :  { %8960 = shalt.err (!%p8957_p11)  }
  0xdf   :  { %223 = dma.hbm_to_vmem [thread:$0]  %s9906_s11, 16384, %s221_s23, [#allocation4 + $0x1]  ;;  %v242_v0 = vld [vmem:[#allocation8] sm:$0xff]  ;;  %v243_v2 = vld [vmem:[#allocation8 + $0x8] sm:$0xff]  ;;  %v9025_v8 = vmov 0   ;;  %v244_v15 = vld [vmem:[#allocation8 + $0x10] sm:$0xff]  ;;  %v225_v35 = vlaneseq }
  0xe0   :  { %v246_v1 = vld [vmem:[#allocation8 + $0x20] sm:$0xff]  ;;  %v247_v5 = vld [vmem:[#allocation8 + $0x28] sm:$0xff]  ;;  %417 = vmatprep.mubr.bf16.mxu0 %v9025_v8  ;;  %458 = vmatprep.mubr.bf16.mxu1 %v9025_v8  ;;  %v248_v16 = vld [vmem:[#allocation8 + $0x30] sm:$0xff]  ;;  %vm381_vm0 = vcmask 261120  }
  0xe1   :  { %v7764_v3 = vcombine.high %v242_v0, %v246_v1  ;;  %v7763_v4 = vcombine.low %v242_v0, %v246_v1  ;;  %v250_v6 = vld [vmem:[#allocation8 + $0x40] sm:$0xff]  ;;  %v7766_v9 = vcombine.high %v243_v2, %v247_v5  ;;  %v7765_v10 = vcombine.low %v243_v2, %v247_v5  ;;  %v251_v12 = vld [vmem:[#allocation8 + $0x48] sm:$0xff]  ;;  %v245_v17 = vld [vmem:[#allocation8 + $0x18] sm:$0xff] }
  0xe2   :  { %v254_v7 = vld [vmem:[#allocation8 + $0x60] sm:$0xff]  ;;  %v255_v13 = vld [vmem:[#allocation8 + $0x68] sm:$0xff]  ;;  %v224_v19 = vld [vmem:[#allocation5] sm:$0xff]  ;;  %v7768_v22 = vcombine.high %v244_v15, %v248_v16  ;;  %v7767_v29 = vcombine.low %v244_v15, %v248_v16  ;;  %v262_v36 = vshrl.u32 %v225_v35, 7 }
  0xe3   :  { %v7772_v11 = vcombine.high %v250_v6, %v254_v7  ;;  %385 = vmatprep.subr.bf16.mxu0 %v7764_v3  ;;  %v7774_v14 = vcombine.high %v251_v12, %v255_v13  ;;  %426 = vmatprep.subr.bf16.mxu1 %v7766_v9  ;;  %v7771_v18 = vcombine.low %v250_v6, %v254_v7  ;;  %v249_v20 = vld [vmem:[#allocation8 + $0x38] sm:$0xff]  ;;  %v252_v24 = vld [vmem:[#allocation8 + $0x50] sm:$0xff]  ;;  %v258_v38 = vld [vmem:[#allocation10] sm:$0xff] }
  0xe4   :  { %386 = vmatpush1.bf16.msra.mxu0 %v7763_v4  ;;  %427 = vmatpush1.bf16.msra.mxu1 %v7765_v10  ;;  %v7773_v21 = vcombine.low %v251_v12, %v255_v13  ;;  %v7770_v23 = vcombine.high %v245_v17, %v249_v20  ;;  %v256_v25 = vld [vmem:[#allocation8 + $0x70] sm:$0xff]  ;;  %v259_v26 = vpack.c.bf16 %v224_v19, %v224_v19  ;;  %v253_v27 = vld [vmem:[#allocation8 + $0x58] sm:$0xff]  ;;  %v9261_v37 = vsub.s32 0, %v262_v36 }
  0xe5   :  { %387 = vmatprep.subr.bf16.mxu0 %v7772_v11  ;;  %428 = vmatprep.subr.bf16.mxu1 %v7774_v14  ;;  %v257_v28 = vld [vmem:[#allocation8 + $0x78] sm:$0xff]  ;;  %v7769_v30 = vcombine.low %v245_v17, %v249_v20  ;;  %v7776_v31 = vcombine.high %v252_v24, %v256_v25  ;;  %v7775_v33 = vcombine.low %v252_v24, %v256_v25  ;;  %v9263_v39 = vsub.s32 1, %v262_v36 }
  0xe6   :  { %v7778_v32 = vcombine.high %v253_v27, %v257_v28  ;;  %v7777_v34 = vcombine.low %v253_v27, %v257_v28  ;;  %v9265_v40 = vsub.s32 2, %v262_v36  ;;  %v9267_v41 = vsub.s32 3, %v262_v36  ;;  %v719_v27 = vld [vmem:[#allocation14 + $0x40] sm:$0xff] }
  0xe7   :  { %v264_v42 = vrot.slane %v258_v38, %v9261_v37  ;;  %v268_v43 = vrot.slane %v258_v38, %v9263_v39  ;;  %v9275_v50 = vsub.s32 4, %v262_v36  ;;  %v9281_v55 = vsub.s32 5, %v262_v36  ;;  %v723_v28 = vld [vmem:[#allocation14 + $0x60] sm:$0xff] }
  0xe8   :  { %388 = vmatpush1.bf16.msra.mxu0 %v7771_v18  ;;  %429 = vmatpush1.bf16.msra.mxu1 %v7773_v21  ;;  %v272_v44 = vrot.slane %v258_v38, %v9265_v40  ;;  %v276_v46 = vrot.slane %v258_v38, %v9267_v41  ;;  %v9283_v58 = vsub.s32 6, %v262_v36  ;;  %v9293_v2 = vsub.s32 7, %v262_v36  ;;  %v711_v21 = vld [vmem:[#allocation14] sm:$0xff] }
  0xe9   :  { %467 = vmatprep.subr.bf16.mxu0 %v7768_v22  ;;  %508 = vmatprep.subr.bf16.mxu1 %v7770_v23  ;;  %v280_v62 = vrot.slane %v258_v38, %v9275_v50  ;;  %v284_v0 = vrot.slane %v258_v38, %v9281_v55  ;;  %v715_v22 = vld [vmem:[#allocation14 + $0x20] sm:$0xff]  ;;  %v712_v23 = vld [vmem:[#allocation14 + $0x8] sm:$0xff] }
  0xea   :  { %v288_v1 = vrot.slane %v258_v38, %v9283_v58  ;;  %v292_v14 = vrot.slane %v258_v38, %v9293_v2  ;;  %v7783_v24 = vcombine.low %v711_v21, %v715_v22  ;;  %v7784_v25 = vcombine.high %v711_v21, %v715_v22  ;;  %v731_v38 = vld [vmem:[#allocation14 + $0xa0] sm:$0xff]  ;;  %v760_v22 = vld [vmem:[#allocation14 + $0x188] sm:$0xff] }
  0xeb   :  { %7779 = vmatmul.mubr.msk.bf16.vlgmr.msra.gmra.mrb[0].mxu0 %vm381_vm0, %v259_v26  ;;  %7780 = vmatmul.mubr.msk.bf16.vlgmr.msra.gmra.mrb[0].mxu1 %vm381_vm0, %v259_v26  ;;  %v763_v21 = vld [vmem:[#allocation14 + $0x1a0] sm:$0xff] }
  0xec   :  { %468 = vmatpush1.bf16.msra.mxu0 %v7767_v29  ;;  %509 = vmatpush1.bf16.msra.mxu1 %v7769_v30 }
  0xed   :  { %469 = vmatprep.subr.bf16.mxu0 %v7776_v31  ;;  %510 = vmatprep.subr.bf16.mxu1 %v7778_v32  ;;  %v7792_v31 = vcombine.high %v719_v27, %v723_v28  ;;  %v720_v32 = vld [vmem:[#allocation14 + $0x48] sm:$0xff] }
  0xee   :  { %499 = vmatprep.mubr.bf16.mxu0 %v9025_v8  ;;  %540 = vmatprep.mubr.bf16.mxu1 %v9025_v8 }
  0xf0   :  { %470 = vmatpush1.bf16.msra.mxu0 %v7775_v33  ;;  %511 = vmatpush1.bf16.msra.mxu1 %v7777_v34  ;;  %v724_v33 = vld [vmem:[#allocation14 + $0x68] sm:$0xff]  ;;  %v727_v34 = vld [vmem:[#allocation14 + $0x80] sm:$0xff] }
  0xf1   :  { %3833 = vmatprep.subr.bf16.mxu0 %v7784_v25  ;;  %v7794_v36 = vcombine.high %v720_v32, %v724_v33 }
  0xf3   :  { %7781 = vmatmul.mubr.msk.bf16.vlgmr.msra.gmra.mrb[4].mxu0 %vm381_vm0, %v259_v26  ;;  %7782 = vmatmul.mubr.msk.bf16.vlgmr.msra.gmra.mrb[4].mxu1 %vm381_vm0, %v259_v26  ;;  %v716_v26 = vld [vmem:[#allocation14 + $0x28] sm:$0xff] }
  0xf4   :  { %v7785_v29 = vcombine.low %v712_v23, %v716_v26  ;;  %v7786_v30 = vcombine.high %v712_v23, %v716_v26  ;;  %3834 = vmatpush1.bf16.msra.mxu0 %v7783_v24  ;;  %v764_v23 = vld [vmem:[#allocation14 + $0x1a8] sm:$0xff] }
  0xf5   :  { %3835 = vmatprep.subr.bf16.mxu0 %v7792_v31  ;;  %v772_v31 = vld [vmem:[#allocation14 + $0x1e8] sm:$0xff] }
  0xf6   :  { %3997 = vmatprep.subr.bf16.mxu1 %v7786_v30  ;;  %v768_v30 = vld [vmem:[#allocation14 + $0x1c8] sm:$0xff] }
  0xf7   :  { %3998 = vmatpush1.bf16.msra.mxu1 %v7785_v29  ;;  %v771_v29 = vld [vmem:[#allocation14 + $0x1e0] sm:$0xff] }
  0xf8   :  { %3999 = vmatprep.subr.bf16.mxu1 %v7794_v36  ;;  %v7842_v36 = vcombine.high %v768_v30, %v772_v31 }
 0x1be   :  { %v419_v45 = vpop.f32.mrb[0].mxu0  ;;  %v460_v49 = vpop.f32.mrb[0].mxu1 }
 0x1bf   :  { %v9273_v47 = vadd.f32 %v419_v45, %v264_v42  ;;  %v421_v48 = vpop.f32.mrb[1].mxu0  ;;  %v9279_v53 = vadd.f32 %v460_v49, %v272_v44  ;;  %v462_v54 = vpop.f32.mrb[1].mxu1  ;;  %v728_v42 = vld [vmem:[#allocation14 + $0x88] sm:$0xff]  ;;  %v7791_v44 = vcombine.low %v719_v27, %v723_v28  ;;  %v7793_v45 = vcombine.low %v720_v32, %v724_v33  ;;  %v735_v49 = vld [vmem:[#allocation14 + $0xc0] sm:$0xff] }
 0x1c0   :  { %v9277_v51 = vadd.f32 %v421_v48, %v268_v43  ;;  %v423_v52 = vpop.f32.mrb[2].mxu0  ;;  %v464_v57 = vpop.f32.mrb[2].mxu1  ;;  %v9287_v60 = vadd.f32 %v462_v54, %v276_v46  ;;  %v732_v43 = vld [vmem:[#allocation14 + $0xa8] sm:$0xff]  ;;  %v7800_v46 = vcombine.high %v727_v34, %v731_v38  ;;  %v7834_v27 = vcombine.high %v760_v22, %v764_v23  ;;  %v767_v28 = vld [vmem:[#allocation14 + $0x1c0] sm:$0xff] }
 0x1c1   :  { %v424_v56 = vpop.f32.mrb[3].mxu0  ;;  %v465_v61 = vpop.f32.mrb[3].mxu1  ;;  %v7802_v48 = vcombine.high %v728_v42, %v732_v43  ;;  %v739_v52 = vld [vmem:[#allocation14 + $0xe0] sm:$0xff]  ;;  %v736_v54 = vld [vmem:[#allocation14 + $0xc8] sm:$0xff]  ;;  %3836 = vmatpush1.bf16.msra.mxu0 %v7791_v44  ;;  %v7799_v57 = vcombine.low %v727_v34, %v731_v38  ;;  %4000 = vmatpush1.bf16.msra.mxu1 %v7793_v45  ;;  %v7833_v33 = vcombine.low %v760_v22, %v764_v23 }
 0x1c2   :  { %v551_v59 = vadd.f32 %v9277_v51, %v9273_v47  ;;  %v740_v56 = vld [vmem:[#allocation14 + $0xe8] sm:$0xff]  ;;  %3837 = vmatprep.subr.bf16.mxu0 %v7800_v46  ;;  %v7808_v61 = vcombine.high %v735_v49, %v739_v52  ;;  %v7840_v34 = vcombine.high %v767_v28, %v771_v29  ;;  %v775_v38 = vld [vmem:[#allocation14 + $0x200] sm:$0xff]  ;;  %v7839_v45 = vcombine.low %v767_v28, %v771_v29 }
 0x1c3   :  { %4001 = vmatprep.subr.bf16.mxu1 %v7802_v48  ;;  %v780_v44 = vld [vmem:[#allocation14 + $0x228] sm:$0xff]  ;;  %v7841_v46 = vcombine.low %v768_v30, %v772_v31 }
 0x1c4   :  { %v552_v63 = vadd.f32 %v551_v59, %v9279_v53  ;;  %v7801_v59 = vcombine.low %v728_v42, %v732_v43  ;;  %v779_v42 = vld [vmem:[#allocation14 + $0x220] sm:$0xff]  ;;  %v776_v43 = vld [vmem:[#allocation14 + $0x208] sm:$0xff] }
 0x1c5   :  { %3838 = vmatpush1.bf16.msra.mxu0 %v7799_v57  ;;  %v7848_v48 = vcombine.high %v775_v38, %v779_v42  ;;  %v788_v57 = vld [vmem:[#allocation14 + $0x268] sm:$0xff] }
 0x1c6   :  { %v553_v3 = vadd.f32 %v552_v63, %v9287_v60  ;;  %v501_v4 = vpop.f32.mrb[4].mxu0  ;;  %v542_v7 = vpop.f32.mrb[4].mxu1  ;;  %v743_v63 = vld [vmem:[#allocation14 + $0x100] sm:$0xff]  ;;  %4002 = vmatpush1.bf16.msra.mxu1 %v7801_v59  ;;  %3839 = vmatprep.subr.bf16.mxu0 %v7808_v61  ;;  %v7847_v59 = vcombine.low %v775_v38, %v779_v42  ;;  %v7849_v61 = vcombine.low %v776_v43, %v780_v44  ;;  %v792_v28 = vld [vmem:[#allocation14 + $0x288] sm:$0xff] }
 0x1c7   :  { %v9296_v5 = vadd.f32 %v501_v4, %v280_v62  ;;  %v503_v6 = vpop.f32.mrb[5].mxu0  ;;  %v544_v10 = vpop.f32.mrb[5].mxu1  ;;  %v9301_v12 = vadd.f32 %v542_v7, %v288_v1  ;;  %v7810_v62 = vcombine.high %v736_v54, %v740_v56  ;;  %v744_v1 = vld [vmem:[#allocation14 + $0x108] sm:$0xff]  ;;  %v7807_v4 = vcombine.low %v735_v49, %v739_v52  ;;  %v783_v52 = vld [vmem:[#allocation14 + $0x240] sm:$0xff] }
 0x1c8   :  { %v9298_v8 = vadd.f32 %v503_v6, %v284_v0  ;;  %v505_v9 = vpop.f32.mrb[6].mxu0  ;;  %v546_v15 = vpop.f32.mrb[6].mxu1  ;;  %v9305_v18 = vadd.f32 %v544_v10, %v292_v14  ;;  %v747_v0 = vld [vmem:[#allocation14 + $0x120] sm:$0xff]  ;;  %v7809_v6 = vcombine.low %v736_v54, %v740_v56  ;;  %v756_v14 = vld [vmem:[#allocation14 + $0x168] sm:$0xff]  ;;  %v7850_v49 = vcombine.high %v776_v43, %v780_v44 }
 0x1c9   :  { %v554_v11 = vadd.f32 %v553_v3, %v9296_v5  ;;  %v506_v13 = vpop.f32.mrb[7].mxu0  ;;  %v547_v16 = vpop.f32.mrb[7].mxu1  ;;  %v748_v3 = vld [vmem:[#allocation14 + $0x128] sm:$0xff]  ;;  %v7816_v7 = vcombine.high %v743_v63, %v747_v0  ;;  %4003 = vmatprep.subr.bf16.mxu1 %v7810_v62  ;;  %v751_v10 = vld [vmem:[#allocation14 + $0x140] sm:$0xff]  ;;  %3840 = vmatpush1.bf16.msra.mxu0 %v7807_v4  ;;  %v7815_v15 = vcombine.low %v743_v63, %v747_v0 }
 0x1ca   :  { %v7818_v9 = vcombine.high %v744_v1, %v748_v3  ;;  %v752_v13 = vld [vmem:[#allocation14 + $0x148] sm:$0xff]  ;;  %4004 = vmatpush1.bf16.msra.mxu1 %v7809_v6  ;;  %v7817_v16 = vcombine.low %v744_v1, %v748_v3  ;;  %v787_v54 = vld [vmem:[#allocation14 + $0x260] sm:$0xff]  ;;  %v9310_v6 = vand.u32 127, %v225_v35 }
 0x1cb   :  { %v555_v17 = vadd.f32 %v554_v11, %v9298_v8  ;;  %v755_v11 = vld [vmem:[#allocation14 + $0x160] sm:$0xff]  ;;  %3841 = vmatprep.subr.bf16.mxu0 %v7816_v7  ;;  %v7825_v25 = vcombine.low %v752_v13, %v756_v14  ;;  %v784_v56 = vld [vmem:[#allocation14 + $0x248] sm:$0xff]  ;;  %v7856_v62 = vcombine.high %v783_v52, %v787_v54  ;;  %v7855_v0 = vcombine.low %v783_v52, %v787_v54 }
 0x1cc   :  { %4005 = vmatprep.subr.bf16.mxu1 %v7818_v9  ;;  %v7823_v24 = vcombine.low %v751_v10, %v755_v11  ;;  %v7858_v63 = vcombine.high %v784_v56, %v788_v57  ;;  %v7857_v1 = vcombine.low %v784_v56, %v788_v57  ;;  %v9329_v35 = vadd.s32 896, %v9310_v6  ;;  %v796_v30 = vld [vmem:[#allocation14 + $0x2a8] sm:$0xff]  ;;  %v815_v57 = vld [vmem:[#allocation14 + $0x340] sm:$0xff] }
 0x1cd   :  { %v556_v19 = vadd.f32 %v555_v17, %v9301_v12  ;;  %v7824_v17 = vcombine.high %v751_v10, %v755_v11  ;;  %3842 = vmatpush1.bf16.msra.mxu0 %v7815_v15  ;;  %v800_v38 = vld [vmem:[#allocation14 + $0x2c8] sm:$0xff] }
 0x1ce   :  { %4006 = vmatpush1.bf16.msra.mxu1 %v7817_v16  ;;  %vm241_vm1 = vcmp.lt.s32.totalorder %v9329_v35, 1000  ;;  %v804_v44 = vld [vmem:[#allocation14 + $0x2e8] sm:$0xff] }
 0x1cf   :  { %v557_v20 = vadd.f32 %v556_v19, %v9305_v18  ;;  %v7826_v19 = vcombine.high %v752_v13, %v756_v14  ;;  %3843 = vmatprep.subr.bf16.mxu0 %v7824_v17  ;;  %v808_v54 = vld [vmem:[#allocation14 + $0x308] sm:$0xff] }
 0x1d0   :  { %v812_v56 = vld [vmem:[#allocation14 + $0x328] sm:$0xff] }
 0x1d1   :  { %558 = vadd.xlane.f32.xlu0 %v557_v20  ;;  %v759_v20 = vld [vmem:[#allocation14 + $0x180] sm:$0xff]  ;;  %4007 = vmatprep.subr.bf16.mxu1 %v7826_v19 }
 0x1d2   :  { %v7832_v26 = vcombine.high %v759_v20, %v763_v21  ;;  %3844 = vmatpush1.bf16.msra.mxu0 %v7823_v24  ;;  %v7831_v32 = vcombine.low %v759_v20, %v763_v21  ;;  %4008 = vmatpush1.bf16.msra.mxu1 %v7825_v25 }
 0x1d3   :  { %4009 = vmatprep.subr.bf16.mxu1 %v7834_v27  ;;  %v795_v27 = vld [vmem:[#allocation14 + $0x2a0] sm:$0xff] }
 0x1d4   :  { %3845 = vmatprep.subr.bf16.mxu0 %v7832_v26  ;;  %v791_v26 = vld [vmem:[#allocation14 + $0x280] sm:$0xff] }
 0x1d5   :  { %v7864_v29 = vcombine.high %v791_v26, %v795_v27  ;;  %v7863_v31 = vcombine.low %v791_v26, %v795_v27 }
 0x1d6   :  { %3846 = vmatpush1.bf16.msra.mxu0 %v7831_v32  ;;  %4010 = vmatpush1.bf16.msra.mxu1 %v7833_v33  ;;  %v7865_v32 = vcombine.low %v792_v28, %v796_v30  ;;  %v7866_v33 = vcombine.high %v792_v28, %v796_v30  ;;  %v9358_v28 = vld [vmem:[#allocation14 + $0x400] sm:$0xff]  ;;  %v9362_v30 = vld [vmem:[#allocation14 + $0x408] sm:$0xff] }
 0x1d7   :  { %3847 = vmatprep.subr.bf16.mxu0 %v7840_v34  ;;  %4011 = vmatprep.subr.bf16.mxu1 %v7842_v36  ;;  %v799_v34 = vld [vmem:[#allocation14 + $0x2c0] sm:$0xff] }
 0x1d8   :  { %v803_v36 = vld [vmem:[#allocation14 + $0x2e0] sm:$0xff] }
 0x1d9   :  { %v7871_v42 = vcombine.low %v799_v34, %v803_v36  ;;  %v7872_v43 = vcombine.high %v799_v34, %v803_v36 }
 0x1da   :  { %3848 = vmatpush1.bf16.msra.mxu0 %v7839_v45  ;;  %4012 = vmatpush1.bf16.msra.mxu1 %v7841_v46  ;;  %v807_v45 = vld [vmem:[#allocation14 + $0x300] sm:$0xff] }
 0x1db   :  { %3849 = vmatprep.subr.bf16.mxu0 %v7848_v48  ;;  %4013 = vmatprep.subr.bf16.mxu1 %v7850_v49  ;;  %v811_v46 = vld [vmem:[#allocation14 + $0x320] sm:$0xff]  ;;  %v7873_v48 = vcombine.low %v800_v38, %v804_v44  ;;  %v7874_v49 = vcombine.high %v800_v38, %v804_v44  ;;  %v549_v44 = vld [vmem:[#allocation11] sm:$0xff] }
 0x1dc   :  { %v7880_v52 = vcombine.high %v807_v45, %v811_v46 }
 0x1de   :  { %3850 = vmatpush1.bf16.msra.mxu0 %v7847_v59  ;;  %4014 = vmatpush1.bf16.msra.mxu1 %v7849_v61  ;;  %v7882_v59 = vcombine.high %v808_v54, %v812_v56  ;;  %v819_v61 = vld [vmem:[#allocation14 + $0x360] sm:$0xff] }
 0x1df   :  { %3851 = vmatprep.subr.bf16.mxu0 %v7856_v62  ;;  %4015 = vmatprep.subr.bf16.mxu1 %v7858_v63  ;;  %v816_v62 = vld [vmem:[#allocation14 + $0x348] sm:$0xff] }
 0x1e0   :  { %v820_v63 = vld [vmem:[#allocation14 + $0x368] sm:$0xff] }
 0x1e2   :  { %3852 = vmatpush1.bf16.msra.mxu0 %v7855_v0  ;;  %4016 = vmatpush1.bf16.msra.mxu1 %v7857_v1  ;;  %v7879_v0 = vcombine.low %v807_v45, %v811_v46  ;;  %v7881_v1 = vcombine.low %v808_v54, %v812_v56  ;;  %v9374_v45 = vld [vmem:[#allocation13] sm:$0xff]  ;;  %v613_v46 = vrot.slane %v549_v44, %v9263_v39 }
 0x1e3   :  { %3853 = vmatprep.subr.bf16.mxu0 %v7864_v29  ;;  %4017 = vmatprep.subr.bf16.mxu1 %v7866_v33  ;;  %v9360_v29 = vld [vmem:[#allocation14 + $0x420] sm:$0xff]  ;;  %v617_v54 = vrot.slane %v549_v44, %v9265_v40  ;;  %v629_v56 = vrot.slane %v549_v44, %v9281_v55 }
 0x1e4   :  { %v7911_v33 = vcombine.low %v9358_v28, %v9360_v29 }
 0x1e6   :  { %3854 = vmatpush1.bf16.msra.mxu0 %v7863_v31  ;;  %4018 = vmatpush1.bf16.msra.mxu1 %v7865_v32  ;;  %v7912_v31 = vcombine.high %v9358_v28, %v9360_v29  ;;  %v9366_v32 = vld [vmem:[#allocation14 + $0x428] sm:$0xff] }
 0x1e7   :  { %3855 = vmatprep.subr.bf16.mxu0 %v7872_v43  ;;  %4019 = vmatprep.subr.bf16.mxu1 %v7874_v49  ;;  %v7913_v34 = vcombine.low %v9362_v30, %v9366_v32  ;;  %v7914_v36 = vcombine.high %v9362_v30, %v9366_v32  ;;  %v621_v49 = vrot.slane %v549_v44, %v9267_v41  ;;  %v864_v28 = vld [vmem:[#allocation14 + $0x4c8] sm:$0xff] }
 0x1e8   :  { %v868_v29 = vld [vmem:[#allocation14 + $0x4e8] sm:$0xff] }
 0x1ea   :  { %3856 = vmatpush1.bf16.msra.mxu0 %v7871_v42  ;;  %4020 = vmatpush1.bf16.msra.mxu1 %v7873_v48  ;;  %v609_v48 = vrot.slane %v549_v44, %v9261_v37 }
 0x1eb   :  { %3857 = vmatprep.subr.bf16.mxu0 %v7880_v52  ;;  %4021 = vmatprep.subr.bf16.mxu1 %v7882_v59  ;;  %v662_v52 = vrot.slane %v9374_v45, %v9263_v39 }
 0x1ee   :  { %3858 = vmatpush1.bf16.msra.mxu0 %v7879_v0  ;;  %4022 = vmatpush1.bf16.msra.mxu1 %v7881_v1  ;;  %v678_v0 = vrot.slane %v9374_v45, %v9281_v55 }
 0x25e   :  { %v559_v3 = vpop.xlane.xlu0 %558 }
 0x25f   :  { %v560_v4 = vmul.f32 0.001, %v559_v3  ;;  %v7888_v3 = vcombine.high %v815_v57, %v819_v61 }
 0x261   :  { %v9313_v7 = vsub.f32 %v9273_v47, %v560_v4  ;;  %v9316_v9 = vsub.f32 %v9277_v51, %v560_v4  ;;  %v9319_v10 = vsub.f32 %v9279_v53, %v560_v4  ;;  %v9322_v11 = vsub.f32 %v9287_v60, %v560_v4  ;;  %3859 = vmatprep.subr.bf16.mxu0 %v7888_v3 }
 0x262   :  { %v9332_v47 = vsub.f32 %v9296_v5, %v560_v4  ;;  %v9337_v15 = vsub.f32 %v9298_v8, %v560_v4  ;;  %v568_v17 = vsub.f32 %v9305_v18, %v560_v4  ;;  %v9344_v19 = vsub.f32 %v9301_v12, %v560_v4 }
 0x263   :  { %v577_v13 = vmul.f32 %v9313_v7, %v9313_v7  ;;  %v578_v14 = vmul.f32 %v9316_v9, %v9316_v9  ;;  %v579_v51 = vmul.f32 %v9319_v10, %v9319_v10  ;;  %v580_v60 = vmul.f32 %v9322_v11, %v9322_v11 }
 0x264   :  { %v581_v5 = vmul.f32 %v9332_v47, %v9332_v47  ;;  %v582_v21 = vmul.f32 %v9337_v15, %v9337_v15  ;;  %v9352_v22 = vsel %vm241_vm1, %v568_v17, 0.0  ;;  %v583_v18 = vmul.f32 %v9344_v19, %v9344_v19 }
 0x265   :  { %v585_v53 = vadd.f32 %v578_v14, %v577_v13  ;;  %v584_v12 = vmul.f32 %v9352_v22, %v9352_v22  ;;  %v7890_v4 = vcombine.high %v816_v62, %v820_v63  ;;  %v823_v13 = vld [vmem:[#allocation14 + $0x380] sm:$0xff] }
 0x266   :  { %v827_v14 = vld [vmem:[#allocation14 + $0x3a0] sm:$0xff] }
 0x267   :  { %v586_v16 = vadd.f32 %v585_v53, %v579_v51  ;;  %v824_v51 = vld [vmem:[#allocation14 + $0x388] sm:$0xff]  ;;  %v7896_v17 = vcombine.high %v823_v13, %v827_v14  ;;  %4023 = vmatprep.subr.bf16.mxu1 %v7890_v4 }
 0x268   :  { %v828_v53 = vld [vmem:[#allocation14 + $0x3a8] sm:$0xff] }
 0x269   :  { %v587_v20 = vadd.f32 %v586_v16, %v580_v60  ;;  %v7887_v60 = vcombine.low %v815_v57, %v819_v61  ;;  %v7889_v16 = vcombine.low %v816_v62, %v820_v63  ;;  %v625_v57 = vrot.slane %v549_v44, %v9275_v50 }
 0x26a   :  { %v658_v61 = vrot.slane %v9374_v45, %v9261_v37  ;;  %v670_v62 = vrot.slane %v9374_v45, %v9267_v41  ;;  %v666_v63 = vrot.slane %v9374_v45, %v9265_v40 }
 0x26b   :  { %v588_v8 = vadd.f32 %v587_v20, %v581_v5  ;;  %v7898_v5 = vcombine.high %v824_v51, %v828_v53  ;;  %v831_v20 = vld [vmem:[#allocation14 + $0x3c0] sm:$0xff]  ;;  %3860 = vmatpush1.bf16.msra.mxu0 %v7887_v60  ;;  %4024 = vmatpush1.bf16.msra.mxu1 %v7889_v16  ;;  %v637_v60 = vrot.slane %v549_v44, %v9293_v2 }
 0x26c   :  { %3861 = vmatprep.subr.bf16.mxu0 %v7896_v17 }
 0x26d   :  { %v589_v23 = vadd.f32 %v588_v8, %v582_v21  ;;  %v835_v21 = vld [vmem:[#allocation14 + $0x3e0] sm:$0xff]  ;;  %v832_v8 = vld [vmem:[#allocation14 + $0x3c8] sm:$0xff]  ;;  %4025 = vmatprep.subr.bf16.mxu1 %v7898_v5 }
 0x26e   :  { %v7903_v26 = vcombine.low %v831_v20, %v835_v21 }
 0x26f   :  { %v590_v24 = vadd.f32 %v589_v23, %v583_v18  ;;  %v836_v18 = vld [vmem:[#allocation14 + $0x3e8] sm:$0xff]  ;;  %v7895_v23 = vcombine.low %v823_v13, %v827_v14 }
 0x270   :  { %v7905_v27 = vcombine.low %v832_v8, %v836_v18 }
 0x271   :  { %v591_v25 = vadd.f32 %v590_v24, %v584_v12  ;;  %v7897_v12 = vcombine.low %v824_v51, %v828_v53  ;;  %v7904_v24 = vcombine.high %v831_v20, %v835_v21  ;;  %3862 = vmatpush1.bf16.msra.mxu0 %v7895_v23 }
 0x273   :  { %592 = vadd.xlane.f32.xlu0 %v591_v25  ;;  %v7906_v25 = vcombine.high %v832_v8, %v836_v18  ;;  %4026 = vmatpush1.bf16.msra.mxu1 %v7897_v12 }
 0x274   :  { %3863 = vmatprep.subr.bf16.mxu0 %v7904_v24  ;;  %v847_v24 = vld [vmem:[#allocation14 + $0x440] sm:$0xff] }
 0x275   :  { %4027 = vmatprep.subr.bf16.mxu1 %v7906_v25  ;;  %3864 = vmatpush1.bf16.msra.mxu0 %v7903_v26  ;;  %v633_v26 = vrot.slane %v549_v44, %v9283_v58 }
 0x276   :  { %3874 = vmatprep.subr.bf16.mxu0 %v7912_v31  ;;  %v851_v31 = vld [vmem:[#allocation14 + $0x460] sm:$0xff] }
 0x277   :  { %4028 = vmatpush1.bf16.msra.mxu1 %v7905_v27 }
 0x278   :  { %4038 = vmatprep.subr.bf16.mxu1 %v7914_v36  ;;  %v848_v36 = vld [vmem:[#allocation14 + $0x448] sm:$0xff] }
 0x300   :  { %v593_v38 = vpop.xlane.xlu0 %592 }
 0x301   :  { %v594_v42 = vmul.f32 0.001, %v593_v38  ;;  %v852_v38 = vld [vmem:[#allocation14 + $0x468] sm:$0xff] }
 0x302   :  { %v7922_v44 = vcombine.high %v848_v36, %v852_v38 }
 0x303   :  { %v595_v43 = vadd.f32 1e-12, %v594_v42 }
 0x305   :  { %8674 = vrsqrt.f32 %v595_v43 }
 0x30f   :  { %v8675_v59 = vpop.eup %8674 }
 0x310   :  { %v598_v1 = vmul.f32 %v8675_v59, %v9316_v9  ;;  %v597_v3 = vmul.f32 %v8675_v59, %v9313_v7  ;;  %v600_v4 = vmul.f32 %v8675_v59, %v9322_v11  ;;  %v599_v13 = vmul.f32 %v8675_v59, %v9319_v10 }
 0x311   :  { %v602_v14 = vmul.f32 %v8675_v59, %v9337_v15  ;;  %v601_v51 = vmul.f32 %v8675_v59, %v9332_v47  ;;  %v604_v53 = vmul.f32 %v8675_v59, %v9352_v22  ;;  %v674_v7 = vrot.slane %v9374_v45, %v9275_v50 }
 0x312   :  { %v647_v16 = vmul.f32 %v613_v46, %v598_v1  ;;  %v646_v17 = vmul.f32 %v609_v48, %v597_v3  ;;  %v649_v5 = vmul.f32 %v621_v49, %v600_v4  ;;  %v648_v20 = vmul.f32 %v617_v54, %v599_v13  ;;  %v855_v48 = vld [vmem:[#allocation14 + $0x480] sm:$0xff] }
 0x313   :  { %v651_v21 = vmul.f32 %v629_v56, %v602_v14  ;;  %v650_v47 = vmul.f32 %v625_v57, %v601_v51  ;;  %v653_v18 = vmul.f32 %v637_v60, %v604_v53  ;;  %v686_v22 = vrot.slane %v9374_v45, %v9293_v2  ;;  %v859_v54 = vld [vmem:[#allocation14 + $0x4a0] sm:$0xff]  ;;  %v856_v56 = vld [vmem:[#allocation14 + $0x488] sm:$0xff] }
 0x314   :  { %v696_v9 = vadd.f32 %v662_v52, %v647_v16  ;;  %v695_v11 = vadd.f32 %v658_v61, %v646_v17  ;;  %v698_v8 = vadd.f32 %v670_v62, %v649_v5  ;;  %v9402_v10 = vadd.f32 %v666_v63, %v648_v20  ;;  %v860_v57 = vld [vmem:[#allocation14 + $0x4a8] sm:$0xff]  ;;  %v863_v3 = vld [vmem:[#allocation14 + $0x4c0] sm:$0xff] }
 0x315   :  { %v9404_v15 = vadd.f32 %v678_v0, %v651_v21  ;;  %v603_v25 = vmul.f32 %v8675_v59, %v9344_v19  ;;  %v682_v46 = vrot.slane %v9374_v45, %v9283_v58  ;;  %v9416_v49 = vadd.f32 %v674_v7, %v650_v47  ;;  %v867_v4 = vld [vmem:[#allocation14 + $0x4e0] sm:$0xff]  ;;  %v872_v51 = vld [vmem:[#allocation14 + $0x508] sm:$0xff] }
 0x316   :  { %v704_v23 = vmax.f32 %v696_v9, 0.0  ;;  %v703_v12 = vmax.f32 %v695_v11, 0.0  ;;  %v706_v27 = vmax.f32 %v698_v8, 0.0  ;;  %v9418_v52 = vadd.f32 %v686_v22, %v653_v18  ;;  %v871_v13 = vld [vmem:[#allocation14 + $0x500] sm:$0xff]  ;;  %v876_v53 = vld [vmem:[#allocation14 + $0x528] sm:$0xff] }
 0x317   :  { %v7920_v19 = vcombine.high %v847_v24, %v851_v31  ;;  %v652_v59 = vmul.f32 %v633_v26, %v603_v25  ;;  %v7919_v61 = vcombine.low %v847_v24, %v851_v31  ;;  %v7921_v62 = vcombine.low %v848_v36, %v852_v38  ;;  %v875_v14 = vld [vmem:[#allocation14 + $0x520] sm:$0xff]  ;;  %v880_v7 = vld [vmem:[#allocation14 + $0x548] sm:$0xff] }
 0x318   :  { %v9410_v42 = vpack.c.bf16 %v704_v23, %v704_v23  ;;  %v9412_v43 = vpack.c.bf16 %v703_v12, %v703_v12  ;;  %v9424_v45 = vpack.c.bf16 %v706_v27, %v706_v27  ;;  %v7928_v0 = vcombine.high %v855_v48, %v859_v54  ;;  %v879_v20 = vld [vmem:[#allocation14 + $0x540] sm:$0xff]  ;;  %v884_v9 = vld [vmem:[#allocation14 + $0x568] sm:$0xff] }
 0x319   :  { %v9432_v63 = vadd.f32 %v682_v46, %v652_v59  ;;  %v7930_v1 = vcombine.high %v856_v56, %v860_v57  ;;  %v7927_v30 = vcombine.low %v855_v48, %v859_v54  ;;  %v7929_v32 = vcombine.low %v856_v56, %v860_v57  ;;  %v883_v21 = vld [vmem:[#allocation14 + $0x560] sm:$0xff]  ;;  %v888_v12 = vld [vmem:[#allocation14 + $0x588] sm:$0xff] }
 0x31a   :  { %3865 = vmatprep.mubr.bf16.mxu0 %v9410_v42  ;;  %4029 = vmatprep.mubr.bf16.mxu1 %v9410_v42  ;;  %v7935_v60 = vcombine.low %v863_v3, %v867_v4  ;;  %v7937_v16 = vcombine.low %v864_v28, %v868_v29  ;;  %v7944_v17 = vcombine.high %v871_v13, %v875_v14  ;;  %v887_v22 = vld [vmem:[#allocation14 + $0x580] sm:$0xff]  ;;  %v892_v24 = vld [vmem:[#allocation14 + $0x5a8] sm:$0xff] }
 0x31b   :  { %3866 = vmatmul.mubr.bf16.vlgmr.msra.gmra.mrb[8].mxu0 %v9412_v43  ;;  %4030 = vmatmul.mubr.bf16.vlgmr.msra.gmra.mrb[8].mxu1 %v9412_v43  ;;  %v7946_v5 = vcombine.high %v872_v51, %v876_v53  ;;  %v7943_v11 = vcombine.low %v871_v13, %v875_v14  ;;  %v7945_v8 = vcombine.low %v872_v51, %v876_v53  ;;  %v891_v23 = vld [vmem:[#allocation14 + $0x5a0] sm:$0xff]  ;;  %v896_v46 = vld [vmem:[#allocation14 + $0x5c8] sm:$0xff] }
 0x31c   :  { %3875 = vmatpush1.bf16.msra.mxu0 %v7911_v33  ;;  %4039 = vmatpush1.bf16.msra.mxu1 %v7913_v34  ;;  %v7936_v33 = vcombine.high %v863_v3, %v867_v4  ;;  %v7938_v34 = vcombine.high %v864_v28, %v868_v29  ;;  %v7952_v47 = vcombine.high %v879_v20, %v883_v21  ;;  %v895_v36 = vld [vmem:[#allocation14 + $0x5c0] sm:$0xff]  ;;  %v900_v48 = vld [vmem:[#allocation14 + $0x5e8] sm:$0xff] }
 0x31d   :  { %3906 = vmatprep.mubr.bf16.mxu0 %v9424_v45  ;;  %4070 = vmatprep.mubr.bf16.mxu1 %v9424_v45  ;;  %v7954_v18 = vcombine.high %v880_v7, %v884_v9  ;;  %v7951_v25 = vcombine.low %v879_v20, %v883_v21  ;;  %v7953_v26 = vcombine.low %v880_v7, %v884_v9  ;;  %v899_v38 = vld [vmem:[#allocation14 + $0x5e0] sm:$0xff] }
 0x31e   :  { %3876 = vmatprep.subr.bf16.mxu0 %v7920_v19  ;;  %4040 = vmatprep.subr.bf16.mxu1 %v7922_v44  ;;  %v7960_v27 = vcombine.high %v887_v22, %v891_v23  ;;  %v7962_v31 = vcombine.high %v888_v12, %v892_v24  ;;  %v7959_v19 = vcombine.low %v887_v22, %v891_v23  ;;  %v903_v57 = vld [vmem:[#allocation14 + $0x600] sm:$0xff] }
 0x31f   :  { %v7961_v44 = vcombine.low %v888_v12, %v892_v24  ;;  %v7968_v54 = vcombine.high %v895_v36, %v899_v38  ;;  %v7970_v56 = vcombine.high %v896_v46, %v900_v48  ;;  %v907_v59 = vld [vmem:[#allocation14 + $0x620] sm:$0xff] }
 0x320   :  { %3877 = vmatpush1.bf16.msra.mxu0 %v7919_v61  ;;  %4041 = vmatpush1.bf16.msra.mxu1 %v7921_v62  ;;  %v904_v61 = vld [vmem:[#allocation14 + $0x608] sm:$0xff]  ;;  %v7976_v3 = vcombine.high %v903_v57, %v907_v59  ;;  %v911_v28 = vld [vmem:[#allocation14 + $0x640] sm:$0xff] }
 0x321   :  { %3878 = vmatprep.subr.bf16.mxu0 %v7928_v0  ;;  %4042 = vmatprep.subr.bf16.mxu1 %v7930_v1  ;;  %v908_v62 = vld [vmem:[#allocation14 + $0x628] sm:$0xff]  ;;  %v7967_v0 = vcombine.low %v895_v36, %v899_v38  ;;  %v7969_v1 = vcombine.low %v896_v46, %v900_v48  ;;  %v915_v29 = vld [vmem:[#allocation14 + $0x660] sm:$0xff] }
 0x322   :  { %v7978_v4 = vcombine.high %v904_v61, %v908_v62  ;;  %v7984_v13 = vcombine.high %v911_v28, %v915_v29  ;;  %v919_v51 = vld [vmem:[#allocation14 + $0x680] sm:$0xff] }
 0x323   :  { %v923_v53 = vld [vmem:[#allocation14 + $0x6a0] sm:$0xff] }
 0x324   :  { %3879 = vmatpush1.bf16.msra.mxu0 %v7927_v30  ;;  %4043 = vmatpush1.bf16.msra.mxu1 %v7929_v32  ;;  %v912_v30 = vld [vmem:[#allocation14 + $0x648] sm:$0xff]  ;;  %v7992_v20 = vcombine.high %v919_v51, %v923_v53  ;;  %v927_v7 = vld [vmem:[#allocation14 + $0x6c0] sm:$0xff] }
 0x325   :  { %3880 = vmatprep.subr.bf16.mxu0 %v7936_v33  ;;  %4044 = vmatprep.subr.bf16.mxu1 %v7938_v34  ;;  %v916_v32 = vld [vmem:[#allocation14 + $0x668] sm:$0xff]  ;;  %v7975_v33 = vcombine.low %v903_v57, %v907_v59  ;;  %v7977_v34 = vcombine.low %v904_v61, %v908_v62  ;;  %v931_v9 = vld [vmem:[#allocation14 + $0x6e0] sm:$0xff] }
 0x326   :  { %v7986_v14 = vcombine.high %v912_v30, %v916_v32  ;;  %v8000_v22 = vcombine.high %v927_v7, %v931_v9  ;;  %v935_v12 = vld [vmem:[#allocation14 + $0x700] sm:$0xff] }
 0x327   :  { %v939_v24 = vld [vmem:[#allocation14 + $0x720] sm:$0xff] }
 0x328   :  { %3881 = vmatpush1.bf16.msra.mxu0 %v7935_v60  ;;  %4045 = vmatpush1.bf16.msra.mxu1 %v7937_v16  ;;  %v920_v60 = vld [vmem:[#allocation14 + $0x688] sm:$0xff]  ;;  %v8008_v36 = vcombine.high %v935_v12, %v939_v24  ;;  %v943_v46 = vld [vmem:[#allocation14 + $0x740] sm:$0xff] }
 0x329   :  { %3882 = vmatprep.subr.bf16.mxu0 %v7944_v17  ;;  %4046 = vmatprep.subr.bf16.mxu1 %v7946_v5  ;;  %v924_v16 = vld [vmem:[#allocation14 + $0x6a8] sm:$0xff]  ;;  %v7983_v17 = vcombine.low %v911_v28, %v915_v29  ;;  %v7985_v5 = vcombine.low %v912_v30, %v916_v32  ;;  %v947_v48 = vld [vmem:[#allocation14 + $0x760] sm:$0xff] }
 0x32a   :  { %v7994_v21 = vcombine.high %v920_v60, %v924_v16  ;;  %v8016_v57 = vcombine.high %v943_v46, %v947_v48  ;;  %v951_v61 = vld [vmem:[#allocation14 + $0x780] sm:$0xff] }
 0x32b   :  { %v955_v62 = vld [vmem:[#allocation14 + $0x7a0] sm:$0xff] }
 0x32c   :  { %3883 = vmatpush1.bf16.msra.mxu0 %v7943_v11  ;;  %4047 = vmatpush1.bf16.msra.mxu1 %v7945_v8  ;;  %v928_v11 = vld [vmem:[#allocation14 + $0x6c8] sm:$0xff]  ;;  %v8024_v28 = vcombine.high %v951_v61, %v955_v62  ;;  %v959_v30 = vld [vmem:[#allocation14 + $0x7c0] sm:$0xff] }
 0x32d   :  { %3884 = vmatprep.subr.bf16.mxu0 %v7952_v47  ;;  %4048 = vmatprep.subr.bf16.mxu1 %v7954_v18  ;;  %v932_v8 = vld [vmem:[#allocation14 + $0x6e8] sm:$0xff]  ;;  %v7991_v47 = vcombine.low %v919_v51, %v923_v53  ;;  %v7993_v18 = vcombine.low %v920_v60, %v924_v16  ;;  %v963_v32 = vld [vmem:[#allocation14 + $0x7e0] sm:$0xff] }
 0x32e   :  { %v8002_v23 = vcombine.high %v928_v11, %v932_v8  ;;  %v8032_v51 = vcombine.high %v959_v30, %v963_v32  ;;  %v967_v60 = vld [vmem:[#allocation14 + $0x800] sm:$0xff] }
 0x32f   :  { %v971_v16 = vld [vmem:[#allocation14 + $0x820] sm:$0xff] }
 0x330   :  { %3885 = vmatpush1.bf16.msra.mxu0 %v7951_v25  ;;  %4049 = vmatpush1.bf16.msra.mxu1 %v7953_v26  ;;  %v936_v25 = vld [vmem:[#allocation14 + $0x708] sm:$0xff] }
 0x331   :  { %3886 = vmatprep.subr.bf16.mxu0 %v7960_v27  ;;  %4050 = vmatprep.subr.bf16.mxu1 %v7962_v31  ;;  %v940_v26 = vld [vmem:[#allocation14 + $0x728] sm:$0xff]  ;;  %v7999_v27 = vcombine.low %v927_v7, %v931_v9  ;;  %v8001_v31 = vcombine.low %v928_v11, %v932_v8  ;;  %v705_v7 = vmax.f32 %v9402_v10, 0.0  ;;  %v8040_v9 = vcombine.high %v967_v60, %v971_v16 }
 0x332   :  { %v8010_v38 = vcombine.high %v936_v25, %v940_v26  ;;  %v708_v8 = vmax.f32 %v9404_v15, 0.0  ;;  %v984_v15 = vld [vmem:[#allocation14 + $0x888] sm:$0xff] }
 0x334   :  { %3887 = vmatpush1.bf16.msra.mxu0 %v7959_v19  ;;  %4051 = vmatpush1.bf16.msra.mxu1 %v7961_v44  ;;  %v944_v19 = vld [vmem:[#allocation14 + $0x748] sm:$0xff] }
 0x335   :  { %3888 = vmatprep.subr.bf16.mxu0 %v7968_v54  ;;  %4052 = vmatprep.subr.bf16.mxu1 %v7970_v56  ;;  %v948_v44 = vld [vmem:[#allocation14 + $0x768] sm:$0xff]  ;;  %v8007_v54 = vcombine.low %v935_v12, %v939_v24  ;;  %v8009_v56 = vcombine.low %v936_v25, %v940_v26  ;;  %v8039_v12 = vcombine.low %v967_v60, %v971_v16 }
 0x336   :  { %v8018_v59 = vcombine.high %v944_v19, %v948_v44  ;;  %v9438_v24 = vpack.c.bf16 %v705_v7, %v705_v7  ;;  %v9440_v26 = vpack.c.bf16 %v708_v8, %v708_v8  ;;  %v1016_v7 = vld [vmem:[#allocation14 + $0x988] sm:$0xff] }
 0x338   :  { %3889 = vmatpush1.bf16.msra.mxu0 %v7967_v0  ;;  %4053 = vmatpush1.bf16.msra.mxu1 %v7969_v1  ;;  %v952_v0 = vld [vmem:[#allocation14 + $0x788] sm:$0xff] }
 0x339   :  { %3890 = vmatprep.subr.bf16.mxu0 %v7976_v3  ;;  %4054 = vmatprep.subr.bf16.mxu1 %v7978_v4  ;;  %v956_v1 = vld [vmem:[#allocation14 + $0x7a8] sm:$0xff]  ;;  %v8015_v3 = vcombine.low %v943_v46, %v947_v48  ;;  %v8017_v4 = vcombine.low %v944_v19, %v948_v44 }
 0x33a   :  { %v8026_v29 = vcombine.high %v952_v0, %v956_v1 }
 0x33c   :  { %3891 = vmatpush1.bf16.msra.mxu0 %v7975_v33  ;;  %4055 = vmatpush1.bf16.msra.mxu1 %v7977_v34  ;;  %v960_v33 = vld [vmem:[#allocation14 + $0x7c8] sm:$0xff] }
 0x33d   :  { %3892 = vmatprep.subr.bf16.mxu0 %v7984_v13  ;;  %4056 = vmatprep.subr.bf16.mxu1 %v7986_v14  ;;  %v964_v34 = vld [vmem:[#allocation14 + $0x7e8] sm:$0xff]  ;;  %v8023_v13 = vcombine.low %v951_v61, %v955_v62  ;;  %v8025_v14 = vcombine.low %v952_v0, %v956_v1 }
 0x33e   :  { %v8034_v53 = vcombine.high %v960_v33, %v964_v34 }
 0x340   :  { %3893 = vmatpush1.bf16.msra.mxu0 %v7983_v17  ;;  %4057 = vmatpush1.bf16.msra.mxu1 %v7985_v5  ;;  %v968_v17 = vld [vmem:[#allocation14 + $0x808] sm:$0xff] }
 0x341   :  { %3894 = vmatprep.subr.bf16.mxu0 %v7992_v20  ;;  %4058 = vmatprep.subr.bf16.mxu1 %v7994_v21  ;;  %v972_v5 = vld [vmem:[#allocation14 + $0x828] sm:$0xff]  ;;  %v8031_v20 = vcombine.low %v959_v30, %v963_v32  ;;  %v8033_v21 = vcombine.low %v960_v33, %v964_v34 }
 0x342   :  { %v8042_v11 = vcombine.high %v968_v17, %v972_v5  ;;  %v8041_v25 = vcombine.low %v968_v17, %v972_v5 }
 0x344   :  { %3895 = vmatpush1.bf16.msra.mxu0 %v7991_v47  ;;  %4059 = vmatpush1.bf16.msra.mxu1 %v7993_v18  ;;  %v975_v47 = vld [vmem:[#allocation14 + $0x840] sm:$0xff] }
 0x345   :  { %3896 = vmatprep.subr.bf16.mxu0 %v8000_v22  ;;  %4060 = vmatprep.subr.bf16.mxu1 %v8002_v23  ;;  %v979_v18 = vld [vmem:[#allocation14 + $0x860] sm:$0xff]  ;;  %v976_v22 = vld [vmem:[#allocation14 + $0x848] sm:$0xff] }
 0x346   :  { %v980_v23 = vld [vmem:[#allocation14 + $0x868] sm:$0xff]  ;;  %v8047_v46 = vcombine.low %v975_v47, %v979_v18 }
 0x347   :  { %v8050_v10 = vcombine.high %v976_v22, %v980_v23  ;;  %v8049_v48 = vcombine.low %v976_v22, %v980_v23  ;;  %v1023_v22 = vld [vmem:[#allocation14 + $0x9c0] sm:$0xff] }
 0x348   :  { %3897 = vmatpush1.bf16.msra.mxu0 %v7999_v27  ;;  %4061 = vmatpush1.bf16.msra.mxu1 %v8001_v31  ;;  %v8048_v27 = vcombine.high %v975_v47, %v979_v18  ;;  %v983_v31 = vld [vmem:[#allocation14 + $0x880] sm:$0xff] }
 0x349   :  { %3898 = vmatprep.subr.bf16.mxu0 %v8008_v36  ;;  %4062 = vmatprep.subr.bf16.mxu1 %v8010_v38  ;;  %v987_v36 = vld [vmem:[#allocation14 + $0x8a0] sm:$0xff]  ;;  %v988_v38 = vld [vmem:[#allocation14 + $0x8a8] sm:$0xff] }
 0x34a   :  { %v8056_v19 = vcombine.high %v983_v31, %v987_v36  ;;  %v8058_v44 = vcombine.high %v984_v15, %v988_v38  ;;  %v8055_v61 = vcombine.low %v983_v31, %v987_v36  ;;  %v8057_v62 = vcombine.low %v984_v15, %v988_v38  ;;  %v1027_v23 = vld [vmem:[#allocation14 + $0x9e0] sm:$0xff] }
 0x34b   :  { %v8096_v31 = vcombine.high %v1023_v22, %v1027_v23  ;;  %v1031_v15 = vld [vmem:[#allocation14 + $0xa00] sm:$0xff] }
 0x34c   :  { %3899 = vmatpush1.bf16.msra.mxu0 %v8007_v54  ;;  %4063 = vmatpush1.bf16.msra.mxu1 %v8009_v56  ;;  %v991_v54 = vld [vmem:[#allocation14 + $0x8c0] sm:$0xff] }
 0x34d   :  { %3900 = vmatprep.subr.bf16.mxu0 %v8016_v57  ;;  %4064 = vmatprep.subr.bf16.mxu1 %v8018_v59  ;;  %v995_v56 = vld [vmem:[#allocation14 + $0x8e0] sm:$0xff]  ;;  %v992_v57 = vld [vmem:[#allocation14 + $0x8c8] sm:$0xff] }
 0x34e   :  { %v996_v59 = vld [vmem:[#allocation14 + $0x8e8] sm:$0xff]  ;;  %v8064_v0 = vcombine.high %v991_v54, %v995_v56  ;;  %v8063_v30 = vcombine.low %v991_v54, %v995_v56  ;;  %v1035_v38 = vld [vmem:[#allocation14 + $0xa20] sm:$0xff] }
 0x34f   :  { %v8066_v1 = vcombine.high %v992_v57, %v996_v59  ;;  %v8065_v32 = vcombine.low %v992_v57, %v996_v59  ;;  %v8104_v54 = vcombine.high %v1031_v15, %v1035_v38  ;;  %v1039_v57 = vld [vmem:[#allocation14 + $0xa40] sm:$0xff] }
 0x350   :  { %3901 = vmatpush1.bf16.msra.mxu0 %v8015_v3  ;;  %4065 = vmatpush1.bf16.msra.mxu1 %v8017_v4  ;;  %v999_v3 = vld [vmem:[#allocation14 + $0x900] sm:$0xff] }
 0x351   :  { %3902 = vmatprep.subr.bf16.mxu0 %v8024_v28  ;;  %4066 = vmatprep.subr.bf16.mxu1 %v8026_v29  ;;  %v1003_v4 = vld [vmem:[#allocation14 + $0x920] sm:$0xff]  ;;  %v1000_v28 = vld [vmem:[#allocation14 + $0x908] sm:$0xff] }
 0x352   :  { %v1004_v29 = vld [vmem:[#allocation14 + $0x928] sm:$0xff]  ;;  %v8072_v33 = vcombine.high %v999_v3, %v1003_v4  ;;  %v8071_v60 = vcombine.low %v999_v3, %v1003_v4  ;;  %v1043_v59 = vld [vmem:[#allocation14 + $0xa60] sm:$0xff] }
 0x353   :  { %v8074_v34 = vcombine.high %v1000_v28, %v1004_v29  ;;  %v8073_v16 = vcombine.low %v1000_v28, %v1004_v29  ;;  %v8112_v3 = vcombine.high %v1039_v57, %v1043_v59  ;;  %v1047_v28 = vld [vmem:[#allocation14 + $0xa80] sm:$0xff] }
 0x354   :  { %3903 = vmatpush1.bf16.msra.mxu0 %v8023_v13  ;;  %4067 = vmatpush1.bf16.msra.mxu1 %v8025_v14  ;;  %v1007_v13 = vld [vmem:[#allocation14 + $0x940] sm:$0xff] }
 0x355   :  { %3904 = vmatprep.subr.bf16.mxu0 %v8032_v51  ;;  %4068 = vmatprep.subr.bf16.mxu1 %v8034_v53  ;;  %v1011_v14 = vld [vmem:[#allocation14 + $0x960] sm:$0xff]  ;;  %v1008_v51 = vld [vmem:[#allocation14 + $0x948] sm:$0xff] }
 0x356   :  { %v1012_v53 = vld [vmem:[#allocation14 + $0x968] sm:$0xff]  ;;  %v8080_v17 = vcombine.high %v1007_v13, %v1011_v14  ;;  %v1051_v29 = vld [vmem:[#allocation14 + $0xaa0] sm:$0xff] }
 0x357   :  { %v8082_v5 = vcombine.high %v1008_v51, %v1012_v53  ;;  %v8081_v8 = vcombine.low %v1008_v51, %v1012_v53  ;;  %v1055_v51 = vld [vmem:[#allocation14 + $0xac0] sm:$0xff] }
 0x358   :  { %3905 = vmatpush1.bf16.msra.mxu0 %v8031_v20  ;;  %4069 = vmatpush1.bf16.msra.mxu1 %v8033_v21  ;;  %v1015_v20 = vld [vmem:[#allocation14 + $0x980] sm:$0xff] }
 0x359   :  { %3915 = vmatprep.subr.bf16.mxu0 %v8040_v9  ;;  %4079 = vmatprep.subr.bf16.mxu1 %v8042_v11  ;;  %v1019_v21 = vld [vmem:[#allocation14 + $0x9a0] sm:$0xff]  ;;  %v1020_v9 = vld [vmem:[#allocation14 + $0x9a8] sm:$0xff]  ;;  %v8079_v11 = vcombine.low %v1007_v13, %v1011_v14  ;;  %v8120_v13 = vcombine.high %v1047_v28, %v1051_v29 }
 0x35a   :  { %v8088_v47 = vcombine.high %v1015_v20, %v1019_v21  ;;  %v8090_v18 = vcombine.high %v1016_v7, %v1020_v9  ;;  %v1059_v53 = vld [vmem:[#allocation14 + $0xae0] sm:$0xff] }
 0x35b   :  { %3907 = vmatmul.mubr.bf16.vlgmr.msra.gmra.mrb[8].mxu0 %v9438_v24  ;;  %4071 = vmatmul.mubr.bf16.vlgmr.msra.gmra.mrb[8].mxu1 %v9438_v24 }
 0x35c   :  { %3916 = vmatpush1.bf16.msra.mxu0 %v8039_v12  ;;  %3947 = vmatprep.mubr.bf16.mxu0 %v9440_v26  ;;  %v1024_v12 = vld [vmem:[#allocation14 + $0x9c8] sm:$0xff] }
 0x35d   :  { %4080 = vmatpush1.bf16.msra.mxu1 %v8041_v25  ;;  %4111 = vmatprep.mubr.bf16.mxu1 %v9440_v26  ;;  %v1028_v25 = vld [vmem:[#allocation14 + $0x9e8] sm:$0xff] }
 0x35e   :  { %3917 = vmatprep.subr.bf16.mxu0 %v8048_v27  ;;  %4081 = vmatprep.subr.bf16.mxu1 %v8050_v10  ;;  %v8087_v27 = vcombine.low %v1015_v20, %v1019_v21  ;;  %v8089_v10 = vcombine.low %v1016_v7, %v1020_v9  ;;  %v8098_v36 = vcombine.high %v1024_v12, %v1028_v25  ;;  %v1063_v7 = vld [vmem:[#allocation14 + $0xb00] sm:$0xff] }
 0x35f   :  { %v8128_v20 = vcombine.high %v1055_v51, %v1059_v53  ;;  %v1067_v9 = vld [vmem:[#allocation14 + $0xb20] sm:$0xff] }
 0x360   :  { %3918 = vmatpush1.bf16.msra.mxu0 %v8047_v46  ;;  %v1032_v46 = vld [vmem:[#allocation14 + $0xa08] sm:$0xff] }
 0x361   :  { %4082 = vmatpush1.bf16.msra.mxu1 %v8049_v48  ;;  %3919 = vmatprep.subr.bf16.mxu0 %v8056_v19  ;;  %v1036_v48 = vld [vmem:[#allocation14 + $0xa28] sm:$0xff]  ;;  %v8095_v19 = vcombine.low %v1023_v22, %v1027_v23  ;;  %v8136_v22 = vcombine.high %v1063_v7, %v1067_v9 }
 0x362   :  { %4083 = vmatprep.subr.bf16.mxu1 %v8058_v44  ;;  %v8097_v44 = vcombine.low %v1024_v12, %v1028_v25  ;;  %v8106_v56 = vcombine.high %v1032_v46, %v1036_v48  ;;  %v1071_v12 = vld [vmem:[#allocation14 + $0xb40] sm:$0xff] }
 0x363   :  { %v1075_v25 = vld [vmem:[#allocation14 + $0xb60] sm:$0xff] }
 0x364   :  { %3920 = vmatpush1.bf16.msra.mxu0 %v8055_v61  ;;  %v1040_v61 = vld [vmem:[#allocation14 + $0xa48] sm:$0xff] }
 0x365   :  { %4084 = vmatpush1.bf16.msra.mxu1 %v8057_v62  ;;  %3921 = vmatprep.subr.bf16.mxu0 %v8064_v0  ;;  %v1044_v62 = vld [vmem:[#allocation14 + $0xa68] sm:$0xff]  ;;  %v8103_v0 = vcombine.low %v1031_v15, %v1035_v38  ;;  %v8144_v15 = vcombine.high %v1071_v12, %v1075_v25 }
 0x366   :  { %4085 = vmatprep.subr.bf16.mxu1 %v8066_v1  ;;  %v8105_v1 = vcombine.low %v1032_v46, %v1036_v48  ;;  %v8114_v4 = vcombine.high %v1040_v61, %v1044_v62  ;;  %v1079_v46 = vld [vmem:[#allocation14 + $0xb80] sm:$0xff] }
 0x367   :  { %v1083_v48 = vld [vmem:[#allocation14 + $0xba0] sm:$0xff] }
 0x368   :  { %3922 = vmatpush1.bf16.msra.mxu0 %v8063_v30  ;;  %v1048_v30 = vld [vmem:[#allocation14 + $0xa88] sm:$0xff] }
 0x369   :  { %4086 = vmatpush1.bf16.msra.mxu1 %v8065_v32  ;;  %3923 = vmatprep.subr.bf16.mxu0 %v8072_v33  ;;  %v1052_v32 = vld [vmem:[#allocation14 + $0xaa8] sm:$0xff]  ;;  %v8111_v33 = vcombine.low %v1039_v57, %v1043_v59  ;;  %v8152_v57 = vcombine.high %v1079_v46, %v1083_v48 }
 0x36a   :  { %4087 = vmatprep.subr.bf16.mxu1 %v8074_v34  ;;  %v8113_v34 = vcombine.low %v1040_v61, %v1044_v62  ;;  %v8122_v14 = vcombine.high %v1048_v30, %v1052_v32  ;;  %v1087_v61 = vld [vmem:[#allocation14 + $0xbc0] sm:$0xff] }
 0x36b   :  { %v1091_v62 = vld [vmem:[#allocation14 + $0xbe0] sm:$0xff] }
 0x36c   :  { %3924 = vmatpush1.bf16.msra.mxu0 %v8071_v60  ;;  %v1056_v60 = vld [vmem:[#allocation14 + $0xac8] sm:$0xff] }
 0x36d   :  { %4088 = vmatpush1.bf16.msra.mxu1 %v8073_v16  ;;  %3925 = vmatprep.subr.bf16.mxu0 %v8080_v17  ;;  %v1060_v16 = vld [vmem:[#allocation14 + $0xae8] sm:$0xff]  ;;  %v8119_v17 = vcombine.low %v1047_v28, %v1051_v29  ;;  %v8160_v28 = vcombine.high %v1087_v61, %v1091_v62 }
 0x36e   :  { %4089 = vmatprep.subr.bf16.mxu1 %v8082_v5  ;;  %v8121_v5 = vcombine.low %v1048_v30, %v1052_v32  ;;  %v8130_v21 = vcombine.high %v1056_v60, %v1060_v16  ;;  %v1095_v30 = vld [vmem:[#allocation14 + $0xc00] sm:$0xff] }
 0x36f   :  { %v1099_v32 = vld [vmem:[#allocation14 + $0xc20] sm:$0xff] }
 0x370   :  { %3926 = vmatpush1.bf16.msra.mxu0 %v8079_v11  ;;  %v1064_v11 = vld [vmem:[#allocation14 + $0xb08] sm:$0xff] }
 0x371   :  { %4090 = vmatpush1.bf16.msra.mxu1 %v8081_v8  ;;  %3927 = vmatprep.subr.bf16.mxu0 %v8088_v47  ;;  %v1068_v8 = vld [vmem:[#allocation14 + $0xb28] sm:$0xff]  ;;  %v8127_v47 = vcombine.low %v1055_v51, %v1059_v53  ;;  %v707_v51 = vmax.f32 %v9416_v49, 0.0  ;;  %v8168_v53 = vcombine.high %v1095_v30, %v1099_v32  ;;  %v1115_v49 = vld [vmem:[#allocation14 + $0xca0] sm:$0xff] }
 0x372   :  { %4091 = vmatprep.subr.bf16.mxu1 %v8090_v18  ;;  %v8129_v18 = vcombine.low %v1056_v60, %v1060_v16  ;;  %v8138_v23 = vcombine.high %v1064_v11, %v1068_v8  ;;  %v710_v16 = vmax.f32 %v9418_v52, 0.0 }
 0x374   :  { %3928 = vmatpush1.bf16.msra.mxu0 %v8087_v27  ;;  %v1072_v27 = vld [vmem:[#allocation14 + $0xb48] sm:$0xff] }
 0x375   :  { %4092 = vmatpush1.bf16.msra.mxu1 %v8089_v10  ;;  %3929 = vmatprep.subr.bf16.mxu0 %v8096_v31  ;;  %v1076_v10 = vld [vmem:[#allocation14 + $0xb68] sm:$0xff]  ;;  %v8135_v31 = vcombine.low %v1063_v7, %v1067_v9  ;;  %v9448_v9 = vpack.c.bf16 %v707_v51, %v707_v51 }
 0x376   :  { %4093 = vmatprep.subr.bf16.mxu1 %v8098_v36  ;;  %v8137_v36 = vcombine.low %v1064_v11, %v1068_v8  ;;  %v8146_v38 = vcombine.high %v1072_v27, %v1076_v10  ;;  %v1108_v7 = vld [vmem:[#allocation14 + $0xc68] sm:$0xff] }
 0x377   :  { %v1144_v51 = vld [vmem:[#allocation14 + $0xd88] sm:$0xff] }
 0x378   :  { %3930 = vmatpush1.bf16.msra.mxu0 %v8095_v19  ;;  %v1080_v19 = vld [vmem:[#allocation14 + $0xb88] sm:$0xff] }
 0x379   :  { %4094 = vmatpush1.bf16.msra.mxu1 %v8097_v44  ;;  %3931 = vmatprep.subr.bf16.mxu0 %v8104_v54  ;;  %v1084_v44 = vld [vmem:[#allocation14 + $0xba8] sm:$0xff]  ;;  %v8143_v54 = vcombine.low %v1071_v12, %v1075_v25 }
 0x37a   :  { %4095 = vmatprep.subr.bf16.mxu1 %v8106_v56  ;;  %v8145_v56 = vcombine.low %v1072_v27, %v1076_v10  ;;  %v8154_v59 = vcombine.high %v1080_v19, %v1084_v44 }
 0x37c   :  { %3932 = vmatpush1.bf16.msra.mxu0 %v8103_v0  ;;  %v1088_v0 = vld [vmem:[#allocation14 + $0xbc8] sm:$0xff] }
 0x37d   :  { %4096 = vmatpush1.bf16.msra.mxu1 %v8105_v1  ;;  %3933 = vmatprep.subr.bf16.mxu0 %v8112_v3  ;;  %v1092_v1 = vld [vmem:[#allocation14 + $0xbe8] sm:$0xff]  ;;  %v8151_v3 = vcombine.low %v1079_v46, %v1083_v48 }
 0x37e   :  { %4097 = vmatprep.subr.bf16.mxu1 %v8114_v4  ;;  %v8153_v4 = vcombine.low %v1080_v19, %v1084_v44  ;;  %v8162_v29 = vcombine.high %v1088_v0, %v1092_v1 }
 0x380   :  { %3934 = vmatpush1.bf16.msra.mxu0 %v8111_v33  ;;  %v1096_v33 = vld [vmem:[#allocation14 + $0xc08] sm:$0xff] }
 0x381   :  { %4098 = vmatpush1.bf16.msra.mxu1 %v8113_v34  ;;  %3935 = vmatprep.subr.bf16.mxu0 %v8120_v13  ;;  %v1100_v34 = vld [vmem:[#allocation14 + $0xc28] sm:$0xff]  ;;  %v8159_v13 = vcombine.low %v1087_v61, %v1091_v62 }
 0x382   :  { %4099 = vmatprep.subr.bf16.mxu1 %v8122_v14  ;;  %v8161_v14 = vcombine.low %v1088_v0, %v1092_v1  ;;  %v8170_v60 = vcombine.high %v1096_v33, %v1100_v34  ;;  %v8169_v11 = vcombine.low %v1096_v33, %v1100_v34 }
 0x384   :  { %3936 = vmatpush1.bf16.msra.mxu0 %v8119_v17  ;;  %v1103_v17 = vld [vmem:[#allocation14 + $0xc40] sm:$0xff] }
 0x385   :  { %4100 = vmatpush1.bf16.msra.mxu1 %v8121_v5  ;;  %3937 = vmatprep.subr.bf16.mxu0 %v8128_v20  ;;  %v1107_v5 = vld [vmem:[#allocation14 + $0xc60] sm:$0xff]  ;;  %v8167_v20 = vcombine.low %v1095_v30, %v1099_v32 }
 0x386   :  { %4101 = vmatprep.subr.bf16.mxu1 %v8130_v21  ;;  %v1104_v21 = vld [vmem:[#allocation14 + $0xc48] sm:$0xff]  ;;  %v8176_v8 = vcombine.high %v1103_v17, %v1107_v5  ;;  %v8175_v12 = vcombine.low %v1103_v17, %v1107_v5 }
 0x387   :  { %v8178_v52 = vcombine.high %v1104_v21, %v1108_v7  ;;  %v8177_v25 = vcombine.low %v1104_v21, %v1108_v7  ;;  %v1155_v21 = vld [vmem:[#allocation14 + $0xde0] sm:$0xff]  ;;  %v1152_v7 = vld [vmem:[#allocation14 + $0xdc8] sm:$0xff] }
 0x388   :  { %3938 = vmatpush1.bf16.msra.mxu0 %v8127_v47  ;;  %v1111_v47 = vld [vmem:[#allocation14 + $0xc80] sm:$0xff] }
 0x389   :  { %4102 = vmatpush1.bf16.msra.mxu1 %v8129_v18  ;;  %3939 = vmatprep.subr.bf16.mxu0 %v8136_v22  ;;  %v9451_v18 = vpack.c.bf16 %v710_v16, %v710_v16  ;;  %v1112_v22 = vld [vmem:[#allocation14 + $0xc88] sm:$0xff]  ;;  %v8184_v27 = vcombine.high %v1111_v47, %v1115_v49  ;;  %v8183_v46 = vcombine.low %v1111_v47, %v1115_v49 }
 0x38a   :  { %4103 = vmatprep.subr.bf16.mxu1 %v8138_v23  ;;  %v1116_v23 = vld [vmem:[#allocation14 + $0xca8] sm:$0xff] }
 0x38b   :  { %v8186_v10 = vcombine.high %v1112_v22, %v1116_v23  ;;  %v8185_v48 = vcombine.low %v1112_v22, %v1116_v23  ;;  %v1159_v22 = vld [vmem:[#allocation14 + $0xe00] sm:$0xff] }
 0x38c   :  { %3940 = vmatpush1.bf16.msra.mxu0 %v8135_v31  ;;  %v1119_v31 = vld [vmem:[#allocation14 + $0xcc0] sm:$0xff] }
 0x38d   :  { %4104 = vmatpush1.bf16.msra.mxu1 %v8137_v36  ;;  %3941 = vmatprep.subr.bf16.mxu0 %v8144_v15  ;;  %v1123_v36 = vld [vmem:[#allocation14 + $0xce0] sm:$0xff]  ;;  %v1120_v15 = vld [vmem:[#allocation14 + $0xcc8] sm:$0xff] }
 0x38e   :  { %4105 = vmatprep.subr.bf16.mxu1 %v8146_v38  ;;  %v1124_v38 = vld [vmem:[#allocation14 + $0xce8] sm:$0xff]  ;;  %v8192_v19 = vcombine.high %v1119_v31, %v1123_v36  ;;  %v8191_v61 = vcombine.low %v1119_v31, %v1123_v36  ;;  %v1163_v23 = vld [vmem:[#allocation14 + $0xe20] sm:$0xff] }
 0x38f   :  { %v8194_v44 = vcombine.high %v1120_v15, %v1124_v38  ;;  %v8193_v62 = vcombine.low %v1120_v15, %v1124_v38  ;;  %v8232_v31 = vcombine.high %v1159_v22, %v1163_v23  ;;  %v1167_v15 = vld [vmem:[#allocation14 + $0xe40] sm:$0xff] }
 0x390   :  { %3942 = vmatpush1.bf16.msra.mxu0 %v8143_v54  ;;  %v1127_v54 = vld [vmem:[#allocation14 + $0xd00] sm:$0xff] }
 0x391   :  { %4106 = vmatpush1.bf16.msra.mxu1 %v8145_v56  ;;  %3943 = vmatprep.subr.bf16.mxu0 %v8152_v57  ;;  %v1131_v56 = vld [vmem:[#allocation14 + $0xd20] sm:$0xff]  ;;  %v1128_v57 = vld [vmem:[#allocation14 + $0xd08] sm:$0xff] }
 0x392   :  { %4107 = vmatprep.subr.bf16.mxu1 %v8154_v59  ;;  %v1132_v59 = vld [vmem:[#allocation14 + $0xd28] sm:$0xff]  ;;  %v8200_v0 = vcombine.high %v1127_v54, %v1131_v56  ;;  %v8199_v30 = vcombine.low %v1127_v54, %v1131_v56  ;;  %v1171_v38 = vld [vmem:[#allocation14 + $0xe60] sm:$0xff] }
 0x393   :  { %v8202_v1 = vcombine.high %v1128_v57, %v1132_v59  ;;  %v8201_v32 = vcombine.low %v1128_v57, %v1132_v59  ;;  %v8240_v54 = vcombine.high %v1167_v15, %v1171_v38  ;;  %v1175_v57 = vld [vmem:[#allocation14 + $0xe80] sm:$0xff] }
 0x394   :  { %3944 = vmatpush1.bf16.msra.mxu0 %v8151_v3  ;;  %v1135_v3 = vld [vmem:[#allocation14 + $0xd40] sm:$0xff] }
 0x395   :  { %4108 = vmatpush1.bf16.msra.mxu1 %v8153_v4  ;;  %3945 = vmatprep.subr.bf16.mxu0 %v8160_v28  ;;  %v1139_v4 = vld [vmem:[#allocation14 + $0xd60] sm:$0xff]  ;;  %v1136_v28 = vld [vmem:[#allocation14 + $0xd48] sm:$0xff] }
 0x396   :  { %4109 = vmatprep.subr.bf16.mxu1 %v8162_v29  ;;  %v1140_v29 = vld [vmem:[#allocation14 + $0xd68] sm:$0xff]  ;;  %v8208_v33 = vcombine.high %v1135_v3, %v1139_v4  ;;  %v1179_v59 = vld [vmem:[#allocation14 + $0xea0] sm:$0xff] }
 0x397   :  { %v8210_v34 = vcombine.high %v1136_v28, %v1140_v29  ;;  %v8209_v16 = vcombine.low %v1136_v28, %v1140_v29  ;;  %v1183_v28 = vld [vmem:[#allocation14 + $0xec0] sm:$0xff] }
 0x398   :  { %3946 = vmatpush1.bf16.msra.mxu0 %v8159_v13  ;;  %v1143_v13 = vld [vmem:[#allocation14 + $0xd80] sm:$0xff] }
 0x399   :  { %4110 = vmatpush1.bf16.msra.mxu1 %v8161_v14  ;;  %3956 = vmatprep.subr.bf16.mxu0 %v8168_v53  ;;  %v1147_v14 = vld [vmem:[#allocation14 + $0xda0] sm:$0xff]  ;;  %v1148_v53 = vld [vmem:[#allocation14 + $0xda8] sm:$0xff] }
 0x39a   :  { %4120 = vmatprep.subr.bf16.mxu1 %v8170_v60  ;;  %v8207_v60 = vcombine.low %v1135_v3, %v1139_v4  ;;  %v8216_v17 = vcombine.high %v1143_v13, %v1147_v14  ;;  %v8218_v5 = vcombine.high %v1144_v51, %v1148_v53  ;;  %v8217_v47 = vcombine.low %v1144_v51, %v1148_v53  ;;  %v1187_v29 = vld [vmem:[#allocation14 + $0xee0] sm:$0xff] }
 0x39b   :  { %3948 = vmatmul.mubr.bf16.vlgmr.msra.gmra.mrb[8].mxu0 %v9448_v9  ;;  %v8248_v3 = vcombine.high %v1175_v57, %v1179_v59  ;;  %v1191_v51 = vld [vmem:[#allocation14 + $0xf00] sm:$0xff] }
 0x39c   :  { %4112 = vmatmul.mubr.bf16.vlgmr.msra.gmra.mrb[8].mxu1 %v9448_v9  ;;  %3957 = vmatpush1.bf16.msra.mxu0 %v8167_v20  ;;  %v1151_v20 = vld [vmem:[#allocation14 + $0xdc0] sm:$0xff] }
 0x39d   :  { %3988 = vmatprep.mubr.bf16.mxu0 %v9451_v18  ;;  %4121 = vmatpush1.bf16.msra.mxu1 %v8169_v11  ;;  %v1156_v11 = vld [vmem:[#allocation14 + $0xde8] sm:$0xff]  ;;  %v8224_v49 = vcombine.high %v1151_v20, %v1155_v21  ;;  %v1195_v53 = vld [vmem:[#allocation14 + $0xf20] sm:$0xff] }
 0x39e   :  { %4152 = vmatprep.mubr.bf16.mxu1 %v9451_v18  ;;  %3958 = vmatprep.subr.bf16.mxu0 %v8176_v8  ;;  %v8215_v8 = vcombine.low %v1143_v13, %v1147_v14  ;;  %v8256_v13 = vcombine.high %v1183_v28, %v1187_v29 }
 0x39f   :  { %4122 = vmatprep.subr.bf16.mxu1 %v8178_v52  ;;  %v8226_v52 = vcombine.high %v1152_v7, %v1156_v11 }
 0x3a0   :  { %3959 = vmatpush1.bf16.msra.mxu0 %v8175_v12  ;;  %v1160_v12 = vld [vmem:[#allocation14 + $0xe08] sm:$0xff] }
 0x3a1   :  { %4123 = vmatpush1.bf16.msra.mxu1 %v8177_v25  ;;  %3960 = vmatprep.subr.bf16.mxu0 %v8184_v27  ;;  %v1164_v25 = vld [vmem:[#allocation14 + $0xe28] sm:$0xff]  ;;  %v8223_v27 = vcombine.low %v1151_v20, %v1155_v21  ;;  %v8264_v20 = vcombine.high %v1191_v51, %v1195_v53 }
 0x3a2   :  { %4124 = vmatprep.subr.bf16.mxu1 %v8186_v10  ;;  %v8225_v10 = vcombine.low %v1152_v7, %v1156_v11  ;;  %v8234_v36 = vcombine.high %v1160_v12, %v1164_v25  ;;  %v1199_v7 = vld [vmem:[#allocation14 + $0xf40] sm:$0xff] }
 0x3a3   :  { %v1203_v11 = vld [vmem:[#allocation14 + $0xf60] sm:$0xff] }
 0x3a4   :  { %3961 = vmatpush1.bf16.msra.mxu0 %v8183_v46  ;;  %v1168_v46 = vld [vmem:[#allocation14 + $0xe48] sm:$0xff] }
 0x3a5   :  { %4125 = vmatpush1.bf16.msra.mxu1 %v8185_v48  ;;  %3962 = vmatprep.subr.bf16.mxu0 %v8192_v19  ;;  %v1172_v48 = vld [vmem:[#allocation14 + $0xe68] sm:$0xff]  ;;  %v8231_v19 = vcombine.low %v1159_v22, %v1163_v23  ;;  %v8272_v22 = vcombine.high %v1199_v7, %v1203_v11 }
 0x3a6   :  { %4126 = vmatprep.subr.bf16.mxu1 %v8194_v44  ;;  %v8233_v44 = vcombine.low %v1160_v12, %v1164_v25  ;;  %v8242_v56 = vcombine.high %v1168_v46, %v1172_v48  ;;  %v1207_v12 = vld [vmem:[#allocation14 + $0xf80] sm:$0xff] }
 0x3a7   :  { %v1211_v25 = vld [vmem:[#allocation14 + $0xfa0] sm:$0xff] }
 0x3a8   :  { %3963 = vmatpush1.bf16.msra.mxu0 %v8191_v61  ;;  %v1176_v61 = vld [vmem:[#allocation14 + $0xe88] sm:$0xff] }
 0x3a9   :  { %4127 = vmatpush1.bf16.msra.mxu1 %v8193_v62  ;;  %3964 = vmatprep.subr.bf16.mxu0 %v8200_v0  ;;  %v1180_v62 = vld [vmem:[#allocation14 + $0xea8] sm:$0xff]  ;;  %v8239_v0 = vcombine.low %v1167_v15, %v1171_v38  ;;  %v8280_v15 = vcombine.high %v1207_v12, %v1211_v25 }
 0x3aa   :  { %4128 = vmatprep.subr.bf16.mxu1 %v8202_v1  ;;  %v8241_v1 = vcombine.low %v1168_v46, %v1172_v48  ;;  %v8250_v4 = vcombine.high %v1176_v61, %v1180_v62  ;;  %v1215_v46 = vld [vmem:[#allocation14 + $0xfc0] sm:$0xff] }
 0x3ab   :  { %v1219_v48 = vld [vmem:[#allocation14 + $0xfe0] sm:$0xff] }
 0x3ac   :  { %3965 = vmatpush1.bf16.msra.mxu0 %v8199_v30  ;;  %v1184_v30 = vld [vmem:[#allocation14 + $0xec8] sm:$0xff] }
 0x3ad   :  { %4129 = vmatpush1.bf16.msra.mxu1 %v8201_v32  ;;  %3966 = vmatprep.subr.bf16.mxu0 %v8208_v33  ;;  %v1188_v32 = vld [vmem:[#allocation14 + $0xee8] sm:$0xff]  ;;  %v8247_v33 = vcombine.low %v1175_v57, %v1179_v59  ;;  %v8288_v57 = vcombine.high %v1215_v46, %v1219_v48 }
 0x3ae   :  { %4130 = vmatprep.subr.bf16.mxu1 %v8210_v34  ;;  %v8249_v34 = vcombine.low %v1176_v61, %v1180_v62  ;;  %v8258_v14 = vcombine.high %v1184_v30, %v1188_v32  ;;  %v713_v61 = vld [vmem:[#allocation14 + $0x10] sm:$0xff] }
 0x3af   :  { %v717_v62 = vld [vmem:[#allocation14 + $0x30] sm:$0xff] }
 0x3b0   :  { %3967 = vmatpush1.bf16.msra.mxu0 %v8207_v60  ;;  %v1192_v60 = vld [vmem:[#allocation14 + $0xf08] sm:$0xff] }
 0x3b1   :  { %4131 = vmatpush1.bf16.msra.mxu1 %v8209_v16  ;;  %3968 = vmatprep.subr.bf16.mxu0 %v8216_v17  ;;  %v1196_v16 = vld [vmem:[#allocation14 + $0xf28] sm:$0xff]  ;;  %v8255_v17 = vcombine.low %v1183_v28, %v1187_v29  ;;  %v709_v28 = vmax.f32 %v9432_v63, 0.0  ;;  %v7788_v29 = vcombine.high %v713_v61, %v717_v62 }
 0x3b2   :  { %4132 = vmatprep.subr.bf16.mxu1 %v8218_v5  ;;  %v8257_v5 = vcombine.low %v1184_v30, %v1188_v32  ;;  %v8266_v21 = vcombine.high %v1192_v60, %v1196_v16  ;;  %v721_v32 = vld [vmem:[#allocation14 + $0x50] sm:$0xff] }
 0x3b4   :  { %3969 = vmatpush1.bf16.msra.mxu0 %v8215_v8  ;;  %v1200_v8 = vld [vmem:[#allocation14 + $0xf48] sm:$0xff] }
 0x3b5   :  { %4133 = vmatpush1.bf16.msra.mxu1 %v8217_v47  ;;  %3970 = vmatprep.subr.bf16.mxu0 %v8224_v49  ;;  %v1204_v47 = vld [vmem:[#allocation14 + $0xf68] sm:$0xff]  ;;  %v8263_v49 = vcombine.low %v1191_v51, %v1195_v53  ;;  %v9457_v51 = vpack.c.bf16 %v709_v28, %v709_v28 }
 0x3b6   :  { %4134 = vmatprep.subr.bf16.mxu1 %v8226_v52  ;;  %v8265_v52 = vcombine.low %v1192_v60, %v1196_v16  ;;  %v8274_v23 = vcombine.high %v1200_v8, %v1204_v47  ;;  %v729_v16 = vld [vmem:[#allocation14 + $0x90] sm:$0xff] }
 0x3b8   :  { %3971 = vmatpush1.bf16.msra.mxu0 %v8223_v27  ;;  %v1208_v27 = vld [vmem:[#allocation14 + $0xf88] sm:$0xff] }
 0x3b9   :  { %4135 = vmatpush1.bf16.msra.mxu1 %v8225_v10  ;;  %3972 = vmatprep.subr.bf16.mxu0 %v8232_v31  ;;  %v1212_v10 = vld [vmem:[#allocation14 + $0xfa8] sm:$0xff]  ;;  %v8271_v31 = vcombine.low %v1199_v7, %v1203_v11 }
 0x3ba   :  { %4136 = vmatprep.subr.bf16.mxu1 %v8234_v36  ;;  %v8273_v36 = vcombine.low %v1200_v8, %v1204_v47  ;;  %v8282_v38 = vcombine.high %v1208_v27, %v1212_v10  ;;  %v737_v47 = vld [vmem:[#allocation14 + $0xd0] sm:$0xff] }
 0x3bc   :  { %3973 = vmatpush1.bf16.msra.mxu0 %v8231_v19  ;;  %v1216_v19 = vld [vmem:[#allocation14 + $0xfc8] sm:$0xff] }
 0x3bd   :  { %4137 = vmatpush1.bf16.msra.mxu1 %v8233_v44  ;;  %3974 = vmatprep.subr.bf16.mxu0 %v8240_v54  ;;  %v1220_v44 = vld [vmem:[#allocation14 + $0xfe8] sm:$0xff]  ;;  %v8279_v54 = vcombine.low %v1207_v12, %v1211_v25 }
 0x3be   :  { %4138 = vmatprep.subr.bf16.mxu1 %v8242_v56  ;;  %v8281_v56 = vcombine.low %v1208_v27, %v1212_v10  ;;  %v8290_v59 = vcombine.high %v1216_v19, %v1220_v44  ;;  %v745_v10 = vld [vmem:[#allocation14 + $0x110] sm:$0xff] }
 0x3c0   :  { %3975 = vmatpush1.bf16.msra.mxu0 %v8239_v0  ;;  %v714_v0 = vld [vmem:[#allocation14 + $0x18] sm:$0xff] }
 0x3c1   :  { %4139 = vmatpush1.bf16.msra.mxu1 %v8241_v1  ;;  %3976 = vmatprep.subr.bf16.mxu0 %v8248_v3  ;;  %v718_v1 = vld [vmem:[#allocation14 + $0x38] sm:$0xff]  ;;  %v8287_v3 = vcombine.low %v1215_v46, %v1219_v48 }
 0x3c2   :  { %4140 = vmatprep.subr.bf16.mxu1 %v8250_v4  ;;  %v8289_v4 = vcombine.low %v1216_v19, %v1220_v44  ;;  %v7790_v30 = vcombine.high %v714_v0, %v718_v1  ;;  %v7789_v53 = vcombine.low %v714_v0, %v718_v1  ;;  %v753_v19 = vld [vmem:[#allocation14 + $0x150] sm:$0xff] }
 0x3c3   :  { %v757_v44 = vld [vmem:[#allocation14 + $0x170] sm:$0xff] }
 0x3c4   :  { %3977 = vmatpush1.bf16.msra.mxu0 %v8247_v33  ;;  %v725_v33 = vld [vmem:[#allocation14 + $0x70] sm:$0xff]  ;;  %v7827_v28 = vcombine.low %v753_v19, %v757_v44 }
 0x3c5   :  { %4141 = vmatpush1.bf16.msra.mxu1 %v8249_v34  ;;  %3978 = vmatprep.subr.bf16.mxu0 %v8256_v13  ;;  %v7787_v34 = vcombine.low %v713_v61, %v717_v62  ;;  %v722_v13 = vld [vmem:[#allocation14 + $0x58] sm:$0xff]  ;;  %v7796_v60 = vcombine.high %v721_v32, %v725_v33  ;;  %v7828_v61 = vcombine.high %v753_v19, %v757_v44  ;;  %v761_v0 = vld [vmem:[#allocation14 + $0x190] sm:$0xff] }
 0x3c6   :  { %4142 = vmatprep.subr.bf16.mxu1 %v8258_v14  ;;  %v726_v14 = vld [vmem:[#allocation14 + $0x78] sm:$0xff]  ;;  %v765_v1 = vld [vmem:[#allocation14 + $0x1b0] sm:$0xff] }
 0x3c7   :  { %v7798_v63 = vcombine.high %v722_v13, %v726_v14  ;;  %v7797_v7 = vcombine.low %v722_v13, %v726_v14  ;;  %v770_v13 = vld [vmem:[#allocation14 + $0x1d8] sm:$0xff]  ;;  %v801_v44 = vld [vmem:[#allocation14 + $0x2d0] sm:$0xff] }
 0x3c8   :  { %3979 = vmatpush1.bf16.msra.mxu0 %v8255_v17  ;;  %v733_v17 = vld [vmem:[#allocation14 + $0xb0] sm:$0xff]  ;;  %v774_v14 = vld [vmem:[#allocation14 + $0x1f8] sm:$0xff] }
 0x3c9   :  { %4143 = vmatpush1.bf16.msra.mxu1 %v8257_v5  ;;  %3980 = vmatprep.subr.bf16.mxu0 %v8264_v20  ;;  %v730_v5 = vld [vmem:[#allocation14 + $0x98] sm:$0xff]  ;;  %v7804_v11 = vcombine.high %v729_v16, %v733_v17 }
 0x3ca   :  { %4144 = vmatprep.subr.bf16.mxu1 %v8266_v21  ;;  %v734_v20 = vld [vmem:[#allocation14 + $0xb8] sm:$0xff]  ;;  %v7795_v21 = vcombine.low %v721_v32, %v725_v33  ;;  %v769_v33 = vld [vmem:[#allocation14 + $0x1d0] sm:$0xff] }
 0x3cb   :  { %v7806_v8 = vcombine.high %v730_v5, %v734_v20  ;;  %v7805_v12 = vcombine.low %v730_v5, %v734_v20  ;;  %v781_v5 = vld [vmem:[#allocation14 + $0x230] sm:$0xff]  ;;  %v778_v20 = vld [vmem:[#allocation14 + $0x218] sm:$0xff] }
 0x3cc   :  { %3981 = vmatpush1.bf16.msra.mxu0 %v8263_v49  ;;  %v741_v49 = vld [vmem:[#allocation14 + $0xf0] sm:$0xff] }
 0x3cd   :  { %4145 = vmatpush1.bf16.msra.mxu1 %v8265_v52  ;;  %3982 = vmatprep.subr.bf16.mxu0 %v8272_v22  ;;  %v738_v52 = vld [vmem:[#allocation14 + $0xd8] sm:$0xff]  ;;  %v7812_v25 = vcombine.high %v737_v47, %v741_v49 }
 0x3ce   :  { %4146 = vmatprep.subr.bf16.mxu1 %v8274_v23  ;;  %v742_v22 = vld [vmem:[#allocation14 + $0xf8] sm:$0xff]  ;;  %v7803_v23 = vcombine.low %v729_v16, %v733_v17  ;;  %v7846_v17 = vcombine.high %v770_v13, %v774_v14 }
 0x3cf   :  { %v7814_v27 = vcombine.high %v738_v52, %v742_v22 }
 0x3d0   :  { %3983 = vmatpush1.bf16.msra.mxu0 %v8271_v31  ;;  %v749_v31 = vld [vmem:[#allocation14 + $0x130] sm:$0xff] }
 0x3d1   :  { %4147 = vmatpush1.bf16.msra.mxu1 %v8273_v36  ;;  %3984 = vmatprep.subr.bf16.mxu0 %v8280_v15  ;;  %v746_v36 = vld [vmem:[#allocation14 + $0x118] sm:$0xff]  ;;  %v7820_v46 = vcombine.high %v745_v10, %v749_v31 }
 0x3d2   :  { %4148 = vmatprep.subr.bf16.mxu1 %v8282_v38  ;;  %v750_v15 = vld [vmem:[#allocation14 + $0x138] sm:$0xff]  ;;  %v7813_v38 = vcombine.low %v738_v52, %v742_v22  ;;  %v789_v52 = vld [vmem:[#allocation14 + $0x270] sm:$0xff] }
 0x3d3   :  { %v7822_v48 = vcombine.high %v746_v36, %v750_v15  ;;  %v786_v22 = vld [vmem:[#allocation14 + $0x258] sm:$0xff] }
 0x3d4   :  { %3985 = vmatpush1.bf16.msra.mxu0 %v8279_v54  ;;  %v754_v54 = vld [vmem:[#allocation14 + $0x158] sm:$0xff] }
 0x3d5   :  { %4149 = vmatpush1.bf16.msra.mxu1 %v8281_v56  ;;  %3986 = vmatprep.subr.bf16.mxu0 %v8288_v57  ;;  %v758_v56 = vld [vmem:[#allocation14 + $0x178] sm:$0xff]  ;;  %v7819_v57 = vcombine.low %v745_v10, %v749_v31  ;;  %v793_v31 = vld [vmem:[#allocation14 + $0x290] sm:$0xff] }
 0x3d6   :  { %4150 = vmatprep.subr.bf16.mxu1 %v8290_v59  ;;  %v7821_v59 = vcombine.low %v746_v36, %v750_v15  ;;  %v7830_v62 = vcombine.high %v754_v54, %v758_v56  ;;  %v797_v36 = vld [vmem:[#allocation14 + $0x2b0] sm:$0xff]  ;;  %v794_v15 = vld [vmem:[#allocation14 + $0x298] sm:$0xff] }
 0x3d8   :  { %3987 = vmatpush1.bf16.msra.mxu0 %v8287_v3  ;;  %v762_v3 = vld [vmem:[#allocation14 + $0x198] sm:$0xff] }
 0x3d9   :  { %4151 = vmatpush1.bf16.msra.mxu1 %v8289_v4  ;;  %4161 = vmatprep.subr.bf16.mxu0 %v7788_v29  ;;  %v766_v4 = vld [vmem:[#allocation14 + $0x1b8] sm:$0xff]  ;;  %v7829_v29 = vcombine.low %v754_v54, %v758_v56  ;;  %v805_v54 = vld [vmem:[#allocation14 + $0x2f0] sm:$0xff] }
 0x3da   :  { %4325 = vmatprep.subr.bf16.mxu1 %v7790_v30  ;;  %v7836_v30 = vcombine.high %v761_v0, %v765_v1  ;;  %v7838_v32 = vcombine.high %v762_v3, %v766_v4  ;;  %v802_v56 = vld [vmem:[#allocation14 + $0x2d8] sm:$0xff] }
 0x3db   :  { %3989 = vmatmul.mubr.bf16.vlgmr.msra.gmra.mrb[8].mxu0 %v9457_v51 }
 0x3dc   :  { %4153 = vmatmul.mubr.bf16.vlgmr.msra.gmra.mrb[8].mxu1 %v9457_v51  ;;  %4162 = vmatpush1.bf16.msra.mxu0 %v7787_v34  ;;  %v773_v34 = vld [vmem:[#allocation14 + $0x1f0] sm:$0xff] }
 0x3dd   :  { %4193 = vmatprep.mubr.bf16.mxu0 %v9410_v42  ;;  %4326 = vmatpush1.bf16.msra.mxu1 %v7789_v53  ;;  %v7835_v53 = vcombine.low %v761_v0, %v765_v1  ;;  %v7844_v16 = vcombine.high %v769_v33, %v773_v34  ;;  %v809_v1 = vld [vmem:[#allocation14 + $0x310] sm:$0xff] }
 0x3de   :  { %4357 = vmatprep.mubr.bf16.mxu1 %v9410_v42  ;;  %4163 = vmatprep.subr.bf16.mxu0 %v7796_v60  ;;  %v7811_v42 = vcombine.low %v737_v47, %v741_v49  ;;  %v7837_v60 = vcombine.low %v762_v3, %v766_v4  ;;  %v785_v49 = vld [vmem:[#allocation14 + $0x250] sm:$0xff]  ;;  %v810_v4 = vld [vmem:[#allocation14 + $0x318] sm:$0xff] }
 0x3df   :  { %4327 = vmatprep.subr.bf16.mxu1 %v7798_v63  ;;  %v777_v63 = vld [vmem:[#allocation14 + $0x210] sm:$0xff] }
 0x3e0   :  { %4164 = vmatpush1.bf16.msra.mxu0 %v7795_v21  ;;  %v782_v21 = vld [vmem:[#allocation14 + $0x238] sm:$0xff]  ;;  %v813_v3 = vld [vmem:[#allocation14 + $0x330] sm:$0xff] }
 0x3e1   :  { %4328 = vmatpush1.bf16.msra.mxu1 %v7797_v7  ;;  %4165 = vmatprep.subr.bf16.mxu0 %v7804_v11  ;;  %v7843_v7 = vcombine.low %v769_v33, %v773_v34  ;;  %v7845_v11 = vcombine.low %v770_v13, %v774_v14  ;;  %v7854_v47 = vcombine.high %v778_v20, %v782_v21  ;;  %v817_v34 = vld [vmem:[#allocation14 + $0x350] sm:$0xff]  ;;  %v818_v14 = vld [vmem:[#allocation14 + $0x358] sm:$0xff] }
 0x3e2   :  { %4329 = vmatprep.subr.bf16.mxu1 %v7806_v8  ;;  %v7852_v8 = vcombine.high %v777_v63, %v781_v5  ;;  %v821_v13 = vld [vmem:[#allocation14 + $0x370] sm:$0xff] }
 0x3e4   :  { %4166 = vmatpush1.bf16.msra.mxu0 %v7803_v23  ;;  %v790_v23 = vld [vmem:[#allocation14 + $0x278] sm:$0xff] }
 0x3e5   :  { %4330 = vmatpush1.bf16.msra.mxu1 %v7805_v12  ;;  %4167 = vmatprep.subr.bf16.mxu0 %v7812_v25  ;;  %v7851_v12 = vcombine.low %v777_v63, %v781_v5  ;;  %v7853_v25 = vcombine.low %v778_v20, %v782_v21  ;;  %v7862_v10 = vcombine.high %v786_v22, %v790_v23  ;;  %v825_v5 = vld [vmem:[#allocation14 + $0x390] sm:$0xff]  ;;  %v826_v21 = vld [vmem:[#allocation14 + $0x398] sm:$0xff] }
 0x3e6   :  { %4331 = vmatprep.subr.bf16.mxu1 %v7814_v27  ;;  %v7860_v27 = vcombine.high %v785_v49, %v789_v52  ;;  %v829_v20 = vld [vmem:[#allocation14 + $0x3b0] sm:$0xff] }
 0x3e8   :  { %4168 = vmatpush1.bf16.msra.mxu0 %v7811_v42  ;;  %v798_v42 = vld [vmem:[#allocation14 + $0x2b8] sm:$0xff] }
 0x3e9   :  { %4332 = vmatpush1.bf16.msra.mxu1 %v7813_v38  ;;  %4169 = vmatprep.subr.bf16.mxu0 %v7820_v46  ;;  %v7859_v38 = vcombine.low %v785_v49, %v789_v52  ;;  %v7861_v46 = vcombine.low %v786_v22, %v790_v23  ;;  %v7870_v19 = vcombine.high %v794_v15, %v798_v42  ;;  %v833_v52 = vld [vmem:[#allocation14 + $0x3d0] sm:$0xff]  ;;  %v834_v23 = vld [vmem:[#allocation14 + $0x3d8] sm:$0xff] }
 0x3ea   :  { %4333 = vmatprep.subr.bf16.mxu1 %v7822_v48  ;;  %v7868_v48 = vcombine.high %v793_v31, %v797_v36  ;;  %v837_v22 = vld [vmem:[#allocation14 + $0x3f0] sm:$0xff] }
 0x3ec   :  { %4170 = vmatpush1.bf16.msra.mxu0 %v7819_v57  ;;  %v806_v57 = vld [vmem:[#allocation14 + $0x2f8] sm:$0xff] }
 0x3ed   :  { %4334 = vmatpush1.bf16.msra.mxu1 %v7821_v59  ;;  %4171 = vmatprep.subr.bf16.mxu0 %v7828_v61  ;;  %v7867_v59 = vcombine.low %v793_v31, %v797_v36  ;;  %v7869_v61 = vcombine.low %v794_v15, %v798_v42  ;;  %v7878_v0 = vcombine.high %v802_v56, %v806_v57  ;;  %v841_v36 = vld [vmem:[#allocation14 + $0x410] sm:$0xff]  ;;  %v842_v42 = vld [vmem:[#allocation14 + $0x418] sm:$0xff] }
 0x3ee   :  { %4335 = vmatprep.subr.bf16.mxu1 %v7830_v62  ;;  %v7876_v62 = vcombine.high %v801_v44, %v805_v54  ;;  %v845_v15 = vld [vmem:[#allocation14 + $0x430] sm:$0xff] }
 0x3f0   :  { %4172 = vmatpush1.bf16.msra.mxu0 %v7827_v28  ;;  %v814_v28 = vld [vmem:[#allocation14 + $0x338] sm:$0xff] }
 0x3f1   :  { %4336 = vmatpush1.bf16.msra.mxu1 %v7829_v29  ;;  %4173 = vmatprep.subr.bf16.mxu0 %v7836_v30  ;;  %v7875_v29 = vcombine.low %v801_v44, %v805_v54  ;;  %v7877_v30 = vcombine.low %v802_v56, %v806_v57  ;;  %v7886_v33 = vcombine.high %v810_v4, %v814_v28  ;;  %v849_v54 = vld [vmem:[#allocation14 + $0x450] sm:$0xff] }
 0x3f2   :  { %4337 = vmatprep.subr.bf16.mxu1 %v7838_v32  ;;  %v7884_v32 = vcombine.high %v809_v1, %v813_v3  ;;  %v853_v56 = vld [vmem:[#allocation14 + $0x470] sm:$0xff]  ;;  %v7915_v57 = vcombine.low %v841_v36, %v845_v15 }
 0x3f4   :  { %4174 = vmatpush1.bf16.msra.mxu0 %v7835_v53  ;;  %v822_v53 = vld [vmem:[#allocation14 + $0x378] sm:$0xff] }
 0x3f5   :  { %4338 = vmatpush1.bf16.msra.mxu1 %v7837_v60  ;;  %4175 = vmatprep.subr.bf16.mxu0 %v7844_v16  ;;  %v7883_v60 = vcombine.low %v809_v1, %v813_v3  ;;  %v7885_v16 = vcombine.low %v810_v4, %v814_v28  ;;  %v7894_v63 = vcombine.high %v818_v14, %v822_v53  ;;  %v857_v1 = vld [vmem:[#allocation14 + $0x490] sm:$0xff]  ;;  %v858_v28 = vld [vmem:[#allocation14 + $0x498] sm:$0xff] }
 0x3f6   :  { %4339 = vmatprep.subr.bf16.mxu1 %v7846_v17  ;;  %v7892_v17 = vcombine.high %v817_v34, %v821_v13  ;;  %v861_v3 = vld [vmem:[#allocation14 + $0x4b0] sm:$0xff] }
 0x3f8   :  { %4176 = vmatpush1.bf16.msra.mxu0 %v7843_v7  ;;  %v830_v7 = vld [vmem:[#allocation14 + $0x3b8] sm:$0xff] }
 0x3f9   :  { %4340 = vmatpush1.bf16.msra.mxu1 %v7845_v11  ;;  %4177 = vmatprep.subr.bf16.mxu0 %v7852_v8  ;;  %v7891_v11 = vcombine.low %v817_v34, %v821_v13  ;;  %v7893_v8 = vcombine.low %v818_v14, %v822_v53  ;;  %v7902_v49 = vcombine.high %v826_v21, %v830_v7  ;;  %v865_v13 = vld [vmem:[#allocation14 + $0x4d0] sm:$0xff]  ;;  %v866_v53 = vld [vmem:[#allocation14 + $0x4d8] sm:$0xff] }
 0x3fa   :  { %4341 = vmatprep.subr.bf16.mxu1 %v7854_v47  ;;  %v7900_v47 = vcombine.high %v825_v5, %v829_v20  ;;  %v869_v14 = vld [vmem:[#allocation14 + $0x4f0] sm:$0xff] }
 0x3fc   :  { %4178 = vmatpush1.bf16.msra.mxu0 %v7851_v12  ;;  %v838_v12 = vld [vmem:[#allocation14 + $0x3f8] sm:$0xff] }
 0x3fd   :  { %4342 = vmatpush1.bf16.msra.mxu1 %v7853_v25  ;;  %4179 = vmatprep.subr.bf16.mxu0 %v7860_v27  ;;  %v7899_v25 = vcombine.low %v825_v5, %v829_v20  ;;  %v7901_v27 = vcombine.low %v826_v21, %v830_v7  ;;  %v7910_v31 = vcombine.high %v834_v23, %v838_v12  ;;  %v873_v5 = vld [vmem:[#allocation14 + $0x510] sm:$0xff]  ;;  %v874_v21 = vld [vmem:[#allocation14 + $0x518] sm:$0xff] }
 0x3fe   :  { %4343 = vmatprep.subr.bf16.mxu1 %v7862_v10  ;;  %v7908_v10 = vcombine.high %v833_v52, %v837_v22  ;;  %v877_v20 = vld [vmem:[#allocation14 + $0x530] sm:$0xff]  ;;  %v878_v7 = vld [vmem:[#allocation14 + $0x538] sm:$0xff] }
 0x400   :  { %4180 = vmatpush1.bf16.msra.mxu0 %v7859_v38  ;;  %v846_v38 = vld [vmem:[#allocation14 + $0x438] sm:$0xff] }
 0x401   :  { %4344 = vmatpush1.bf16.msra.mxu1 %v7861_v46  ;;  %4181 = vmatprep.subr.bf16.mxu0 %v7868_v48  ;;  %v7907_v46 = vcombine.low %v833_v52, %v837_v22  ;;  %v7909_v48 = vcombine.low %v834_v23, %v838_v12  ;;  %v7918_v44 = vcombine.high %v842_v42, %v846_v38  ;;  %v885_v52 = vld [vmem:[#allocation14 + $0x570] sm:$0xff]  ;;  %v882_v22 = vld [vmem:[#allocation14 + $0x558] sm:$0xff] }
 0x402   :  { %4345 = vmatprep.subr.bf16.mxu1 %v7870_v19  ;;  %v7916_v19 = vcombine.high %v841_v36, %v845_v15  ;;  %v886_v23 = vld [vmem:[#allocation14 + $0x578] sm:$0xff]  ;;  %v7947_v12 = vcombine.low %v873_v5, %v877_v20  ;;  %v893_v36 = vld [vmem:[#allocation14 + $0x5b0] sm:$0xff] }
 0x403   :  { %v890_v15 = vld [vmem:[#allocation14 + $0x598] sm:$0xff] }
 0x404   :  { %4182 = vmatpush1.bf16.msra.mxu0 %v7867_v59  ;;  %v850_v59 = vld [vmem:[#allocation14 + $0x458] sm:$0xff] }
 0x405   :  { %4346 = vmatpush1.bf16.msra.mxu1 %v7869_v61  ;;  %4183 = vmatprep.subr.bf16.mxu0 %v7876_v62  ;;  %v854_v61 = vld [vmem:[#allocation14 + $0x478] sm:$0xff]  ;;  %v7917_v62 = vcombine.low %v842_v42, %v846_v38 }
 0x406   :  { %4347 = vmatprep.subr.bf16.mxu1 %v7878_v0  ;;  %v7924_v0 = vcombine.high %v849_v54, %v853_v56  ;;  %v7926_v4 = vcombine.high %v850_v59, %v854_v61  ;;  %v894_v42 = vld [vmem:[#allocation14 + $0x5b8] sm:$0xff] }
 0x408   :  { %4184 = vmatpush1.bf16.msra.mxu0 %v7875_v29  ;;  %v862_v29 = vld [vmem:[#allocation14 + $0x4b8] sm:$0xff] }
 0x409   :  { %4348 = vmatpush1.bf16.msra.mxu1 %v7877_v30  ;;  %4185 = vmatprep.subr.bf16.mxu0 %v7884_v32  ;;  %v7923_v30 = vcombine.low %v849_v54, %v853_v56  ;;  %v7925_v32 = vcombine.low %v850_v59, %v854_v61  ;;  %v7934_v34 = vcombine.high %v858_v28, %v862_v29  ;;  %v901_v54 = vld [vmem:[#allocation14 + $0x5f0] sm:$0xff]  ;;  %v898_v56 = vld [vmem:[#allocation14 + $0x5d8] sm:$0xff] }
 0x40a   :  { %4349 = vmatprep.subr.bf16.mxu1 %v7886_v33  ;;  %v7932_v33 = vcombine.high %v857_v1, %v861_v3  ;;  %v7965_v61 = vcombine.low %v890_v15, %v894_v42 }
 0x40c   :  { %4186 = vmatpush1.bf16.msra.mxu0 %v7883_v60  ;;  %v870_v60 = vld [vmem:[#allocation14 + $0x4f8] sm:$0xff] }
 0x40d   :  { %4350 = vmatpush1.bf16.msra.mxu1 %v7885_v16  ;;  %4187 = vmatprep.subr.bf16.mxu0 %v7892_v17  ;;  %v7931_v16 = vcombine.low %v857_v1, %v861_v3  ;;  %v7940_v17 = vcombine.high %v865_v13, %v869_v14  ;;  %v905_v1 = vld [vmem:[#allocation14 + $0x610] sm:$0xff] }
 0x40e   :  { %4351 = vmatprep.subr.bf16.mxu1 %v7894_v63  ;;  %v7942_v63 = vcombine.high %v866_v53, %v870_v60  ;;  %v909_v3 = vld [vmem:[#allocation14 + $0x630] sm:$0xff] }
 0x410   :  { %4188 = vmatpush1.bf16.msra.mxu0 %v7891_v11  ;;  %v7941_v11 = vcombine.low %v866_v53, %v870_v60  ;;  %v918_v53 = vld [vmem:[#allocation14 + $0x678] sm:$0xff]  ;;  %v7979_v60 = vcombine.low %v905_v1, %v909_v3 }
 0x411   :  { %4352 = vmatpush1.bf16.msra.mxu1 %v7893_v8  ;;  %4189 = vmatprep.subr.bf16.mxu0 %v7900_v47  ;;  %v7948_v8 = vcombine.high %v873_v5, %v877_v20  ;;  %v7950_v47 = vcombine.high %v874_v21, %v878_v7  ;;  %v925_v5 = vld [vmem:[#allocation14 + $0x6b0] sm:$0xff]  ;;  %v922_v20 = vld [vmem:[#allocation14 + $0x698] sm:$0xff] }
 0x412   :  { %4353 = vmatprep.subr.bf16.mxu1 %v7902_v49  ;;  %v881_v49 = vld [vmem:[#allocation14 + $0x550] sm:$0xff] }
 0x413   :  { %v7955_v38 = vcombine.low %v881_v49, %v885_v52 }
 0x414   :  { %4190 = vmatpush1.bf16.msra.mxu0 %v7899_v25  ;;  %v7949_v25 = vcombine.low %v874_v21, %v878_v7  ;;  %v926_v21 = vld [vmem:[#allocation14 + $0x6b8] sm:$0xff] }
 0x415   :  { %4354 = vmatpush1.bf16.msra.mxu1 %v7901_v27  ;;  %4191 = vmatprep.subr.bf16.mxu0 %v7908_v10  ;;  %v7956_v27 = vcombine.high %v881_v49, %v885_v52  ;;  %v7958_v10 = vcombine.high %v882_v22, %v886_v23  ;;  %v933_v49 = vld [vmem:[#allocation14 + $0x6f0] sm:$0xff]  ;;  %v930_v52 = vld [vmem:[#allocation14 + $0x6d8] sm:$0xff] }
 0x416   :  { %4355 = vmatprep.subr.bf16.mxu1 %v7910_v31  ;;  %v889_v31 = vld [vmem:[#allocation14 + $0x590] sm:$0xff] }
 0x417   :  { %v7963_v59 = vcombine.low %v889_v31, %v893_v36 }
 0x418   :  { %4192 = vmatpush1.bf16.msra.mxu0 %v7907_v46  ;;  %v7957_v46 = vcombine.low %v882_v22, %v886_v23  ;;  %v934_v22 = vld [vmem:[#allocation14 + $0x6f8] sm:$0xff] }
 0x419   :  { %4356 = vmatpush1.bf16.msra.mxu1 %v7909_v48  ;;  %4202 = vmatprep.subr.bf16.mxu0 %v7916_v19  ;;  %v7964_v48 = vcombine.high %v889_v31, %v893_v36  ;;  %v7966_v19 = vcombine.high %v890_v15, %v894_v42  ;;  %v941_v31 = vld [vmem:[#allocation14 + $0x730] sm:$0xff]  ;;  %v938_v36 = vld [vmem:[#allocation14 + $0x718] sm:$0xff] }
 0x41a   :  { %4366 = vmatprep.subr.bf16.mxu1 %v7918_v44  ;;  %v897_v44 = vld [vmem:[#allocation14 + $0x5d0] sm:$0xff]  ;;  %v942_v15 = vld [vmem:[#allocation14 + $0x738] sm:$0xff] }
 0x41b   :  { %4194 = vmatmul.mubr.bf16.vlgmr.msra.gmra.mrb[12].mxu0 %v9412_v43 }
 0x41c   :  { %4358 = vmatmul.mubr.bf16.vlgmr.msra.gmra.mrb[12].mxu1 %v9412_v43  ;;  %4203 = vmatpush1.bf16.msra.mxu0 %v7915_v57  ;;  %v7933_v43 = vcombine.low %v858_v28, %v862_v29  ;;  %v902_v57 = vld [vmem:[#allocation14 + $0x5f8] sm:$0xff]  ;;  %v7971_v29 = vcombine.low %v897_v44, %v901_v54 }
 0x41d   :  { %4234 = vmatprep.mubr.bf16.mxu0 %v9424_v45  ;;  %4367 = vmatpush1.bf16.msra.mxu1 %v7917_v62  ;;  %v7972_v62 = vcombine.high %v897_v44, %v901_v54  ;;  %v910_v28 = vld [vmem:[#allocation14 + $0x638] sm:$0xff]  ;;  %v949_v44 = vld [vmem:[#allocation14 + $0x770] sm:$0xff] }
 0x41e   :  { %4398 = vmatprep.mubr.bf16.mxu1 %v9424_v45  ;;  %4204 = vmatprep.subr.bf16.mxu0 %v7924_v0  ;;  %v7939_v45 = vcombine.low %v865_v13, %v869_v14  ;;  %v7974_v0 = vcombine.high %v898_v56, %v902_v57  ;;  %v917_v13 = vld [vmem:[#allocation14 + $0x670] sm:$0xff]  ;;  %v914_v14 = vld [vmem:[#allocation14 + $0x658] sm:$0xff] }
 0x41f   :  { %4368 = vmatprep.subr.bf16.mxu1 %v7926_v4  ;;  %v906_v4 = vld [vmem:[#allocation14 + $0x618] sm:$0xff] }
 0x420   :  { %4205 = vmatpush1.bf16.msra.mxu0 %v7923_v30  ;;  %v7973_v30 = vcombine.low %v898_v56, %v902_v57  ;;  %v946_v54 = vld [vmem:[#allocation14 + $0x758] sm:$0xff] }
 0x421   :  { %4369 = vmatpush1.bf16.msra.mxu1 %v7925_v32  ;;  %4206 = vmatprep.subr.bf16.mxu0 %v7932_v33  ;;  %v7980_v32 = vcombine.high %v905_v1, %v909_v3  ;;  %v7982_v33 = vcombine.high %v906_v4, %v910_v28  ;;  %v950_v56 = vld [vmem:[#allocation14 + $0x778] sm:$0xff]  ;;  %v957_v1 = vld [vmem:[#allocation14 + $0x7b0] sm:$0xff] }
 0x422   :  { %4370 = vmatprep.subr.bf16.mxu1 %v7934_v34  ;;  %v913_v34 = vld [vmem:[#allocation14 + $0x650] sm:$0xff]  ;;  %v954_v3 = vld [vmem:[#allocation14 + $0x798] sm:$0xff] }
 0x423   :  { %v7987_v7 = vcombine.low %v913_v34, %v917_v13 }
 0x424   :  { %4207 = vmatpush1.bf16.msra.mxu0 %v7931_v16  ;;  %v7981_v16 = vcombine.low %v906_v4, %v910_v28  ;;  %v958_v4 = vld [vmem:[#allocation14 + $0x7b8] sm:$0xff] }
 0x425   :  { %4371 = vmatpush1.bf16.msra.mxu1 %v7933_v43  ;;  %4208 = vmatprep.subr.bf16.mxu0 %v7940_v17  ;;  %v7988_v43 = vcombine.high %v913_v34, %v917_v13  ;;  %v7990_v17 = vcombine.high %v914_v14, %v918_v53  ;;  %v965_v34 = vld [vmem:[#allocation14 + $0x7f0] sm:$0xff]  ;;  %v962_v13 = vld [vmem:[#allocation14 + $0x7d8] sm:$0xff] }
 0x426   :  { %4372 = vmatprep.subr.bf16.mxu1 %v7942_v63  ;;  %v921_v63 = vld [vmem:[#allocation14 + $0x690] sm:$0xff] }
 0x427   :  { %v7995_v23 = vcombine.low %v921_v63, %v925_v5 }
 0x428   :  { %4209 = vmatpush1.bf16.msra.mxu0 %v7939_v45  ;;  %v7989_v45 = vcombine.low %v914_v14, %v918_v53  ;;  %v966_v14 = vld [vmem:[#allocation14 + $0x7f8] sm:$0xff] }
 0x429   :  { %4373 = vmatpush1.bf16.msra.mxu1 %v7941_v11  ;;  %4210 = vmatprep.subr.bf16.mxu0 %v7948_v8  ;;  %v7996_v11 = vcombine.high %v921_v63, %v925_v5  ;;  %v7998_v8 = vcombine.high %v922_v20, %v926_v21  ;;  %v973_v63 = vld [vmem:[#allocation14 + $0x830] sm:$0xff]  ;;  %v970_v5 = vld [vmem:[#allocation14 + $0x818] sm:$0xff] }
 0x42a   :  { %4374 = vmatprep.subr.bf16.mxu1 %v7950_v47  ;;  %v929_v47 = vld [vmem:[#allocation14 + $0x6d0] sm:$0xff] }
 0x42b   :  { %v8003_v42 = vcombine.low %v929_v47, %v933_v49 }
 0x42c   :  { %4211 = vmatpush1.bf16.msra.mxu0 %v7947_v12  ;;  %v7997_v12 = vcombine.low %v922_v20, %v926_v21  ;;  %v974_v20 = vld [vmem:[#allocation14 + $0x838] sm:$0xff] }
 0x42d   :  { %4375 = vmatpush1.bf16.msra.mxu1 %v7949_v25  ;;  %4212 = vmatprep.subr.bf16.mxu0 %v7956_v27  ;;  %v8004_v25 = vcombine.high %v929_v47, %v933_v49  ;;  %v8006_v27 = vcombine.high %v930_v52, %v934_v22  ;;  %v981_v47 = vld [vmem:[#allocation14 + $0x870] sm:$0xff] }
 0x42e   :  { %4376 = vmatprep.subr.bf16.mxu1 %v7958_v10  ;;  %v937_v10 = vld [vmem:[#allocation14 + $0x710] sm:$0xff] }
 0x42f   :  { %v8011_v57 = vcombine.low %v937_v10, %v941_v31 }
 0x430   :  { %4213 = vmatpush1.bf16.msra.mxu0 %v7955_v38  ;;  %v8005_v38 = vcombine.low %v930_v52, %v934_v22  ;;  %v978_v52 = vld [vmem:[#allocation14 + $0x858] sm:$0xff] }
 0x431   :  { %4377 = vmatpush1.bf16.msra.mxu1 %v7957_v46  ;;  %4214 = vmatprep.subr.bf16.mxu0 %v7964_v48  ;;  %v8012_v46 = vcombine.high %v937_v10, %v941_v31  ;;  %v8014_v48 = vcombine.high %v938_v36, %v942_v15  ;;  %v982_v22 = vld [vmem:[#allocation14 + $0x878] sm:$0xff] }
 0x432   :  { %4378 = vmatprep.subr.bf16.mxu1 %v7966_v19  ;;  %v945_v19 = vld [vmem:[#allocation14 + $0x750] sm:$0xff]  ;;  %v8054_v10 = vcombine.high %v978_v52, %v982_v22  ;;  %v986_v31 = vld [vmem:[#allocation14 + $0x898] sm:$0xff] }
 0x433   :  { %v8019_v28 = vcombine.low %v945_v19, %v949_v44 }
 0x434   :  { %4215 = vmatpush1.bf16.msra.mxu0 %v7963_v59  ;;  %v8013_v59 = vcombine.low %v938_v36, %v942_v15  ;;  %v990_v36 = vld [vmem:[#allocation14 + $0x8b8] sm:$0xff] }
 0x435   :  { %4379 = vmatpush1.bf16.msra.mxu1 %v7965_v61  ;;  %4216 = vmatprep.subr.bf16.mxu0 %v7972_v62  ;;  %v8020_v61 = vcombine.high %v945_v19, %v949_v44  ;;  %v8022_v62 = vcombine.high %v946_v54, %v950_v56  ;;  %v997_v19 = vld [vmem:[#allocation14 + $0x8f0] sm:$0xff]  ;;  %v994_v44 = vld [vmem:[#allocation14 + $0x8d8] sm:$0xff] }
 0x436   :  { %4380 = vmatprep.subr.bf16.mxu1 %v7974_v0  ;;  %v953_v0 = vld [vmem:[#allocation14 + $0x790] sm:$0xff] }
 0x437   :  { %v8027_v53 = vcombine.low %v953_v0, %v957_v1 }
 0x438   :  { %4217 = vmatpush1.bf16.msra.mxu0 %v7971_v29  ;;  %v8021_v29 = vcombine.low %v946_v54, %v950_v56  ;;  %v998_v54 = vld [vmem:[#allocation14 + $0x8f8] sm:$0xff] }
 0x439   :  { %4381 = vmatpush1.bf16.msra.mxu1 %v7973_v30  ;;  %4218 = vmatprep.subr.bf16.mxu0 %v7980_v32  ;;  %v8028_v30 = vcombine.high %v953_v0, %v957_v1  ;;  %v8030_v32 = vcombine.high %v954_v3, %v958_v4  ;;  %v1002_v0 = vld [vmem:[#allocation14 + $0x918] sm:$0xff] }
 0x43a   :  { %4382 = vmatprep.subr.bf16.mxu1 %v7982_v33  ;;  %v961_v33 = vld [vmem:[#allocation14 + $0x7d0] sm:$0xff]  ;;  %v1006_v1 = vld [vmem:[#allocation14 + $0x938] sm:$0xff] }
 0x43b   :  { %v8035_v21 = vcombine.low %v961_v33, %v965_v34 }
 0x43c   :  { %4219 = vmatpush1.bf16.msra.mxu0 %v7979_v60  ;;  %v8029_v60 = vcombine.low %v954_v3, %v958_v4  ;;  %v8069_v3 = vcombine.low %v994_v44, %v998_v54 }
 0x43d   :  { %4383 = vmatpush1.bf16.msra.mxu1 %v7981_v16  ;;  %4220 = vmatprep.subr.bf16.mxu0 %v7988_v43  ;;  %v8036_v16 = vcombine.high %v961_v33, %v965_v34  ;;  %v8038_v43 = vcombine.high %v962_v13, %v966_v14  ;;  %v1014_v33 = vld [vmem:[#allocation14 + $0x978] sm:$0xff] }
 0x43e   :  { %4384 = vmatprep.subr.bf16.mxu1 %v7990_v17  ;;  %v969_v17 = vld [vmem:[#allocation14 + $0x810] sm:$0xff] }
 0x43f   :  { %v8043_v49 = vcombine.low %v969_v17, %v973_v63 }
 0x440   :  { %4221 = vmatpush1.bf16.msra.mxu0 %v7987_v7  ;;  %v8037_v7 = vcombine.low %v962_v13, %v966_v14  ;;  %v8077_v13 = vcombine.low %v1002_v0, %v1006_v1 }
 0x441   :  { %4385 = vmatpush1.bf16.msra.mxu1 %v7989_v45  ;;  %4222 = vmatprep.subr.bf16.mxu0 %v7996_v11  ;;  %v8044_v45 = vcombine.high %v969_v17, %v973_v63  ;;  %v8046_v11 = vcombine.high %v970_v5, %v974_v20  ;;  %v1022_v17 = vld [vmem:[#allocation14 + $0x9b8] sm:$0xff] }
 0x442   :  { %4386 = vmatprep.subr.bf16.mxu1 %v7998_v8  ;;  %v977_v8 = vld [vmem:[#allocation14 + $0x850] sm:$0xff] }
 0x443   :  { %v8051_v15 = vcombine.low %v977_v8, %v981_v47 }
 0x444   :  { %4223 = vmatpush1.bf16.msra.mxu0 %v7995_v23  ;;  %v8045_v23 = vcombine.low %v970_v5, %v974_v20 }
 0x445   :  { %4387 = vmatpush1.bf16.msra.mxu1 %v7997_v12  ;;  %4224 = vmatprep.subr.bf16.mxu0 %v8004_v25  ;;  %v8052_v12 = vcombine.high %v977_v8, %v981_v47  ;;  %v985_v25 = vld [vmem:[#allocation14 + $0x890] sm:$0xff]  ;;  %v1030_v8 = vld [vmem:[#allocation14 + $0x9f8] sm:$0xff] }
 0x446   :  { %4388 = vmatprep.subr.bf16.mxu1 %v8006_v27  ;;  %v989_v27 = vld [vmem:[#allocation14 + $0x8b0] sm:$0xff] }
 0x447   :  { %v8059_v56 = vcombine.low %v985_v25, %v989_v27 }
 0x448   :  { %4225 = vmatpush1.bf16.msra.mxu0 %v8003_v42  ;;  %v8053_v42 = vcombine.low %v978_v52, %v982_v22 }
 0x449   :  { %4389 = vmatpush1.bf16.msra.mxu1 %v8005_v38  ;;  %4226 = vmatprep.subr.bf16.mxu0 %v8012_v46  ;;  %v8060_v38 = vcombine.high %v985_v25, %v989_v27  ;;  %v8062_v46 = vcombine.high %v986_v31, %v990_v36  ;;  %v1034_v25 = vld [vmem:[#allocation14 + $0xa18] sm:$0xff] }
 0x44a   :  { %4390 = vmatprep.subr.bf16.mxu1 %v8014_v48  ;;  %v993_v48 = vld [vmem:[#allocation14 + $0x8d0] sm:$0xff]  ;;  %v1038_v27 = vld [vmem:[#allocation14 + $0xa38] sm:$0xff] }
 0x44c   :  { %4227 = vmatpush1.bf16.msra.mxu0 %v8011_v57  ;;  %v8068_v57 = vcombine.high %v993_v48, %v997_v19 }
 0x44d   :  { %4391 = vmatpush1.bf16.msra.mxu1 %v8013_v59  ;;  %4228 = vmatprep.subr.bf16.mxu0 %v8020_v61  ;;  %v8070_v59 = vcombine.high %v994_v44, %v998_v54  ;;  %v1001_v61 = vld [vmem:[#allocation14 + $0x910] sm:$0xff]  ;;  %v8109_v44 = vcombine.low %v1034_v25, %v1038_v27 }
 0x44e   :  { %4392 = vmatprep.subr.bf16.mxu1 %v8022_v62  ;;  %v1005_v62 = vld [vmem:[#allocation14 + $0x930] sm:$0xff] }
 0x44f   :  { %v8076_v4 = vcombine.high %v1001_v61, %v1005_v62  ;;  %v8075_v34 = vcombine.low %v1001_v61, %v1005_v62  ;;  %v1054_v61 = vld [vmem:[#allocation14 + $0xab8] sm:$0xff] }
 0x450   :  { %4229 = vmatpush1.bf16.msra.mxu0 %v8019_v28  ;;  %v8078_v28 = vcombine.high %v1002_v0, %v1006_v1 }
 0x451   :  { %4393 = vmatpush1.bf16.msra.mxu1 %v8021_v29  ;;  %4230 = vmatprep.subr.bf16.mxu0 %v8028_v30  ;;  %v1009_v29 = vld [vmem:[#allocation14 + $0x950] sm:$0xff] }
 0x452   :  { %4394 = vmatprep.subr.bf16.mxu1 %v8030_v32  ;;  %v1013_v30 = vld [vmem:[#allocation14 + $0x970] sm:$0xff]  ;;  %v1010_v32 = vld [vmem:[#allocation14 + $0x958] sm:$0xff] }
 0x453   :  { %v8084_v14 = vcombine.high %v1009_v29, %v1013_v30  ;;  %v8083_v63 = vcombine.low %v1009_v29, %v1013_v30  ;;  %v8085_v5 = vcombine.low %v1010_v32, %v1014_v33  ;;  %v1062_v29 = vld [vmem:[#allocation14 + $0xaf8] sm:$0xff] }
 0x454   :  { %4231 = vmatpush1.bf16.msra.mxu0 %v8027_v53  ;;  %v8086_v53 = vcombine.high %v1010_v32, %v1014_v33 }
 0x455   :  { %4395 = vmatpush1.bf16.msra.mxu1 %v8029_v60  ;;  %4232 = vmatprep.subr.bf16.mxu0 %v8036_v16  ;;  %v1017_v60 = vld [vmem:[#allocation14 + $0x990] sm:$0xff] }
 0x456   :  { %4396 = vmatprep.subr.bf16.mxu1 %v8038_v43  ;;  %v1021_v16 = vld [vmem:[#allocation14 + $0x9b0] sm:$0xff]  ;;  %v1018_v43 = vld [vmem:[#allocation14 + $0x998] sm:$0xff] }
 0x457   :  { %v8092_v20 = vcombine.high %v1017_v60, %v1021_v16  ;;  %v8091_v47 = vcombine.low %v1017_v60, %v1021_v16  ;;  %v1070_v60 = vld [vmem:[#allocation14 + $0xb38] sm:$0xff] }
 0x458   :  { %4233 = vmatpush1.bf16.msra.mxu0 %v8035_v21  ;;  %v8094_v21 = vcombine.high %v1018_v43, %v1022_v17 }
 0x459   :  { %4397 = vmatpush1.bf16.msra.mxu1 %v8037_v7  ;;  %4243 = vmatprep.subr.bf16.mxu0 %v8044_v45  ;;  %v1025_v7 = vld [vmem:[#allocation14 + $0x9d0] sm:$0xff] }
 0x45a   :  { %4407 = vmatprep.subr.bf16.mxu1 %v8046_v11  ;;  %v1029_v45 = vld [vmem:[#allocation14 + $0x9f0] sm:$0xff]  ;;  %v1026_v11 = vld [vmem:[#allocation14 + $0x9d8] sm:$0xff] }
 0x45b   :  { %4235 = vmatmul.mubr.bf16.vlgmr.msra.gmra.mrb[12].mxu0 %v9438_v24  ;;  %v8100_v52 = vcombine.high %v1025_v7, %v1029_v45  ;;  %v8102_v22 = vcombine.high %v1026_v11, %v1030_v8 }
 0x45c   :  { %4399 = vmatmul.mubr.bf16.vlgmr.msra.gmra.mrb[12].mxu1 %v9438_v24  ;;  %4244 = vmatpush1.bf16.msra.mxu0 %v8043_v49  ;;  %v8061_v24 = vcombine.low %v986_v31, %v990_v36  ;;  %v8093_v49 = vcombine.low %v1018_v43, %v1022_v17  ;;  %v8101_v31 = vcombine.low %v1026_v11, %v1030_v8 }
 0x45d   :  { %4275 = vmatprep.mubr.bf16.mxu0 %v9440_v26  ;;  %4408 = vmatpush1.bf16.msra.mxu1 %v8045_v23  ;;  %v1033_v23 = vld [vmem:[#allocation14 + $0xa10] sm:$0xff] }
 0x45e   :  { %4439 = vmatprep.mubr.bf16.mxu1 %v9440_v26  ;;  %4245 = vmatprep.subr.bf16.mxu0 %v8052_v12  ;;  %v8067_v26 = vcombine.low %v993_v48, %v997_v19  ;;  %v1037_v12 = vld [vmem:[#allocation14 + $0xa30] sm:$0xff]  ;;  %v1046_v48 = vld [vmem:[#allocation14 + $0xa78] sm:$0xff] }
 0x45f   :  { %4409 = vmatprep.subr.bf16.mxu1 %v8054_v10  ;;  %v8099_v10 = vcombine.low %v1025_v7, %v1029_v45  ;;  %v8108_v36 = vcombine.high %v1033_v23, %v1037_v12  ;;  %v8107_v19 = vcombine.low %v1033_v23, %v1037_v12  ;;  %v1078_v7 = vld [vmem:[#allocation14 + $0xb78] sm:$0xff] }
 0x460   :  { %4246 = vmatpush1.bf16.msra.mxu0 %v8051_v15  ;;  %v8110_v15 = vcombine.high %v1034_v25, %v1038_v27  ;;  %v1086_v23 = vld [vmem:[#allocation14 + $0xbb8] sm:$0xff] }
 0x461   :  { %4410 = vmatpush1.bf16.msra.mxu1 %v8053_v42  ;;  %4247 = vmatprep.subr.bf16.mxu0 %v8060_v38  ;;  %v1041_v42 = vld [vmem:[#allocation14 + $0xa50] sm:$0xff] }
 0x462   :  { %4411 = vmatprep.subr.bf16.mxu1 %v8062_v46  ;;  %v1045_v38 = vld [vmem:[#allocation14 + $0xa70] sm:$0xff]  ;;  %v1042_v46 = vld [vmem:[#allocation14 + $0xa58] sm:$0xff] }
 0x463   :  { %v8116_v54 = vcombine.high %v1041_v42, %v1045_v38  ;;  %v8115_v62 = vcombine.low %v1041_v42, %v1045_v38  ;;  %v8117_v0 = vcombine.low %v1042_v46, %v1046_v48  ;;  %v1094_v42 = vld [vmem:[#allocation14 + $0xbf8] sm:$0xff] }
 0x464   :  { %4248 = vmatpush1.bf16.msra.mxu0 %v8059_v56  ;;  %v8118_v56 = vcombine.high %v1042_v46, %v1046_v48 }
 0x465   :  { %4412 = vmatpush1.bf16.msra.mxu1 %v8061_v24  ;;  %4249 = vmatprep.subr.bf16.mxu0 %v8068_v57  ;;  %v1049_v24 = vld [vmem:[#allocation14 + $0xa90] sm:$0xff] }
 0x466   :  { %4413 = vmatprep.subr.bf16.mxu1 %v8070_v59  ;;  %v1053_v57 = vld [vmem:[#allocation14 + $0xab0] sm:$0xff]  ;;  %v1050_v59 = vld [vmem:[#allocation14 + $0xa98] sm:$0xff] }
 0x467   :  { %v8124_v1 = vcombine.high %v1049_v24, %v1053_v57  ;;  %v8123_v30 = vcombine.low %v1049_v24, %v1053_v57  ;;  %v8125_v32 = vcombine.low %v1050_v59, %v1054_v61  ;;  %v1102_v24 = vld [vmem:[#allocation14 + $0xc38] sm:$0xff] }
 0x468   :  { %4250 = vmatpush1.bf16.msra.mxu0 %v8067_v26  ;;  %v8126_v26 = vcombine.high %v1050_v59, %v1054_v61 }
 0x469   :  { %4414 = vmatpush1.bf16.msra.mxu1 %v8069_v3  ;;  %4251 = vmatprep.subr.bf16.mxu0 %v8076_v4  ;;  %v1057_v3 = vld [vmem:[#allocation14 + $0xad0] sm:$0xff] }
 0x46a   :  { %4415 = vmatprep.subr.bf16.mxu1 %v8078_v28  ;;  %v1061_v4 = vld [vmem:[#allocation14 + $0xaf0] sm:$0xff]  ;;  %v1058_v28 = vld [vmem:[#allocation14 + $0xad8] sm:$0xff] }
 0x46b   :  { %v8132_v33 = vcombine.high %v1057_v3, %v1061_v4  ;;  %v8131_v16 = vcombine.low %v1057_v3, %v1061_v4  ;;  %v8133_v43 = vcombine.low %v1058_v28, %v1062_v29  ;;  %v1106_v3 = vld [vmem:[#allocation14 + $0xc58] sm:$0xff] }
 0x46c   :  { %4252 = vmatpush1.bf16.msra.mxu0 %v8075_v34  ;;  %v8134_v34 = vcombine.high %v1058_v28, %v1062_v29  ;;  %v1110_v4 = vld [vmem:[#allocation14 + $0xc78] sm:$0xff] }
 0x46d   :  { %4416 = vmatpush1.bf16.msra.mxu1 %v8077_v13  ;;  %4253 = vmatprep.subr.bf16.mxu0 %v8084_v14  ;;  %v1065_v13 = vld [vmem:[#allocation14 + $0xb10] sm:$0xff] }
 0x46e   :  { %4417 = vmatprep.subr.bf16.mxu1 %v8086_v53  ;;  %v1069_v14 = vld [vmem:[#allocation14 + $0xb30] sm:$0xff]  ;;  %v1066_v53 = vld [vmem:[#allocation14 + $0xb18] sm:$0xff] }
 0x46f   :  { %v8140_v17 = vcombine.high %v1065_v13, %v1069_v14  ;;  %v8139_v45 = vcombine.low %v1065_v13, %v1069_v14  ;;  %v8141_v11 = vcombine.low %v1066_v53, %v1070_v60  ;;  %v1118_v13 = vld [vmem:[#allocation14 + $0xcb8] sm:$0xff] }
 0x470   :  { %4254 = vmatpush1.bf16.msra.mxu0 %v8083_v63  ;;  %v8142_v63 = vcombine.high %v1066_v53, %v1070_v60  ;;  %v8181_v53 = vcombine.low %v1106_v3, %v1110_v4 }
 0x471   :  { %4418 = vmatpush1.bf16.msra.mxu1 %v8085_v5  ;;  %4255 = vmatprep.subr.bf16.mxu0 %v8092_v20  ;;  %v1073_v5 = vld [vmem:[#allocation14 + $0xb50] sm:$0xff] }
 0x472   :  { %4419 = vmatprep.subr.bf16.mxu1 %v8094_v21  ;;  %v1077_v20 = vld [vmem:[#allocation14 + $0xb70] sm:$0xff]  ;;  %v1074_v21 = vld [vmem:[#allocation14 + $0xb58] sm:$0xff] }
 0x473   :  { %v8148_v8 = vcombine.high %v1073_v5, %v1077_v20  ;;  %v8147_v12 = vcombine.low %v1073_v5, %v1077_v20  ;;  %v8149_v25 = vcombine.low %v1074_v21, %v1078_v7  ;;  %v1126_v5 = vld [vmem:[#allocation14 + $0xcf8] sm:$0xff] }
 0x474   :  { %4256 = vmatpush1.bf16.msra.mxu0 %v8091_v47  ;;  %v8150_v47 = vcombine.high %v1074_v21, %v1078_v7 }
 0x475   :  { %4420 = vmatpush1.bf16.msra.mxu1 %v8093_v49  ;;  %4257 = vmatprep.subr.bf16.mxu0 %v8100_v52  ;;  %v1081_v49 = vld [vmem:[#allocation14 + $0xb90] sm:$0xff] }
 0x476   :  { %4421 = vmatprep.subr.bf16.mxu1 %v8102_v22  ;;  %v1085_v52 = vld [vmem:[#allocation14 + $0xbb0] sm:$0xff]  ;;  %v1082_v22 = vld [vmem:[#allocation14 + $0xb98] sm:$0xff] }
 0x477   :  { %v8156_v27 = vcombine.high %v1081_v49, %v1085_v52  ;;  %v8155_v38 = vcombine.low %v1081_v49, %v1085_v52  ;;  %v8157_v46 = vcombine.low %v1082_v22, %v1086_v23 }
 0x478   :  { %4258 = vmatpush1.bf16.msra.mxu0 %v8099_v10  ;;  %v8158_v10 = vcombine.high %v1082_v22, %v1086_v23  ;;  %v1137_v23 = vld [vmem:[#allocation14 + $0xd50] sm:$0xff] }
 0x479   :  { %4422 = vmatpush1.bf16.msra.mxu1 %v8101_v31  ;;  %4259 = vmatprep.subr.bf16.mxu0 %v8108_v36  ;;  %v1089_v31 = vld [vmem:[#allocation14 + $0xbd0] sm:$0xff] }
 0x47a   :  { %4423 = vmatprep.subr.bf16.mxu1 %v8110_v15  ;;  %v1093_v36 = vld [vmem:[#allocation14 + $0xbf0] sm:$0xff]  ;;  %v1090_v15 = vld [vmem:[#allocation14 + $0xbd8] sm:$0xff] }
 0x47b   :  { %v8164_v48 = vcombine.high %v1089_v31, %v1093_v36  ;;  %v8163_v57 = vcombine.low %v1089_v31, %v1093_v36  ;;  %v8165_v59 = vcombine.low %v1090_v15, %v1094_v42 }
 0x47c   :  { %4260 = vmatpush1.bf16.msra.mxu0 %v8107_v19  ;;  %v8166_v19 = vcombine.high %v1090_v15, %v1094_v42  ;;  %v1145_v42 = vld [vmem:[#allocation14 + $0xd90] sm:$0xff] }
 0x47d   :  { %4424 = vmatpush1.bf16.msra.mxu1 %v8109_v44  ;;  %4261 = vmatprep.subr.bf16.mxu0 %v8116_v54  ;;  %v1097_v44 = vld [vmem:[#allocation14 + $0xc10] sm:$0xff] }
 0x47e   :  { %4425 = vmatprep.subr.bf16.mxu1 %v8118_v56  ;;  %v1101_v54 = vld [vmem:[#allocation14 + $0xc30] sm:$0xff]  ;;  %v1098_v56 = vld [vmem:[#allocation14 + $0xc18] sm:$0xff] }
 0x47f   :  { %v8172_v61 = vcombine.high %v1097_v44, %v1101_v54  ;;  %v8173_v28 = vcombine.low %v1098_v56, %v1102_v24 }
 0x480   :  { %4262 = vmatpush1.bf16.msra.mxu0 %v8115_v62  ;;  %v8174_v62 = vcombine.high %v1098_v56, %v1102_v24 }
 0x481   :  { %4426 = vmatpush1.bf16.msra.mxu1 %v8117_v0  ;;  %4263 = vmatprep.subr.bf16.mxu0 %v8124_v1  ;;  %v1105_v0 = vld [vmem:[#allocation14 + $0xc50] sm:$0xff] }
 0x482   :  { %4427 = vmatprep.subr.bf16.mxu1 %v8126_v26  ;;  %v1109_v1 = vld [vmem:[#allocation14 + $0xc70] sm:$0xff]  ;;  %v8171_v26 = vcombine.low %v1097_v44, %v1101_v54 }
 0x483   :  { %v8180_v29 = vcombine.high %v1105_v0, %v1109_v1  ;;  %v8179_v14 = vcombine.low %v1105_v0, %v1109_v1  ;;  %v1154_v0 = vld [vmem:[#allocation14 + $0xdd8] sm:$0xff] }
 0x484   :  { %4264 = vmatpush1.bf16.msra.mxu0 %v8123_v30  ;;  %v1113_v30 = vld [vmem:[#allocation14 + $0xc90] sm:$0xff]  ;;  %v1158_v1 = vld [vmem:[#allocation14 + $0xdf8] sm:$0xff] }
 0x485   :  { %4428 = vmatpush1.bf16.msra.mxu1 %v8125_v32  ;;  %4265 = vmatprep.subr.bf16.mxu0 %v8132_v33  ;;  %v1117_v32 = vld [vmem:[#allocation14 + $0xcb0] sm:$0xff]  ;;  %v8182_v33 = vcombine.high %v1106_v3, %v1110_v4 }
 0x486   :  { %4429 = vmatprep.subr.bf16.mxu1 %v8134_v34  ;;  %v1114_v34 = vld [vmem:[#allocation14 + $0xc98] sm:$0xff]  ;;  %v8188_v60 = vcombine.high %v1113_v30, %v1117_v32  ;;  %v8187_v20 = vcombine.low %v1113_v30, %v1117_v32 }
 0x488   :  { %4266 = vmatpush1.bf16.msra.mxu0 %v8131_v16  ;;  %v8190_v16 = vcombine.high %v1114_v34, %v1118_v13 }
 0x489   :  { %4430 = vmatpush1.bf16.msra.mxu1 %v8133_v43  ;;  %4267 = vmatprep.subr.bf16.mxu0 %v8140_v17  ;;  %v1121_v43 = vld [vmem:[#allocation14 + $0xcd0] sm:$0xff] }
 0x48a   :  { %4431 = vmatprep.subr.bf16.mxu1 %v8142_v63  ;;  %v1125_v17 = vld [vmem:[#allocation14 + $0xcf0] sm:$0xff]  ;;  %v1122_v63 = vld [vmem:[#allocation14 + $0xcd8] sm:$0xff] }
 0x48b   :  { %v8196_v21 = vcombine.high %v1121_v43, %v1125_v17  ;;  %v8198_v7 = vcombine.high %v1122_v63, %v1126_v5  ;;  %v8197_v49 = vcombine.low %v1122_v63, %v1126_v5  ;;  %v1169_v5 = vld [vmem:[#allocation14 + $0xe50] sm:$0xff] }
 0x48c   :  { %4268 = vmatpush1.bf16.msra.mxu0 %v8139_v45  ;;  %v1129_v45 = vld [vmem:[#allocation14 + $0xd10] sm:$0xff] }
 0x48d   :  { %4432 = vmatpush1.bf16.msra.mxu1 %v8141_v11  ;;  %4269 = vmatprep.subr.bf16.mxu0 %v8148_v8  ;;  %v1133_v11 = vld [vmem:[#allocation14 + $0xd30] sm:$0xff]  ;;  %v1130_v8 = vld [vmem:[#allocation14 + $0xd18] sm:$0xff] }
 0x48e   :  { %4433 = vmatprep.subr.bf16.mxu1 %v8150_v47  ;;  %v1134_v47 = vld [vmem:[#allocation14 + $0xd38] sm:$0xff]  ;;  %v8204_v52 = vcombine.high %v1129_v45, %v1133_v11 }
 0x48f   :  { %v8206_v22 = vcombine.high %v1130_v8, %v1134_v47  ;;  %v8205_v31 = vcombine.low %v1130_v8, %v1134_v47  ;;  %v1177_v47 = vld [vmem:[#allocation14 + $0xe90] sm:$0xff] }
 0x490   :  { %4270 = vmatpush1.bf16.msra.mxu0 %v8147_v12  ;;  %v1141_v12 = vld [vmem:[#allocation14 + $0xd70] sm:$0xff] }
 0x491   :  { %4434 = vmatpush1.bf16.msra.mxu1 %v8149_v25  ;;  %4271 = vmatprep.subr.bf16.mxu0 %v8156_v27  ;;  %v1138_v25 = vld [vmem:[#allocation14 + $0xd58] sm:$0xff]  ;;  %v8212_v36 = vcombine.high %v1137_v23, %v1141_v12 }
 0x492   :  { %4435 = vmatprep.subr.bf16.mxu1 %v8158_v10  ;;  %v1142_v27 = vld [vmem:[#allocation14 + $0xd78] sm:$0xff]  ;;  %v8203_v10 = vcombine.low %v1129_v45, %v1133_v11 }
 0x493   :  { %v8214_v15 = vcombine.high %v1138_v25, %v1142_v27  ;;  %v8213_v44 = vcombine.low %v1138_v25, %v1142_v27  ;;  %v1185_v27 = vld [vmem:[#allocation14 + $0xed0] sm:$0xff] }
 0x494   :  { %4272 = vmatpush1.bf16.msra.mxu0 %v8155_v38  ;;  %v1149_v38 = vld [vmem:[#allocation14 + $0xdb0] sm:$0xff] }
 0x495   :  { %4436 = vmatpush1.bf16.msra.mxu1 %v8157_v46  ;;  %4273 = vmatprep.subr.bf16.mxu0 %v8164_v48  ;;  %v1146_v46 = vld [vmem:[#allocation14 + $0xd98] sm:$0xff]  ;;  %v8220_v54 = vcombine.high %v1145_v42, %v1149_v38  ;;  %v8219_v4 = vcombine.low %v1145_v42, %v1149_v38 }
 0x496   :  { %4437 = vmatprep.subr.bf16.mxu1 %v8166_v19  ;;  %v1150_v48 = vld [vmem:[#allocation14 + $0xdb8] sm:$0xff]  ;;  %v8211_v19 = vcombine.low %v1137_v23, %v1141_v12 }
 0x497   :  { %v8222_v24 = vcombine.high %v1146_v46, %v1150_v48  ;;  %v8221_v30 = vcombine.low %v1146_v46, %v1150_v48  ;;  %v1193_v48 = vld [vmem:[#allocation14 + $0xf10] sm:$0xff] }
 0x498   :  { %4274 = vmatpush1.bf16.msra.mxu0 %v8163_v57  ;;  %v1153_v57 = vld [vmem:[#allocation14 + $0xdd0] sm:$0xff] }
 0x499   :  { %4438 = vmatpush1.bf16.msra.mxu1 %v8165_v59  ;;  %4284 = vmatprep.subr.bf16.mxu0 %v8172_v61  ;;  %v1157_v59 = vld [vmem:[#allocation14 + $0xdf0] sm:$0xff] }
 0x49a   :  { %4448 = vmatprep.subr.bf16.mxu1 %v8174_v62  ;;  %v8228_v32 = vcombine.high %v1153_v57, %v1157_v59 }
 0x49b   :  { %4276 = vmatmul.mubr.bf16.vlgmr.msra.gmra.mrb[12].mxu0 %v9448_v9 }
 0x49c   :  { %4440 = vmatmul.mubr.bf16.vlgmr.msra.gmra.mrb[12].mxu1 %v9448_v9  ;;  %4285 = vmatpush1.bf16.msra.mxu0 %v8171_v26  ;;  %v8189_v9 = vcombine.low %v1114_v34, %v1118_v13  ;;  %v8230_v34 = vcombine.high %v1154_v0, %v1158_v1  ;;  %v1161_v13 = vld [vmem:[#allocation14 + $0xe10] sm:$0xff] }
 0x49d   :  { %4316 = vmatprep.mubr.bf16.mxu0 %v9451_v18  ;;  %4449 = vmatpush1.bf16.msra.mxu1 %v8173_v28 }
 0x49e   :  { %4480 = vmatprep.mubr.bf16.mxu1 %v9451_v18  ;;  %4286 = vmatprep.subr.bf16.mxu0 %v8180_v29  ;;  %v8195_v18 = vcombine.low %v1121_v43, %v1125_v17  ;;  %v8229_v43 = vcombine.low %v1154_v0, %v1158_v1  ;;  %v1201_v1 = vld [vmem:[#allocation14 + $0xf50] sm:$0xff] }
 0x49f   :  { %4450 = vmatprep.subr.bf16.mxu1 %v8182_v33 }
 0x4a0   :  { %4287 = vmatpush1.bf16.msra.mxu0 %v8179_v14  ;;  %v1165_v14 = vld [vmem:[#allocation14 + $0xe30] sm:$0xff] }
 0x4a1   :  { %4451 = vmatpush1.bf16.msra.mxu1 %v8181_v53  ;;  %4288 = vmatprep.subr.bf16.mxu0 %v8188_v60  ;;  %v1162_v53 = vld [vmem:[#allocation14 + $0xe18] sm:$0xff]  ;;  %v8236_v17 = vcombine.high %v1161_v13, %v1165_v14 }
 0x4a2   :  { %4452 = vmatprep.subr.bf16.mxu1 %v8190_v16  ;;  %v1166_v60 = vld [vmem:[#allocation14 + $0xe38] sm:$0xff]  ;;  %v8227_v16 = vcombine.low %v1153_v57, %v1157_v59 }
 0x4a3   :  { %v8238_v63 = vcombine.high %v1162_v53, %v1166_v60  ;;  %v8237_v45 = vcombine.low %v1162_v53, %v1166_v60  ;;  %v1214_v53 = vld [vmem:[#allocation14 + $0xfb8] sm:$0xff] }
 0x4a4   :  { %4289 = vmatpush1.bf16.msra.mxu0 %v8187_v20  ;;  %v1173_v20 = vld [vmem:[#allocation14 + $0xe70] sm:$0xff] }
 0x4a5   :  { %4453 = vmatpush1.bf16.msra.mxu1 %v8189_v9  ;;  %4290 = vmatprep.subr.bf16.mxu0 %v8196_v21  ;;  %v1170_v9 = vld [vmem:[#allocation14 + $0xe58] sm:$0xff]  ;;  %v8244_v11 = vcombine.high %v1169_v5, %v1173_v20 }
 0x4a6   :  { %4454 = vmatprep.subr.bf16.mxu1 %v8198_v7  ;;  %v1174_v21 = vld [vmem:[#allocation14 + $0xe78] sm:$0xff]  ;;  %v8235_v7 = vcombine.low %v1161_v13, %v1165_v14  ;;  %v1213_v13 = vld [vmem:[#allocation14 + $0xfb0] sm:$0xff] }
 0x4a7   :  { %v8246_v8 = vcombine.high %v1170_v9, %v1174_v21  ;;  %v8245_v23 = vcombine.low %v1170_v9, %v1174_v21  ;;  %v1210_v14 = vld [vmem:[#allocation14 + $0xf98] sm:$0xff] }
 0x4a8   :  { %4291 = vmatpush1.bf16.msra.mxu0 %v8195_v18  ;;  %v1181_v18 = vld [vmem:[#allocation14 + $0xeb0] sm:$0xff]  ;;  %v1222_v9 = vld [vmem:[#allocation14 + $0xff8] sm:$0xff] }
 0x4a9   :  { %4455 = vmatpush1.bf16.msra.mxu1 %v8197_v49  ;;  %4292 = vmatprep.subr.bf16.mxu0 %v8204_v52  ;;  %v1178_v49 = vld [vmem:[#allocation14 + $0xe98] sm:$0xff]  ;;  %v8252_v12 = vcombine.high %v1177_v47, %v1181_v18 }
 0x4aa   :  { %4456 = vmatprep.subr.bf16.mxu1 %v8206_v22  ;;  %v1182_v52 = vld [vmem:[#allocation14 + $0xeb8] sm:$0xff]  ;;  %v8243_v22 = vcombine.low %v1169_v5, %v1173_v20  ;;  %v1221_v5 = vld [vmem:[#allocation14 + $0xff0] sm:$0xff] }
 0x4ab   :  { %v8254_v25 = vcombine.high %v1178_v49, %v1182_v52  ;;  %v8253_v42 = vcombine.low %v1178_v49, %v1182_v52  ;;  %v1218_v20 = vld [vmem:[#allocation14 + $0xfd8] sm:$0xff] }
 0x4ac   :  { %4293 = vmatpush1.bf16.msra.mxu0 %v8203_v10  ;;  %v1189_v10 = vld [vmem:[#allocation14 + $0xef0] sm:$0xff] }
 0x4ad   :  { %4457 = vmatpush1.bf16.msra.mxu1 %v8205_v31  ;;  %4294 = vmatprep.subr.bf16.mxu0 %v8212_v36  ;;  %v1186_v31 = vld [vmem:[#allocation14 + $0xed8] sm:$0xff]  ;;  %v8260_v38 = vcombine.high %v1185_v27, %v1189_v10 }
 0x4ae   :  { %v9475_v56 = vpop.f32.mrb[8].mxu0  ;;  %4458 = vmatprep.subr.bf16.mxu1 %v8214_v15  ;;  %v1190_v36 = vld [vmem:[#allocation14 + $0xef8] sm:$0xff]  ;;  %v8251_v15 = vcombine.low %v1177_v47, %v1181_v18  ;;  %v8293_v47 = vcombine.low %v1218_v20, %v1222_v9  ;;  %v1223_v18 = vld [vmem:[#allocation16] sm:$0xff] }
 0x4af   :  { %v9477_v61 = vpop.f32.mrb[8].mxu1  ;;  %v9479_v62 = vpop.f32.mrb[9].mxu0  ;;  %v8262_v46 = vcombine.high %v1186_v31, %v1190_v36  ;;  %v8261_v57 = vcombine.low %v1186_v31, %v1190_v36  ;;  %v1236_v49 = vrot.slane %v1223_v18, %v9261_v37  ;;  %v1240_v52 = vrot.slane %v1223_v18, %v9263_v39 }
 0x4b0   :  { %v9481_v26 = vpop.f32.mrb[9].mxu1  ;;  %v3994_v3 = vpop.f32.mrb[10].mxu0  ;;  %4295 = vmatpush1.bf16.msra.mxu0 %v8211_v19  ;;  %v1197_v19 = vld [vmem:[#allocation14 + $0xf30] sm:$0xff]  ;;  %v1252_v36 = vrot.slane %v1223_v18, %v9275_v50 }
 0x4b1   :  { %v4158_v28 = vpop.f32.mrb[10].mxu1  ;;  %4459 = vmatpush1.bf16.msra.mxu1 %v8213_v44  ;;  %v3995_v29 = vpop.f32.mrb[11].mxu0  ;;  %4296 = vmatprep.subr.bf16.mxu0 %v8220_v54  ;;  %v1194_v44 = vld [vmem:[#allocation14 + $0xf18] sm:$0xff]  ;;  %v8268_v59 = vcombine.high %v1193_v48, %v1197_v19  ;;  %v1205_v3 = vld [vmem:[#allocation14 + $0xf70] sm:$0xff] }
 0x4b2   :  { %v4159_v33 = vpop.f32.mrb[11].mxu1  ;;  %4460 = vmatprep.subr.bf16.mxu1 %v8222_v24  ;;  %v1198_v54 = vld [vmem:[#allocation14 + $0xf38] sm:$0xff]  ;;  %v8259_v24 = vcombine.low %v1185_v27, %v1189_v10  ;;  %v8267_v29 = vcombine.low %v1193_v48, %v1197_v19  ;;  %v8275_v60 = vcombine.low %v1201_v1, %v1205_v3  ;;  %v1248_v10 = vrot.slane %v1223_v18, %v9267_v41 }
 0x4b3   :  { %v8270_v0 = vcombine.high %v1194_v44, %v1198_v54  ;;  %v1206_v28 = vld [vmem:[#allocation14 + $0xf78] sm:$0xff] }
 0x4b4   :  { %4297 = vmatpush1.bf16.msra.mxu0 %v8219_v4  ;;  %v1202_v4 = vld [vmem:[#allocation14 + $0xf58] sm:$0xff] }
 0x4b5   :  { %4461 = vmatpush1.bf16.msra.mxu1 %v8221_v30  ;;  %4298 = vmatprep.subr.bf16.mxu0 %v8228_v32  ;;  %v8269_v30 = vcombine.low %v1194_v44, %v1198_v54  ;;  %v8276_v32 = vcombine.high %v1201_v1, %v1205_v3  ;;  %v8278_v33 = vcombine.high %v1202_v4, %v1206_v28 }
 0x4b6   :  { %4462 = vmatprep.subr.bf16.mxu1 %v8230_v34  ;;  %v1209_v34 = vld [vmem:[#allocation14 + $0xf90] sm:$0xff] }
 0x4b7   :  { %v8283_v21 = vcombine.low %v1209_v34, %v1213_v13 }
 0x4b8   :  { %4299 = vmatpush1.bf16.msra.mxu0 %v8227_v16  ;;  %v8277_v16 = vcombine.low %v1202_v4, %v1206_v28 }
 0x4b9   :  { %4463 = vmatpush1.bf16.msra.mxu1 %v8229_v43  ;;  %4300 = vmatprep.subr.bf16.mxu0 %v8236_v17  ;;  %v8284_v43 = vcombine.high %v1209_v34, %v1213_v13  ;;  %v8286_v17 = vcombine.high %v1210_v14, %v1214_v53 }
 0x4ba   :  { %4464 = vmatprep.subr.bf16.mxu1 %v8238_v63  ;;  %v1217_v63 = vld [vmem:[#allocation14 + $0xfd0] sm:$0xff] }
 0x4bc   :  { %4301 = vmatpush1.bf16.msra.mxu0 %v8235_v7  ;;  %v8285_v7 = vcombine.low %v1210_v14, %v1214_v53 }
 0x4bd   :  { %4465 = vmatpush1.bf16.msra.mxu1 %v8237_v45  ;;  %4302 = vmatprep.subr.bf16.mxu0 %v8244_v11  ;;  %v8292_v45 = vcombine.high %v1217_v63, %v1221_v5  ;;  %v8294_v11 = vcombine.high %v1218_v20, %v1222_v9 }
 0x4be   :  { %4466 = vmatprep.subr.bf16.mxu1 %v8246_v8  ;;  %v8291_v8 = vcombine.low %v1217_v63, %v1221_v5 }
 0x4c0   :  { %4303 = vmatpush1.bf16.msra.mxu0 %v8243_v22  ;;  %v8474_v22 = vadd.f32 %v9475_v56, %v1236_v49  ;;  %v1260_v56 = vrot.slane %v1223_v18, %v9283_v58 }
 0x4c1   :  { %4467 = vmatpush1.bf16.msra.mxu1 %v8245_v23  ;;  %4304 = vmatprep.subr.bf16.mxu0 %v8252_v12  ;;  %v8475_v23 = vadd.f32 %v9479_v62, %v1240_v52  ;;  %v1244_v12 = vrot.slane %v1223_v18, %v9265_v40 }
 0x4c2   :  { %4468 = vmatprep.subr.bf16.mxu1 %v8254_v25 }
 0x4c3   :  { %v4491_v25 = vadd.f32 %v8475_v23, %v8474_v22  ;;  %v8476_v27 = vadd.f32 %v9477_v61, %v1244_v12 }
 0x4c4   :  { %4305 = vmatpush1.bf16.msra.mxu0 %v8251_v15  ;;  %v8477_v15 = vadd.f32 %v9481_v26, %v1248_v10  ;;  %v4490_v10 = vld [vmem:[#allocation19] sm:$0xff] }
 0x4c5   :  { %4469 = vmatpush1.bf16.msra.mxu1 %v8253_v42  ;;  %4306 = vmatprep.subr.bf16.mxu0 %v8260_v38  ;;  %v4492_v31 = vadd.f32 %v8476_v27, %v4491_v25  ;;  %v4602_v35 = vrot.slane %v4490_v10, %v9263_v39 }
 0x4c6   :  { %4470 = vmatprep.subr.bf16.mxu1 %v8262_v46 }
 0x4c7   :  { %v4493_v38 = vadd.f32 %v8477_v15, %v4492_v31 }
 0x4c8   :  { %4307 = vmatpush1.bf16.msra.mxu0 %v8259_v24  ;;  %v1264_v24 = vrot.slane %v1223_v18, %v9293_v2 }
 0x4c9   :  { %4471 = vmatpush1.bf16.msra.mxu1 %v8261_v57  ;;  %4308 = vmatprep.subr.bf16.mxu0 %v8268_v59 }
 0x4ca   :  { %4472 = vmatprep.subr.bf16.mxu1 %v8270_v0 }
 0x4cc   :  { %4309 = vmatpush1.bf16.msra.mxu0 %v8267_v29 }
 0x4cd   :  { %4473 = vmatpush1.bf16.msra.mxu1 %v8269_v30  ;;  %4310 = vmatprep.subr.bf16.mxu0 %v8276_v32 }
 0x4ce   :  { %4474 = vmatprep.subr.bf16.mxu1 %v8278_v33 }
 0x4d0   :  { %4311 = vmatpush1.bf16.msra.mxu0 %v8275_v60 }
 0x4d1   :  { %4475 = vmatpush1.bf16.msra.mxu1 %v8277_v16  ;;  %4312 = vmatprep.subr.bf16.mxu0 %v8284_v43 }
 0x4d2   :  { %4476 = vmatprep.subr.bf16.mxu1 %v8286_v17 }
 0x4d4   :  { %4313 = vmatpush1.bf16.msra.mxu0 %v8283_v21 }
 0x4d5   :  { %4477 = vmatpush1.bf16.msra.mxu1 %v8285_v7  ;;  %4314 = vmatprep.subr.bf16.mxu0 %v8292_v45 }
 0x4d6   :  { %4478 = vmatprep.subr.bf16.mxu1 %v8294_v11 }
 0x4d8   :  { %4315 = vmatpush1.bf16.msra.mxu0 %v8291_v8 }
 0x4d9   :  { %4479 = vmatpush1.bf16.msra.mxu1 %v8293_v47 }
 0x4db   :  { %4317 = vmatmul.mubr.bf16.vlgmr.msra.gmra.mrb[12].mxu0 %v9457_v51 }
 0x4dc   :  { %4481 = vmatmul.mubr.bf16.vlgmr.msra.gmra.mrb[12].mxu1 %v9457_v51  ;;  %v1256_v51 = vrot.slane %v1223_v18, %v9281_v55 }
 0x5ae   :  { %v4318_v42 = vpop.f32.mrb[12].mxu0 }
 0x5af   :  { %v8478_v46 = vadd.f32 %v4318_v42, %v1252_v36  ;;  %v4482_v62 = vpop.f32.mrb[12].mxu1  ;;  %v4320_v48 = vpop.f32.mrb[13].mxu0  ;;  %v4598_v36 = vrot.slane %v4490_v10, %v9261_v37  ;;  %v4606_v42 = vrot.slane %v4490_v10, %v9265_v40 }
 0x5b0   :  { %v8479_v19 = vadd.f32 %v4320_v48, %v1256_v51  ;;  %v4484_v44 = vpop.f32.mrb[13].mxu1  ;;  %v4322_v54 = vpop.f32.mrb[14].mxu0  ;;  %v8480_v1 = vadd.f32 %v4482_v62, %v1260_v56  ;;  %v4614_v62 = vrot.slane %v4490_v10, %v9275_v50 }
 0x5b1   :  { %v4494_v61 = vadd.f32 %v8478_v46, %v4493_v38  ;;  %v4486_v57 = vpop.f32.mrb[14].mxu1  ;;  %v4323_v59 = vpop.f32.mrb[15].mxu0  ;;  %v8481_v4 = vadd.f32 %v4484_v44, %v1264_v24 }
 0x5b2   :  { %v4487_v0 = vpop.f32.mrb[15].mxu1  ;;  %v4626_v57 = vrot.slane %v4490_v10, %v9293_v2 }
 0x5b3   :  { %v4495_v3 = vadd.f32 %v8479_v19, %v4494_v61  ;;  %v4622_v61 = vrot.slane %v4490_v10, %v9283_v58 }
 0x5b5   :  { %v4496_v26 = vadd.f32 %v8480_v1, %v4495_v3 }
 0x5b7   :  { %v4497_v28 = vadd.f32 %v8481_v4, %v4496_v26 }
 0x5b9   :  { %4498 = vadd.xlane.f32.xlu1 %v4497_v28 }
 0x646   :  { %v4499_v29 = vpop.xlane.xlu1 %4498 }
 0x647   :  { %v4500_v30 = vmul.f32 0.001, %v4499_v29 }
 0x649   :  { %v4501_v32 = vsub.f32 %v8474_v22, %v4500_v30  ;;  %v4502_v33 = vsub.f32 %v8475_v23, %v4500_v30  ;;  %v4503_v34 = vsub.f32 %v8476_v27, %v4500_v30  ;;  %v4504_v13 = vsub.f32 %v8477_v15, %v4500_v30  ;;  %v4489_v27 = vld [vmem:[#allocation17] sm:$0xff] }
 0x64a   :  { %v4505_v60 = vsub.f32 %v8478_v46, %v4500_v30  ;;  %v4506_v17 = vsub.f32 %v8479_v19, %v4500_v30  ;;  %v4508_v20 = vsub.f32 %v8481_v4, %v4500_v30  ;;  %v4507_v9 = vsub.f32 %v8480_v1, %v4500_v30 }
 0x64b   :  { %v4517_v14 = vmul.f32 %v4501_v32, %v4501_v32  ;;  %v4518_v53 = vmul.f32 %v4502_v33, %v4502_v33  ;;  %v4519_v16 = vmul.f32 %v4503_v34, %v4503_v34  ;;  %v4520_v63 = vmul.f32 %v4504_v13, %v4504_v13 }
 0x64c   :  { %v4521_v21 = vmul.f32 %v4505_v60, %v4505_v60  ;;  %v4522_v45 = vmul.f32 %v4506_v17, %v4506_v17  ;;  %v4516_v8 = vsel %vm241_vm1, %v4508_v20, 0.0  ;;  %v4523_v47 = vmul.f32 %v4507_v9, %v4507_v9 }
 0x64d   :  { %v4525_v43 = vadd.f32 %v4518_v53, %v4517_v14  ;;  %v4524_v49 = vmul.f32 %v4516_v8, %v4516_v8  ;;  %v4549_v31 = vrot.slane %v4489_v27, %v9261_v37  ;;  %v4553_v51 = vrot.slane %v4489_v27, %v9263_v39 }
 0x64e   :  { %v4557_v15 = vrot.slane %v4489_v27, %v9265_v40  ;;  %v4561_v38 = vrot.slane %v4489_v27, %v9267_v41  ;;  %v4610_v46 = vrot.slane %v4490_v10, %v9267_v41  ;;  %v4565_v56 = vrot.slane %v4489_v27, %v9275_v50 }
 0x64f   :  { %v4526_v5 = vadd.f32 %v4525_v43, %v4519_v16  ;;  %v4569_v48 = vrot.slane %v4489_v27, %v9281_v55  ;;  %v4618_v19 = vrot.slane %v4490_v10, %v9281_v55  ;;  %v4573_v54 = vrot.slane %v4489_v27, %v9283_v58 }
 0x650   :  { %v4577_v24 = vrot.slane %v4489_v27, %v9293_v2 }
 0x651   :  { %v4527_v7 = vadd.f32 %v4526_v5, %v4520_v63 }
 0x653   :  { %v4528_v11 = vadd.f32 %v4527_v7, %v4521_v21 }
 0x655   :  { %v4529_v18 = vadd.f32 %v4528_v11, %v4522_v45 }
 0x657   :  { %v4530_v52 = vadd.f32 %v4529_v18, %v4523_v47 }
 0x659   :  { %v4531_v22 = vadd.f32 %v4530_v52, %v4524_v49 }
 0x65b   :  { %4532 = vadd.xlane.f32.xlu1 %v4531_v22 }
 0x6e8   :  { %v4533_v23 = vpop.xlane.xlu1 %4532 }
 0x6e9   :  { %v4534_v12 = vmul.f32 0.001, %v4533_v23 }
 0x6eb   :  { %v4535_v25 = vadd.f32 1e-12, %v4534_v12 }
 0x6ed   :  { %8676 = vrsqrt.f32 %v4535_v25 }
 0x6f7   :  { %v8677_v44 = vpop.eup %8676 }
 0x6f8   :  { %v4537_v59 = vmul.f32 %v8677_v44, %v4501_v32  ;;  %v4538_v0 = vmul.f32 %v8677_v44, %v4502_v33  ;;  %v4539_v1 = vmul.f32 %v8677_v44, %v4503_v34  ;;  %v4540_v3 = vmul.f32 %v8677_v44, %v4504_v13 }
 0x6f9   :  { %v4541_v4 = vmul.f32 %v8677_v44, %v4505_v60  ;;  %v4542_v26 = vmul.f32 %v8677_v44, %v4506_v17  ;;  %v4543_v28 = vmul.f32 %v8677_v44, %v4507_v9  ;;  %v4544_v29 = vmul.f32 %v8677_v44, %v4516_v8 }
 0x6fa   :  { %v4586_v30 = vmul.f32 %v4549_v31, %v4537_v59  ;;  %v4587_v14 = vmul.f32 %v4553_v51, %v4538_v0  ;;  %v4588_v53 = vmul.f32 %v4557_v15, %v4539_v1  ;;  %v4589_v16 = vmul.f32 %v4561_v38, %v4540_v3 }
 0x6fb   :  { %v4590_v43 = vmul.f32 %v4565_v56, %v4541_v4  ;;  %v4591_v63 = vmul.f32 %v4569_v48, %v4542_v26  ;;  %v4592_v5 = vmul.f32 %v4573_v54, %v4543_v28  ;;  %v4593_v20 = vmul.f32 %v4577_v24, %v4544_v29 }
 0x6fc   :  { %v9515_v21 = vadd.f32 %v4598_v36, %v4586_v30  ;;  %v4636_v7 = vadd.f32 %v4602_v35, %v4587_v14  ;;  %v9517_v45 = vadd.f32 %v4606_v42, %v4588_v53  ;;  %v9519_v32 = vadd.f32 %v4610_v46, %v4589_v16 }
 0x6fd   :  { %v9521_v33 = vadd.f32 %v4614_v62, %v4590_v43  ;;  %v9523_v34 = vadd.f32 %v4618_v19, %v4591_v63  ;;  %v9525_v13 = vadd.f32 %v4622_v61, %v4592_v5  ;;  %v9527_v60 = vadd.f32 %v4626_v57, %v4593_v20 }
 0x6fe   :  { %v4643_v17 = vmax.f32 %v9515_v21, 0.0  ;;  %v4644_v9 = vmax.f32 %v4636_v7, 0.0  ;;  %v4645_v11 = vmax.f32 %v9517_v45, 0.0  ;;  %v4646_v8 = vmax.f32 %v9519_v32, 0.0 }
 0x6ff   :  { %v4647_v47 = vmax.f32 %v9521_v33, 0.0  ;;  %v4648_v18 = vmax.f32 %v9523_v34, 0.0  ;;  %v4649_v49 = vmax.f32 %v9525_v13, 0.0  ;;  %v4650_v52 = vmax.f32 %v9527_v60, 0.0 }
 0x700   :  { %8995 = dma.done.wait [#allocation4], 131072 }
 0x701   :  { %8996 = vsyncadd [#allocation4], 4294836224  ;;  %v9536_v22 = vpack.c.bf16 %v4644_v9, %v4644_v9  ;;  %v4659_v23 = vld [vmem:[#allocation2 + $0x8] sm:$0xff]  ;;  %v4661_v12 = vld [vmem:[#allocation2 + $0x18] sm:$0xff] }
 0x702   :  { %v4658_v25 = vld [vmem:[#allocation2] sm:$0xff]  ;;  %5774 = vmatprep.subr.bf16.mxu0 %v4659_v23  ;;  %5938 = vmatprep.subr.bf16.mxu1 %v4661_v12  ;;  %v4660_v27 = vld [vmem:[#allocation2 + $0x10] sm:$0xff]  ;;  %v4675_v10 = vld [vmem:[#allocation2 + $0x88] sm:$0xff] }
 0x703   :  { %5806 = vmatprep.mubr.bf16.mxu0 %v9536_v22  ;;  %5970 = vmatprep.mubr.bf16.mxu1 %v9536_v22  ;;  %v4677_v31 = vld [vmem:[#allocation2 + $0x98] sm:$0xff]  ;;  %v4674_v36 = vld [vmem:[#allocation2 + $0x80] sm:$0xff]  ;;  %v4676_v51 = vld [vmem:[#allocation2 + $0x90] sm:$0xff] }
 0x704   :  { %5775 = vmatpush1.bf16.msra.mxu0 %v4658_v25  ;;  %5939 = vmatpush1.bf16.msra.mxu1 %v4660_v27  ;;  %v4691_v35 = vld [vmem:[#allocation2 + $0x108] sm:$0xff]  ;;  %v4693_v15 = vld [vmem:[#allocation2 + $0x118] sm:$0xff]  ;;  %v4690_v42 = vld [vmem:[#allocation2 + $0x100] sm:$0xff] }
 0x705   :  { %5776 = vmatprep.subr.bf16.mxu0 %v4675_v10  ;;  %5940 = vmatprep.subr.bf16.mxu1 %v4677_v31  ;;  %v4692_v38 = vld [vmem:[#allocation2 + $0x110] sm:$0xff]  ;;  %v4707_v46 = vld [vmem:[#allocation2 + $0x188] sm:$0xff]  ;;  %v4709_v56 = vld [vmem:[#allocation2 + $0x198] sm:$0xff] }
 0x706   :  { %v4706_v62 = vld [vmem:[#allocation2 + $0x180] sm:$0xff]  ;;  %v4708_v48 = vld [vmem:[#allocation2 + $0x190] sm:$0xff]  ;;  %v4723_v19 = vld [vmem:[#allocation2 + $0x208] sm:$0xff] }
 0x707   :  { %v4725_v44 = vld [vmem:[#allocation2 + $0x218] sm:$0xff]  ;;  %v4722_v54 = vld [vmem:[#allocation2 + $0x200] sm:$0xff]  ;;  %v4724_v61 = vld [vmem:[#allocation2 + $0x210] sm:$0xff] }
 0x708   :  { %5777 = vmatpush1.bf16.msra.mxu0 %v4674_v36  ;;  %5941 = vmatpush1.bf16.msra.mxu1 %v4676_v51  ;;  %v4739_v24 = vld [vmem:[#allocation2 + $0x288] sm:$0xff]  ;;  %v4741_v57 = vld [vmem:[#allocation2 + $0x298] sm:$0xff]  ;;  %v4738_v59 = vld [vmem:[#allocation2 + $0x280] sm:$0xff] }
 0x709   :  { %5778 = vmatprep.subr.bf16.mxu0 %v4691_v35  ;;  %5942 = vmatprep.subr.bf16.mxu1 %v4693_v15  ;;  %v4740_v0 = vld [vmem:[#allocation2 + $0x290] sm:$0xff]  ;;  %v4755_v1 = vld [vmem:[#allocation2 + $0x308] sm:$0xff]  ;;  %v4757_v3 = vld [vmem:[#allocation2 + $0x318] sm:$0xff] }
 0x70a   :  { %v4754_v4 = vld [vmem:[#allocation2 + $0x300] sm:$0xff]  ;;  %v4756_v26 = vld [vmem:[#allocation2 + $0x310] sm:$0xff]  ;;  %v4771_v28 = vld [vmem:[#allocation2 + $0x388] sm:$0xff] }
 0x70b   :  { %v4773_v29 = vld [vmem:[#allocation2 + $0x398] sm:$0xff]  ;;  %v4770_v30 = vld [vmem:[#allocation2 + $0x380] sm:$0xff]  ;;  %v4772_v14 = vld [vmem:[#allocation2 + $0x390] sm:$0xff] }
 0x70c   :  { %5779 = vmatpush1.bf16.msra.mxu0 %v4690_v42  ;;  %5943 = vmatpush1.bf16.msra.mxu1 %v4692_v38  ;;  %v4787_v53 = vld [vmem:[#allocation2 + $0x408] sm:$0xff]  ;;  %v4789_v16 = vld [vmem:[#allocation2 + $0x418] sm:$0xff]  ;;  %v4786_v43 = vld [vmem:[#allocation2 + $0x400] sm:$0xff] }
 0x70d   :  { %5780 = vmatprep.subr.bf16.mxu0 %v4707_v46  ;;  %5944 = vmatprep.subr.bf16.mxu1 %v4709_v56  ;;  %v4788_v63 = vld [vmem:[#allocation2 + $0x410] sm:$0xff]  ;;  %v4803_v5 = vld [vmem:[#allocation2 + $0x488] sm:$0xff]  ;;  %v4805_v20 = vld [vmem:[#allocation2 + $0x498] sm:$0xff] }
 0x70e   :  { %v4802_v7 = vld [vmem:[#allocation2 + $0x480] sm:$0xff]  ;;  %v4804_v9 = vld [vmem:[#allocation2 + $0x490] sm:$0xff]  ;;  %v4819_v23 = vld [vmem:[#allocation2 + $0x508] sm:$0xff] }
 0x70f   :  { %v4821_v12 = vld [vmem:[#allocation2 + $0x518] sm:$0xff]  ;;  %v4818_v25 = vld [vmem:[#allocation2 + $0x500] sm:$0xff]  ;;  %v4820_v27 = vld [vmem:[#allocation2 + $0x510] sm:$0xff] }
 0x710   :  { %5781 = vmatpush1.bf16.msra.mxu0 %v4706_v62  ;;  %5945 = vmatpush1.bf16.msra.mxu1 %v4708_v48  ;;  %v4835_v10 = vld [vmem:[#allocation2 + $0x588] sm:$0xff]  ;;  %v4837_v31 = vld [vmem:[#allocation2 + $0x598] sm:$0xff]  ;;  %v4834_v36 = vld [vmem:[#allocation2 + $0x580] sm:$0xff] }
 0x711   :  { %5782 = vmatprep.subr.bf16.mxu0 %v4723_v19  ;;  %5946 = vmatprep.subr.bf16.mxu1 %v4725_v44  ;;  %v4836_v51 = vld [vmem:[#allocation2 + $0x590] sm:$0xff]  ;;  %v4851_v35 = vld [vmem:[#allocation2 + $0x608] sm:$0xff]  ;;  %v4853_v15 = vld [vmem:[#allocation2 + $0x618] sm:$0xff] }
 0x712   :  { %v4850_v42 = vld [vmem:[#allocation2 + $0x600] sm:$0xff]  ;;  %v4852_v38 = vld [vmem:[#allocation2 + $0x610] sm:$0xff]  ;;  %v4867_v46 = vld [vmem:[#allocation2 + $0x688] sm:$0xff] }
 0x713   :  { %v4869_v56 = vld [vmem:[#allocation2 + $0x698] sm:$0xff]  ;;  %v4866_v62 = vld [vmem:[#allocation2 + $0x680] sm:$0xff]  ;;  %v4868_v48 = vld [vmem:[#allocation2 + $0x690] sm:$0xff] }
 0x714   :  { %5783 = vmatpush1.bf16.msra.mxu0 %v4722_v54  ;;  %5947 = vmatpush1.bf16.msra.mxu1 %v4724_v61  ;;  %v4883_v19 = vld [vmem:[#allocation2 + $0x708] sm:$0xff]  ;;  %v4885_v44 = vld [vmem:[#allocation2 + $0x718] sm:$0xff]  ;;  %v4882_v54 = vld [vmem:[#allocation2 + $0x700] sm:$0xff] }
 0x715   :  { %5784 = vmatprep.subr.bf16.mxu0 %v4739_v24  ;;  %5948 = vmatprep.subr.bf16.mxu1 %v4741_v57  ;;  %v4884_v61 = vld [vmem:[#allocation2 + $0x710] sm:$0xff]  ;;  %v4899_v24 = vld [vmem:[#allocation2 + $0x788] sm:$0xff]  ;;  %v4901_v57 = vld [vmem:[#allocation2 + $0x798] sm:$0xff] }
 0x716   :  { %v4930_v21 = vld [vmem:[#allocation2 + $0x880] sm:$0xff] }
 0x717   :  { %v4946_v32 = vld [vmem:[#allocation2 + $0x900] sm:$0xff] }
 0x718   :  { %5785 = vmatpush1.bf16.msra.mxu0 %v4738_v59  ;;  %5949 = vmatpush1.bf16.msra.mxu1 %v4740_v0  ;;  %v4898_v59 = vld [vmem:[#allocation2 + $0x780] sm:$0xff]  ;;  %v4900_v0 = vld [vmem:[#allocation2 + $0x790] sm:$0xff] }
 0x719   :  { %5786 = vmatprep.subr.bf16.mxu0 %v4755_v1  ;;  %5950 = vmatprep.subr.bf16.mxu1 %v4757_v3  ;;  %v4915_v1 = vld [vmem:[#allocation2 + $0x808] sm:$0xff]  ;;  %v4917_v3 = vld [vmem:[#allocation2 + $0x818] sm:$0xff]  ;;  %v5186_v45 = vld [vmem:[#allocation2 + $0x1080] sm:$0xff] }
 0x71a   :  { %v5202_v34 = vld [vmem:[#allocation2 + $0x1100] sm:$0xff] }
 0x71b   :  { %v5442_v33 = vld [vmem:[#allocation2 + $0x1880] sm:$0xff] }
 0x71c   :  { %5787 = vmatpush1.bf16.msra.mxu0 %v4754_v4  ;;  %5951 = vmatpush1.bf16.msra.mxu1 %v4756_v26  ;;  %v9543_v4 = vpack.c.bf16 %v4643_v17, %v4643_v17  ;;  %v4914_v26 = vld [vmem:[#allocation2 + $0x800] sm:$0xff]  ;;  %v4932_v17 = vld [vmem:[#allocation2 + $0x890] sm:$0xff] }
 0x71d   :  { %5788 = vmatprep.subr.bf16.mxu0 %v4771_v28  ;;  %5952 = vmatprep.subr.bf16.mxu1 %v4773_v29  ;;  %v4916_v28 = vld [vmem:[#allocation2 + $0x810] sm:$0xff]  ;;  %v4931_v29 = vld [vmem:[#allocation2 + $0x888] sm:$0xff]  ;;  %v5458_v60 = vld [vmem:[#allocation2 + $0x1900] sm:$0xff] }
 0x71e   :  { %v4678_v13 = vld [vmem:[#allocation2 + $0xa0] sm:$0xff] }
 0x720   :  { %5789 = vmatpush1.bf16.msra.mxu0 %v4770_v30  ;;  %5953 = vmatpush1.bf16.msra.mxu1 %v4772_v14  ;;  %v4933_v30 = vld [vmem:[#allocation2 + $0x898] sm:$0xff]  ;;  %v9548_v14 = vpack.c.bf16 %v4646_v8, %v4646_v8  ;;  %v4948_v8 = vld [vmem:[#allocation2 + $0x910] sm:$0xff] }
 0x721   :  { %5790 = vmatprep.subr.bf16.mxu0 %v4787_v53  ;;  %5954 = vmatprep.subr.bf16.mxu1 %v4789_v16  ;;  %v4947_v53 = vld [vmem:[#allocation2 + $0x908] sm:$0xff]  ;;  %v4949_v16 = vld [vmem:[#allocation2 + $0x918] sm:$0xff] }
 0x724   :  { %5791 = vmatpush1.bf16.msra.mxu0 %v4786_v43  ;;  %5955 = vmatpush1.bf16.msra.mxu1 %v4788_v63  ;;  %v4963_v43 = vld [vmem:[#allocation2 + $0x988] sm:$0xff]  ;;  %v4965_v63 = vld [vmem:[#allocation2 + $0x998] sm:$0xff] }
 0x725   :  { %5792 = vmatprep.subr.bf16.mxu0 %v4803_v5  ;;  %5956 = vmatprep.subr.bf16.mxu1 %v4805_v20  ;;  %v4962_v5 = vld [vmem:[#allocation2 + $0x980] sm:$0xff]  ;;  %v4964_v20 = vld [vmem:[#allocation2 + $0x990] sm:$0xff] }
 0x728   :  { %5793 = vmatpush1.bf16.msra.mxu0 %v4802_v7  ;;  %5957 = vmatpush1.bf16.msra.mxu1 %v4804_v9  ;;  %v4979_v7 = vld [vmem:[#allocation2 + $0xa08] sm:$0xff]  ;;  %v4981_v9 = vld [vmem:[#allocation2 + $0xa18] sm:$0xff] }
 0x729   :  { %5794 = vmatprep.subr.bf16.mxu0 %v4819_v23  ;;  %5958 = vmatprep.subr.bf16.mxu1 %v4821_v12  ;;  %v4978_v23 = vld [vmem:[#allocation2 + $0xa00] sm:$0xff]  ;;  %v4980_v12 = vld [vmem:[#allocation2 + $0xa10] sm:$0xff] }
 0x72c   :  { %5795 = vmatpush1.bf16.msra.mxu0 %v4818_v25  ;;  %5959 = vmatpush1.bf16.msra.mxu1 %v4820_v27  ;;  %v4995_v25 = vld [vmem:[#allocation2 + $0xa88] sm:$0xff]  ;;  %v4997_v27 = vld [vmem:[#allocation2 + $0xa98] sm:$0xff] }
 0x72d   :  { %5796 = vmatprep.subr.bf16.mxu0 %v4835_v10  ;;  %5960 = vmatprep.subr.bf16.mxu1 %v4837_v31  ;;  %v4994_v10 = vld [vmem:[#allocation2 + $0xa80] sm:$0xff]  ;;  %v4996_v31 = vld [vmem:[#allocation2 + $0xa90] sm:$0xff] }
 0x730   :  { %5797 = vmatpush1.bf16.msra.mxu0 %v4834_v36  ;;  %5961 = vmatpush1.bf16.msra.mxu1 %v4836_v51  ;;  %v5011_v36 = vld [vmem:[#allocation2 + $0xb08] sm:$0xff]  ;;  %v5013_v51 = vld [vmem:[#allocation2 + $0xb18] sm:$0xff] }
 0x731   :  { %5798 = vmatprep.subr.bf16.mxu0 %v4851_v35  ;;  %5962 = vmatprep.subr.bf16.mxu1 %v4853_v15  ;;  %v5010_v35 = vld [vmem:[#allocation2 + $0xb00] sm:$0xff]  ;;  %v5012_v15 = vld [vmem:[#allocation2 + $0xb10] sm:$0xff] }
 0x734   :  { %5799 = vmatpush1.bf16.msra.mxu0 %v4850_v42  ;;  %5963 = vmatpush1.bf16.msra.mxu1 %v4852_v38  ;;  %v5027_v42 = vld [vmem:[#allocation2 + $0xb88] sm:$0xff]  ;;  %v5029_v38 = vld [vmem:[#allocation2 + $0xb98] sm:$0xff] }
 0x735   :  { %5800 = vmatprep.subr.bf16.mxu0 %v4867_v46  ;;  %5964 = vmatprep.subr.bf16.mxu1 %v4869_v56  ;;  %v5026_v46 = vld [vmem:[#allocation2 + $0xb80] sm:$0xff]  ;;  %v5028_v56 = vld [vmem:[#allocation2 + $0xb90] sm:$0xff] }
 0x738   :  { %5801 = vmatpush1.bf16.msra.mxu0 %v4866_v62  ;;  %5965 = vmatpush1.bf16.msra.mxu1 %v4868_v48  ;;  %v5043_v62 = vld [vmem:[#allocation2 + $0xc08] sm:$0xff]  ;;  %v5045_v48 = vld [vmem:[#allocation2 + $0xc18] sm:$0xff] }
 0x739   :  { %5802 = vmatprep.subr.bf16.mxu0 %v4883_v19  ;;  %5966 = vmatprep.subr.bf16.mxu1 %v4885_v44  ;;  %v5042_v19 = vld [vmem:[#allocation2 + $0xc00] sm:$0xff]  ;;  %v5044_v44 = vld [vmem:[#allocation2 + $0xc10] sm:$0xff] }
 0x73c   :  { %5803 = vmatpush1.bf16.msra.mxu0 %v4882_v54  ;;  %5967 = vmatpush1.bf16.msra.mxu1 %v4884_v61  ;;  %v5059_v54 = vld [vmem:[#allocation2 + $0xc88] sm:$0xff]  ;;  %v5061_v61 = vld [vmem:[#allocation2 + $0xc98] sm:$0xff] }
 0x73d   :  { %5804 = vmatprep.subr.bf16.mxu0 %v4899_v24  ;;  %5968 = vmatprep.subr.bf16.mxu1 %v4901_v57  ;;  %v5058_v24 = vld [vmem:[#allocation2 + $0xc80] sm:$0xff]  ;;  %v5060_v57 = vld [vmem:[#allocation2 + $0xc90] sm:$0xff] }
 0x740   :  { %5805 = vmatpush1.bf16.msra.mxu0 %v4898_v59  ;;  %5969 = vmatpush1.bf16.msra.mxu1 %v4900_v0  ;;  %v5075_v59 = vld [vmem:[#allocation2 + $0xd08] sm:$0xff]  ;;  %v5077_v0 = vld [vmem:[#allocation2 + $0xd18] sm:$0xff] }
 0x741   :  { %5815 = vmatprep.subr.bf16.mxu0 %v4915_v1  ;;  %5979 = vmatprep.subr.bf16.mxu1 %v4917_v3  ;;  %v5074_v1 = vld [vmem:[#allocation2 + $0xd00] sm:$0xff]  ;;  %v5076_v3 = vld [vmem:[#allocation2 + $0xd10] sm:$0xff] }
 0x743   :  { %5807 = vmatmul.mubr.bf16.vlgmr.msra.gmra.mrb[16].mxu0 %v9543_v4  ;;  %5971 = vmatmul.mubr.bf16.vlgmr.msra.gmra.mrb[16].mxu1 %v9543_v4 }
 0x744   :  { %5816 = vmatpush1.bf16.msra.mxu0 %v4914_v26  ;;  %5980 = vmatpush1.bf16.msra.mxu1 %v4916_v28  ;;  %v5091_v26 = vld [vmem:[#allocation2 + $0xd88] sm:$0xff]  ;;  %v5093_v28 = vld [vmem:[#allocation2 + $0xd98] sm:$0xff] }
 0x745   :  { %5817 = vmatprep.subr.bf16.mxu0 %v4931_v29  ;;  %5981 = vmatprep.subr.bf16.mxu1 %v4933_v30  ;;  %v5090_v29 = vld [vmem:[#allocation2 + $0xd80] sm:$0xff]  ;;  %v5092_v30 = vld [vmem:[#allocation2 + $0xd90] sm:$0xff] }
 0x746   :  { %5847 = vmatprep.mubr.bf16.mxu0 %v9548_v14  ;;  %6011 = vmatprep.mubr.bf16.mxu1 %v9548_v14 }
 0x748   :  { %5818 = vmatpush1.bf16.msra.mxu0 %v4930_v21  ;;  %5982 = vmatpush1.bf16.msra.mxu1 %v4932_v17  ;;  %v5107_v21 = vld [vmem:[#allocation2 + $0xe08] sm:$0xff]  ;;  %v5109_v17 = vld [vmem:[#allocation2 + $0xe18] sm:$0xff] }
 0x749   :  { %5819 = vmatprep.subr.bf16.mxu0 %v4947_v53  ;;  %5983 = vmatprep.subr.bf16.mxu1 %v4949_v16  ;;  %v5106_v53 = vld [vmem:[#allocation2 + $0xe00] sm:$0xff]  ;;  %v5108_v16 = vld [vmem:[#allocation2 + $0xe10] sm:$0xff] }
 0x74c   :  { %5820 = vmatpush1.bf16.msra.mxu0 %v4946_v32  ;;  %5984 = vmatpush1.bf16.msra.mxu1 %v4948_v8  ;;  %v5123_v32 = vld [vmem:[#allocation2 + $0xe88] sm:$0xff]  ;;  %v5125_v8 = vld [vmem:[#allocation2 + $0xe98] sm:$0xff] }
 0x74d   :  { %5821 = vmatprep.subr.bf16.mxu0 %v4963_v43  ;;  %5985 = vmatprep.subr.bf16.mxu1 %v4965_v63  ;;  %v5122_v43 = vld [vmem:[#allocation2 + $0xe80] sm:$0xff]  ;;  %v5124_v63 = vld [vmem:[#allocation2 + $0xe90] sm:$0xff] }
 0x750   :  { %5822 = vmatpush1.bf16.msra.mxu0 %v4962_v5  ;;  %5986 = vmatpush1.bf16.msra.mxu1 %v4964_v20  ;;  %v5139_v5 = vld [vmem:[#allocation2 + $0xf08] sm:$0xff]  ;;  %v5141_v20 = vld [vmem:[#allocation2 + $0xf18] sm:$0xff] }
 0x751   :  { %5823 = vmatprep.subr.bf16.mxu0 %v4979_v7  ;;  %5987 = vmatprep.subr.bf16.mxu1 %v4981_v9  ;;  %v5138_v7 = vld [vmem:[#allocation2 + $0xf00] sm:$0xff]  ;;  %v5140_v9 = vld [vmem:[#allocation2 + $0xf10] sm:$0xff] }
 0x754   :  { %5824 = vmatpush1.bf16.msra.mxu0 %v4978_v23  ;;  %5988 = vmatpush1.bf16.msra.mxu1 %v4980_v12  ;;  %v5155_v23 = vld [vmem:[#allocation2 + $0xf88] sm:$0xff]  ;;  %v5157_v12 = vld [vmem:[#allocation2 + $0xf98] sm:$0xff] }
 0x755   :  { %5825 = vmatprep.subr.bf16.mxu0 %v4995_v25  ;;  %5989 = vmatprep.subr.bf16.mxu1 %v4997_v27  ;;  %v5154_v25 = vld [vmem:[#allocation2 + $0xf80] sm:$0xff]  ;;  %v5156_v27 = vld [vmem:[#allocation2 + $0xf90] sm:$0xff] }
 0x758   :  { %5826 = vmatpush1.bf16.msra.mxu0 %v4994_v10  ;;  %5990 = vmatpush1.bf16.msra.mxu1 %v4996_v31  ;;  %v5171_v10 = vld [vmem:[#allocation2 + $0x1008] sm:$0xff]  ;;  %v5173_v31 = vld [vmem:[#allocation2 + $0x1018] sm:$0xff] }
 0x759   :  { %5827 = vmatprep.subr.bf16.mxu0 %v5011_v36  ;;  %5991 = vmatprep.subr.bf16.mxu1 %v5013_v51  ;;  %v9557_v36 = vpack.c.bf16 %v4645_v11, %v4645_v11  ;;  %v5170_v51 = vld [vmem:[#allocation2 + $0x1000] sm:$0xff]  ;;  %v5188_v11 = vld [vmem:[#allocation2 + $0x1090] sm:$0xff] }
 0x75c   :  { %5828 = vmatpush1.bf16.msra.mxu0 %v5010_v35  ;;  %5992 = vmatpush1.bf16.msra.mxu1 %v5012_v15  ;;  %v5172_v35 = vld [vmem:[#allocation2 + $0x1010] sm:$0xff]  ;;  %v5187_v15 = vld [vmem:[#allocation2 + $0x1088] sm:$0xff] }
 0x75d   :  { %5829 = vmatprep.subr.bf16.mxu0 %v5027_v42  ;;  %5993 = vmatprep.subr.bf16.mxu1 %v5029_v38  ;;  %v5189_v42 = vld [vmem:[#allocation2 + $0x1098] sm:$0xff]  ;;  %v9562_v38 = vpack.c.bf16 %v4648_v18, %v4648_v18  ;;  %v5204_v18 = vld [vmem:[#allocation2 + $0x1110] sm:$0xff] }
 0x760   :  { %5830 = vmatpush1.bf16.msra.mxu0 %v5026_v46  ;;  %5994 = vmatpush1.bf16.msra.mxu1 %v5028_v56  ;;  %v5203_v46 = vld [vmem:[#allocation2 + $0x1108] sm:$0xff]  ;;  %v5205_v56 = vld [vmem:[#allocation2 + $0x1118] sm:$0xff] }
 0x761   :  { %5831 = vmatprep.subr.bf16.mxu0 %v5043_v62  ;;  %5995 = vmatprep.subr.bf16.mxu1 %v5045_v48  ;;  %v5219_v62 = vld [vmem:[#allocation2 + $0x1188] sm:$0xff]  ;;  %v5221_v48 = vld [vmem:[#allocation2 + $0x1198] sm:$0xff] }
 0x764   :  { %5832 = vmatpush1.bf16.msra.mxu0 %v5042_v19  ;;  %5996 = vmatpush1.bf16.msra.mxu1 %v5044_v44  ;;  %v5218_v19 = vld [vmem:[#allocation2 + $0x1180] sm:$0xff]  ;;  %v5220_v44 = vld [vmem:[#allocation2 + $0x1190] sm:$0xff] }
 0x765   :  { %5833 = vmatprep.subr.bf16.mxu0 %v5059_v54  ;;  %5997 = vmatprep.subr.bf16.mxu1 %v5061_v61  ;;  %v5235_v54 = vld [vmem:[#allocation2 + $0x1208] sm:$0xff]  ;;  %v5237_v61 = vld [vmem:[#allocation2 + $0x1218] sm:$0xff] }
 0x768   :  { %5834 = vmatpush1.bf16.msra.mxu0 %v5058_v24  ;;  %5998 = vmatpush1.bf16.msra.mxu1 %v5060_v57  ;;  %v5234_v24 = vld [vmem:[#allocation2 + $0x1200] sm:$0xff]  ;;  %v5236_v57 = vld [vmem:[#allocation2 + $0x1210] sm:$0xff] }
 0x769   :  { %5835 = vmatprep.subr.bf16.mxu0 %v5075_v59  ;;  %5999 = vmatprep.subr.bf16.mxu1 %v5077_v0  ;;  %v5251_v59 = vld [vmem:[#allocation2 + $0x1288] sm:$0xff]  ;;  %v5253_v0 = vld [vmem:[#allocation2 + $0x1298] sm:$0xff] }
 0x76c   :  { %5836 = vmatpush1.bf16.msra.mxu0 %v5074_v1  ;;  %6000 = vmatpush1.bf16.msra.mxu1 %v5076_v3  ;;  %v5250_v1 = vld [vmem:[#allocation2 + $0x1280] sm:$0xff]  ;;  %v5252_v3 = vld [vmem:[#allocation2 + $0x1290] sm:$0xff] }
 0x76d   :  { %5837 = vmatprep.subr.bf16.mxu0 %v5091_v26  ;;  %6001 = vmatprep.subr.bf16.mxu1 %v5093_v28  ;;  %v5267_v26 = vld [vmem:[#allocation2 + $0x1308] sm:$0xff]  ;;  %v5269_v28 = vld [vmem:[#allocation2 + $0x1318] sm:$0xff] }
 0x770   :  { %5838 = vmatpush1.bf16.msra.mxu0 %v5090_v29  ;;  %6002 = vmatpush1.bf16.msra.mxu1 %v5092_v30  ;;  %v5266_v29 = vld [vmem:[#allocation2 + $0x1300] sm:$0xff]  ;;  %v5268_v30 = vld [vmem:[#allocation2 + $0x1310] sm:$0xff] }
 0x771   :  { %5839 = vmatprep.subr.bf16.mxu0 %v5107_v21  ;;  %6003 = vmatprep.subr.bf16.mxu1 %v5109_v17  ;;  %v5283_v21 = vld [vmem:[#allocation2 + $0x1388] sm:$0xff]  ;;  %v5285_v17 = vld [vmem:[#allocation2 + $0x1398] sm:$0xff] }
 0x774   :  { %5840 = vmatpush1.bf16.msra.mxu0 %v5106_v53  ;;  %6004 = vmatpush1.bf16.msra.mxu1 %v5108_v16  ;;  %v5282_v53 = vld [vmem:[#allocation2 + $0x1380] sm:$0xff]  ;;  %v5284_v16 = vld [vmem:[#allocation2 + $0x1390] sm:$0xff] }
 0x775   :  { %5841 = vmatprep.subr.bf16.mxu0 %v5123_v32  ;;  %6005 = vmatprep.subr.bf16.mxu1 %v5125_v8  ;;  %v5299_v32 = vld [vmem:[#allocation2 + $0x1408] sm:$0xff]  ;;  %v5301_v8 = vld [vmem:[#allocation2 + $0x1418] sm:$0xff] }
 0x778   :  { %5842 = vmatpush1.bf16.msra.mxu0 %v5122_v43  ;;  %6006 = vmatpush1.bf16.msra.mxu1 %v5124_v63  ;;  %v5298_v43 = vld [vmem:[#allocation2 + $0x1400] sm:$0xff]  ;;  %v5300_v63 = vld [vmem:[#allocation2 + $0x1410] sm:$0xff] }
 0x779   :  { %5843 = vmatprep.subr.bf16.mxu0 %v5139_v5  ;;  %6007 = vmatprep.subr.bf16.mxu1 %v5141_v20  ;;  %v5315_v5 = vld [vmem:[#allocation2 + $0x1488] sm:$0xff]  ;;  %v5317_v20 = vld [vmem:[#allocation2 + $0x1498] sm:$0xff] }
 0x77c   :  { %5844 = vmatpush1.bf16.msra.mxu0 %v5138_v7  ;;  %6008 = vmatpush1.bf16.msra.mxu1 %v5140_v9  ;;  %v5314_v7 = vld [vmem:[#allocation2 + $0x1480] sm:$0xff]  ;;  %v5316_v9 = vld [vmem:[#allocation2 + $0x1490] sm:$0xff] }
 0x77d   :  { %5845 = vmatprep.subr.bf16.mxu0 %v5155_v23  ;;  %6009 = vmatprep.subr.bf16.mxu1 %v5157_v12  ;;  %v5331_v23 = vld [vmem:[#allocation2 + $0x1508] sm:$0xff]  ;;  %v5333_v12 = vld [vmem:[#allocation2 + $0x1518] sm:$0xff] }
 0x780   :  { %5846 = vmatpush1.bf16.msra.mxu0 %v5154_v25  ;;  %6010 = vmatpush1.bf16.msra.mxu1 %v5156_v27  ;;  %v5330_v25 = vld [vmem:[#allocation2 + $0x1500] sm:$0xff]  ;;  %v5332_v27 = vld [vmem:[#allocation2 + $0x1510] sm:$0xff] }
 0x781   :  { %5856 = vmatprep.subr.bf16.mxu0 %v5171_v10  ;;  %6020 = vmatprep.subr.bf16.mxu1 %v5173_v31  ;;  %v5347_v10 = vld [vmem:[#allocation2 + $0x1588] sm:$0xff]  ;;  %v5349_v31 = vld [vmem:[#allocation2 + $0x1598] sm:$0xff] }
 0x783   :  { %5848 = vmatmul.mubr.bf16.vlgmr.msra.gmra.mrb[16].mxu0 %v9557_v36  ;;  %6012 = vmatmul.mubr.bf16.vlgmr.msra.gmra.mrb[16].mxu1 %v9557_v36 }
 0x784   :  { %5857 = vmatpush1.bf16.msra.mxu0 %v5170_v51  ;;  %6021 = vmatpush1.bf16.msra.mxu1 %v5172_v35  ;;  %v5346_v51 = vld [vmem:[#allocation2 + $0x1580] sm:$0xff]  ;;  %v5348_v35 = vld [vmem:[#allocation2 + $0x1590] sm:$0xff] }
 0x785   :  { %5858 = vmatprep.subr.bf16.mxu0 %v5187_v15  ;;  %6022 = vmatprep.subr.bf16.mxu1 %v5189_v42  ;;  %v5363_v15 = vld [vmem:[#allocation2 + $0x1608] sm:$0xff]  ;;  %v5365_v42 = vld [vmem:[#allocation2 + $0x1618] sm:$0xff] }
 0x786   :  { %5888 = vmatprep.mubr.bf16.mxu0 %v9562_v38  ;;  %6052 = vmatprep.mubr.bf16.mxu1 %v9562_v38 }
 0x788   :  { %5859 = vmatpush1.bf16.msra.mxu0 %v5186_v45  ;;  %6023 = vmatpush1.bf16.msra.mxu1 %v5188_v11  ;;  %v5362_v45 = vld [vmem:[#allocation2 + $0x1600] sm:$0xff]  ;;  %v5364_v11 = vld [vmem:[#allocation2 + $0x1610] sm:$0xff] }
 0x789   :  { %5860 = vmatprep.subr.bf16.mxu0 %v5203_v46  ;;  %6024 = vmatprep.subr.bf16.mxu1 %v5205_v56  ;;  %v5379_v46 = vld [vmem:[#allocation2 + $0x1688] sm:$0xff]  ;;  %v5381_v56 = vld [vmem:[#allocation2 + $0x1698] sm:$0xff] }
 0x78c   :  { %5861 = vmatpush1.bf16.msra.mxu0 %v5202_v34  ;;  %6025 = vmatpush1.bf16.msra.mxu1 %v5204_v18  ;;  %v5378_v34 = vld [vmem:[#allocation2 + $0x1680] sm:$0xff]  ;;  %v5380_v18 = vld [vmem:[#allocation2 + $0x1690] sm:$0xff] }
 0x78d   :  { %5862 = vmatprep.subr.bf16.mxu0 %v5219_v62  ;;  %6026 = vmatprep.subr.bf16.mxu1 %v5221_v48  ;;  %v5395_v62 = vld [vmem:[#allocation2 + $0x1708] sm:$0xff]  ;;  %v5397_v48 = vld [vmem:[#allocation2 + $0x1718] sm:$0xff] }
 0x790   :  { %5863 = vmatpush1.bf16.msra.mxu0 %v5218_v19  ;;  %6027 = vmatpush1.bf16.msra.mxu1 %v5220_v44  ;;  %v5394_v19 = vld [vmem:[#allocation2 + $0x1700] sm:$0xff]  ;;  %v5396_v44 = vld [vmem:[#allocation2 + $0x1710] sm:$0xff] }
 0x791   :  { %5864 = vmatprep.subr.bf16.mxu0 %v5235_v54  ;;  %6028 = vmatprep.subr.bf16.mxu1 %v5237_v61  ;;  %v5411_v54 = vld [vmem:[#allocation2 + $0x1788] sm:$0xff]  ;;  %v5413_v61 = vld [vmem:[#allocation2 + $0x1798] sm:$0xff] }
 0x794   :  { %5865 = vmatpush1.bf16.msra.mxu0 %v5234_v24  ;;  %6029 = vmatpush1.bf16.msra.mxu1 %v5236_v57  ;;  %v5410_v24 = vld [vmem:[#allocation2 + $0x1780] sm:$0xff]  ;;  %v5412_v57 = vld [vmem:[#allocation2 + $0x1790] sm:$0xff] }
 0x795   :  { %5866 = vmatprep.subr.bf16.mxu0 %v5251_v59  ;;  %6030 = vmatprep.subr.bf16.mxu1 %v5253_v0  ;;  %v5427_v59 = vld [vmem:[#allocation2 + $0x1808] sm:$0xff]  ;;  %v5429_v0 = vld [vmem:[#allocation2 + $0x1818] sm:$0xff] }
 0x798   :  { %5867 = vmatpush1.bf16.msra.mxu0 %v5250_v1  ;;  %6031 = vmatpush1.bf16.msra.mxu1 %v5252_v3  ;;  %v9571_v1 = vpack.c.bf16 %v4647_v47, %v4647_v47  ;;  %v5426_v3 = vld [vmem:[#allocation2 + $0x1800] sm:$0xff]  ;;  %v5444_v47 = vld [vmem:[#allocation2 + $0x1890] sm:$0xff] }
 0x799   :  { %5868 = vmatprep.subr.bf16.mxu0 %v5267_v26  ;;  %6032 = vmatprep.subr.bf16.mxu1 %v5269_v28  ;;  %v5428_v26 = vld [vmem:[#allocation2 + $0x1810] sm:$0xff]  ;;  %v5443_v28 = vld [vmem:[#allocation2 + $0x1888] sm:$0xff] }
 0x79c   :  { %5869 = vmatpush1.bf16.msra.mxu0 %v5266_v29  ;;  %6033 = vmatpush1.bf16.msra.mxu1 %v5268_v30  ;;  %v5445_v29 = vld [vmem:[#allocation2 + $0x1898] sm:$0xff]  ;;  %v9576_v30 = vpack.c.bf16 %v4650_v52, %v4650_v52  ;;  %v5460_v52 = vld [vmem:[#allocation2 + $0x1910] sm:$0xff] }
 0x79d   :  { %5870 = vmatprep.subr.bf16.mxu0 %v5283_v21  ;;  %6034 = vmatprep.subr.bf16.mxu1 %v5285_v17  ;;  %v5459_v21 = vld [vmem:[#allocation2 + $0x1908] sm:$0xff]  ;;  %v5461_v17 = vld [vmem:[#allocation2 + $0x1918] sm:$0xff] }
 0x7a0   :  { %5871 = vmatpush1.bf16.msra.mxu0 %v5282_v53  ;;  %6035 = vmatpush1.bf16.msra.mxu1 %v5284_v16  ;;  %v5475_v53 = vld [vmem:[#allocation2 + $0x1988] sm:$0xff]  ;;  %v5477_v16 = vld [vmem:[#allocation2 + $0x1998] sm:$0xff] }
 0x7a1   :  { %5872 = vmatprep.subr.bf16.mxu0 %v5299_v32  ;;  %6036 = vmatprep.subr.bf16.mxu1 %v5301_v8  ;;  %v5474_v32 = vld [vmem:[#allocation2 + $0x1980] sm:$0xff]  ;;  %v5476_v8 = vld [vmem:[#allocation2 + $0x1990] sm:$0xff] }
 0x7a4   :  { %5873 = vmatpush1.bf16.msra.mxu0 %v5298_v43  ;;  %6037 = vmatpush1.bf16.msra.mxu1 %v5300_v63  ;;  %v5491_v43 = vld [vmem:[#allocation2 + $0x1a08] sm:$0xff]  ;;  %v5493_v63 = vld [vmem:[#allocation2 + $0x1a18] sm:$0xff] }
 0x7a5   :  { %5874 = vmatprep.subr.bf16.mxu0 %v5315_v5  ;;  %6038 = vmatprep.subr.bf16.mxu1 %v5317_v20  ;;  %v5490_v5 = vld [vmem:[#allocation2 + $0x1a00] sm:$0xff]  ;;  %v5492_v20 = vld [vmem:[#allocation2 + $0x1a10] sm:$0xff] }
 0x7a8   :  { %5875 = vmatpush1.bf16.msra.mxu0 %v5314_v7  ;;  %6039 = vmatpush1.bf16.msra.mxu1 %v5316_v9  ;;  %v5507_v7 = vld [vmem:[#allocation2 + $0x1a88] sm:$0xff]  ;;  %v5509_v9 = vld [vmem:[#allocation2 + $0x1a98] sm:$0xff] }
 0x7a9   :  { %5876 = vmatprep.subr.bf16.mxu0 %v5331_v23  ;;  %6040 = vmatprep.subr.bf16.mxu1 %v5333_v12  ;;  %v5506_v23 = vld [vmem:[#allocation2 + $0x1a80] sm:$0xff]  ;;  %v5508_v12 = vld [vmem:[#allocation2 + $0x1a90] sm:$0xff] }
 0x7ac   :  { %5877 = vmatpush1.bf16.msra.mxu0 %v5330_v25  ;;  %6041 = vmatpush1.bf16.msra.mxu1 %v5332_v27  ;;  %v5523_v25 = vld [vmem:[#allocation2 + $0x1b08] sm:$0xff]  ;;  %v5525_v27 = vld [vmem:[#allocation2 + $0x1b18] sm:$0xff] }
 0x7ad   :  { %5878 = vmatprep.subr.bf16.mxu0 %v5347_v10  ;;  %6042 = vmatprep.subr.bf16.mxu1 %v5349_v31  ;;  %v5522_v10 = vld [vmem:[#allocation2 + $0x1b00] sm:$0xff]  ;;  %v5524_v31 = vld [vmem:[#allocation2 + $0x1b10] sm:$0xff] }
 0x7b0   :  { %5879 = vmatpush1.bf16.msra.mxu0 %v5346_v51  ;;  %6043 = vmatpush1.bf16.msra.mxu1 %v5348_v35  ;;  %v5539_v51 = vld [vmem:[#allocation2 + $0x1b88] sm:$0xff]  ;;  %v5541_v35 = vld [vmem:[#allocation2 + $0x1b98] sm:$0xff] }
 0x7b1   :  { %5880 = vmatprep.subr.bf16.mxu0 %v5363_v15  ;;  %6044 = vmatprep.subr.bf16.mxu1 %v5365_v42  ;;  %v5538_v15 = vld [vmem:[#allocation2 + $0x1b80] sm:$0xff]  ;;  %v5540_v42 = vld [vmem:[#allocation2 + $0x1b90] sm:$0xff] }
 0x7b4   :  { %5881 = vmatpush1.bf16.msra.mxu0 %v5362_v45  ;;  %6045 = vmatpush1.bf16.msra.mxu1 %v5364_v11  ;;  %v5555_v45 = vld [vmem:[#allocation2 + $0x1c08] sm:$0xff]  ;;  %v5557_v11 = vld [vmem:[#allocation2 + $0x1c18] sm:$0xff] }
 0x7b5   :  { %5882 = vmatprep.subr.bf16.mxu0 %v5379_v46  ;;  %6046 = vmatprep.subr.bf16.mxu1 %v5381_v56  ;;  %v5554_v46 = vld [vmem:[#allocation2 + $0x1c00] sm:$0xff]  ;;  %v5556_v56 = vld [vmem:[#allocation2 + $0x1c10] sm:$0xff] }
 0x7b8   :  { %5883 = vmatpush1.bf16.msra.mxu0 %v5378_v34  ;;  %6047 = vmatpush1.bf16.msra.mxu1 %v5380_v18  ;;  %v5571_v34 = vld [vmem:[#allocation2 + $0x1c88] sm:$0xff]  ;;  %v5573_v18 = vld [vmem:[#allocation2 + $0x1c98] sm:$0xff] }
 0x7b9   :  { %5884 = vmatprep.subr.bf16.mxu0 %v5395_v62  ;;  %6048 = vmatprep.subr.bf16.mxu1 %v5397_v48  ;;  %v5570_v62 = vld [vmem:[#allocation2 + $0x1c80] sm:$0xff]  ;;  %v5572_v48 = vld [vmem:[#allocation2 + $0x1c90] sm:$0xff] }
 0x7bc   :  { %5885 = vmatpush1.bf16.msra.mxu0 %v5394_v19  ;;  %6049 = vmatpush1.bf16.msra.mxu1 %v5396_v44  ;;  %v5587_v19 = vld [vmem:[#allocation2 + $0x1d08] sm:$0xff]  ;;  %v5589_v44 = vld [vmem:[#allocation2 + $0x1d18] sm:$0xff] }
 0x7bd   :  { %5886 = vmatprep.subr.bf16.mxu0 %v5411_v54  ;;  %6050 = vmatprep.subr.bf16.mxu1 %v5413_v61  ;;  %v5586_v54 = vld [vmem:[#allocation2 + $0x1d00] sm:$0xff]  ;;  %v5588_v61 = vld [vmem:[#allocation2 + $0x1d10] sm:$0xff] }
 0x7c0   :  { %5887 = vmatpush1.bf16.msra.mxu0 %v5410_v24  ;;  %6051 = vmatpush1.bf16.msra.mxu1 %v5412_v57  ;;  %v5603_v24 = vld [vmem:[#allocation2 + $0x1d88] sm:$0xff]  ;;  %v5605_v57 = vld [vmem:[#allocation2 + $0x1d98] sm:$0xff] }
 0x7c1   :  { %5897 = vmatprep.subr.bf16.mxu0 %v5427_v59  ;;  %6061 = vmatprep.subr.bf16.mxu1 %v5429_v0  ;;  %v5602_v59 = vld [vmem:[#allocation2 + $0x1d80] sm:$0xff]  ;;  %v5604_v0 = vld [vmem:[#allocation2 + $0x1d90] sm:$0xff] }
 0x7c3   :  { %5889 = vmatmul.mubr.bf16.vlgmr.msra.gmra.mrb[16].mxu0 %v9571_v1  ;;  %6053 = vmatmul.mubr.bf16.vlgmr.msra.gmra.mrb[16].mxu1 %v9571_v1 }
 0x7c4   :  { %5898 = vmatpush1.bf16.msra.mxu0 %v5426_v3  ;;  %6062 = vmatpush1.bf16.msra.mxu1 %v5428_v26  ;;  %v5619_v3 = vld [vmem:[#allocation2 + $0x1e08] sm:$0xff]  ;;  %v5621_v26 = vld [vmem:[#allocation2 + $0x1e18] sm:$0xff] }
 0x7c5   :  { %5899 = vmatprep.subr.bf16.mxu0 %v5443_v28  ;;  %6063 = vmatprep.subr.bf16.mxu1 %v5445_v29  ;;  %v5618_v28 = vld [vmem:[#allocation2 + $0x1e00] sm:$0xff]  ;;  %v5620_v29 = vld [vmem:[#allocation2 + $0x1e10] sm:$0xff] }
 0x7c6   :  { %5929 = vmatprep.mubr.bf16.mxu0 %v9576_v30  ;;  %6093 = vmatprep.mubr.bf16.mxu1 %v9576_v30 }
 0x7c8   :  { %5900 = vmatpush1.bf16.msra.mxu0 %v5442_v33  ;;  %6064 = vmatpush1.bf16.msra.mxu1 %v5444_v47  ;;  %v5635_v33 = vld [vmem:[#allocation2 + $0x1e88] sm:$0xff]  ;;  %v5637_v47 = vld [vmem:[#allocation2 + $0x1e98] sm:$0xff] }
 0x7c9   :  { %5901 = vmatprep.subr.bf16.mxu0 %v5459_v21  ;;  %6065 = vmatprep.subr.bf16.mxu1 %v5461_v17  ;;  %v5634_v21 = vld [vmem:[#allocation2 + $0x1e80] sm:$0xff]  ;;  %v5636_v17 = vld [vmem:[#allocation2 + $0x1e90] sm:$0xff] }
 0x7cc   :  { %5902 = vmatpush1.bf16.msra.mxu0 %v5458_v60  ;;  %6066 = vmatpush1.bf16.msra.mxu1 %v5460_v52  ;;  %v5651_v60 = vld [vmem:[#allocation2 + $0x1f08] sm:$0xff]  ;;  %v5653_v52 = vld [vmem:[#allocation2 + $0x1f18] sm:$0xff] }
 0x7cd   :  { %5903 = vmatprep.subr.bf16.mxu0 %v5475_v53  ;;  %6067 = vmatprep.subr.bf16.mxu1 %v5477_v16  ;;  %v5650_v53 = vld [vmem:[#allocation2 + $0x1f00] sm:$0xff]  ;;  %v5652_v16 = vld [vmem:[#allocation2 + $0x1f10] sm:$0xff] }
 0x7d0   :  { %5904 = vmatpush1.bf16.msra.mxu0 %v5474_v32  ;;  %6068 = vmatpush1.bf16.msra.mxu1 %v5476_v8  ;;  %v5667_v32 = vld [vmem:[#allocation2 + $0x1f88] sm:$0xff]  ;;  %v5669_v8 = vld [vmem:[#allocation2 + $0x1f98] sm:$0xff] }
 0x7d1   :  { %5905 = vmatprep.subr.bf16.mxu0 %v5491_v43  ;;  %6069 = vmatprep.subr.bf16.mxu1 %v5493_v63  ;;  %v5666_v43 = vld [vmem:[#allocation2 + $0x1f80] sm:$0xff]  ;;  %v5668_v63 = vld [vmem:[#allocation2 + $0x1f90] sm:$0xff] }
 0x7d4   :  { %5906 = vmatpush1.bf16.msra.mxu0 %v5490_v5  ;;  %6070 = vmatpush1.bf16.msra.mxu1 %v5492_v20  ;;  %v4663_v5 = vld [vmem:[#allocation2 + $0x28] sm:$0xff]  ;;  %v4665_v20 = vld [vmem:[#allocation2 + $0x38] sm:$0xff] }
 0x7d5   :  { %5907 = vmatprep.subr.bf16.mxu0 %v5507_v7  ;;  %6071 = vmatprep.subr.bf16.mxu1 %v5509_v9  ;;  %v9585_v7 = vpack.c.bf16 %v4649_v49, %v4649_v49  ;;  %v4662_v9 = vld [vmem:[#allocation2 + $0x20] sm:$0xff]  ;;  %v4695_v49 = vld [vmem:[#allocation2 + $0x128] sm:$0xff] }
 0x7d8   :  { %5908 = vmatpush1.bf16.msra.mxu0 %v5506_v23  ;;  %6072 = vmatpush1.bf16.msra.mxu1 %v5508_v12  ;;  %v4664_v23 = vld [vmem:[#allocation2 + $0x30] sm:$0xff]  ;;  %v4679_v12 = vld [vmem:[#allocation2 + $0xa8] sm:$0xff] }
 0x7d9   :  { %5909 = vmatprep.subr.bf16.mxu0 %v5523_v25  ;;  %6073 = vmatprep.subr.bf16.mxu1 %v5525_v27  ;;  %v4681_v25 = vld [vmem:[#allocation2 + $0xb8] sm:$0xff]  ;;  %v4680_v27 = vld [vmem:[#allocation2 + $0xb0] sm:$0xff] }
 0x7dc   :  { %5910 = vmatpush1.bf16.msra.mxu0 %v5522_v10  ;;  %6074 = vmatpush1.bf16.msra.mxu1 %v5524_v31  ;;  %v4697_v10 = vld [vmem:[#allocation2 + $0x138] sm:$0xff]  ;;  %v4694_v31 = vld [vmem:[#allocation2 + $0x120] sm:$0xff] }
 0x7dd   :  { %5911 = vmatprep.subr.bf16.mxu0 %v5539_v51  ;;  %6075 = vmatprep.subr.bf16.mxu1 %v5541_v35  ;;  %v4696_v51 = vld [vmem:[#allocation2 + $0x130] sm:$0xff]  ;;  %v4711_v35 = vld [vmem:[#allocation2 + $0x1a8] sm:$0xff] }
 0x7e0   :  { %5912 = vmatpush1.bf16.msra.mxu0 %v5538_v15  ;;  %6076 = vmatpush1.bf16.msra.mxu1 %v5540_v42  ;;  %v4713_v15 = vld [vmem:[#allocation2 + $0x1b8] sm:$0xff]  ;;  %v4710_v42 = vld [vmem:[#allocation2 + $0x1a0] sm:$0xff] }
 0x7e1   :  { %5913 = vmatprep.subr.bf16.mxu0 %v5555_v45  ;;  %6077 = vmatprep.subr.bf16.mxu1 %v5557_v11  ;;  %v4712_v45 = vld [vmem:[#allocation2 + $0x1b0] sm:$0xff]  ;;  %v4727_v11 = vld [vmem:[#allocation2 + $0x228] sm:$0xff] }
 0x7e4   :  { %5914 = vmatpush1.bf16.msra.mxu0 %v5554_v46  ;;  %6078 = vmatpush1.bf16.msra.mxu1 %v5556_v56  ;;  %v4729_v46 = vld [vmem:[#allocation2 + $0x238] sm:$0xff]  ;;  %v4726_v56 = vld [vmem:[#allocation2 + $0x220] sm:$0xff] }
 0x7e5   :  { %5915 = vmatprep.subr.bf16.mxu0 %v5571_v34  ;;  %6079 = vmatprep.subr.bf16.mxu1 %v5573_v18  ;;  %v4728_v34 = vld [vmem:[#allocation2 + $0x230] sm:$0xff]  ;;  %v4743_v18 = vld [vmem:[#allocation2 + $0x2a8] sm:$0xff] }
 0x7e8   :  { %5916 = vmatpush1.bf16.msra.mxu0 %v5570_v62  ;;  %6080 = vmatpush1.bf16.msra.mxu1 %v5572_v48  ;;  %v4745_v62 = vld [vmem:[#allocation2 + $0x2b8] sm:$0xff]  ;;  %v4742_v48 = vld [vmem:[#allocation2 + $0x2a0] sm:$0xff] }
 0x7e9   :  { %5917 = vmatprep.subr.bf16.mxu0 %v5587_v19  ;;  %6081 = vmatprep.subr.bf16.mxu1 %v5589_v44  ;;  %v4744_v19 = vld [vmem:[#allocation2 + $0x2b0] sm:$0xff]  ;;  %v4759_v44 = vld [vmem:[#allocation2 + $0x328] sm:$0xff] }
 0x7ec   :  { %5918 = vmatpush1.bf16.msra.mxu0 %v5586_v54  ;;  %6082 = vmatpush1.bf16.msra.mxu1 %v5588_v61  ;;  %v4761_v54 = vld [vmem:[#allocation2 + $0x338] sm:$0xff]  ;;  %v4758_v61 = vld [vmem:[#allocation2 + $0x320] sm:$0xff] }
 0x7ed   :  { %5919 = vmatprep.subr.bf16.mxu0 %v5603_v24  ;;  %6083 = vmatprep.subr.bf16.mxu1 %v5605_v57  ;;  %v4760_v24 = vld [vmem:[#allocation2 + $0x330] sm:$0xff]  ;;  %v4775_v57 = vld [vmem:[#allocation2 + $0x3a8] sm:$0xff] }
 0x7f0   :  { %5920 = vmatpush1.bf16.msra.mxu0 %v5602_v59  ;;  %6084 = vmatpush1.bf16.msra.mxu1 %v5604_v0  ;;  %v4777_v59 = vld [vmem:[#allocation2 + $0x3b8] sm:$0xff]  ;;  %v4774_v0 = vld [vmem:[#allocation2 + $0x3a0] sm:$0xff] }
 0x7f1   :  { %5921 = vmatprep.subr.bf16.mxu0 %v5619_v3  ;;  %6085 = vmatprep.subr.bf16.mxu1 %v5621_v26  ;;  %v4776_v3 = vld [vmem:[#allocation2 + $0x3b0] sm:$0xff]  ;;  %v4791_v26 = vld [vmem:[#allocation2 + $0x428] sm:$0xff] }
 0x7f4   :  { %5922 = vmatpush1.bf16.msra.mxu0 %v5618_v28  ;;  %6086 = vmatpush1.bf16.msra.mxu1 %v5620_v29  ;;  %v4793_v28 = vld [vmem:[#allocation2 + $0x438] sm:$0xff]  ;;  %v4790_v29 = vld [vmem:[#allocation2 + $0x420] sm:$0xff] }
 0x7f5   :  { %5923 = vmatprep.subr.bf16.mxu0 %v5635_v33  ;;  %6087 = vmatprep.subr.bf16.mxu1 %v5637_v47  ;;  %v4792_v33 = vld [vmem:[#allocation2 + $0x430] sm:$0xff]  ;;  %v4807_v47 = vld [vmem:[#allocation2 + $0x4a8] sm:$0xff] }
 0x7f8   :  { %5924 = vmatpush1.bf16.msra.mxu0 %v5634_v21  ;;  %6088 = vmatpush1.bf16.msra.mxu1 %v5636_v17  ;;  %v4809_v21 = vld [vmem:[#allocation2 + $0x4b8] sm:$0xff]  ;;  %v4806_v17 = vld [vmem:[#allocation2 + $0x4a0] sm:$0xff] }
 0x7f9   :  { %5925 = vmatprep.subr.bf16.mxu0 %v5651_v60  ;;  %6089 = vmatprep.subr.bf16.mxu1 %v5653_v52  ;;  %v4808_v60 = vld [vmem:[#allocation2 + $0x4b0] sm:$0xff]  ;;  %v4823_v52 = vld [vmem:[#allocation2 + $0x528] sm:$0xff] }
 0x7fc   :  { %5926 = vmatpush1.bf16.msra.mxu0 %v5650_v53  ;;  %6090 = vmatpush1.bf16.msra.mxu1 %v5652_v16  ;;  %v4825_v53 = vld [vmem:[#allocation2 + $0x538] sm:$0xff]  ;;  %v4822_v16 = vld [vmem:[#allocation2 + $0x520] sm:$0xff] }
 0x7fd   :  { %5927 = vmatprep.subr.bf16.mxu0 %v5667_v32  ;;  %6091 = vmatprep.subr.bf16.mxu1 %v5669_v8  ;;  %v4824_v32 = vld [vmem:[#allocation2 + $0x530] sm:$0xff]  ;;  %v4839_v8 = vld [vmem:[#allocation2 + $0x5a8] sm:$0xff] }
 0x800   :  { %5928 = vmatpush1.bf16.msra.mxu0 %v5666_v43  ;;  %6092 = vmatpush1.bf16.msra.mxu1 %v5668_v63  ;;  %v4841_v43 = vld [vmem:[#allocation2 + $0x5b8] sm:$0xff]  ;;  %v4838_v63 = vld [vmem:[#allocation2 + $0x5a0] sm:$0xff] }
 0x801   :  { %6102 = vmatprep.subr.bf16.mxu0 %v4663_v5  ;;  %6266 = vmatprep.subr.bf16.mxu1 %v4665_v20  ;;  %v4840_v5 = vld [vmem:[#allocation2 + $0x5b0] sm:$0xff]  ;;  %v4855_v20 = vld [vmem:[#allocation2 + $0x628] sm:$0xff] }
 0x803   :  { %5930 = vmatmul.mubr.bf16.vlgmr.msra.gmra.mrb[16].mxu0 %v9585_v7  ;;  %6094 = vmatmul.mubr.bf16.vlgmr.msra.gmra.mrb[16].mxu1 %v9585_v7 }
 0x804   :  { %6103 = vmatpush1.bf16.msra.mxu0 %v4662_v9  ;;  %6267 = vmatpush1.bf16.msra.mxu1 %v4664_v23  ;;  %v4857_v9 = vld [vmem:[#allocation2 + $0x638] sm:$0xff]  ;;  %v4854_v23 = vld [vmem:[#allocation2 + $0x620] sm:$0xff] }
 0x805   :  { %6104 = vmatprep.subr.bf16.mxu0 %v4679_v12  ;;  %6268 = vmatprep.subr.bf16.mxu1 %v4681_v25  ;;  %v4856_v12 = vld [vmem:[#allocation2 + $0x630] sm:$0xff]  ;;  %v4871_v25 = vld [vmem:[#allocation2 + $0x6a8] sm:$0xff] }
 0x806   :  { %6134 = vmatprep.mubr.bf16.mxu0 %v9536_v22  ;;  %6298 = vmatprep.mubr.bf16.mxu1 %v9536_v22 }
 0x808   :  { %6105 = vmatpush1.bf16.msra.mxu0 %v4678_v13  ;;  %6269 = vmatpush1.bf16.msra.mxu1 %v4680_v27  ;;  %v4873_v13 = vld [vmem:[#allocation2 + $0x6b8] sm:$0xff]  ;;  %v4870_v27 = vld [vmem:[#allocation2 + $0x6a0] sm:$0xff] }
 0x809   :  { %6106 = vmatprep.subr.bf16.mxu0 %v4695_v49  ;;  %6270 = vmatprep.subr.bf16.mxu1 %v4697_v10  ;;  %v4872_v49 = vld [vmem:[#allocation2 + $0x6b0] sm:$0xff]  ;;  %v4887_v10 = vld [vmem:[#allocation2 + $0x728] sm:$0xff] }
 0x80c   :  { %6107 = vmatpush1.bf16.msra.mxu0 %v4694_v31  ;;  %6271 = vmatpush1.bf16.msra.mxu1 %v4696_v51  ;;  %v4889_v31 = vld [vmem:[#allocation2 + $0x738] sm:$0xff]  ;;  %v4886_v51 = vld [vmem:[#allocation2 + $0x720] sm:$0xff] }
 0x80d   :  { %6108 = vmatprep.subr.bf16.mxu0 %v4711_v35  ;;  %6272 = vmatprep.subr.bf16.mxu1 %v4713_v15  ;;  %v4888_v35 = vld [vmem:[#allocation2 + $0x730] sm:$0xff]  ;;  %v4903_v15 = vld [vmem:[#allocation2 + $0x7a8] sm:$0xff] }
 0x810   :  { %6109 = vmatpush1.bf16.msra.mxu0 %v4710_v42  ;;  %6273 = vmatpush1.bf16.msra.mxu1 %v4712_v45  ;;  %v4905_v42 = vld [vmem:[#allocation2 + $0x7b8] sm:$0xff]  ;;  %v4902_v45 = vld [vmem:[#allocation2 + $0x7a0] sm:$0xff] }
 0x811   :  { %6110 = vmatprep.subr.bf16.mxu0 %v4727_v11  ;;  %6274 = vmatprep.subr.bf16.mxu1 %v4729_v46  ;;  %v4904_v11 = vld [vmem:[#allocation2 + $0x7b0] sm:$0xff]  ;;  %v4919_v46 = vld [vmem:[#allocation2 + $0x828] sm:$0xff] }
 0x814   :  { %6111 = vmatpush1.bf16.msra.mxu0 %v4726_v56  ;;  %6275 = vmatpush1.bf16.msra.mxu1 %v4728_v34  ;;  %v4921_v56 = vld [vmem:[#allocation2 + $0x838] sm:$0xff]  ;;  %v4918_v34 = vld [vmem:[#allocation2 + $0x820] sm:$0xff] }
 0x815   :  { %6112 = vmatprep.subr.bf16.mxu0 %v4743_v18  ;;  %6276 = vmatprep.subr.bf16.mxu1 %v4745_v62  ;;  %v4920_v18 = vld [vmem:[#allocation2 + $0x830] sm:$0xff]  ;;  %v4935_v62 = vld [vmem:[#allocation2 + $0x8a8] sm:$0xff] }
 0x818   :  { %6113 = vmatpush1.bf16.msra.mxu0 %v4742_v48  ;;  %6277 = vmatpush1.bf16.msra.mxu1 %v4744_v19  ;;  %v4937_v48 = vld [vmem:[#allocation2 + $0x8b8] sm:$0xff]  ;;  %v4934_v19 = vld [vmem:[#allocation2 + $0x8a0] sm:$0xff] }
 0x819   :  { %6114 = vmatprep.subr.bf16.mxu0 %v4759_v44  ;;  %6278 = vmatprep.subr.bf16.mxu1 %v4761_v54  ;;  %v4936_v44 = vld [vmem:[#allocation2 + $0x8b0] sm:$0xff]  ;;  %v4951_v54 = vld [vmem:[#allocation2 + $0x928] sm:$0xff] }
 0x81c   :  { %6115 = vmatpush1.bf16.msra.mxu0 %v4758_v61  ;;  %6279 = vmatpush1.bf16.msra.mxu1 %v4760_v24  ;;  %v4953_v61 = vld [vmem:[#allocation2 + $0x938] sm:$0xff]  ;;  %v4950_v24 = vld [vmem:[#allocation2 + $0x920] sm:$0xff] }
 0x81d   :  { %6116 = vmatprep.subr.bf16.mxu0 %v4775_v57  ;;  %6280 = vmatprep.subr.bf16.mxu1 %v4777_v59  ;;  %v4952_v57 = vld [vmem:[#allocation2 + $0x930] sm:$0xff]  ;;  %v4967_v59 = vld [vmem:[#allocation2 + $0x9a8] sm:$0xff] }
 0x820   :  { %6117 = vmatpush1.bf16.msra.mxu0 %v4774_v0  ;;  %6281 = vmatpush1.bf16.msra.mxu1 %v4776_v3  ;;  %v4969_v0 = vld [vmem:[#allocation2 + $0x9b8] sm:$0xff]  ;;  %v4966_v3 = vld [vmem:[#allocation2 + $0x9a0] sm:$0xff] }
 0x821   :  { %6118 = vmatprep.subr.bf16.mxu0 %v4791_v26  ;;  %6282 = vmatprep.subr.bf16.mxu1 %v4793_v28  ;;  %v4968_v26 = vld [vmem:[#allocation2 + $0x9b0] sm:$0xff]  ;;  %v4983_v28 = vld [vmem:[#allocation2 + $0xa28] sm:$0xff] }
 0x824   :  { %6119 = vmatpush1.bf16.msra.mxu0 %v4790_v29  ;;  %6283 = vmatpush1.bf16.msra.mxu1 %v4792_v33  ;;  %v4985_v29 = vld [vmem:[#allocation2 + $0xa38] sm:$0xff]  ;;  %v4982_v33 = vld [vmem:[#allocation2 + $0xa20] sm:$0xff] }
 0x825   :  { %6120 = vmatprep.subr.bf16.mxu0 %v4807_v47  ;;  %6284 = vmatprep.subr.bf16.mxu1 %v4809_v21  ;;  %v4984_v47 = vld [vmem:[#allocation2 + $0xa30] sm:$0xff]  ;;  %v4999_v21 = vld [vmem:[#allocation2 + $0xaa8] sm:$0xff] }
 0x828   :  { %6121 = vmatpush1.bf16.msra.mxu0 %v4806_v17  ;;  %6285 = vmatpush1.bf16.msra.mxu1 %v4808_v60  ;;  %v5001_v17 = vld [vmem:[#allocation2 + $0xab8] sm:$0xff]  ;;  %v4998_v60 = vld [vmem:[#allocation2 + $0xaa0] sm:$0xff] }
 0x829   :  { %6122 = vmatprep.subr.bf16.mxu0 %v4823_v52  ;;  %6286 = vmatprep.subr.bf16.mxu1 %v4825_v53  ;;  %v5000_v52 = vld [vmem:[#allocation2 + $0xab0] sm:$0xff]  ;;  %v5015_v53 = vld [vmem:[#allocation2 + $0xb28] sm:$0xff] }
 0x82c   :  { %6123 = vmatpush1.bf16.msra.mxu0 %v4822_v16  ;;  %6287 = vmatpush1.bf16.msra.mxu1 %v4824_v32  ;;  %v5017_v16 = vld [vmem:[#allocation2 + $0xb38] sm:$0xff]  ;;  %v5014_v32 = vld [vmem:[#allocation2 + $0xb20] sm:$0xff] }
 0x82d   :  { %6124 = vmatprep.subr.bf16.mxu0 %v4839_v8  ;;  %6288 = vmatprep.subr.bf16.mxu1 %v4841_v43  ;;  %v5016_v8 = vld [vmem:[#allocation2 + $0xb30] sm:$0xff]  ;;  %v5031_v43 = vld [vmem:[#allocation2 + $0xba8] sm:$0xff] }
 0x830   :  { %6125 = vmatpush1.bf16.msra.mxu0 %v4838_v63  ;;  %6289 = vmatpush1.bf16.msra.mxu1 %v4840_v5  ;;  %v5033_v63 = vld [vmem:[#allocation2 + $0xbb8] sm:$0xff]  ;;  %v5030_v5 = vld [vmem:[#allocation2 + $0xba0] sm:$0xff] }
 0x831   :  { %6126 = vmatprep.subr.bf16.mxu0 %v4855_v20  ;;  %6290 = vmatprep.subr.bf16.mxu1 %v4857_v9  ;;  %v5032_v20 = vld [vmem:[#allocation2 + $0xbb0] sm:$0xff]  ;;  %v5047_v9 = vld [vmem:[#allocation2 + $0xc28] sm:$0xff] }
 0x834   :  { %6127 = vmatpush1.bf16.msra.mxu0 %v4854_v23  ;;  %6291 = vmatpush1.bf16.msra.mxu1 %v4856_v12  ;;  %v5049_v23 = vld [vmem:[#allocation2 + $0xc38] sm:$0xff]  ;;  %v5046_v12 = vld [vmem:[#allocation2 + $0xc20] sm:$0xff] }
 0x835   :  { %6128 = vmatprep.subr.bf16.mxu0 %v4871_v25  ;;  %6292 = vmatprep.subr.bf16.mxu1 %v4873_v13  ;;  %v5048_v25 = vld [vmem:[#allocation2 + $0xc30] sm:$0xff]  ;;  %v5063_v13 = vld [vmem:[#allocation2 + $0xca8] sm:$0xff] }
 0x838   :  { %6129 = vmatpush1.bf16.msra.mxu0 %v4870_v27  ;;  %6293 = vmatpush1.bf16.msra.mxu1 %v4872_v49  ;;  %v5065_v27 = vld [vmem:[#allocation2 + $0xcb8] sm:$0xff]  ;;  %v5062_v49 = vld [vmem:[#allocation2 + $0xca0] sm:$0xff] }
 0x839   :  { %6130 = vmatprep.subr.bf16.mxu0 %v4887_v10  ;;  %6294 = vmatprep.subr.bf16.mxu1 %v4889_v31  ;;  %v5064_v10 = vld [vmem:[#allocation2 + $0xcb0] sm:$0xff]  ;;  %v5079_v31 = vld [vmem:[#allocation2 + $0xd28] sm:$0xff] }
 0x83c   :  { %6131 = vmatpush1.bf16.msra.mxu0 %v4886_v51  ;;  %6295 = vmatpush1.bf16.msra.mxu1 %v4888_v35  ;;  %v5081_v51 = vld [vmem:[#allocation2 + $0xd38] sm:$0xff]  ;;  %v5078_v35 = vld [vmem:[#allocation2 + $0xd20] sm:$0xff] }
 0x83d   :  { %6132 = vmatprep.subr.bf16.mxu0 %v4903_v15  ;;  %6296 = vmatprep.subr.bf16.mxu1 %v4905_v42  ;;  %v5080_v15 = vld [vmem:[#allocation2 + $0xd30] sm:$0xff]  ;;  %v5095_v42 = vld [vmem:[#allocation2 + $0xda8] sm:$0xff] }
 0x840   :  { %6133 = vmatpush1.bf16.msra.mxu0 %v4902_v45  ;;  %6297 = vmatpush1.bf16.msra.mxu1 %v4904_v11  ;;  %v5097_v45 = vld [vmem:[#allocation2 + $0xdb8] sm:$0xff]  ;;  %v5094_v11 = vld [vmem:[#allocation2 + $0xda0] sm:$0xff] }
 0x841   :  { %6143 = vmatprep.subr.bf16.mxu0 %v4919_v46  ;;  %6307 = vmatprep.subr.bf16.mxu1 %v4921_v56  ;;  %v5096_v46 = vld [vmem:[#allocation2 + $0xdb0] sm:$0xff]  ;;  %v5111_v56 = vld [vmem:[#allocation2 + $0xe28] sm:$0xff] }
 0x843   :  { %6135 = vmatmul.mubr.bf16.vlgmr.msra.gmra.mrb[20].mxu0 %v9543_v4  ;;  %6299 = vmatmul.mubr.bf16.vlgmr.msra.gmra.mrb[20].mxu1 %v9543_v4 }
 0x844   :  { %6144 = vmatpush1.bf16.msra.mxu0 %v4918_v34  ;;  %6308 = vmatpush1.bf16.msra.mxu1 %v4920_v18  ;;  %v5113_v34 = vld [vmem:[#allocation2 + $0xe38] sm:$0xff]  ;;  %v5110_v18 = vld [vmem:[#allocation2 + $0xe20] sm:$0xff] }
 0x845   :  { %6145 = vmatprep.subr.bf16.mxu0 %v4935_v62  ;;  %6309 = vmatprep.subr.bf16.mxu1 %v4937_v48  ;;  %v5112_v62 = vld [vmem:[#allocation2 + $0xe30] sm:$0xff]  ;;  %v5127_v48 = vld [vmem:[#allocation2 + $0xea8] sm:$0xff] }
 0x846   :  { %6175 = vmatprep.mubr.bf16.mxu0 %v9548_v14  ;;  %6339 = vmatprep.mubr.bf16.mxu1 %v9548_v14 }
 0x848   :  { %6146 = vmatpush1.bf16.msra.mxu0 %v4934_v19  ;;  %6310 = vmatpush1.bf16.msra.mxu1 %v4936_v44  ;;  %v5129_v19 = vld [vmem:[#allocation2 + $0xeb8] sm:$0xff]  ;;  %v5126_v44 = vld [vmem:[#allocation2 + $0xea0] sm:$0xff] }
 0x849   :  { %6147 = vmatprep.subr.bf16.mxu0 %v4951_v54  ;;  %6311 = vmatprep.subr.bf16.mxu1 %v4953_v61  ;;  %v5128_v54 = vld [vmem:[#allocation2 + $0xeb0] sm:$0xff]  ;;  %v5143_v61 = vld [vmem:[#allocation2 + $0xf28] sm:$0xff] }
 0x84c   :  { %6148 = vmatpush1.bf16.msra.mxu0 %v4950_v24  ;;  %6312 = vmatpush1.bf16.msra.mxu1 %v4952_v57  ;;  %v5145_v24 = vld [vmem:[#allocation2 + $0xf38] sm:$0xff]  ;;  %v5142_v57 = vld [vmem:[#allocation2 + $0xf20] sm:$0xff] }
 0x84d   :  { %6149 = vmatprep.subr.bf16.mxu0 %v4967_v59  ;;  %6313 = vmatprep.subr.bf16.mxu1 %v4969_v0  ;;  %v5144_v59 = vld [vmem:[#allocation2 + $0xf30] sm:$0xff]  ;;  %v5159_v0 = vld [vmem:[#allocation2 + $0xfa8] sm:$0xff] }
 0x850   :  { %6150 = vmatpush1.bf16.msra.mxu0 %v4966_v3  ;;  %6314 = vmatpush1.bf16.msra.mxu1 %v4968_v26  ;;  %v5161_v3 = vld [vmem:[#allocation2 + $0xfb8] sm:$0xff]  ;;  %v5158_v26 = vld [vmem:[#allocation2 + $0xfa0] sm:$0xff] }
 0x851   :  { %6151 = vmatprep.subr.bf16.mxu0 %v4983_v28  ;;  %6315 = vmatprep.subr.bf16.mxu1 %v4985_v29  ;;  %v5160_v28 = vld [vmem:[#allocation2 + $0xfb0] sm:$0xff]  ;;  %v5175_v29 = vld [vmem:[#allocation2 + $0x1028] sm:$0xff] }
 0x854   :  { %6152 = vmatpush1.bf16.msra.mxu0 %v4982_v33  ;;  %6316 = vmatpush1.bf16.msra.mxu1 %v4984_v47  ;;  %v5177_v33 = vld [vmem:[#allocation2 + $0x1038] sm:$0xff]  ;;  %v5174_v47 = vld [vmem:[#allocation2 + $0x1020] sm:$0xff] }
 0x855   :  { %6153 = vmatprep.subr.bf16.mxu0 %v4999_v21  ;;  %6317 = vmatprep.subr.bf16.mxu1 %v5001_v17  ;;  %v5176_v21 = vld [vmem:[#allocation2 + $0x1030] sm:$0xff]  ;;  %v5191_v17 = vld [vmem:[#allocation2 + $0x10a8] sm:$0xff] }
 0x858   :  { %6154 = vmatpush1.bf16.msra.mxu0 %v4998_v60  ;;  %6318 = vmatpush1.bf16.msra.mxu1 %v5000_v52  ;;  %v5193_v60 = vld [vmem:[#allocation2 + $0x10b8] sm:$0xff]  ;;  %v5190_v52 = vld [vmem:[#allocation2 + $0x10a0] sm:$0xff] }
 0x859   :  { %6155 = vmatprep.subr.bf16.mxu0 %v5015_v53  ;;  %6319 = vmatprep.subr.bf16.mxu1 %v5017_v16  ;;  %v5192_v53 = vld [vmem:[#allocation2 + $0x10b0] sm:$0xff]  ;;  %v5207_v16 = vld [vmem:[#allocation2 + $0x1128] sm:$0xff] }
 0x85c   :  { %6156 = vmatpush1.bf16.msra.mxu0 %v5014_v32  ;;  %6320 = vmatpush1.bf16.msra.mxu1 %v5016_v8  ;;  %v5209_v32 = vld [vmem:[#allocation2 + $0x1138] sm:$0xff]  ;;  %v5206_v8 = vld [vmem:[#allocation2 + $0x1120] sm:$0xff] }
 0x85d   :  { %6157 = vmatprep.subr.bf16.mxu0 %v5031_v43  ;;  %6321 = vmatprep.subr.bf16.mxu1 %v5033_v63  ;;  %v5208_v43 = vld [vmem:[#allocation2 + $0x1130] sm:$0xff]  ;;  %v5223_v63 = vld [vmem:[#allocation2 + $0x11a8] sm:$0xff] }
 0x860   :  { %6158 = vmatpush1.bf16.msra.mxu0 %v5030_v5  ;;  %6322 = vmatpush1.bf16.msra.mxu1 %v5032_v20  ;;  %v5225_v5 = vld [vmem:[#allocation2 + $0x11b8] sm:$0xff]  ;;  %v5222_v20 = vld [vmem:[#allocation2 + $0x11a0] sm:$0xff] }
 0x861   :  { %6159 = vmatprep.subr.bf16.mxu0 %v5047_v9  ;;  %6323 = vmatprep.subr.bf16.mxu1 %v5049_v23  ;;  %v5224_v9 = vld [vmem:[#allocation2 + $0x11b0] sm:$0xff]  ;;  %v5239_v23 = vld [vmem:[#allocation2 + $0x1228] sm:$0xff] }
 0x864   :  { %6160 = vmatpush1.bf16.msra.mxu0 %v5046_v12  ;;  %6324 = vmatpush1.bf16.msra.mxu1 %v5048_v25  ;;  %v5241_v12 = vld [vmem:[#allocation2 + $0x1238] sm:$0xff]  ;;  %v5238_v25 = vld [vmem:[#allocation2 + $0x1220] sm:$0xff] }
 0x865   :  { %6161 = vmatprep.subr.bf16.mxu0 %v5063_v13  ;;  %6325 = vmatprep.subr.bf16.mxu1 %v5065_v27  ;;  %v5240_v13 = vld [vmem:[#allocation2 + $0x1230] sm:$0xff]  ;;  %v5255_v27 = vld [vmem:[#allocation2 + $0x12a8] sm:$0xff] }
 0x868   :  { %6162 = vmatpush1.bf16.msra.mxu0 %v5062_v49  ;;  %6326 = vmatpush1.bf16.msra.mxu1 %v5064_v10  ;;  %v5257_v49 = vld [vmem:[#allocation2 + $0x12b8] sm:$0xff]  ;;  %v5254_v10 = vld [vmem:[#allocation2 + $0x12a0] sm:$0xff] }
 0x869   :  { %6163 = vmatprep.subr.bf16.mxu0 %v5079_v31  ;;  %6327 = vmatprep.subr.bf16.mxu1 %v5081_v51  ;;  %v5256_v31 = vld [vmem:[#allocation2 + $0x12b0] sm:$0xff]  ;;  %v5271_v51 = vld [vmem:[#allocation2 + $0x1328] sm:$0xff] }
 0x86c   :  { %6164 = vmatpush1.bf16.msra.mxu0 %v5078_v35  ;;  %6328 = vmatpush1.bf16.msra.mxu1 %v5080_v15  ;;  %v5273_v35 = vld [vmem:[#allocation2 + $0x1338] sm:$0xff]  ;;  %v5270_v15 = vld [vmem:[#allocation2 + $0x1320] sm:$0xff] }
 0x86d   :  { %6165 = vmatprep.subr.bf16.mxu0 %v5095_v42  ;;  %6329 = vmatprep.subr.bf16.mxu1 %v5097_v45  ;;  %v5272_v42 = vld [vmem:[#allocation2 + $0x1330] sm:$0xff]  ;;  %v5287_v45 = vld [vmem:[#allocation2 + $0x13a8] sm:$0xff] }
 0x870   :  { %6166 = vmatpush1.bf16.msra.mxu0 %v5094_v11  ;;  %6330 = vmatpush1.bf16.msra.mxu1 %v5096_v46  ;;  %v5289_v11 = vld [vmem:[#allocation2 + $0x13b8] sm:$0xff]  ;;  %v5286_v46 = vld [vmem:[#allocation2 + $0x13a0] sm:$0xff] }
 0x871   :  { %6167 = vmatprep.subr.bf16.mxu0 %v5111_v56  ;;  %6331 = vmatprep.subr.bf16.mxu1 %v5113_v34  ;;  %v5288_v56 = vld [vmem:[#allocation2 + $0x13b0] sm:$0xff]  ;;  %v5303_v34 = vld [vmem:[#allocation2 + $0x1428] sm:$0xff] }
 0x874   :  { %6168 = vmatpush1.bf16.msra.mxu0 %v5110_v18  ;;  %6332 = vmatpush1.bf16.msra.mxu1 %v5112_v62  ;;  %v5305_v18 = vld [vmem:[#allocation2 + $0x1438] sm:$0xff]  ;;  %v5302_v62 = vld [vmem:[#allocation2 + $0x1420] sm:$0xff] }
 0x875   :  { %6169 = vmatprep.subr.bf16.mxu0 %v5127_v48  ;;  %6333 = vmatprep.subr.bf16.mxu1 %v5129_v19  ;;  %v5304_v48 = vld [vmem:[#allocation2 + $0x1430] sm:$0xff]  ;;  %v5319_v19 = vld [vmem:[#allocation2 + $0x14a8] sm:$0xff] }
 0x878   :  { %6170 = vmatpush1.bf16.msra.mxu0 %v5126_v44  ;;  %6334 = vmatpush1.bf16.msra.mxu1 %v5128_v54  ;;  %v5321_v44 = vld [vmem:[#allocation2 + $0x14b8] sm:$0xff]  ;;  %v5318_v54 = vld [vmem:[#allocation2 + $0x14a0] sm:$0xff] }
 0x879   :  { %6171 = vmatprep.subr.bf16.mxu0 %v5143_v61  ;;  %6335 = vmatprep.subr.bf16.mxu1 %v5145_v24  ;;  %v5320_v61 = vld [vmem:[#allocation2 + $0x14b0] sm:$0xff]  ;;  %v5335_v24 = vld [vmem:[#allocation2 + $0x1528] sm:$0xff] }
 0x87c   :  { %6172 = vmatpush1.bf16.msra.mxu0 %v5142_v57  ;;  %6336 = vmatpush1.bf16.msra.mxu1 %v5144_v59  ;;  %v5337_v57 = vld [vmem:[#allocation2 + $0x1538] sm:$0xff]  ;;  %v5334_v59 = vld [vmem:[#allocation2 + $0x1520] sm:$0xff] }
 0x87d   :  { %6173 = vmatprep.subr.bf16.mxu0 %v5159_v0  ;;  %6337 = vmatprep.subr.bf16.mxu1 %v5161_v3  ;;  %v5336_v0 = vld [vmem:[#allocation2 + $0x1530] sm:$0xff]  ;;  %v5351_v3 = vld [vmem:[#allocation2 + $0x15a8] sm:$0xff] }
 0x880   :  { %6174 = vmatpush1.bf16.msra.mxu0 %v5158_v26  ;;  %6338 = vmatpush1.bf16.msra.mxu1 %v5160_v28  ;;  %v5353_v26 = vld [vmem:[#allocation2 + $0x15b8] sm:$0xff]  ;;  %v5350_v28 = vld [vmem:[#allocation2 + $0x15a0] sm:$0xff] }
 0x881   :  { %6184 = vmatprep.subr.bf16.mxu0 %v5175_v29  ;;  %6348 = vmatprep.subr.bf16.mxu1 %v5177_v33  ;;  %v5352_v29 = vld [vmem:[#allocation2 + $0x15b0] sm:$0xff]  ;;  %v5367_v33 = vld [vmem:[#allocation2 + $0x1628] sm:$0xff] }
 0x883   :  { %6176 = vmatmul.mubr.bf16.vlgmr.msra.gmra.mrb[20].mxu0 %v9557_v36  ;;  %6340 = vmatmul.mubr.bf16.vlgmr.msra.gmra.mrb[20].mxu1 %v9557_v36 }
 0x884   :  { %6185 = vmatpush1.bf16.msra.mxu0 %v5174_v47  ;;  %6349 = vmatpush1.bf16.msra.mxu1 %v5176_v21  ;;  %v5369_v47 = vld [vmem:[#allocation2 + $0x1638] sm:$0xff]  ;;  %v5366_v21 = vld [vmem:[#allocation2 + $0x1620] sm:$0xff] }
 0x885   :  { %6186 = vmatprep.subr.bf16.mxu0 %v5191_v17  ;;  %6350 = vmatprep.subr.bf16.mxu1 %v5193_v60  ;;  %v5368_v17 = vld [vmem:[#allocation2 + $0x1630] sm:$0xff]  ;;  %v5383_v60 = vld [vmem:[#allocation2 + $0x16a8] sm:$0xff] }
 0x886   :  { %6216 = vmatprep.mubr.bf16.mxu0 %v9562_v38  ;;  %6380 = vmatprep.mubr.bf16.mxu1 %v9562_v38 }
 0x888   :  { %6187 = vmatpush1.bf16.msra.mxu0 %v5190_v52  ;;  %6351 = vmatpush1.bf16.msra.mxu1 %v5192_v53  ;;  %v5385_v52 = vld [vmem:[#allocation2 + $0x16b8] sm:$0xff]  ;;  %v5382_v53 = vld [vmem:[#allocation2 + $0x16a0] sm:$0xff] }
 0x889   :  { %6188 = vmatprep.subr.bf16.mxu0 %v5207_v16  ;;  %6352 = vmatprep.subr.bf16.mxu1 %v5209_v32  ;;  %v5384_v16 = vld [vmem:[#allocation2 + $0x16b0] sm:$0xff]  ;;  %v5399_v32 = vld [vmem:[#allocation2 + $0x1728] sm:$0xff] }
 0x88c   :  { %6189 = vmatpush1.bf16.msra.mxu0 %v5206_v8  ;;  %6353 = vmatpush1.bf16.msra.mxu1 %v5208_v43  ;;  %v5401_v8 = vld [vmem:[#allocation2 + $0x1738] sm:$0xff]  ;;  %v5398_v43 = vld [vmem:[#allocation2 + $0x1720] sm:$0xff] }
 0x88d   :  { %6190 = vmatprep.subr.bf16.mxu0 %v5223_v63  ;;  %6354 = vmatprep.subr.bf16.mxu1 %v5225_v5  ;;  %v5400_v63 = vld [vmem:[#allocation2 + $0x1730] sm:$0xff]  ;;  %v5415_v5 = vld [vmem:[#allocation2 + $0x17a8] sm:$0xff] }
 0x890   :  { %6191 = vmatpush1.bf16.msra.mxu0 %v5222_v20  ;;  %6355 = vmatpush1.bf16.msra.mxu1 %v5224_v9  ;;  %v5417_v20 = vld [vmem:[#allocation2 + $0x17b8] sm:$0xff]  ;;  %v5414_v9 = vld [vmem:[#allocation2 + $0x17a0] sm:$0xff] }
 0x891   :  { %6192 = vmatprep.subr.bf16.mxu0 %v5239_v23  ;;  %6356 = vmatprep.subr.bf16.mxu1 %v5241_v12  ;;  %v5416_v23 = vld [vmem:[#allocation2 + $0x17b0] sm:$0xff]  ;;  %v5431_v12 = vld [vmem:[#allocation2 + $0x1828] sm:$0xff] }
 0x894   :  { %6193 = vmatpush1.bf16.msra.mxu0 %v5238_v25  ;;  %6357 = vmatpush1.bf16.msra.mxu1 %v5240_v13  ;;  %v5433_v25 = vld [vmem:[#allocation2 + $0x1838] sm:$0xff]  ;;  %v5430_v13 = vld [vmem:[#allocation2 + $0x1820] sm:$0xff] }
 0x895   :  { %6194 = vmatprep.subr.bf16.mxu0 %v5255_v27  ;;  %6358 = vmatprep.subr.bf16.mxu1 %v5257_v49  ;;  %v5432_v27 = vld [vmem:[#allocation2 + $0x1830] sm:$0xff]  ;;  %v5447_v49 = vld [vmem:[#allocation2 + $0x18a8] sm:$0xff] }
 0x898   :  { %6195 = vmatpush1.bf16.msra.mxu0 %v5254_v10  ;;  %6359 = vmatpush1.bf16.msra.mxu1 %v5256_v31  ;;  %v5449_v10 = vld [vmem:[#allocation2 + $0x18b8] sm:$0xff]  ;;  %v5446_v31 = vld [vmem:[#allocation2 + $0x18a0] sm:$0xff] }
 0x899   :  { %6196 = vmatprep.subr.bf16.mxu0 %v5271_v51  ;;  %6360 = vmatprep.subr.bf16.mxu1 %v5273_v35  ;;  %v5448_v51 = vld [vmem:[#allocation2 + $0x18b0] sm:$0xff]  ;;  %v5463_v35 = vld [vmem:[#allocation2 + $0x1928] sm:$0xff] }
 0x89c   :  { %6197 = vmatpush1.bf16.msra.mxu0 %v5270_v15  ;;  %6361 = vmatpush1.bf16.msra.mxu1 %v5272_v42  ;;  %v5465_v15 = vld [vmem:[#allocation2 + $0x1938] sm:$0xff]  ;;  %v5462_v42 = vld [vmem:[#allocation2 + $0x1920] sm:$0xff] }
 0x89d   :  { %6198 = vmatprep.subr.bf16.mxu0 %v5287_v45  ;;  %6362 = vmatprep.subr.bf16.mxu1 %v5289_v11  ;;  %v5464_v45 = vld [vmem:[#allocation2 + $0x1930] sm:$0xff]  ;;  %v5479_v11 = vld [vmem:[#allocation2 + $0x19a8] sm:$0xff] }
 0x8a0   :  { %6199 = vmatpush1.bf16.msra.mxu0 %v5286_v46  ;;  %6363 = vmatpush1.bf16.msra.mxu1 %v5288_v56  ;;  %v5481_v46 = vld [vmem:[#allocation2 + $0x19b8] sm:$0xff]  ;;  %v5478_v56 = vld [vmem:[#allocation2 + $0x19a0] sm:$0xff] }
 0x8a1   :  { %6200 = vmatprep.subr.bf16.mxu0 %v5303_v34  ;;  %6364 = vmatprep.subr.bf16.mxu1 %v5305_v18  ;;  %v5480_v34 = vld [vmem:[#allocation2 + $0x19b0] sm:$0xff]  ;;  %v5495_v18 = vld [vmem:[#allocation2 + $0x1a28] sm:$0xff] }
 0x8a4   :  { %6201 = vmatpush1.bf16.msra.mxu0 %v5302_v62  ;;  %6365 = vmatpush1.bf16.msra.mxu1 %v5304_v48  ;;  %v5497_v62 = vld [vmem:[#allocation2 + $0x1a38] sm:$0xff] }
 0x8a5   :  { %6202 = vmatprep.subr.bf16.mxu0 %v5319_v19  ;;  %6366 = vmatprep.subr.bf16.mxu1 %v5321_v44  ;;  %v5682_v48 = vld [vmem:[#allocation20] sm:$0xff]  ;;  %v5494_v19 = vld [vmem:[#allocation2 + $0x1a20] sm:$0xff]  ;;  %v5496_v44 = vld [vmem:[#allocation2 + $0x1a30] sm:$0xff] }
 0x8a8   :  { %6203 = vmatpush1.bf16.msra.mxu0 %v5318_v54  ;;  %6367 = vmatpush1.bf16.msra.mxu1 %v5320_v61  ;;  %v5511_v54 = vld [vmem:[#allocation2 + $0x1aa8] sm:$0xff]  ;;  %v5513_v61 = vld [vmem:[#allocation2 + $0x1ab8] sm:$0xff] }
 0x8a9   :  { %6204 = vmatprep.subr.bf16.mxu0 %v5335_v24  ;;  %6368 = vmatprep.subr.bf16.mxu1 %v5337_v57  ;;  %v5697_v24 = vrot.slane %v5682_v48, %v9261_v37  ;;  %v5705_v57 = vrot.slane %v5682_v48, %v9265_v40 }
 0x8ac   :  { %6205 = vmatpush1.bf16.msra.mxu0 %v5334_v59  ;;  %6369 = vmatpush1.bf16.msra.mxu1 %v5336_v0  ;;  %v5701_v59 = vrot.slane %v5682_v48, %v9263_v39  ;;  %v5709_v0 = vrot.slane %v5682_v48, %v9267_v41  ;;  %v5607_v48 = vld [vmem:[#allocation2 + $0x1da8] sm:$0xff] }
 0x8ad   :  { %6206 = vmatprep.subr.bf16.mxu0 %v5351_v3  ;;  %6370 = vmatprep.subr.bf16.mxu1 %v5353_v26  ;;  %v5510_v3 = vld [vmem:[#allocation2 + $0x1aa0] sm:$0xff]  ;;  %v5512_v26 = vld [vmem:[#allocation2 + $0x1ab0] sm:$0xff] }
 0x8b0   :  { %6207 = vmatpush1.bf16.msra.mxu0 %v5350_v28  ;;  %6371 = vmatpush1.bf16.msra.mxu1 %v5352_v29 }
 0x8b1   :  { %6208 = vmatprep.subr.bf16.mxu0 %v5367_v33  ;;  %6372 = vmatprep.subr.bf16.mxu1 %v5369_v47  ;;  %v5527_v33 = vld [vmem:[#allocation2 + $0x1b28] sm:$0xff]  ;;  %v5529_v47 = vld [vmem:[#allocation2 + $0x1b38] sm:$0xff] }
 0x8b4   :  { %6209 = vmatpush1.bf16.msra.mxu0 %v5366_v21  ;;  %6373 = vmatpush1.bf16.msra.mxu1 %v5368_v17 }
 0x8b5   :  { %6210 = vmatprep.subr.bf16.mxu0 %v5383_v60  ;;  %6374 = vmatprep.subr.bf16.mxu1 %v5385_v52 }
 0x8b8   :  { %6211 = vmatpush1.bf16.msra.mxu0 %v5382_v53  ;;  %6375 = vmatpush1.bf16.msra.mxu1 %v5384_v16 }
 0x8b9   :  { %6212 = vmatprep.subr.bf16.mxu0 %v5399_v32  ;;  %6376 = vmatprep.subr.bf16.mxu1 %v5401_v8 }
 0x8bc   :  { %6213 = vmatpush1.bf16.msra.mxu0 %v5398_v43  ;;  %6377 = vmatpush1.bf16.msra.mxu1 %v5400_v63 }
 0x8bd   :  { %6214 = vmatprep.subr.bf16.mxu0 %v5415_v5  ;;  %6378 = vmatprep.subr.bf16.mxu1 %v5417_v20 }
 0x8c0   :  { %6215 = vmatpush1.bf16.msra.mxu0 %v5414_v9  ;;  %6379 = vmatpush1.bf16.msra.mxu1 %v5416_v23  ;;  %v5526_v9 = vld [vmem:[#allocation2 + $0x1b20] sm:$0xff]  ;;  %v5528_v23 = vld [vmem:[#allocation2 + $0x1b30] sm:$0xff] }
 0x8c1   :  { %6225 = vmatprep.subr.bf16.mxu0 %v5431_v12  ;;  %6389 = vmatprep.subr.bf16.mxu1 %v5433_v25 }
 0x8c3   :  { %6217 = vmatmul.mubr.bf16.vlgmr.msra.gmra.mrb[20].mxu0 %v9571_v1  ;;  %6381 = vmatmul.mubr.bf16.vlgmr.msra.gmra.mrb[20].mxu1 %v9571_v1 }
 0x8c4   :  { %6226 = vmatpush1.bf16.msra.mxu0 %v5430_v13  ;;  %6390 = vmatpush1.bf16.msra.mxu1 %v5432_v27  ;;  %v5543_v13 = vld [vmem:[#allocation2 + $0x1ba8] sm:$0xff]  ;;  %v5545_v27 = vld [vmem:[#allocation2 + $0x1bb8] sm:$0xff] }
 0x8c5   :  { %6227 = vmatprep.subr.bf16.mxu0 %v5447_v49  ;;  %6391 = vmatprep.subr.bf16.mxu1 %v5449_v10  ;;  %v5542_v49 = vld [vmem:[#allocation2 + $0x1ba0] sm:$0xff]  ;;  %v5544_v10 = vld [vmem:[#allocation2 + $0x1bb0] sm:$0xff] }
 0x8c6   :  { %6257 = vmatprep.mubr.bf16.mxu0 %v9576_v30  ;;  %6421 = vmatprep.mubr.bf16.mxu1 %v9576_v30 }
 0x8c8   :  { %6228 = vmatpush1.bf16.msra.mxu0 %v5446_v31  ;;  %6392 = vmatpush1.bf16.msra.mxu1 %v5448_v51  ;;  %v5559_v31 = vld [vmem:[#allocation2 + $0x1c28] sm:$0xff]  ;;  %v5561_v51 = vld [vmem:[#allocation2 + $0x1c38] sm:$0xff] }
 0x8c9   :  { %6229 = vmatprep.subr.bf16.mxu0 %v5463_v35  ;;  %6393 = vmatprep.subr.bf16.mxu1 %v5465_v15  ;;  %v5558_v35 = vld [vmem:[#allocation2 + $0x1c20] sm:$0xff]  ;;  %v5560_v15 = vld [vmem:[#allocation2 + $0x1c30] sm:$0xff] }
 0x8cc   :  { %6230 = vmatpush1.bf16.msra.mxu0 %v5462_v42  ;;  %6394 = vmatpush1.bf16.msra.mxu1 %v5464_v45  ;;  %v5575_v42 = vld [vmem:[#allocation2 + $0x1ca8] sm:$0xff]  ;;  %v5577_v45 = vld [vmem:[#allocation2 + $0x1cb8] sm:$0xff] }
 0x8cd   :  { %6231 = vmatprep.subr.bf16.mxu0 %v5479_v11  ;;  %6395 = vmatprep.subr.bf16.mxu1 %v5481_v46  ;;  %v5574_v11 = vld [vmem:[#allocation2 + $0x1ca0] sm:$0xff]  ;;  %v5576_v46 = vld [vmem:[#allocation2 + $0x1cb0] sm:$0xff] }
 0x8d0   :  { %6232 = vmatpush1.bf16.msra.mxu0 %v5478_v56  ;;  %6396 = vmatpush1.bf16.msra.mxu1 %v5480_v34  ;;  %v5591_v56 = vld [vmem:[#allocation2 + $0x1d28] sm:$0xff]  ;;  %v5593_v34 = vld [vmem:[#allocation2 + $0x1d38] sm:$0xff] }
 0x8d1   :  { %6233 = vmatprep.subr.bf16.mxu0 %v5495_v18  ;;  %6397 = vmatprep.subr.bf16.mxu1 %v5497_v62  ;;  %v5590_v18 = vld [vmem:[#allocation2 + $0x1d20] sm:$0xff]  ;;  %v5592_v62 = vld [vmem:[#allocation2 + $0x1d30] sm:$0xff] }
 0x8d4   :  { %6234 = vmatpush1.bf16.msra.mxu0 %v5494_v19  ;;  %6398 = vmatpush1.bf16.msra.mxu1 %v5496_v44  ;;  %v5609_v19 = vld [vmem:[#allocation2 + $0x1db8] sm:$0xff]  ;;  %v5606_v44 = vld [vmem:[#allocation2 + $0x1da0] sm:$0xff] }
 0x8d5   :  { %6235 = vmatprep.subr.bf16.mxu0 %v5511_v54  ;;  %6399 = vmatprep.subr.bf16.mxu1 %v5513_v61  ;;  %v5608_v54 = vld [vmem:[#allocation2 + $0x1db0] sm:$0xff]  ;;  %v5623_v61 = vld [vmem:[#allocation2 + $0x1e28] sm:$0xff] }
 0x8d6   :  { %v5931_v28 = vpop.f32.mrb[16].mxu0  ;;  %v6095_v29 = vpop.f32.mrb[16].mxu1 }
 0x8d7   :  { %v9607_v21 = vadd.f32 %v5931_v28, %v5697_v24  ;;  %v9609_v17 = vadd.f32 %v6095_v29, %v5705_v57  ;;  %v5933_v60 = vpop.f32.mrb[17].mxu0  ;;  %v6097_v52 = vpop.f32.mrb[17].mxu1  ;;  %v5625_v24 = vld [vmem:[#allocation2 + $0x1e38] sm:$0xff]  ;;  %v5622_v57 = vld [vmem:[#allocation2 + $0x1e20] sm:$0xff]  ;;  %v5640_v28 = vld [vmem:[#allocation2 + $0x1eb0] sm:$0xff] }
 0x8d8   :  { %v9611_v53 = vadd.f32 %v5933_v60, %v5701_v59  ;;  %v9613_v16 = vadd.f32 %v6097_v52, %v5709_v0  ;;  %v5935_v32 = vpop.f32.mrb[18].mxu0  ;;  %v6099_v8 = vpop.f32.mrb[18].mxu1  ;;  %6236 = vmatpush1.bf16.msra.mxu0 %v5510_v3  ;;  %6400 = vmatpush1.bf16.msra.mxu1 %v5512_v26  ;;  %v5624_v59 = vld [vmem:[#allocation2 + $0x1e30] sm:$0xff]  ;;  %v5639_v0 = vld [vmem:[#allocation2 + $0x1ea8] sm:$0xff]  ;;  %v5641_v3 = vld [vmem:[#allocation2 + $0x1eb8] sm:$0xff] }
 0x8d9   :  { %v7086_v43 = vmax.f32 %v9607_v21, 0.0  ;;  %v7088_v63 = vmax.f32 %v9609_v17, 0.0  ;;  %v5936_v5 = vpop.f32.mrb[19].mxu0  ;;  %v6100_v20 = vpop.f32.mrb[19].mxu1  ;;  %6237 = vmatprep.subr.bf16.mxu0 %v5527_v33  ;;  %6401 = vmatprep.subr.bf16.mxu1 %v5529_v47  ;;  %v5638_v26 = vld [vmem:[#allocation2 + $0x1ea0] sm:$0xff]  ;;  %v5655_v29 = vld [vmem:[#allocation2 + $0x1f28] sm:$0xff] }
 0x8da   :  { %v7087_v12 = vmax.f32 %v9611_v53, 0.0  ;;  %v7089_v25 = vmax.f32 %v9613_v16, 0.0  ;;  %v5657_v33 = vld [vmem:[#allocation2 + $0x1f38] sm:$0xff]  ;;  %v5654_v47 = vld [vmem:[#allocation2 + $0x1f20] sm:$0xff]  ;;  %v5656_v60 = vld [vmem:[#allocation2 + $0x1f30] sm:$0xff] }
 0x8db   :  { %v5671_v52 = vld [vmem:[#allocation2 + $0x1fa8] sm:$0xff]  ;;  %v5673_v32 = vld [vmem:[#allocation2 + $0x1fb8] sm:$0xff]  ;;  %v5670_v8 = vld [vmem:[#allocation2 + $0x1fa0] sm:$0xff] }
 0x8dc   :  { %6238 = vmatpush1.bf16.msra.mxu0 %v5526_v9  ;;  %6402 = vmatpush1.bf16.msra.mxu1 %v5528_v23  ;;  %v5672_v5 = vld [vmem:[#allocation2 + $0x1fb0] sm:$0xff]  ;;  %v4667_v20 = vld [vmem:[#allocation2 + $0x48] sm:$0xff]  ;;  %v4669_v9 = vld [vmem:[#allocation2 + $0x58] sm:$0xff] }
 0x8dd   :  { %6239 = vmatprep.subr.bf16.mxu0 %v5543_v13  ;;  %6403 = vmatprep.subr.bf16.mxu1 %v5545_v27  ;;  %v4666_v23 = vld [vmem:[#allocation2 + $0x40] sm:$0xff]  ;;  %v4668_v13 = vld [vmem:[#allocation2 + $0x50] sm:$0xff]  ;;  %v4683_v27 = vld [vmem:[#allocation2 + $0xc8] sm:$0xff] }
 0x8e0   :  { %6240 = vmatpush1.bf16.msra.mxu0 %v5542_v49  ;;  %6404 = vmatpush1.bf16.msra.mxu1 %v5544_v10  ;;  %v4685_v49 = vld [vmem:[#allocation2 + $0xd8] sm:$0xff]  ;;  %v4682_v10 = vld [vmem:[#allocation2 + $0xc0] sm:$0xff] }
 0x8e1   :  { %6241 = vmatprep.subr.bf16.mxu0 %v5559_v31  ;;  %6405 = vmatprep.subr.bf16.mxu1 %v5561_v51  ;;  %v4684_v31 = vld [vmem:[#allocation2 + $0xd0] sm:$0xff]  ;;  %v4699_v51 = vld [vmem:[#allocation2 + $0x148] sm:$0xff] }
 0x8e4   :  { %6242 = vmatpush1.bf16.msra.mxu0 %v5558_v35  ;;  %6406 = vmatpush1.bf16.msra.mxu1 %v5560_v15  ;;  %v4701_v35 = vld [vmem:[#allocation2 + $0x158] sm:$0xff]  ;;  %v4698_v15 = vld [vmem:[#allocation2 + $0x140] sm:$0xff] }
 0x8e5   :  { %6243 = vmatprep.subr.bf16.mxu0 %v5575_v42  ;;  %6407 = vmatprep.subr.bf16.mxu1 %v5577_v45  ;;  %v4700_v42 = vld [vmem:[#allocation2 + $0x150] sm:$0xff]  ;;  %v4715_v45 = vld [vmem:[#allocation2 + $0x1c8] sm:$0xff] }
 0x8e8   :  { %6244 = vmatpush1.bf16.msra.mxu0 %v5574_v11  ;;  %6408 = vmatpush1.bf16.msra.mxu1 %v5576_v46  ;;  %v4717_v11 = vld [vmem:[#allocation2 + $0x1d8] sm:$0xff]  ;;  %v4714_v46 = vld [vmem:[#allocation2 + $0x1c0] sm:$0xff] }
 0x8e9   :  { %6245 = vmatprep.subr.bf16.mxu0 %v5591_v56  ;;  %6409 = vmatprep.subr.bf16.mxu1 %v5593_v34  ;;  %v4716_v56 = vld [vmem:[#allocation2 + $0x1d0] sm:$0xff]  ;;  %v4731_v34 = vld [vmem:[#allocation2 + $0x248] sm:$0xff] }
 0x8ec   :  { %6246 = vmatpush1.bf16.msra.mxu0 %v5590_v18  ;;  %6410 = vmatpush1.bf16.msra.mxu1 %v5592_v62  ;;  %v4733_v18 = vld [vmem:[#allocation2 + $0x258] sm:$0xff]  ;;  %v4730_v62 = vld [vmem:[#allocation2 + $0x240] sm:$0xff] }
 0x8ed   :  { %6247 = vmatprep.subr.bf16.mxu0 %v5607_v48  ;;  %6411 = vmatprep.subr.bf16.mxu1 %v5609_v19  ;;  %v4732_v48 = vld [vmem:[#allocation2 + $0x250] sm:$0xff]  ;;  %v4747_v19 = vld [vmem:[#allocation2 + $0x2c8] sm:$0xff] }
 0x8f0   :  { %6248 = vmatpush1.bf16.msra.mxu0 %v5606_v44  ;;  %6412 = vmatpush1.bf16.msra.mxu1 %v5608_v54  ;;  %v4749_v44 = vld [vmem:[#allocation2 + $0x2d8] sm:$0xff]  ;;  %v4746_v54 = vld [vmem:[#allocation2 + $0x2c0] sm:$0xff] }
 0x8f1   :  { %6249 = vmatprep.subr.bf16.mxu0 %v5623_v61  ;;  %6413 = vmatprep.subr.bf16.mxu1 %v5625_v24  ;;  %v4748_v61 = vld [vmem:[#allocation2 + $0x2d0] sm:$0xff]  ;;  %v4763_v24 = vld [vmem:[#allocation2 + $0x348] sm:$0xff] }
 0x8f4   :  { %6250 = vmatpush1.bf16.msra.mxu0 %v5622_v57  ;;  %6414 = vmatpush1.bf16.msra.mxu1 %v5624_v59  ;;  %v4765_v57 = vld [vmem:[#allocation2 + $0x358] sm:$0xff]  ;;  %v4762_v59 = vld [vmem:[#allocation2 + $0x340] sm:$0xff] }
 0x8f5   :  { %6251 = vmatprep.subr.bf16.mxu0 %v5639_v0  ;;  %6415 = vmatprep.subr.bf16.mxu1 %v5641_v3  ;;  %v4764_v0 = vld [vmem:[#allocation2 + $0x350] sm:$0xff]  ;;  %v4779_v3 = vld [vmem:[#allocation2 + $0x3c8] sm:$0xff] }
 0x8f8   :  { %6252 = vmatpush1.bf16.msra.mxu0 %v5638_v26  ;;  %6416 = vmatpush1.bf16.msra.mxu1 %v5640_v28  ;;  %v4781_v26 = vld [vmem:[#allocation2 + $0x3d8] sm:$0xff]  ;;  %v4778_v28 = vld [vmem:[#allocation2 + $0x3c0] sm:$0xff] }
 0x8f9   :  { %6253 = vmatprep.subr.bf16.mxu0 %v5655_v29  ;;  %6417 = vmatprep.subr.bf16.mxu1 %v5657_v33  ;;  %v4780_v29 = vld [vmem:[#allocation2 + $0x3d0] sm:$0xff]  ;;  %v4795_v33 = vld [vmem:[#allocation2 + $0x448] sm:$0xff] }
 0x8fc   :  { %6254 = vmatpush1.bf16.msra.mxu0 %v5654_v47  ;;  %6418 = vmatpush1.bf16.msra.mxu1 %v5656_v60  ;;  %v4797_v47 = vld [vmem:[#allocation2 + $0x458] sm:$0xff]  ;;  %v4794_v60 = vld [vmem:[#allocation2 + $0x440] sm:$0xff] }
 0x8fd   :  { %6255 = vmatprep.subr.bf16.mxu0 %v5671_v52  ;;  %6419 = vmatprep.subr.bf16.mxu1 %v5673_v32  ;;  %v4796_v52 = vld [vmem:[#allocation2 + $0x450] sm:$0xff]  ;;  %v4811_v32 = vld [vmem:[#allocation2 + $0x4c8] sm:$0xff] }
 0x900   :  { %6256 = vmatpush1.bf16.msra.mxu0 %v5670_v8  ;;  %6420 = vmatpush1.bf16.msra.mxu1 %v5672_v5  ;;  %v4813_v8 = vld [vmem:[#allocation2 + $0x4d8] sm:$0xff]  ;;  %v4810_v5 = vld [vmem:[#allocation2 + $0x4c0] sm:$0xff] }
 0x901   :  { %6430 = vmatprep.subr.bf16.mxu0 %v4667_v20  ;;  %6594 = vmatprep.subr.bf16.mxu1 %v4669_v9  ;;  %v4812_v20 = vld [vmem:[#allocation2 + $0x4d0] sm:$0xff]  ;;  %v4827_v9 = vld [vmem:[#allocation2 + $0x548] sm:$0xff] }
 0x903   :  { %6258 = vmatmul.mubr.bf16.vlgmr.msra.gmra.mrb[20].mxu0 %v9585_v7  ;;  %6422 = vmatmul.mubr.bf16.vlgmr.msra.gmra.mrb[20].mxu1 %v9585_v7 }
 0x904   :  { %6431 = vmatpush1.bf16.msra.mxu0 %v4666_v23  ;;  %6595 = vmatpush1.bf16.msra.mxu1 %v4668_v13  ;;  %v4829_v23 = vld [vmem:[#allocation2 + $0x558] sm:$0xff]  ;;  %v4826_v13 = vld [vmem:[#allocation2 + $0x540] sm:$0xff] }
 0x905   :  { %6432 = vmatprep.subr.bf16.mxu0 %v4683_v27  ;;  %6596 = vmatprep.subr.bf16.mxu1 %v4685_v49  ;;  %v4828_v27 = vld [vmem:[#allocation2 + $0x550] sm:$0xff]  ;;  %v4843_v49 = vld [vmem:[#allocation2 + $0x5c8] sm:$0xff] }
 0x906   :  { %6462 = vmatprep.mubr.bf16.mxu0 %v9536_v22  ;;  %6626 = vmatprep.mubr.bf16.mxu1 %v9536_v22 }
 0x908   :  { %6433 = vmatpush1.bf16.msra.mxu0 %v4682_v10  ;;  %6597 = vmatpush1.bf16.msra.mxu1 %v4684_v31  ;;  %v4845_v10 = vld [vmem:[#allocation2 + $0x5d8] sm:$0xff]  ;;  %v4842_v31 = vld [vmem:[#allocation2 + $0x5c0] sm:$0xff] }
 0x909   :  { %6434 = vmatprep.subr.bf16.mxu0 %v4699_v51  ;;  %6598 = vmatprep.subr.bf16.mxu1 %v4701_v35  ;;  %v4844_v51 = vld [vmem:[#allocation2 + $0x5d0] sm:$0xff]  ;;  %v4859_v35 = vld [vmem:[#allocation2 + $0x648] sm:$0xff] }
 0x90c   :  { %6435 = vmatpush1.bf16.msra.mxu0 %v4698_v15  ;;  %6599 = vmatpush1.bf16.msra.mxu1 %v4700_v42  ;;  %v4861_v15 = vld [vmem:[#allocation2 + $0x658] sm:$0xff]  ;;  %v4858_v42 = vld [vmem:[#allocation2 + $0x640] sm:$0xff] }
 0x90d   :  { %6436 = vmatprep.subr.bf16.mxu0 %v4715_v45  ;;  %6600 = vmatprep.subr.bf16.mxu1 %v4717_v11  ;;  %v4860_v45 = vld [vmem:[#allocation2 + $0x650] sm:$0xff]  ;;  %v4875_v11 = vld [vmem:[#allocation2 + $0x6c8] sm:$0xff] }
 0x910   :  { %6437 = vmatpush1.bf16.msra.mxu0 %v4714_v46  ;;  %6601 = vmatpush1.bf16.msra.mxu1 %v4716_v56  ;;  %v4877_v46 = vld [vmem:[#allocation2 + $0x6d8] sm:$0xff]  ;;  %v4874_v56 = vld [vmem:[#allocation2 + $0x6c0] sm:$0xff] }
 0x911   :  { %6438 = vmatprep.subr.bf16.mxu0 %v4731_v34  ;;  %6602 = vmatprep.subr.bf16.mxu1 %v4733_v18  ;;  %v4876_v34 = vld [vmem:[#allocation2 + $0x6d0] sm:$0xff]  ;;  %v4891_v18 = vld [vmem:[#allocation2 + $0x748] sm:$0xff] }
 0x914   :  { %6439 = vmatpush1.bf16.msra.mxu0 %v4730_v62  ;;  %6603 = vmatpush1.bf16.msra.mxu1 %v4732_v48  ;;  %v4893_v62 = vld [vmem:[#allocation2 + $0x758] sm:$0xff]  ;;  %v4890_v48 = vld [vmem:[#allocation2 + $0x740] sm:$0xff] }
 0x915   :  { %6440 = vmatprep.subr.bf16.mxu0 %v4747_v19  ;;  %6604 = vmatprep.subr.bf16.mxu1 %v4749_v44  ;;  %v4892_v19 = vld [vmem:[#allocation2 + $0x750] sm:$0xff]  ;;  %v4907_v44 = vld [vmem:[#allocation2 + $0x7c8] sm:$0xff] }
 0x918   :  { %6441 = vmatpush1.bf16.msra.mxu0 %v4746_v54  ;;  %6605 = vmatpush1.bf16.msra.mxu1 %v4748_v61  ;;  %v4909_v54 = vld [vmem:[#allocation2 + $0x7d8] sm:$0xff]  ;;  %v4906_v61 = vld [vmem:[#allocation2 + $0x7c0] sm:$0xff] }
 0x919   :  { %6442 = vmatprep.subr.bf16.mxu0 %v4763_v24  ;;  %6606 = vmatprep.subr.bf16.mxu1 %v4765_v57  ;;  %v4908_v24 = vld [vmem:[#allocation2 + $0x7d0] sm:$0xff]  ;;  %v4923_v57 = vld [vmem:[#allocation2 + $0x848] sm:$0xff] }
 0x91c   :  { %6443 = vmatpush1.bf16.msra.mxu0 %v4762_v59  ;;  %6607 = vmatpush1.bf16.msra.mxu1 %v4764_v0  ;;  %v4925_v59 = vld [vmem:[#allocation2 + $0x858] sm:$0xff]  ;;  %v4922_v0 = vld [vmem:[#allocation2 + $0x840] sm:$0xff] }
 0x91d   :  { %6444 = vmatprep.subr.bf16.mxu0 %v4779_v3  ;;  %6608 = vmatprep.subr.bf16.mxu1 %v4781_v26  ;;  %v4924_v3 = vld [vmem:[#allocation2 + $0x850] sm:$0xff]  ;;  %v4939_v26 = vld [vmem:[#allocation2 + $0x8c8] sm:$0xff] }
 0x920   :  { %6445 = vmatpush1.bf16.msra.mxu0 %v4778_v28  ;;  %6609 = vmatpush1.bf16.msra.mxu1 %v4780_v29  ;;  %v4941_v28 = vld [vmem:[#allocation2 + $0x8d8] sm:$0xff]  ;;  %v4938_v29 = vld [vmem:[#allocation2 + $0x8c0] sm:$0xff] }
 0x921   :  { %6446 = vmatprep.subr.bf16.mxu0 %v4795_v33  ;;  %6610 = vmatprep.subr.bf16.mxu1 %v4797_v47  ;;  %v4940_v33 = vld [vmem:[#allocation2 + $0x8d0] sm:$0xff]  ;;  %v4955_v47 = vld [vmem:[#allocation2 + $0x948] sm:$0xff] }
 0x924   :  { %6447 = vmatpush1.bf16.msra.mxu0 %v4794_v60  ;;  %6611 = vmatpush1.bf16.msra.mxu1 %v4796_v52  ;;  %v4957_v60 = vld [vmem:[#allocation2 + $0x958] sm:$0xff]  ;;  %v4954_v52 = vld [vmem:[#allocation2 + $0x940] sm:$0xff] }
 0x925   :  { %6448 = vmatprep.subr.bf16.mxu0 %v4811_v32  ;;  %6612 = vmatprep.subr.bf16.mxu1 %v4813_v8  ;;  %v4956_v32 = vld [vmem:[#allocation2 + $0x950] sm:$0xff]  ;;  %v4971_v8 = vld [vmem:[#allocation2 + $0x9c8] sm:$0xff] }
 0x928   :  { %6449 = vmatpush1.bf16.msra.mxu0 %v4810_v5  ;;  %6613 = vmatpush1.bf16.msra.mxu1 %v4812_v20  ;;  %v4973_v5 = vld [vmem:[#allocation2 + $0x9d8] sm:$0xff]  ;;  %v4970_v20 = vld [vmem:[#allocation2 + $0x9c0] sm:$0xff] }
 0x929   :  { %6450 = vmatprep.subr.bf16.mxu0 %v4827_v9  ;;  %6614 = vmatprep.subr.bf16.mxu1 %v4829_v23  ;;  %v4972_v9 = vld [vmem:[#allocation2 + $0x9d0] sm:$0xff]  ;;  %v4987_v23 = vld [vmem:[#allocation2 + $0xa48] sm:$0xff] }
 0x92c   :  { %6451 = vmatpush1.bf16.msra.mxu0 %v4826_v13  ;;  %6615 = vmatpush1.bf16.msra.mxu1 %v4828_v27  ;;  %v4989_v13 = vld [vmem:[#allocation2 + $0xa58] sm:$0xff]  ;;  %v4986_v27 = vld [vmem:[#allocation2 + $0xa40] sm:$0xff] }
 0x92d   :  { %6452 = vmatprep.subr.bf16.mxu0 %v4843_v49  ;;  %6616 = vmatprep.subr.bf16.mxu1 %v4845_v10  ;;  %v4988_v49 = vld [vmem:[#allocation2 + $0xa50] sm:$0xff]  ;;  %v5003_v10 = vld [vmem:[#allocation2 + $0xac8] sm:$0xff] }
 0x930   :  { %6453 = vmatpush1.bf16.msra.mxu0 %v4842_v31  ;;  %6617 = vmatpush1.bf16.msra.mxu1 %v4844_v51  ;;  %v5005_v31 = vld [vmem:[#allocation2 + $0xad8] sm:$0xff]  ;;  %v5002_v51 = vld [vmem:[#allocation2 + $0xac0] sm:$0xff] }
 0x931   :  { %6454 = vmatprep.subr.bf16.mxu0 %v4859_v35  ;;  %6618 = vmatprep.subr.bf16.mxu1 %v4861_v15  ;;  %v5004_v35 = vld [vmem:[#allocation2 + $0xad0] sm:$0xff]  ;;  %v5019_v15 = vld [vmem:[#allocation2 + $0xb48] sm:$0xff] }
 0x934   :  { %6455 = vmatpush1.bf16.msra.mxu0 %v4858_v42  ;;  %6619 = vmatpush1.bf16.msra.mxu1 %v4860_v45  ;;  %v5021_v42 = vld [vmem:[#allocation2 + $0xb58] sm:$0xff]  ;;  %v5018_v45 = vld [vmem:[#allocation2 + $0xb40] sm:$0xff] }
 0x935   :  { %6456 = vmatprep.subr.bf16.mxu0 %v4875_v11  ;;  %6620 = vmatprep.subr.bf16.mxu1 %v4877_v46  ;;  %v5020_v11 = vld [vmem:[#allocation2 + $0xb50] sm:$0xff]  ;;  %v5035_v46 = vld [vmem:[#allocation2 + $0xbc8] sm:$0xff] }
 0x938   :  { %6457 = vmatpush1.bf16.msra.mxu0 %v4874_v56  ;;  %6621 = vmatpush1.bf16.msra.mxu1 %v4876_v34  ;;  %v5037_v56 = vld [vmem:[#allocation2 + $0xbd8] sm:$0xff]  ;;  %v5034_v34 = vld [vmem:[#allocation2 + $0xbc0] sm:$0xff] }
 0x939   :  { %6458 = vmatprep.subr.bf16.mxu0 %v4891_v18  ;;  %6622 = vmatprep.subr.bf16.mxu1 %v4893_v62  ;;  %v5036_v18 = vld [vmem:[#allocation2 + $0xbd0] sm:$0xff]  ;;  %v5051_v62 = vld [vmem:[#allocation2 + $0xc48] sm:$0xff] }
 0x93c   :  { %6459 = vmatpush1.bf16.msra.mxu0 %v4890_v48  ;;  %6623 = vmatpush1.bf16.msra.mxu1 %v4892_v19  ;;  %v5053_v48 = vld [vmem:[#allocation2 + $0xc58] sm:$0xff]  ;;  %v5050_v19 = vld [vmem:[#allocation2 + $0xc40] sm:$0xff] }
 0x93d   :  { %6460 = vmatprep.subr.bf16.mxu0 %v4907_v44  ;;  %6624 = vmatprep.subr.bf16.mxu1 %v4909_v54  ;;  %v5052_v44 = vld [vmem:[#allocation2 + $0xc50] sm:$0xff]  ;;  %v5067_v54 = vld [vmem:[#allocation2 + $0xcc8] sm:$0xff] }
 0x940   :  { %6461 = vmatpush1.bf16.msra.mxu0 %v4906_v61  ;;  %6625 = vmatpush1.bf16.msra.mxu1 %v4908_v24  ;;  %v5069_v61 = vld [vmem:[#allocation2 + $0xcd8] sm:$0xff]  ;;  %v5066_v24 = vld [vmem:[#allocation2 + $0xcc0] sm:$0xff] }
 0x941   :  { %6471 = vmatprep.subr.bf16.mxu0 %v4923_v57  ;;  %6635 = vmatprep.subr.bf16.mxu1 %v4925_v59  ;;  %v5068_v57 = vld [vmem:[#allocation2 + $0xcd0] sm:$0xff]  ;;  %v5083_v59 = vld [vmem:[#allocation2 + $0xd48] sm:$0xff] }
 0x943   :  { %6463 = vmatmul.mubr.bf16.vlgmr.msra.gmra.mrb[24].mxu0 %v9543_v4  ;;  %6627 = vmatmul.mubr.bf16.vlgmr.msra.gmra.mrb[24].mxu1 %v9543_v4 }
 0x944   :  { %6472 = vmatpush1.bf16.msra.mxu0 %v4922_v0  ;;  %6636 = vmatpush1.bf16.msra.mxu1 %v4924_v3  ;;  %v5085_v0 = vld [vmem:[#allocation2 + $0xd58] sm:$0xff]  ;;  %v5082_v3 = vld [vmem:[#allocation2 + $0xd40] sm:$0xff] }
 0x945   :  { %6473 = vmatprep.subr.bf16.mxu0 %v4939_v26  ;;  %6637 = vmatprep.subr.bf16.mxu1 %v4941_v28  ;;  %v5084_v26 = vld [vmem:[#allocation2 + $0xd50] sm:$0xff]  ;;  %v5099_v28 = vld [vmem:[#allocation2 + $0xdc8] sm:$0xff] }
 0x946   :  { %6503 = vmatprep.mubr.bf16.mxu0 %v9548_v14  ;;  %6667 = vmatprep.mubr.bf16.mxu1 %v9548_v14 }
 0x948   :  { %6474 = vmatpush1.bf16.msra.mxu0 %v4938_v29  ;;  %6638 = vmatpush1.bf16.msra.mxu1 %v4940_v33  ;;  %v5101_v29 = vld [vmem:[#allocation2 + $0xdd8] sm:$0xff]  ;;  %v5098_v33 = vld [vmem:[#allocation2 + $0xdc0] sm:$0xff] }
 0x949   :  { %6475 = vmatprep.subr.bf16.mxu0 %v4955_v47  ;;  %6639 = vmatprep.subr.bf16.mxu1 %v4957_v60  ;;  %v5100_v47 = vld [vmem:[#allocation2 + $0xdd0] sm:$0xff]  ;;  %v5115_v60 = vld [vmem:[#allocation2 + $0xe48] sm:$0xff] }
 0x94c   :  { %6476 = vmatpush1.bf16.msra.mxu0 %v4954_v52  ;;  %6640 = vmatpush1.bf16.msra.mxu1 %v4956_v32  ;;  %v5117_v52 = vld [vmem:[#allocation2 + $0xe58] sm:$0xff]  ;;  %v5114_v32 = vld [vmem:[#allocation2 + $0xe40] sm:$0xff] }
 0x94d   :  { %6477 = vmatprep.subr.bf16.mxu0 %v4971_v8  ;;  %6641 = vmatprep.subr.bf16.mxu1 %v4973_v5  ;;  %v5116_v8 = vld [vmem:[#allocation2 + $0xe50] sm:$0xff]  ;;  %v5131_v5 = vld [vmem:[#allocation2 + $0xec8] sm:$0xff] }
 0x950   :  { %6478 = vmatpush1.bf16.msra.mxu0 %v4970_v20  ;;  %6642 = vmatpush1.bf16.msra.mxu1 %v4972_v9  ;;  %v5133_v20 = vld [vmem:[#allocation2 + $0xed8] sm:$0xff]  ;;  %v5130_v9 = vld [vmem:[#allocation2 + $0xec0] sm:$0xff] }
 0x951   :  { %6479 = vmatprep.subr.bf16.mxu0 %v4987_v23  ;;  %6643 = vmatprep.subr.bf16.mxu1 %v4989_v13  ;;  %v5132_v23 = vld [vmem:[#allocation2 + $0xed0] sm:$0xff]  ;;  %v5147_v13 = vld [vmem:[#allocation2 + $0xf48] sm:$0xff] }
 0x954   :  { %6480 = vmatpush1.bf16.msra.mxu0 %v4986_v27  ;;  %6644 = vmatpush1.bf16.msra.mxu1 %v4988_v49  ;;  %v5149_v27 = vld [vmem:[#allocation2 + $0xf58] sm:$0xff]  ;;  %v5146_v49 = vld [vmem:[#allocation2 + $0xf40] sm:$0xff] }
 0x955   :  { %6481 = vmatprep.subr.bf16.mxu0 %v5003_v10  ;;  %6645 = vmatprep.subr.bf16.mxu1 %v5005_v31  ;;  %v5148_v10 = vld [vmem:[#allocation2 + $0xf50] sm:$0xff]  ;;  %v5163_v31 = vld [vmem:[#allocation2 + $0xfc8] sm:$0xff] }
 0x958   :  { %6482 = vmatpush1.bf16.msra.mxu0 %v5002_v51  ;;  %6646 = vmatpush1.bf16.msra.mxu1 %v5004_v35  ;;  %v5165_v51 = vld [vmem:[#allocation2 + $0xfd8] sm:$0xff]  ;;  %v5162_v35 = vld [vmem:[#allocation2 + $0xfc0] sm:$0xff] }
 0x959   :  { %6483 = vmatprep.subr.bf16.mxu0 %v5019_v15  ;;  %6647 = vmatprep.subr.bf16.mxu1 %v5021_v42  ;;  %v5164_v15 = vld [vmem:[#allocation2 + $0xfd0] sm:$0xff]  ;;  %v5179_v42 = vld [vmem:[#allocation2 + $0x1048] sm:$0xff] }
 0x95c   :  { %6484 = vmatpush1.bf16.msra.mxu0 %v5018_v45  ;;  %6648 = vmatpush1.bf16.msra.mxu1 %v5020_v11  ;;  %v5181_v45 = vld [vmem:[#allocation2 + $0x1058] sm:$0xff]  ;;  %v5178_v11 = vld [vmem:[#allocation2 + $0x1040] sm:$0xff] }
 0x95d   :  { %6485 = vmatprep.subr.bf16.mxu0 %v5035_v46  ;;  %6649 = vmatprep.subr.bf16.mxu1 %v5037_v56  ;;  %v5180_v46 = vld [vmem:[#allocation2 + $0x1050] sm:$0xff]  ;;  %v5195_v56 = vld [vmem:[#allocation2 + $0x10c8] sm:$0xff] }
 0x960   :  { %6486 = vmatpush1.bf16.msra.mxu0 %v5034_v34  ;;  %6650 = vmatpush1.bf16.msra.mxu1 %v5036_v18  ;;  %v5197_v34 = vld [vmem:[#allocation2 + $0x10d8] sm:$0xff]  ;;  %v5194_v18 = vld [vmem:[#allocation2 + $0x10c0] sm:$0xff] }
 0x961   :  { %6487 = vmatprep.subr.bf16.mxu0 %v5051_v62  ;;  %6651 = vmatprep.subr.bf16.mxu1 %v5053_v48  ;;  %v5196_v62 = vld [vmem:[#allocation2 + $0x10d0] sm:$0xff]  ;;  %v5211_v48 = vld [vmem:[#allocation2 + $0x1148] sm:$0xff] }
 0x964   :  { %6488 = vmatpush1.bf16.msra.mxu0 %v5050_v19  ;;  %6652 = vmatpush1.bf16.msra.mxu1 %v5052_v44  ;;  %v5213_v19 = vld [vmem:[#allocation2 + $0x1158] sm:$0xff]  ;;  %v5210_v44 = vld [vmem:[#allocation2 + $0x1140] sm:$0xff] }
 0x965   :  { %6489 = vmatprep.subr.bf16.mxu0 %v5067_v54  ;;  %6653 = vmatprep.subr.bf16.mxu1 %v5069_v61  ;;  %v5212_v54 = vld [vmem:[#allocation2 + $0x1150] sm:$0xff]  ;;  %v5227_v61 = vld [vmem:[#allocation2 + $0x11c8] sm:$0xff] }
 0x968   :  { %6490 = vmatpush1.bf16.msra.mxu0 %v5066_v24  ;;  %6654 = vmatpush1.bf16.msra.mxu1 %v5068_v57  ;;  %v5229_v24 = vld [vmem:[#allocation2 + $0x11d8] sm:$0xff]  ;;  %v5226_v57 = vld [vmem:[#allocation2 + $0x11c0] sm:$0xff] }
 0x969   :  { %6491 = vmatprep.subr.bf16.mxu0 %v5083_v59  ;;  %6655 = vmatprep.subr.bf16.mxu1 %v5085_v0  ;;  %v5228_v59 = vld [vmem:[#allocation2 + $0x11d0] sm:$0xff]  ;;  %v5243_v0 = vld [vmem:[#allocation2 + $0x1248] sm:$0xff] }
 0x96c   :  { %6492 = vmatpush1.bf16.msra.mxu0 %v5082_v3  ;;  %6656 = vmatpush1.bf16.msra.mxu1 %v5084_v26  ;;  %v5245_v3 = vld [vmem:[#allocation2 + $0x1258] sm:$0xff]  ;;  %v5242_v26 = vld [vmem:[#allocation2 + $0x1240] sm:$0xff] }
 0x96d   :  { %6493 = vmatprep.subr.bf16.mxu0 %v5099_v28  ;;  %6657 = vmatprep.subr.bf16.mxu1 %v5101_v29  ;;  %v5244_v28 = vld [vmem:[#allocation2 + $0x1250] sm:$0xff]  ;;  %v5259_v29 = vld [vmem:[#allocation2 + $0x12c8] sm:$0xff] }
 0x970   :  { %6494 = vmatpush1.bf16.msra.mxu0 %v5098_v33  ;;  %6658 = vmatpush1.bf16.msra.mxu1 %v5100_v47  ;;  %v5261_v33 = vld [vmem:[#allocation2 + $0x12d8] sm:$0xff]  ;;  %v5258_v47 = vld [vmem:[#allocation2 + $0x12c0] sm:$0xff] }
 0x971   :  { %6495 = vmatprep.subr.bf16.mxu0 %v5115_v60  ;;  %6659 = vmatprep.subr.bf16.mxu1 %v5117_v52  ;;  %v5260_v60 = vld [vmem:[#allocation2 + $0x12d0] sm:$0xff]  ;;  %v5275_v52 = vld [vmem:[#allocation2 + $0x1348] sm:$0xff] }
 0x974   :  { %6496 = vmatpush1.bf16.msra.mxu0 %v5114_v32  ;;  %6660 = vmatpush1.bf16.msra.mxu1 %v5116_v8  ;;  %v5277_v32 = vld [vmem:[#allocation2 + $0x1358] sm:$0xff]  ;;  %v5274_v8 = vld [vmem:[#allocation2 + $0x1340] sm:$0xff] }
 0x975   :  { %6497 = vmatprep.subr.bf16.mxu0 %v5131_v5  ;;  %6661 = vmatprep.subr.bf16.mxu1 %v5133_v20  ;;  %v5276_v5 = vld [vmem:[#allocation2 + $0x1350] sm:$0xff]  ;;  %v5291_v20 = vld [vmem:[#allocation2 + $0x13c8] sm:$0xff] }
 0x978   :  { %6498 = vmatpush1.bf16.msra.mxu0 %v5130_v9  ;;  %6662 = vmatpush1.bf16.msra.mxu1 %v5132_v23  ;;  %v5293_v9 = vld [vmem:[#allocation2 + $0x13d8] sm:$0xff]  ;;  %v5290_v23 = vld [vmem:[#allocation2 + $0x13c0] sm:$0xff] }
 0x979   :  { %6499 = vmatprep.subr.bf16.mxu0 %v5147_v13  ;;  %6663 = vmatprep.subr.bf16.mxu1 %v5149_v27  ;;  %v5292_v13 = vld [vmem:[#allocation2 + $0x13d0] sm:$0xff]  ;;  %v5307_v27 = vld [vmem:[#allocation2 + $0x1448] sm:$0xff] }
 0x97c   :  { %6500 = vmatpush1.bf16.msra.mxu0 %v5146_v49  ;;  %6664 = vmatpush1.bf16.msra.mxu1 %v5148_v10  ;;  %v5309_v49 = vld [vmem:[#allocation2 + $0x1458] sm:$0xff]  ;;  %v5306_v10 = vld [vmem:[#allocation2 + $0x1440] sm:$0xff] }
 0x97d   :  { %6501 = vmatprep.subr.bf16.mxu0 %v5163_v31  ;;  %6665 = vmatprep.subr.bf16.mxu1 %v5165_v51  ;;  %v5308_v31 = vld [vmem:[#allocation2 + $0x1450] sm:$0xff]  ;;  %v5323_v51 = vld [vmem:[#allocation2 + $0x14c8] sm:$0xff] }
 0x980   :  { %6502 = vmatpush1.bf16.msra.mxu0 %v5162_v35  ;;  %6666 = vmatpush1.bf16.msra.mxu1 %v5164_v15  ;;  %v5325_v35 = vld [vmem:[#allocation2 + $0x14d8] sm:$0xff]  ;;  %v5322_v15 = vld [vmem:[#allocation2 + $0x14c0] sm:$0xff] }
 0x981   :  { %6512 = vmatprep.subr.bf16.mxu0 %v5179_v42  ;;  %6676 = vmatprep.subr.bf16.mxu1 %v5181_v45  ;;  %v5324_v42 = vld [vmem:[#allocation2 + $0x14d0] sm:$0xff]  ;;  %v5339_v45 = vld [vmem:[#allocation2 + $0x1548] sm:$0xff] }
 0x983   :  { %6504 = vmatmul.mubr.bf16.vlgmr.msra.gmra.mrb[24].mxu0 %v9557_v36  ;;  %6668 = vmatmul.mubr.bf16.vlgmr.msra.gmra.mrb[24].mxu1 %v9557_v36 }
 0x984   :  { %6513 = vmatpush1.bf16.msra.mxu0 %v5178_v11  ;;  %6677 = vmatpush1.bf16.msra.mxu1 %v5180_v46  ;;  %v5341_v11 = vld [vmem:[#allocation2 + $0x1558] sm:$0xff]  ;;  %v5338_v46 = vld [vmem:[#allocation2 + $0x1540] sm:$0xff] }
 0x985   :  { %6514 = vmatprep.subr.bf16.mxu0 %v5195_v56  ;;  %6678 = vmatprep.subr.bf16.mxu1 %v5197_v34  ;;  %v5340_v56 = vld [vmem:[#allocation2 + $0x1550] sm:$0xff]  ;;  %v5355_v34 = vld [vmem:[#allocation2 + $0x15c8] sm:$0xff] }
 0x986   :  { %6544 = vmatprep.mubr.bf16.mxu0 %v9562_v38  ;;  %6708 = vmatprep.mubr.bf16.mxu1 %v9562_v38 }
 0x988   :  { %6515 = vmatpush1.bf16.msra.mxu0 %v5194_v18  ;;  %6679 = vmatpush1.bf16.msra.mxu1 %v5196_v62  ;;  %v5357_v18 = vld [vmem:[#allocation2 + $0x15d8] sm:$0xff]  ;;  %v5354_v62 = vld [vmem:[#allocation2 + $0x15c0] sm:$0xff] }
 0x989   :  { %6516 = vmatprep.subr.bf16.mxu0 %v5211_v48  ;;  %6680 = vmatprep.subr.bf16.mxu1 %v5213_v19  ;;  %v5356_v48 = vld [vmem:[#allocation2 + $0x15d0] sm:$0xff]  ;;  %v5371_v19 = vld [vmem:[#allocation2 + $0x1648] sm:$0xff] }
 0x98c   :  { %6517 = vmatpush1.bf16.msra.mxu0 %v5210_v44  ;;  %6681 = vmatpush1.bf16.msra.mxu1 %v5212_v54  ;;  %v5373_v44 = vld [vmem:[#allocation2 + $0x1658] sm:$0xff]  ;;  %v5370_v54 = vld [vmem:[#allocation2 + $0x1640] sm:$0xff] }
 0x98d   :  { %6518 = vmatprep.subr.bf16.mxu0 %v5227_v61  ;;  %6682 = vmatprep.subr.bf16.mxu1 %v5229_v24  ;;  %v5372_v61 = vld [vmem:[#allocation2 + $0x1650] sm:$0xff]  ;;  %v5387_v24 = vld [vmem:[#allocation2 + $0x16c8] sm:$0xff] }
 0x990   :  { %6519 = vmatpush1.bf16.msra.mxu0 %v5226_v57  ;;  %6683 = vmatpush1.bf16.msra.mxu1 %v5228_v59  ;;  %v5389_v57 = vld [vmem:[#allocation2 + $0x16d8] sm:$0xff]  ;;  %v5386_v59 = vld [vmem:[#allocation2 + $0x16c0] sm:$0xff] }
 0x991   :  { %6520 = vmatprep.subr.bf16.mxu0 %v5243_v0  ;;  %6684 = vmatprep.subr.bf16.mxu1 %v5245_v3  ;;  %v5388_v0 = vld [vmem:[#allocation2 + $0x16d0] sm:$0xff]  ;;  %v5403_v3 = vld [vmem:[#allocation2 + $0x1748] sm:$0xff] }
 0x994   :  { %6521 = vmatpush1.bf16.msra.mxu0 %v5242_v26  ;;  %6685 = vmatpush1.bf16.msra.mxu1 %v5244_v28  ;;  %v5405_v26 = vld [vmem:[#allocation2 + $0x1758] sm:$0xff]  ;;  %v5402_v28 = vld [vmem:[#allocation2 + $0x1740] sm:$0xff] }
 0x995   :  { %6522 = vmatprep.subr.bf16.mxu0 %v5259_v29  ;;  %6686 = vmatprep.subr.bf16.mxu1 %v5261_v33  ;;  %v5404_v29 = vld [vmem:[#allocation2 + $0x1750] sm:$0xff]  ;;  %v5419_v33 = vld [vmem:[#allocation2 + $0x17c8] sm:$0xff] }
 0x998   :  { %6523 = vmatpush1.bf16.msra.mxu0 %v5258_v47  ;;  %6687 = vmatpush1.bf16.msra.mxu1 %v5260_v60  ;;  %v5421_v47 = vld [vmem:[#allocation2 + $0x17d8] sm:$0xff]  ;;  %v5418_v60 = vld [vmem:[#allocation2 + $0x17c0] sm:$0xff] }
 0x999   :  { %6524 = vmatprep.subr.bf16.mxu0 %v5275_v52  ;;  %6688 = vmatprep.subr.bf16.mxu1 %v5277_v32  ;;  %v5420_v52 = vld [vmem:[#allocation2 + $0x17d0] sm:$0xff]  ;;  %v5435_v32 = vld [vmem:[#allocation2 + $0x1848] sm:$0xff] }
 0x99c   :  { %6525 = vmatpush1.bf16.msra.mxu0 %v5274_v8  ;;  %6689 = vmatpush1.bf16.msra.mxu1 %v5276_v5  ;;  %v5437_v8 = vld [vmem:[#allocation2 + $0x1858] sm:$0xff]  ;;  %v5434_v5 = vld [vmem:[#allocation2 + $0x1840] sm:$0xff] }
 0x99d   :  { %6526 = vmatprep.subr.bf16.mxu0 %v5291_v20  ;;  %6690 = vmatprep.subr.bf16.mxu1 %v5293_v9  ;;  %v5436_v20 = vld [vmem:[#allocation2 + $0x1850] sm:$0xff]  ;;  %v5451_v9 = vld [vmem:[#allocation2 + $0x18c8] sm:$0xff] }
 0x9a0   :  { %6527 = vmatpush1.bf16.msra.mxu0 %v5290_v23  ;;  %6691 = vmatpush1.bf16.msra.mxu1 %v5292_v13  ;;  %v5453_v23 = vld [vmem:[#allocation2 + $0x18d8] sm:$0xff]  ;;  %v5450_v13 = vld [vmem:[#allocation2 + $0x18c0] sm:$0xff] }
 0x9a1   :  { %6528 = vmatprep.subr.bf16.mxu0 %v5307_v27  ;;  %6692 = vmatprep.subr.bf16.mxu1 %v5309_v49  ;;  %v5452_v27 = vld [vmem:[#allocation2 + $0x18d0] sm:$0xff]  ;;  %v5467_v49 = vld [vmem:[#allocation2 + $0x1948] sm:$0xff] }
 0x9a4   :  { %6529 = vmatpush1.bf16.msra.mxu0 %v5306_v10  ;;  %6693 = vmatpush1.bf16.msra.mxu1 %v5308_v31  ;;  %v5469_v10 = vld [vmem:[#allocation2 + $0x1958] sm:$0xff]  ;;  %v5466_v31 = vld [vmem:[#allocation2 + $0x1940] sm:$0xff] }
 0x9a5   :  { %6530 = vmatprep.subr.bf16.mxu0 %v5323_v51  ;;  %6694 = vmatprep.subr.bf16.mxu1 %v5325_v35  ;;  %v5468_v51 = vld [vmem:[#allocation2 + $0x1950] sm:$0xff]  ;;  %v5483_v35 = vld [vmem:[#allocation2 + $0x19c8] sm:$0xff] }
 0x9a8   :  { %6531 = vmatpush1.bf16.msra.mxu0 %v5322_v15  ;;  %6695 = vmatpush1.bf16.msra.mxu1 %v5324_v42  ;;  %v5485_v15 = vld [vmem:[#allocation2 + $0x19d8] sm:$0xff]  ;;  %v5482_v42 = vld [vmem:[#allocation2 + $0x19c0] sm:$0xff] }
 0x9a9   :  { %6532 = vmatprep.subr.bf16.mxu0 %v5339_v45  ;;  %6696 = vmatprep.subr.bf16.mxu1 %v5341_v11  ;;  %v5484_v45 = vld [vmem:[#allocation2 + $0x19d0] sm:$0xff]  ;;  %v5499_v11 = vld [vmem:[#allocation2 + $0x1a48] sm:$0xff] }
 0x9ac   :  { %6533 = vmatpush1.bf16.msra.mxu0 %v5338_v46  ;;  %6697 = vmatpush1.bf16.msra.mxu1 %v5340_v56  ;;  %v5501_v46 = vld [vmem:[#allocation2 + $0x1a58] sm:$0xff]  ;;  %v5498_v56 = vld [vmem:[#allocation2 + $0x1a40] sm:$0xff] }
 0x9ad   :  { %6534 = vmatprep.subr.bf16.mxu0 %v5355_v34  ;;  %6698 = vmatprep.subr.bf16.mxu1 %v5357_v18  ;;  %v5500_v34 = vld [vmem:[#allocation2 + $0x1a50] sm:$0xff]  ;;  %v5515_v18 = vld [vmem:[#allocation2 + $0x1ac8] sm:$0xff] }
 0x9b0   :  { %6535 = vmatpush1.bf16.msra.mxu0 %v5354_v62  ;;  %6699 = vmatpush1.bf16.msra.mxu1 %v5356_v48  ;;  %v5517_v62 = vld [vmem:[#allocation2 + $0x1ad8] sm:$0xff] }
 0x9b1   :  { %6536 = vmatprep.subr.bf16.mxu0 %v5371_v19  ;;  %6700 = vmatprep.subr.bf16.mxu1 %v5373_v44  ;;  %v8678_v48 = vld [vmem:[#allocation20] sm:$0xff] }
 0x9b2   :  { %v5713_v19 = vrot.slane %v8678_v48, %v9275_v50  ;;  %v5721_v44 = vrot.slane %v8678_v48, %v9283_v58 }
 0x9b4   :  { %6537 = vmatpush1.bf16.msra.mxu0 %v5370_v54  ;;  %6701 = vmatpush1.bf16.msra.mxu1 %v5372_v61  ;;  %v5717_v54 = vrot.slane %v8678_v48, %v9281_v55  ;;  %v5725_v61 = vrot.slane %v8678_v48, %v9293_v2  ;;  %v5595_v48 = vld [vmem:[#allocation2 + $0x1d48] sm:$0xff] }
 0x9b5   :  { %6538 = vmatprep.subr.bf16.mxu0 %v5387_v24  ;;  %6702 = vmatprep.subr.bf16.mxu1 %v5389_v57  ;;  %v5514_v24 = vld [vmem:[#allocation2 + $0x1ac0] sm:$0xff]  ;;  %v5516_v57 = vld [vmem:[#allocation2 + $0x1ad0] sm:$0xff] }
 0x9b8   :  { %6539 = vmatpush1.bf16.msra.mxu0 %v5386_v59  ;;  %6703 = vmatpush1.bf16.msra.mxu1 %v5388_v0 }
 0x9b9   :  { %6540 = vmatprep.subr.bf16.mxu0 %v5403_v3  ;;  %6704 = vmatprep.subr.bf16.mxu1 %v5405_v26  ;;  %v5531_v3 = vld [vmem:[#allocation2 + $0x1b48] sm:$0xff]  ;;  %v5533_v26 = vld [vmem:[#allocation2 + $0x1b58] sm:$0xff] }
 0x9bc   :  { %6541 = vmatpush1.bf16.msra.mxu0 %v5402_v28  ;;  %6705 = vmatpush1.bf16.msra.mxu1 %v5404_v29 }
 0x9bd   :  { %6542 = vmatprep.subr.bf16.mxu0 %v5419_v33  ;;  %6706 = vmatprep.subr.bf16.mxu1 %v5421_v47 }
 0x9c0   :  { %6543 = vmatpush1.bf16.msra.mxu0 %v5418_v60  ;;  %6707 = vmatpush1.bf16.msra.mxu1 %v5420_v52 }
 0x9c1   :  { %6553 = vmatprep.subr.bf16.mxu0 %v5435_v32  ;;  %6717 = vmatprep.subr.bf16.mxu1 %v5437_v8 }
 0x9c3   :  { %6545 = vmatmul.mubr.bf16.vlgmr.msra.gmra.mrb[24].mxu0 %v9571_v1  ;;  %6709 = vmatmul.mubr.bf16.vlgmr.msra.gmra.mrb[24].mxu1 %v9571_v1 }
 0x9c4   :  { %6554 = vmatpush1.bf16.msra.mxu0 %v5434_v5  ;;  %6718 = vmatpush1.bf16.msra.mxu1 %v5436_v20 }
 0x9c5   :  { %6555 = vmatprep.subr.bf16.mxu0 %v5451_v9  ;;  %6719 = vmatprep.subr.bf16.mxu1 %v5453_v23 }
 0x9c6   :  { %6585 = vmatprep.mubr.bf16.mxu0 %v9576_v30  ;;  %6749 = vmatprep.mubr.bf16.mxu1 %v9576_v30 }
 0x9c8   :  { %6556 = vmatpush1.bf16.msra.mxu0 %v5450_v13  ;;  %6720 = vmatpush1.bf16.msra.mxu1 %v5452_v27  ;;  %v5530_v13 = vld [vmem:[#allocation2 + $0x1b40] sm:$0xff]  ;;  %v5532_v27 = vld [vmem:[#allocation2 + $0x1b50] sm:$0xff] }
 0x9c9   :  { %6557 = vmatprep.subr.bf16.mxu0 %v5467_v49  ;;  %6721 = vmatprep.subr.bf16.mxu1 %v5469_v10 }
 0x9cc   :  { %6558 = vmatpush1.bf16.msra.mxu0 %v5466_v31  ;;  %6722 = vmatpush1.bf16.msra.mxu1 %v5468_v51  ;;  %v5547_v31 = vld [vmem:[#allocation2 + $0x1bc8] sm:$0xff]  ;;  %v5549_v51 = vld [vmem:[#allocation2 + $0x1bd8] sm:$0xff] }
 0x9cd   :  { %6559 = vmatprep.subr.bf16.mxu0 %v5483_v35  ;;  %6723 = vmatprep.subr.bf16.mxu1 %v5485_v15  ;;  %v5546_v35 = vld [vmem:[#allocation2 + $0x1bc0] sm:$0xff]  ;;  %v5548_v15 = vld [vmem:[#allocation2 + $0x1bd0] sm:$0xff] }
 0x9d0   :  { %6560 = vmatpush1.bf16.msra.mxu0 %v5482_v42  ;;  %6724 = vmatpush1.bf16.msra.mxu1 %v5484_v45  ;;  %v5563_v42 = vld [vmem:[#allocation2 + $0x1c48] sm:$0xff]  ;;  %v5565_v45 = vld [vmem:[#allocation2 + $0x1c58] sm:$0xff] }
 0x9d1   :  { %6561 = vmatprep.subr.bf16.mxu0 %v5499_v11  ;;  %6725 = vmatprep.subr.bf16.mxu1 %v5501_v46  ;;  %v5562_v11 = vld [vmem:[#allocation2 + $0x1c40] sm:$0xff]  ;;  %v5564_v46 = vld [vmem:[#allocation2 + $0x1c50] sm:$0xff] }
 0x9d4   :  { %6562 = vmatpush1.bf16.msra.mxu0 %v5498_v56  ;;  %6726 = vmatpush1.bf16.msra.mxu1 %v5500_v34  ;;  %v5579_v56 = vld [vmem:[#allocation2 + $0x1cc8] sm:$0xff]  ;;  %v5581_v34 = vld [vmem:[#allocation2 + $0x1cd8] sm:$0xff] }
 0x9d5   :  { %6563 = vmatprep.subr.bf16.mxu0 %v5515_v18  ;;  %6727 = vmatprep.subr.bf16.mxu1 %v5517_v62  ;;  %v5578_v18 = vld [vmem:[#allocation2 + $0x1cc0] sm:$0xff]  ;;  %v5580_v62 = vld [vmem:[#allocation2 + $0x1cd0] sm:$0xff] }
 0x9d6   :  { %v6259_v59 = vpop.f32.mrb[20].mxu0  ;;  %v6423_v0 = vpop.f32.mrb[20].mxu1 }
 0x9d7   :  { %v9639_v28 = vadd.f32 %v6259_v59, %v5713_v19  ;;  %v9641_v29 = vadd.f32 %v6423_v0, %v5721_v44  ;;  %v6261_v33 = vpop.f32.mrb[21].mxu0  ;;  %v6425_v47 = vpop.f32.mrb[21].mxu1  ;;  %v5597_v19 = vld [vmem:[#allocation2 + $0x1d58] sm:$0xff]  ;;  %v5594_v44 = vld [vmem:[#allocation2 + $0x1d40] sm:$0xff]  ;;  %v5612_v59 = vld [vmem:[#allocation2 + $0x1dd0] sm:$0xff] }
 0x9d8   :  { %v9643_v60 = vadd.f32 %v6261_v33, %v5717_v54  ;;  %v9645_v52 = vadd.f32 %v6425_v47, %v5725_v61  ;;  %v6263_v32 = vpop.f32.mrb[22].mxu0  ;;  %v6427_v8 = vpop.f32.mrb[22].mxu1  ;;  %6564 = vmatpush1.bf16.msra.mxu0 %v5514_v24  ;;  %6728 = vmatpush1.bf16.msra.mxu1 %v5516_v57  ;;  %v5596_v54 = vld [vmem:[#allocation2 + $0x1d50] sm:$0xff]  ;;  %v5611_v61 = vld [vmem:[#allocation2 + $0x1dc8] sm:$0xff]  ;;  %v5613_v24 = vld [vmem:[#allocation2 + $0x1dd8] sm:$0xff] }
 0x9d9   :  { %v7090_v5 = vmax.f32 %v9639_v28, 0.0  ;;  %v7092_v20 = vmax.f32 %v9641_v29, 0.0  ;;  %v6264_v9 = vpop.f32.mrb[23].mxu0  ;;  %v6428_v23 = vpop.f32.mrb[23].mxu1  ;;  %6565 = vmatprep.subr.bf16.mxu0 %v5531_v3  ;;  %6729 = vmatprep.subr.bf16.mxu1 %v5533_v26  ;;  %v5610_v57 = vld [vmem:[#allocation2 + $0x1dc0] sm:$0xff]  ;;  %v5627_v0 = vld [vmem:[#allocation2 + $0x1e48] sm:$0xff] }
 0x9da   :  { %v7091_v49 = vmax.f32 %v9643_v60, 0.0  ;;  %v7093_v10 = vmax.f32 %v9645_v52, 0.0  ;;  %v5629_v3 = vld [vmem:[#allocation2 + $0x1e58] sm:$0xff]  ;;  %v5626_v26 = vld [vmem:[#allocation2 + $0x1e40] sm:$0xff]  ;;  %v5628_v33 = vld [vmem:[#allocation2 + $0x1e50] sm:$0xff] }
 0x9db   :  { %v5643_v47 = vld [vmem:[#allocation2 + $0x1ec8] sm:$0xff]  ;;  %v5645_v32 = vld [vmem:[#allocation2 + $0x1ed8] sm:$0xff]  ;;  %v5642_v8 = vld [vmem:[#allocation2 + $0x1ec0] sm:$0xff] }
 0x9dc   :  { %6566 = vmatpush1.bf16.msra.mxu0 %v5530_v13  ;;  %6730 = vmatpush1.bf16.msra.mxu1 %v5532_v27  ;;  %v5644_v9 = vld [vmem:[#allocation2 + $0x1ed0] sm:$0xff]  ;;  %v5659_v23 = vld [vmem:[#allocation2 + $0x1f48] sm:$0xff]  ;;  %v5661_v13 = vld [vmem:[#allocation2 + $0x1f58] sm:$0xff] }
 0x9dd   :  { %6567 = vmatprep.subr.bf16.mxu0 %v5547_v31  ;;  %6731 = vmatprep.subr.bf16.mxu1 %v5549_v51  ;;  %v5658_v27 = vld [vmem:[#allocation2 + $0x1f40] sm:$0xff]  ;;  %v5660_v31 = vld [vmem:[#allocation2 + $0x1f50] sm:$0xff]  ;;  %v5675_v51 = vld [vmem:[#allocation2 + $0x1fc8] sm:$0xff] }
 0x9e0   :  { %6568 = vmatpush1.bf16.msra.mxu0 %v5546_v35  ;;  %6732 = vmatpush1.bf16.msra.mxu1 %v5548_v15  ;;  %v5677_v35 = vld [vmem:[#allocation2 + $0x1fd8] sm:$0xff]  ;;  %v5674_v15 = vld [vmem:[#allocation2 + $0x1fc0] sm:$0xff] }
 0x9e1   :  { %6569 = vmatprep.subr.bf16.mxu0 %v5563_v42  ;;  %6733 = vmatprep.subr.bf16.mxu1 %v5565_v45  ;;  %v5676_v42 = vld [vmem:[#allocation2 + $0x1fd0] sm:$0xff]  ;;  %v4671_v45 = vld [vmem:[#allocation2 + $0x68] sm:$0xff] }
 0x9e4   :  { %6570 = vmatpush1.bf16.msra.mxu0 %v5562_v11  ;;  %6734 = vmatpush1.bf16.msra.mxu1 %v5564_v46  ;;  %v4673_v11 = vld [vmem:[#allocation2 + $0x78] sm:$0xff]  ;;  %v4670_v46 = vld [vmem:[#allocation2 + $0x60] sm:$0xff] }
 0x9e5   :  { %6571 = vmatprep.subr.bf16.mxu0 %v5579_v56  ;;  %6735 = vmatprep.subr.bf16.mxu1 %v5581_v34  ;;  %v4672_v56 = vld [vmem:[#allocation2 + $0x70] sm:$0xff]  ;;  %v4687_v34 = vld [vmem:[#allocation2 + $0xe8] sm:$0xff] }
 0x9e8   :  { %6572 = vmatpush1.bf16.msra.mxu0 %v5578_v18  ;;  %6736 = vmatpush1.bf16.msra.mxu1 %v5580_v62  ;;  %v4689_v18 = vld [vmem:[#allocation2 + $0xf8] sm:$0xff]  ;;  %v4686_v62 = vld [vmem:[#allocation2 + $0xe0] sm:$0xff] }
 0x9e9   :  { %6573 = vmatprep.subr.bf16.mxu0 %v5595_v48  ;;  %6737 = vmatprep.subr.bf16.mxu1 %v5597_v19  ;;  %v4688_v48 = vld [vmem:[#allocation2 + $0xf0] sm:$0xff]  ;;  %v4703_v19 = vld [vmem:[#allocation2 + $0x168] sm:$0xff] }
 0x9ec   :  { %6574 = vmatpush1.bf16.msra.mxu0 %v5594_v44  ;;  %6738 = vmatpush1.bf16.msra.mxu1 %v5596_v54  ;;  %v4705_v44 = vld [vmem:[#allocation2 + $0x178] sm:$0xff]  ;;  %v4702_v54 = vld [vmem:[#allocation2 + $0x160] sm:$0xff] }
 0x9ed   :  { %6575 = vmatprep.subr.bf16.mxu0 %v5611_v61  ;;  %6739 = vmatprep.subr.bf16.mxu1 %v5613_v24  ;;  %v4704_v61 = vld [vmem:[#allocation2 + $0x170] sm:$0xff]  ;;  %v4719_v24 = vld [vmem:[#allocation2 + $0x1e8] sm:$0xff] }
 0x9f0   :  { %6576 = vmatpush1.bf16.msra.mxu0 %v5610_v57  ;;  %6740 = vmatpush1.bf16.msra.mxu1 %v5612_v59  ;;  %v4721_v57 = vld [vmem:[#allocation2 + $0x1f8] sm:$0xff]  ;;  %v4718_v59 = vld [vmem:[#allocation2 + $0x1e0] sm:$0xff] }
 0x9f1   :  { %6577 = vmatprep.subr.bf16.mxu0 %v5627_v0  ;;  %6741 = vmatprep.subr.bf16.mxu1 %v5629_v3  ;;  %v4720_v0 = vld [vmem:[#allocation2 + $0x1f0] sm:$0xff]  ;;  %v4735_v3 = vld [vmem:[#allocation2 + $0x268] sm:$0xff] }
 0x9f4   :  { %6578 = vmatpush1.bf16.msra.mxu0 %v5626_v26  ;;  %6742 = vmatpush1.bf16.msra.mxu1 %v5628_v33  ;;  %v4737_v26 = vld [vmem:[#allocation2 + $0x278] sm:$0xff]  ;;  %v4736_v33 = vld [vmem:[#allocation2 + $0x270] sm:$0xff] }
 0x9f5   :  { %6579 = vmatprep.subr.bf16.mxu0 %v5643_v47  ;;  %6743 = vmatprep.subr.bf16.mxu1 %v5645_v32  ;;  %v4751_v47 = vld [vmem:[#allocation2 + $0x2e8] sm:$0xff]  ;;  %v4753_v32 = vld [vmem:[#allocation2 + $0x2f8] sm:$0xff] }
 0x9f8   :  { %6580 = vmatpush1.bf16.msra.mxu0 %v5642_v8  ;;  %6744 = vmatpush1.bf16.msra.mxu1 %v5644_v9  ;;  %v4750_v8 = vld [vmem:[#allocation2 + $0x2e0] sm:$0xff]  ;;  %v4752_v9 = vld [vmem:[#allocation2 + $0x2f0] sm:$0xff] }
 0x9f9   :  { %6581 = vmatprep.subr.bf16.mxu0 %v5659_v23  ;;  %6745 = vmatprep.subr.bf16.mxu1 %v5661_v13  ;;  %v4767_v23 = vld [vmem:[#allocation2 + $0x368] sm:$0xff]  ;;  %v4769_v13 = vld [vmem:[#allocation2 + $0x378] sm:$0xff] }
 0x9fc   :  { %6582 = vmatpush1.bf16.msra.mxu0 %v5658_v27  ;;  %6746 = vmatpush1.bf16.msra.mxu1 %v5660_v31  ;;  %v4766_v27 = vld [vmem:[#allocation2 + $0x360] sm:$0xff]  ;;  %v4768_v31 = vld [vmem:[#allocation2 + $0x370] sm:$0xff] }
 0x9fd   :  { %6583 = vmatprep.subr.bf16.mxu0 %v5675_v51  ;;  %6747 = vmatprep.subr.bf16.mxu1 %v5677_v35  ;;  %v4783_v51 = vld [vmem:[#allocation2 + $0x3e8] sm:$0xff]  ;;  %v4785_v35 = vld [vmem:[#allocation2 + $0x3f8] sm:$0xff] }
 0xa00   :  { %6584 = vmatpush1.bf16.msra.mxu0 %v5674_v15  ;;  %6748 = vmatpush1.bf16.msra.mxu1 %v5676_v42  ;;  %v4782_v15 = vld [vmem:[#allocation2 + $0x3e0] sm:$0xff]  ;;  %v4784_v42 = vld [vmem:[#allocation2 + $0x3f0] sm:$0xff] }
 0xa01   :  { %6758 = vmatprep.subr.bf16.mxu0 %v4671_v45  ;;  %6922 = vmatprep.subr.bf16.mxu1 %v4673_v11  ;;  %v4799_v45 = vld [vmem:[#allocation2 + $0x468] sm:$0xff]  ;;  %v4801_v11 = vld [vmem:[#allocation2 + $0x478] sm:$0xff] }
 0xa03   :  { %6586 = vmatmul.mubr.bf16.vlgmr.msra.gmra.mrb[24].mxu0 %v9585_v7  ;;  %6750 = vmatmul.mubr.bf16.vlgmr.msra.gmra.mrb[24].mxu1 %v9585_v7 }
 0xa04   :  { %6759 = vmatpush1.bf16.msra.mxu0 %v4670_v46  ;;  %6923 = vmatpush1.bf16.msra.mxu1 %v4672_v56  ;;  %v4798_v46 = vld [vmem:[#allocation2 + $0x460] sm:$0xff]  ;;  %v4800_v56 = vld [vmem:[#allocation2 + $0x470] sm:$0xff] }
 0xa05   :  { %6760 = vmatprep.subr.bf16.mxu0 %v4687_v34  ;;  %6924 = vmatprep.subr.bf16.mxu1 %v4689_v18  ;;  %v4815_v34 = vld [vmem:[#allocation2 + $0x4e8] sm:$0xff]  ;;  %v4817_v18 = vld [vmem:[#allocation2 + $0x4f8] sm:$0xff] }
 0xa06   :  { %6790 = vmatprep.mubr.bf16.mxu0 %v9536_v22  ;;  %6954 = vmatprep.mubr.bf16.mxu1 %v9536_v22  ;;  %v4734_v22 = vld [vmem:[#allocation2 + $0x260] sm:$0xff] }
 0xa08   :  { %6761 = vmatpush1.bf16.msra.mxu0 %v4686_v62  ;;  %6925 = vmatpush1.bf16.msra.mxu1 %v4688_v48  ;;  %v4814_v62 = vld [vmem:[#allocation2 + $0x4e0] sm:$0xff]  ;;  %v4816_v48 = vld [vmem:[#allocation2 + $0x4f0] sm:$0xff] }
 0xa09   :  { %6762 = vmatprep.subr.bf16.mxu0 %v4703_v19  ;;  %6926 = vmatprep.subr.bf16.mxu1 %v4705_v44  ;;  %v4831_v19 = vld [vmem:[#allocation2 + $0x568] sm:$0xff]  ;;  %v4833_v44 = vld [vmem:[#allocation2 + $0x578] sm:$0xff] }
 0xa0c   :  { %6763 = vmatpush1.bf16.msra.mxu0 %v4702_v54  ;;  %6927 = vmatpush1.bf16.msra.mxu1 %v4704_v61  ;;  %v4830_v54 = vld [vmem:[#allocation2 + $0x560] sm:$0xff]  ;;  %v4832_v61 = vld [vmem:[#allocation2 + $0x570] sm:$0xff] }
 0xa0d   :  { %6764 = vmatprep.subr.bf16.mxu0 %v4719_v24  ;;  %6928 = vmatprep.subr.bf16.mxu1 %v4721_v57  ;;  %v4847_v24 = vld [vmem:[#allocation2 + $0x5e8] sm:$0xff]  ;;  %v4849_v57 = vld [vmem:[#allocation2 + $0x5f8] sm:$0xff] }
 0xa10   :  { %6765 = vmatpush1.bf16.msra.mxu0 %v4718_v59  ;;  %6929 = vmatpush1.bf16.msra.mxu1 %v4720_v0  ;;  %v4846_v59 = vld [vmem:[#allocation2 + $0x5e0] sm:$0xff]  ;;  %v4848_v0 = vld [vmem:[#allocation2 + $0x5f0] sm:$0xff] }
 0xa11   :  { %6766 = vmatprep.subr.bf16.mxu0 %v4735_v3  ;;  %6930 = vmatprep.subr.bf16.mxu1 %v4737_v26  ;;  %v4863_v3 = vld [vmem:[#allocation2 + $0x668] sm:$0xff]  ;;  %v4865_v26 = vld [vmem:[#allocation2 + $0x678] sm:$0xff] }
 0xa14   :  { %6767 = vmatpush1.bf16.msra.mxu0 %v4734_v22  ;;  %6931 = vmatpush1.bf16.msra.mxu1 %v4736_v33  ;;  %v4862_v22 = vld [vmem:[#allocation2 + $0x660] sm:$0xff]  ;;  %v4864_v33 = vld [vmem:[#allocation2 + $0x670] sm:$0xff] }
 0xa15   :  { %6768 = vmatprep.subr.bf16.mxu0 %v4751_v47  ;;  %6932 = vmatprep.subr.bf16.mxu1 %v4753_v32  ;;  %v4879_v47 = vld [vmem:[#allocation2 + $0x6e8] sm:$0xff]  ;;  %v4881_v32 = vld [vmem:[#allocation2 + $0x6f8] sm:$0xff] }
 0xa18   :  { %6769 = vmatpush1.bf16.msra.mxu0 %v4750_v8  ;;  %6933 = vmatpush1.bf16.msra.mxu1 %v4752_v9  ;;  %v4878_v8 = vld [vmem:[#allocation2 + $0x6e0] sm:$0xff]  ;;  %v4880_v9 = vld [vmem:[#allocation2 + $0x6f0] sm:$0xff] }
 0xa19   :  { %6770 = vmatprep.subr.bf16.mxu0 %v4767_v23  ;;  %6934 = vmatprep.subr.bf16.mxu1 %v4769_v13  ;;  %v4895_v23 = vld [vmem:[#allocation2 + $0x768] sm:$0xff]  ;;  %v4897_v13 = vld [vmem:[#allocation2 + $0x778] sm:$0xff] }
 0xa1c   :  { %6771 = vmatpush1.bf16.msra.mxu0 %v4766_v27  ;;  %6935 = vmatpush1.bf16.msra.mxu1 %v4768_v31  ;;  %v4894_v27 = vld [vmem:[#allocation2 + $0x760] sm:$0xff]  ;;  %v4896_v31 = vld [vmem:[#allocation2 + $0x770] sm:$0xff] }
 0xa1d   :  { %6772 = vmatprep.subr.bf16.mxu0 %v4783_v51  ;;  %6936 = vmatprep.subr.bf16.mxu1 %v4785_v35  ;;  %v4911_v51 = vld [vmem:[#allocation2 + $0x7e8] sm:$0xff]  ;;  %v4913_v35 = vld [vmem:[#allocation2 + $0x7f8] sm:$0xff] }
 0xa20   :  { %6773 = vmatpush1.bf16.msra.mxu0 %v4782_v15  ;;  %6937 = vmatpush1.bf16.msra.mxu1 %v4784_v42  ;;  %v4910_v15 = vld [vmem:[#allocation2 + $0x7e0] sm:$0xff]  ;;  %v4912_v42 = vld [vmem:[#allocation2 + $0x7f0] sm:$0xff] }
 0xa21   :  { %6774 = vmatprep.subr.bf16.mxu0 %v4799_v45  ;;  %6938 = vmatprep.subr.bf16.mxu1 %v4801_v11  ;;  %v4927_v45 = vld [vmem:[#allocation2 + $0x868] sm:$0xff]  ;;  %v4929_v11 = vld [vmem:[#allocation2 + $0x878] sm:$0xff] }
 0xa24   :  { %6775 = vmatpush1.bf16.msra.mxu0 %v4798_v46  ;;  %6939 = vmatpush1.bf16.msra.mxu1 %v4800_v56  ;;  %v4926_v46 = vld [vmem:[#allocation2 + $0x860] sm:$0xff]  ;;  %v4928_v56 = vld [vmem:[#allocation2 + $0x870] sm:$0xff] }
 0xa25   :  { %6776 = vmatprep.subr.bf16.mxu0 %v4815_v34  ;;  %6940 = vmatprep.subr.bf16.mxu1 %v4817_v18  ;;  %v4943_v34 = vld [vmem:[#allocation2 + $0x8e8] sm:$0xff]  ;;  %v4945_v18 = vld [vmem:[#allocation2 + $0x8f8] sm:$0xff] }
 0xa28   :  { %6777 = vmatpush1.bf16.msra.mxu0 %v4814_v62  ;;  %6941 = vmatpush1.bf16.msra.mxu1 %v4816_v48  ;;  %v4942_v62 = vld [vmem:[#allocation2 + $0x8e0] sm:$0xff]  ;;  %v4944_v48 = vld [vmem:[#allocation2 + $0x8f0] sm:$0xff] }
 0xa29   :  { %6778 = vmatprep.subr.bf16.mxu0 %v4831_v19  ;;  %6942 = vmatprep.subr.bf16.mxu1 %v4833_v44  ;;  %v4959_v19 = vld [vmem:[#allocation2 + $0x968] sm:$0xff]  ;;  %v4961_v44 = vld [vmem:[#allocation2 + $0x978] sm:$0xff] }
 0xa2c   :  { %6779 = vmatpush1.bf16.msra.mxu0 %v4830_v54  ;;  %6943 = vmatpush1.bf16.msra.mxu1 %v4832_v61  ;;  %v4958_v54 = vld [vmem:[#allocation2 + $0x960] sm:$0xff]  ;;  %v4960_v61 = vld [vmem:[#allocation2 + $0x970] sm:$0xff] }
 0xa2d   :  { %6780 = vmatprep.subr.bf16.mxu0 %v4847_v24  ;;  %6944 = vmatprep.subr.bf16.mxu1 %v4849_v57  ;;  %v4975_v24 = vld [vmem:[#allocation2 + $0x9e8] sm:$0xff]  ;;  %v4974_v57 = vld [vmem:[#allocation2 + $0x9e0] sm:$0xff] }
 0xa30   :  { %6781 = vmatpush1.bf16.msra.mxu0 %v4846_v59  ;;  %6945 = vmatpush1.bf16.msra.mxu1 %v4848_v0  ;;  %v4976_v59 = vld [vmem:[#allocation2 + $0x9f0] sm:$0xff]  ;;  %v4991_v0 = vld [vmem:[#allocation2 + $0xa68] sm:$0xff] }
 0xa31   :  { %6782 = vmatprep.subr.bf16.mxu0 %v4863_v3  ;;  %6946 = vmatprep.subr.bf16.mxu1 %v4865_v26  ;;  %v4993_v3 = vld [vmem:[#allocation2 + $0xa78] sm:$0xff]  ;;  %v4992_v26 = vld [vmem:[#allocation2 + $0xa70] sm:$0xff] }
 0xa34   :  { %6783 = vmatpush1.bf16.msra.mxu0 %v4862_v22  ;;  %6947 = vmatpush1.bf16.msra.mxu1 %v4864_v33  ;;  %v5007_v22 = vld [vmem:[#allocation2 + $0xae8] sm:$0xff]  ;;  %v5009_v33 = vld [vmem:[#allocation2 + $0xaf8] sm:$0xff] }
 0xa35   :  { %6784 = vmatprep.subr.bf16.mxu0 %v4879_v47  ;;  %6948 = vmatprep.subr.bf16.mxu1 %v4881_v32  ;;  %v5006_v47 = vld [vmem:[#allocation2 + $0xae0] sm:$0xff]  ;;  %v5008_v32 = vld [vmem:[#allocation2 + $0xaf0] sm:$0xff] }
 0xa38   :  { %6785 = vmatpush1.bf16.msra.mxu0 %v4878_v8  ;;  %6949 = vmatpush1.bf16.msra.mxu1 %v4880_v9  ;;  %v5023_v8 = vld [vmem:[#allocation2 + $0xb68] sm:$0xff]  ;;  %v5025_v9 = vld [vmem:[#allocation2 + $0xb78] sm:$0xff] }
 0xa39   :  { %6786 = vmatprep.subr.bf16.mxu0 %v4895_v23  ;;  %6950 = vmatprep.subr.bf16.mxu1 %v4897_v13  ;;  %v5022_v23 = vld [vmem:[#allocation2 + $0xb60] sm:$0xff]  ;;  %v5024_v13 = vld [vmem:[#allocation2 + $0xb70] sm:$0xff] }
 0xa3c   :  { %6787 = vmatpush1.bf16.msra.mxu0 %v4894_v27  ;;  %6951 = vmatpush1.bf16.msra.mxu1 %v4896_v31  ;;  %v5039_v27 = vld [vmem:[#allocation2 + $0xbe8] sm:$0xff]  ;;  %v5041_v31 = vld [vmem:[#allocation2 + $0xbf8] sm:$0xff] }
 0xa3d   :  { %6788 = vmatprep.subr.bf16.mxu0 %v4911_v51  ;;  %6952 = vmatprep.subr.bf16.mxu1 %v4913_v35  ;;  %v5038_v51 = vld [vmem:[#allocation2 + $0xbe0] sm:$0xff]  ;;  %v5040_v35 = vld [vmem:[#allocation2 + $0xbf0] sm:$0xff] }
 0xa40   :  { %6789 = vmatpush1.bf16.msra.mxu0 %v4910_v15  ;;  %6953 = vmatpush1.bf16.msra.mxu1 %v4912_v42  ;;  %v5055_v15 = vld [vmem:[#allocation2 + $0xc68] sm:$0xff]  ;;  %v5057_v42 = vld [vmem:[#allocation2 + $0xc78] sm:$0xff] }
 0xa41   :  { %6799 = vmatprep.subr.bf16.mxu0 %v4927_v45  ;;  %6963 = vmatprep.subr.bf16.mxu1 %v4929_v11  ;;  %v5054_v45 = vld [vmem:[#allocation2 + $0xc60] sm:$0xff]  ;;  %v5056_v11 = vld [vmem:[#allocation2 + $0xc70] sm:$0xff] }
 0xa43   :  { %6791 = vmatmul.mubr.bf16.vlgmr.msra.gmra.mrb[28].mxu0 %v9543_v4  ;;  %6955 = vmatmul.mubr.bf16.vlgmr.msra.gmra.mrb[28].mxu1 %v9543_v4  ;;  %v4977_v4 = vld [vmem:[#allocation2 + $0x9f8] sm:$0xff] }
 0xa44   :  { %6800 = vmatpush1.bf16.msra.mxu0 %v4926_v46  ;;  %6964 = vmatpush1.bf16.msra.mxu1 %v4928_v56  ;;  %v5071_v46 = vld [vmem:[#allocation2 + $0xce8] sm:$0xff]  ;;  %v5073_v56 = vld [vmem:[#allocation2 + $0xcf8] sm:$0xff] }
 0xa45   :  { %6801 = vmatprep.subr.bf16.mxu0 %v4943_v34  ;;  %6965 = vmatprep.subr.bf16.mxu1 %v4945_v18  ;;  %v5070_v34 = vld [vmem:[#allocation2 + $0xce0] sm:$0xff]  ;;  %v5072_v18 = vld [vmem:[#allocation2 + $0xcf0] sm:$0xff] }
 0xa46   :  { %6831 = vmatprep.mubr.bf16.mxu0 %v9548_v14  ;;  %6995 = vmatprep.mubr.bf16.mxu1 %v9548_v14  ;;  %v4990_v14 = vld [vmem:[#allocation2 + $0xa60] sm:$0xff] }
 0xa48   :  { %6802 = vmatpush1.bf16.msra.mxu0 %v4942_v62  ;;  %6966 = vmatpush1.bf16.msra.mxu1 %v4944_v48  ;;  %v5087_v62 = vld [vmem:[#allocation2 + $0xd68] sm:$0xff]  ;;  %v5089_v48 = vld [vmem:[#allocation2 + $0xd78] sm:$0xff] }
 0xa49   :  { %6803 = vmatprep.subr.bf16.mxu0 %v4959_v19  ;;  %6967 = vmatprep.subr.bf16.mxu1 %v4961_v44  ;;  %v5086_v19 = vld [vmem:[#allocation2 + $0xd60] sm:$0xff]  ;;  %v5088_v44 = vld [vmem:[#allocation2 + $0xd70] sm:$0xff] }
 0xa4c   :  { %6804 = vmatpush1.bf16.msra.mxu0 %v4958_v54  ;;  %6968 = vmatpush1.bf16.msra.mxu1 %v4960_v61  ;;  %v5103_v54 = vld [vmem:[#allocation2 + $0xde8] sm:$0xff]  ;;  %v5105_v61 = vld [vmem:[#allocation2 + $0xdf8] sm:$0xff] }
 0xa4d   :  { %6805 = vmatprep.subr.bf16.mxu0 %v4975_v24  ;;  %6969 = vmatprep.subr.bf16.mxu1 %v4977_v4  ;;  %v5102_v24 = vld [vmem:[#allocation2 + $0xde0] sm:$0xff]  ;;  %v5104_v4 = vld [vmem:[#allocation2 + $0xdf0] sm:$0xff] }
 0xa50   :  { %6806 = vmatpush1.bf16.msra.mxu0 %v4974_v57  ;;  %6970 = vmatpush1.bf16.msra.mxu1 %v4976_v59  ;;  %v5119_v57 = vld [vmem:[#allocation2 + $0xe68] sm:$0xff]  ;;  %v5121_v59 = vld [vmem:[#allocation2 + $0xe78] sm:$0xff] }
 0xa51   :  { %6807 = vmatprep.subr.bf16.mxu0 %v4991_v0  ;;  %6971 = vmatprep.subr.bf16.mxu1 %v4993_v3  ;;  %v5118_v0 = vld [vmem:[#allocation2 + $0xe60] sm:$0xff]  ;;  %v5120_v3 = vld [vmem:[#allocation2 + $0xe70] sm:$0xff] }
 0xa54   :  { %6808 = vmatpush1.bf16.msra.mxu0 %v4990_v14  ;;  %6972 = vmatpush1.bf16.msra.mxu1 %v4992_v26  ;;  %v5135_v14 = vld [vmem:[#allocation2 + $0xee8] sm:$0xff]  ;;  %v5137_v26 = vld [vmem:[#allocation2 + $0xef8] sm:$0xff] }
 0xa55   :  { %6809 = vmatprep.subr.bf16.mxu0 %v5007_v22  ;;  %6973 = vmatprep.subr.bf16.mxu1 %v5009_v33  ;;  %v5134_v22 = vld [vmem:[#allocation2 + $0xee0] sm:$0xff]  ;;  %v5136_v33 = vld [vmem:[#allocation2 + $0xef0] sm:$0xff] }
 0xa58   :  { %6810 = vmatpush1.bf16.msra.mxu0 %v5006_v47  ;;  %6974 = vmatpush1.bf16.msra.mxu1 %v5008_v32  ;;  %v5151_v47 = vld [vmem:[#allocation2 + $0xf68] sm:$0xff]  ;;  %v5153_v32 = vld [vmem:[#allocation2 + $0xf78] sm:$0xff] }
 0xa59   :  { %6811 = vmatprep.subr.bf16.mxu0 %v5023_v8  ;;  %6975 = vmatprep.subr.bf16.mxu1 %v5025_v9  ;;  %v5150_v8 = vld [vmem:[#allocation2 + $0xf60] sm:$0xff]  ;;  %v5152_v9 = vld [vmem:[#allocation2 + $0xf70] sm:$0xff] }
 0xa5c   :  { %6812 = vmatpush1.bf16.msra.mxu0 %v5022_v23  ;;  %6976 = vmatpush1.bf16.msra.mxu1 %v5024_v13  ;;  %v5167_v23 = vld [vmem:[#allocation2 + $0xfe8] sm:$0xff]  ;;  %v5169_v13 = vld [vmem:[#allocation2 + $0xff8] sm:$0xff] }
 0xa5d   :  { %6813 = vmatprep.subr.bf16.mxu0 %v5039_v27  ;;  %6977 = vmatprep.subr.bf16.mxu1 %v5041_v31  ;;  %v5166_v27 = vld [vmem:[#allocation2 + $0xfe0] sm:$0xff]  ;;  %v5168_v31 = vld [vmem:[#allocation2 + $0xff0] sm:$0xff] }
 0xa60   :  { %6814 = vmatpush1.bf16.msra.mxu0 %v5038_v51  ;;  %6978 = vmatpush1.bf16.msra.mxu1 %v5040_v35  ;;  %v5183_v51 = vld [vmem:[#allocation2 + $0x1068] sm:$0xff]  ;;  %v5185_v35 = vld [vmem:[#allocation2 + $0x1078] sm:$0xff] }
 0xa61   :  { %6815 = vmatprep.subr.bf16.mxu0 %v5055_v15  ;;  %6979 = vmatprep.subr.bf16.mxu1 %v5057_v42  ;;  %v5182_v15 = vld [vmem:[#allocation2 + $0x1060] sm:$0xff]  ;;  %v5184_v42 = vld [vmem:[#allocation2 + $0x1070] sm:$0xff] }
 0xa64   :  { %6816 = vmatpush1.bf16.msra.mxu0 %v5054_v45  ;;  %6980 = vmatpush1.bf16.msra.mxu1 %v5056_v11  ;;  %v5199_v45 = vld [vmem:[#allocation2 + $0x10e8] sm:$0xff]  ;;  %v5201_v11 = vld [vmem:[#allocation2 + $0x10f8] sm:$0xff] }
 0xa65   :  { %6817 = vmatprep.subr.bf16.mxu0 %v5071_v46  ;;  %6981 = vmatprep.subr.bf16.mxu1 %v5073_v56  ;;  %v5198_v46 = vld [vmem:[#allocation2 + $0x10e0] sm:$0xff]  ;;  %v5200_v56 = vld [vmem:[#allocation2 + $0x10f0] sm:$0xff] }
 0xa68   :  { %6818 = vmatpush1.bf16.msra.mxu0 %v5070_v34  ;;  %6982 = vmatpush1.bf16.msra.mxu1 %v5072_v18  ;;  %v5215_v34 = vld [vmem:[#allocation2 + $0x1168] sm:$0xff]  ;;  %v5217_v18 = vld [vmem:[#allocation2 + $0x1178] sm:$0xff] }
 0xa69   :  { %6819 = vmatprep.subr.bf16.mxu0 %v5087_v62  ;;  %6983 = vmatprep.subr.bf16.mxu1 %v5089_v48  ;;  %v5214_v62 = vld [vmem:[#allocation2 + $0x1160] sm:$0xff]  ;;  %v5216_v48 = vld [vmem:[#allocation2 + $0x1170] sm:$0xff] }
 0xa6c   :  { %6820 = vmatpush1.bf16.msra.mxu0 %v5086_v19  ;;  %6984 = vmatpush1.bf16.msra.mxu1 %v5088_v44  ;;  %v5231_v19 = vld [vmem:[#allocation2 + $0x11e8] sm:$0xff]  ;;  %v5230_v44 = vld [vmem:[#allocation2 + $0x11e0] sm:$0xff] }
 0xa6d   :  { %6821 = vmatprep.subr.bf16.mxu0 %v5103_v54  ;;  %6985 = vmatprep.subr.bf16.mxu1 %v5105_v61  ;;  %v5232_v54 = vld [vmem:[#allocation2 + $0x11f0] sm:$0xff]  ;;  %v5247_v61 = vld [vmem:[#allocation2 + $0x1268] sm:$0xff] }
 0xa70   :  { %6822 = vmatpush1.bf16.msra.mxu0 %v5102_v24  ;;  %6986 = vmatpush1.bf16.msra.mxu1 %v5104_v4  ;;  %v5249_v24 = vld [vmem:[#allocation2 + $0x1278] sm:$0xff]  ;;  %v5248_v4 = vld [vmem:[#allocation2 + $0x1270] sm:$0xff] }
 0xa71   :  { %6823 = vmatprep.subr.bf16.mxu0 %v5119_v57  ;;  %6987 = vmatprep.subr.bf16.mxu1 %v5121_v59  ;;  %v5263_v57 = vld [vmem:[#allocation2 + $0x12e8] sm:$0xff]  ;;  %v5265_v59 = vld [vmem:[#allocation2 + $0x12f8] sm:$0xff] }
 0xa74   :  { %6824 = vmatpush1.bf16.msra.mxu0 %v5118_v0  ;;  %6988 = vmatpush1.bf16.msra.mxu1 %v5120_v3  ;;  %v5262_v0 = vld [vmem:[#allocation2 + $0x12e0] sm:$0xff]  ;;  %v5264_v3 = vld [vmem:[#allocation2 + $0x12f0] sm:$0xff] }
 0xa75   :  { %6825 = vmatprep.subr.bf16.mxu0 %v5135_v14  ;;  %6989 = vmatprep.subr.bf16.mxu1 %v5137_v26  ;;  %v5279_v14 = vld [vmem:[#allocation2 + $0x1368] sm:$0xff]  ;;  %v5281_v26 = vld [vmem:[#allocation2 + $0x1378] sm:$0xff] }
 0xa78   :  { %6826 = vmatpush1.bf16.msra.mxu0 %v5134_v22  ;;  %6990 = vmatpush1.bf16.msra.mxu1 %v5136_v33  ;;  %v5278_v22 = vld [vmem:[#allocation2 + $0x1360] sm:$0xff]  ;;  %v5280_v33 = vld [vmem:[#allocation2 + $0x1370] sm:$0xff] }
 0xa79   :  { %6827 = vmatprep.subr.bf16.mxu0 %v5151_v47  ;;  %6991 = vmatprep.subr.bf16.mxu1 %v5153_v32  ;;  %v5295_v47 = vld [vmem:[#allocation2 + $0x13e8] sm:$0xff]  ;;  %v5297_v32 = vld [vmem:[#allocation2 + $0x13f8] sm:$0xff] }
 0xa7c   :  { %6828 = vmatpush1.bf16.msra.mxu0 %v5150_v8  ;;  %6992 = vmatpush1.bf16.msra.mxu1 %v5152_v9  ;;  %v5294_v8 = vld [vmem:[#allocation2 + $0x13e0] sm:$0xff]  ;;  %v5296_v9 = vld [vmem:[#allocation2 + $0x13f0] sm:$0xff] }
 0xa7d   :  { %6829 = vmatprep.subr.bf16.mxu0 %v5167_v23  ;;  %6993 = vmatprep.subr.bf16.mxu1 %v5169_v13  ;;  %v5311_v23 = vld [vmem:[#allocation2 + $0x1468] sm:$0xff]  ;;  %v5313_v13 = vld [vmem:[#allocation2 + $0x1478] sm:$0xff] }
 0xa80   :  { %6830 = vmatpush1.bf16.msra.mxu0 %v5166_v27  ;;  %6994 = vmatpush1.bf16.msra.mxu1 %v5168_v31  ;;  %v5310_v27 = vld [vmem:[#allocation2 + $0x1460] sm:$0xff]  ;;  %v5312_v31 = vld [vmem:[#allocation2 + $0x1470] sm:$0xff] }
 0xa81   :  { %6840 = vmatprep.subr.bf16.mxu0 %v5183_v51  ;;  %7004 = vmatprep.subr.bf16.mxu1 %v5185_v35  ;;  %v5327_v51 = vld [vmem:[#allocation2 + $0x14e8] sm:$0xff]  ;;  %v5329_v35 = vld [vmem:[#allocation2 + $0x14f8] sm:$0xff] }
 0xa83   :  { %6832 = vmatmul.mubr.bf16.vlgmr.msra.gmra.mrb[28].mxu0 %v9557_v36  ;;  %6996 = vmatmul.mubr.bf16.vlgmr.msra.gmra.mrb[28].mxu1 %v9557_v36  ;;  %v5233_v36 = vld [vmem:[#allocation2 + $0x11f8] sm:$0xff] }
 0xa84   :  { %6841 = vmatpush1.bf16.msra.mxu0 %v5182_v15  ;;  %7005 = vmatpush1.bf16.msra.mxu1 %v5184_v42  ;;  %v5326_v15 = vld [vmem:[#allocation2 + $0x14e0] sm:$0xff]  ;;  %v5328_v42 = vld [vmem:[#allocation2 + $0x14f0] sm:$0xff] }
 0xa85   :  { %6842 = vmatprep.subr.bf16.mxu0 %v5199_v45  ;;  %7006 = vmatprep.subr.bf16.mxu1 %v5201_v11  ;;  %v5343_v45 = vld [vmem:[#allocation2 + $0x1568] sm:$0xff]  ;;  %v5345_v11 = vld [vmem:[#allocation2 + $0x1578] sm:$0xff] }
 0xa86   :  { %6872 = vmatprep.mubr.bf16.mxu0 %v9562_v38  ;;  %7036 = vmatprep.mubr.bf16.mxu1 %v9562_v38  ;;  %v5246_v38 = vld [vmem:[#allocation2 + $0x1260] sm:$0xff] }
 0xa88   :  { %6843 = vmatpush1.bf16.msra.mxu0 %v5198_v46  ;;  %7007 = vmatpush1.bf16.msra.mxu1 %v5200_v56  ;;  %v5342_v46 = vld [vmem:[#allocation2 + $0x1560] sm:$0xff]  ;;  %v5344_v56 = vld [vmem:[#allocation2 + $0x1570] sm:$0xff] }
 0xa89   :  { %6844 = vmatprep.subr.bf16.mxu0 %v5215_v34  ;;  %7008 = vmatprep.subr.bf16.mxu1 %v5217_v18  ;;  %v5359_v34 = vld [vmem:[#allocation2 + $0x15e8] sm:$0xff]  ;;  %v5361_v18 = vld [vmem:[#allocation2 + $0x15f8] sm:$0xff] }
 0xa8c   :  { %6845 = vmatpush1.bf16.msra.mxu0 %v5214_v62  ;;  %7009 = vmatpush1.bf16.msra.mxu1 %v5216_v48  ;;  %v5358_v62 = vld [vmem:[#allocation2 + $0x15e0] sm:$0xff]  ;;  %v5360_v48 = vld [vmem:[#allocation2 + $0x15f0] sm:$0xff] }
 0xa8d   :  { %6846 = vmatprep.subr.bf16.mxu0 %v5231_v19  ;;  %7010 = vmatprep.subr.bf16.mxu1 %v5233_v36  ;;  %v5375_v19 = vld [vmem:[#allocation2 + $0x1668] sm:$0xff]  ;;  %v5377_v36 = vld [vmem:[#allocation2 + $0x1678] sm:$0xff] }
 0xa90   :  { %6847 = vmatpush1.bf16.msra.mxu0 %v5230_v44  ;;  %7011 = vmatpush1.bf16.msra.mxu1 %v5232_v54  ;;  %v5374_v44 = vld [vmem:[#allocation2 + $0x1660] sm:$0xff]  ;;  %v5376_v54 = vld [vmem:[#allocation2 + $0x1670] sm:$0xff] }
 0xa91   :  { %6848 = vmatprep.subr.bf16.mxu0 %v5247_v61  ;;  %7012 = vmatprep.subr.bf16.mxu1 %v5249_v24  ;;  %v5391_v61 = vld [vmem:[#allocation2 + $0x16e8] sm:$0xff]  ;;  %v5393_v24 = vld [vmem:[#allocation2 + $0x16f8] sm:$0xff] }
 0xa94   :  { %6849 = vmatpush1.bf16.msra.mxu0 %v5246_v38  ;;  %7013 = vmatpush1.bf16.msra.mxu1 %v5248_v4  ;;  %v5390_v38 = vld [vmem:[#allocation2 + $0x16e0] sm:$0xff]  ;;  %v5392_v4 = vld [vmem:[#allocation2 + $0x16f0] sm:$0xff] }
 0xa95   :  { %6850 = vmatprep.subr.bf16.mxu0 %v5263_v57  ;;  %7014 = vmatprep.subr.bf16.mxu1 %v5265_v59  ;;  %v5407_v57 = vld [vmem:[#allocation2 + $0x1768] sm:$0xff]  ;;  %v5409_v59 = vld [vmem:[#allocation2 + $0x1778] sm:$0xff] }
 0xa98   :  { %6851 = vmatpush1.bf16.msra.mxu0 %v5262_v0  ;;  %7015 = vmatpush1.bf16.msra.mxu1 %v5264_v3  ;;  %v5406_v0 = vld [vmem:[#allocation2 + $0x1760] sm:$0xff]  ;;  %v5408_v3 = vld [vmem:[#allocation2 + $0x1770] sm:$0xff] }
 0xa99   :  { %6852 = vmatprep.subr.bf16.mxu0 %v5279_v14  ;;  %7016 = vmatprep.subr.bf16.mxu1 %v5281_v26  ;;  %v5423_v14 = vld [vmem:[#allocation2 + $0x17e8] sm:$0xff]  ;;  %v5425_v26 = vld [vmem:[#allocation2 + $0x17f8] sm:$0xff] }
 0xa9c   :  { %6853 = vmatpush1.bf16.msra.mxu0 %v5278_v22  ;;  %7017 = vmatpush1.bf16.msra.mxu1 %v5280_v33  ;;  %v5422_v22 = vld [vmem:[#allocation2 + $0x17e0] sm:$0xff]  ;;  %v5424_v33 = vld [vmem:[#allocation2 + $0x17f0] sm:$0xff] }
 0xa9d   :  { %6854 = vmatprep.subr.bf16.mxu0 %v5295_v47  ;;  %7018 = vmatprep.subr.bf16.mxu1 %v5297_v32  ;;  %v5439_v47 = vld [vmem:[#allocation2 + $0x1868] sm:$0xff]  ;;  %v5441_v32 = vld [vmem:[#allocation2 + $0x1878] sm:$0xff] }
 0xaa0   :  { %6855 = vmatpush1.bf16.msra.mxu0 %v5294_v8  ;;  %7019 = vmatpush1.bf16.msra.mxu1 %v5296_v9  ;;  %v5438_v8 = vld [vmem:[#allocation2 + $0x1860] sm:$0xff]  ;;  %v5440_v9 = vld [vmem:[#allocation2 + $0x1870] sm:$0xff] }
 0xaa1   :  { %6856 = vmatprep.subr.bf16.mxu0 %v5311_v23  ;;  %7020 = vmatprep.subr.bf16.mxu1 %v5313_v13  ;;  %v5455_v23 = vld [vmem:[#allocation2 + $0x18e8] sm:$0xff]  ;;  %v5457_v13 = vld [vmem:[#allocation2 + $0x18f8] sm:$0xff] }
 0xaa4   :  { %6857 = vmatpush1.bf16.msra.mxu0 %v5310_v27  ;;  %7021 = vmatpush1.bf16.msra.mxu1 %v5312_v31  ;;  %v5454_v27 = vld [vmem:[#allocation2 + $0x18e0] sm:$0xff]  ;;  %v5456_v31 = vld [vmem:[#allocation2 + $0x18f0] sm:$0xff] }
 0xaa5   :  { %6858 = vmatprep.subr.bf16.mxu0 %v5327_v51  ;;  %7022 = vmatprep.subr.bf16.mxu1 %v5329_v35  ;;  %v5471_v51 = vld [vmem:[#allocation2 + $0x1968] sm:$0xff]  ;;  %v5473_v35 = vld [vmem:[#allocation2 + $0x1978] sm:$0xff] }
 0xaa8   :  { %6859 = vmatpush1.bf16.msra.mxu0 %v5326_v15  ;;  %7023 = vmatpush1.bf16.msra.mxu1 %v5328_v42  ;;  %v5470_v15 = vld [vmem:[#allocation2 + $0x1960] sm:$0xff]  ;;  %v5472_v42 = vld [vmem:[#allocation2 + $0x1970] sm:$0xff] }
 0xaa9   :  { %6860 = vmatprep.subr.bf16.mxu0 %v5343_v45  ;;  %7024 = vmatprep.subr.bf16.mxu1 %v5345_v11  ;;  %v5487_v45 = vld [vmem:[#allocation2 + $0x19e8] sm:$0xff]  ;;  %v5486_v11 = vld [vmem:[#allocation2 + $0x19e0] sm:$0xff] }
 0xaac   :  { %6861 = vmatpush1.bf16.msra.mxu0 %v5342_v46  ;;  %7025 = vmatpush1.bf16.msra.mxu1 %v5344_v56  ;;  %v5488_v46 = vld [vmem:[#allocation2 + $0x19f0] sm:$0xff]  ;;  %v5503_v56 = vld [vmem:[#allocation2 + $0x1a68] sm:$0xff] }
 0xaad   :  { %6862 = vmatprep.subr.bf16.mxu0 %v5359_v34  ;;  %7026 = vmatprep.subr.bf16.mxu1 %v5361_v18  ;;  %v5505_v34 = vld [vmem:[#allocation2 + $0x1a78] sm:$0xff]  ;;  %v9667_v18 = vld [vmem:[#allocation20 + $0x8] sm:$0xff] }
 0xab0   :  { %6863 = vmatpush1.bf16.msra.mxu0 %v5358_v62  ;;  %7027 = vmatpush1.bf16.msra.mxu1 %v5360_v48  ;;  %v5504_v62 = vld [vmem:[#allocation2 + $0x1a70] sm:$0xff]  ;;  %v5519_v48 = vld [vmem:[#allocation2 + $0x1ae8] sm:$0xff] }
 0xab1   :  { %6864 = vmatprep.subr.bf16.mxu0 %v5375_v19  ;;  %7028 = vmatprep.subr.bf16.mxu1 %v5377_v36  ;;  %v5521_v19 = vld [vmem:[#allocation2 + $0x1af8] sm:$0xff]  ;;  %v5729_v36 = vrot.slane %v9667_v18, %v9261_v37 }
 0xab4   :  { %6865 = vmatpush1.bf16.msra.mxu0 %v5374_v44  ;;  %7029 = vmatpush1.bf16.msra.mxu1 %v5376_v54  ;;  %v5737_v44 = vrot.slane %v9667_v18, %v9265_v40  ;;  %v5733_v54 = vrot.slane %v9667_v18, %v9263_v39 }
 0xab5   :  { %6866 = vmatprep.subr.bf16.mxu0 %v5391_v61  ;;  %7030 = vmatprep.subr.bf16.mxu1 %v5393_v24  ;;  %v5741_v61 = vrot.slane %v9667_v18, %v9267_v41  ;;  %v5518_v24 = vld [vmem:[#allocation2 + $0x1ae0] sm:$0xff] }
 0xab8   :  { %6867 = vmatpush1.bf16.msra.mxu0 %v5390_v38  ;;  %7031 = vmatpush1.bf16.msra.mxu1 %v5392_v4  ;;  %v5520_v38 = vld [vmem:[#allocation2 + $0x1af0] sm:$0xff] }
 0xab9   :  { %6868 = vmatprep.subr.bf16.mxu0 %v5407_v57  ;;  %7032 = vmatprep.subr.bf16.mxu1 %v5409_v59  ;;  %v5535_v59 = vld [vmem:[#allocation2 + $0x1b68] sm:$0xff] }
 0xabc   :  { %6869 = vmatpush1.bf16.msra.mxu0 %v5406_v0  ;;  %7033 = vmatpush1.bf16.msra.mxu1 %v5408_v3  ;;  %v5537_v0 = vld [vmem:[#allocation2 + $0x1b78] sm:$0xff] }
 0xabd   :  { %6870 = vmatprep.subr.bf16.mxu0 %v5423_v14  ;;  %7034 = vmatprep.subr.bf16.mxu1 %v5425_v26 }
 0xac0   :  { %6871 = vmatpush1.bf16.msra.mxu0 %v5422_v22  ;;  %7035 = vmatpush1.bf16.msra.mxu1 %v5424_v33 }
 0xac1   :  { %6881 = vmatprep.subr.bf16.mxu0 %v5439_v47  ;;  %7045 = vmatprep.subr.bf16.mxu1 %v5441_v32 }
 0xac3   :  { %6873 = vmatmul.mubr.bf16.vlgmr.msra.gmra.mrb[28].mxu0 %v9571_v1  ;;  %7037 = vmatmul.mubr.bf16.vlgmr.msra.gmra.mrb[28].mxu1 %v9571_v1  ;;  %v5489_v1 = vld [vmem:[#allocation2 + $0x19f8] sm:$0xff] }
 0xac4   :  { %6882 = vmatpush1.bf16.msra.mxu0 %v5438_v8  ;;  %7046 = vmatpush1.bf16.msra.mxu1 %v5440_v9  ;;  %v5534_v9 = vld [vmem:[#allocation2 + $0x1b60] sm:$0xff] }
 0xac5   :  { %6883 = vmatprep.subr.bf16.mxu0 %v5455_v23  ;;  %7047 = vmatprep.subr.bf16.mxu1 %v5457_v13  ;;  %v5536_v23 = vld [vmem:[#allocation2 + $0x1b70] sm:$0xff] }
 0xac6   :  { %6913 = vmatprep.mubr.bf16.mxu0 %v9576_v30  ;;  %7077 = vmatprep.mubr.bf16.mxu1 %v9576_v30  ;;  %v5502_v30 = vld [vmem:[#allocation2 + $0x1a60] sm:$0xff] }
 0xac8   :  { %6884 = vmatpush1.bf16.msra.mxu0 %v5454_v27  ;;  %7048 = vmatpush1.bf16.msra.mxu1 %v5456_v31  ;;  %v5551_v31 = vld [vmem:[#allocation2 + $0x1be8] sm:$0xff] }
 0xac9   :  { %6885 = vmatprep.subr.bf16.mxu0 %v5471_v51  ;;  %7049 = vmatprep.subr.bf16.mxu1 %v5473_v35  ;;  %v5553_v51 = vld [vmem:[#allocation2 + $0x1bf8] sm:$0xff]  ;;  %v5550_v35 = vld [vmem:[#allocation2 + $0x1be0] sm:$0xff] }
 0xacc   :  { %6886 = vmatpush1.bf16.msra.mxu0 %v5470_v15  ;;  %7050 = vmatpush1.bf16.msra.mxu1 %v5472_v42  ;;  %v5552_v15 = vld [vmem:[#allocation2 + $0x1bf0] sm:$0xff]  ;;  %v5567_v42 = vld [vmem:[#allocation2 + $0x1c68] sm:$0xff] }
 0xacd   :  { %6887 = vmatprep.subr.bf16.mxu0 %v5487_v45  ;;  %7051 = vmatprep.subr.bf16.mxu1 %v5489_v1  ;;  %v5569_v45 = vld [vmem:[#allocation2 + $0x1c78] sm:$0xff]  ;;  %v5566_v1 = vld [vmem:[#allocation2 + $0x1c60] sm:$0xff] }
 0xad0   :  { %6888 = vmatpush1.bf16.msra.mxu0 %v5486_v11  ;;  %7052 = vmatpush1.bf16.msra.mxu1 %v5488_v46  ;;  %v5568_v11 = vld [vmem:[#allocation2 + $0x1c70] sm:$0xff]  ;;  %v5583_v46 = vld [vmem:[#allocation2 + $0x1ce8] sm:$0xff] }
 0xad1   :  { %6889 = vmatprep.subr.bf16.mxu0 %v5503_v56  ;;  %7053 = vmatprep.subr.bf16.mxu1 %v5505_v34  ;;  %v5585_v56 = vld [vmem:[#allocation2 + $0x1cf8] sm:$0xff]  ;;  %v5582_v34 = vld [vmem:[#allocation2 + $0x1ce0] sm:$0xff] }
 0xad4   :  { %6890 = vmatpush1.bf16.msra.mxu0 %v5502_v30  ;;  %7054 = vmatpush1.bf16.msra.mxu1 %v5504_v62  ;;  %v5584_v30 = vld [vmem:[#allocation2 + $0x1cf0] sm:$0xff]  ;;  %v5599_v62 = vld [vmem:[#allocation2 + $0x1d68] sm:$0xff] }
 0xad5   :  { %6891 = vmatprep.subr.bf16.mxu0 %v5519_v48  ;;  %7055 = vmatprep.subr.bf16.mxu1 %v5521_v19  ;;  %v5601_v48 = vld [vmem:[#allocation2 + $0x1d78] sm:$0xff]  ;;  %v5598_v19 = vld [vmem:[#allocation2 + $0x1d60] sm:$0xff] }
 0xad6   :  { %v6587_v4 = vpop.f32.mrb[24].mxu0  ;;  %v6751_v57 = vpop.f32.mrb[24].mxu1 }
 0xad7   :  { %v9677_v37 = vadd.f32 %v6587_v4, %v5729_v36  ;;  %v9679_v3 = vadd.f32 %v6751_v57, %v5737_v44  ;;  %v6589_v40 = vpop.f32.mrb[25].mxu0  ;;  %v6753_v14 = vpop.f32.mrb[25].mxu1  ;;  %v5600_v36 = vld [vmem:[#allocation2 + $0x1d70] sm:$0xff]  ;;  %v5615_v44 = vld [vmem:[#allocation2 + $0x1de8] sm:$0xff]  ;;  %v5633_v4 = vld [vmem:[#allocation2 + $0x1e78] sm:$0xff] }
 0xad8   :  { %v9681_v26 = vadd.f32 %v6589_v40, %v5733_v54  ;;  %v9683_v39 = vadd.f32 %v6753_v14, %v5741_v61  ;;  %v6591_v22 = vpop.f32.mrb[26].mxu0  ;;  %v6755_v41 = vpop.f32.mrb[26].mxu1  ;;  %6892 = vmatpush1.bf16.msra.mxu0 %v5518_v24  ;;  %7056 = vmatpush1.bf16.msra.mxu1 %v5520_v38  ;;  %v5617_v54 = vld [vmem:[#allocation2 + $0x1df8] sm:$0xff]  ;;  %v5614_v61 = vld [vmem:[#allocation2 + $0x1de0] sm:$0xff]  ;;  %v5616_v24 = vld [vmem:[#allocation2 + $0x1df0] sm:$0xff] }
 0xad9   :  { %v7094_v33 = vmax.f32 %v9677_v37, 0.0  ;;  %v7096_v47 = vmax.f32 %v9679_v3, 0.0  ;;  %v6592_v32 = vpop.f32.mrb[27].mxu0  ;;  %v6756_v8 = vpop.f32.mrb[27].mxu1  ;;  %6893 = vmatprep.subr.bf16.mxu0 %v5535_v59  ;;  %7057 = vmatprep.subr.bf16.mxu1 %v5537_v0  ;;  %v5631_v38 = vld [vmem:[#allocation2 + $0x1e68] sm:$0xff]  ;;  %v5630_v57 = vld [vmem:[#allocation2 + $0x1e60] sm:$0xff] }
 0xada   :  { %v7095_v13 = vmax.f32 %v9681_v26, 0.0  ;;  %v7097_v27 = vmax.f32 %v9683_v39, 0.0  ;;  %v5632_v59 = vld [vmem:[#allocation2 + $0x1e70] sm:$0xff]  ;;  %v5647_v0 = vld [vmem:[#allocation2 + $0x1ee8] sm:$0xff]  ;;  %v5649_v40 = vld [vmem:[#allocation2 + $0x1ef8] sm:$0xff] }
 0xadb   :  { %v5646_v14 = vld [vmem:[#allocation2 + $0x1ee0] sm:$0xff]  ;;  %v5648_v22 = vld [vmem:[#allocation2 + $0x1ef0] sm:$0xff]  ;;  %v5663_v41 = vld [vmem:[#allocation2 + $0x1f68] sm:$0xff] }
 0xadc   :  { %6894 = vmatpush1.bf16.msra.mxu0 %v5534_v9  ;;  %7058 = vmatpush1.bf16.msra.mxu1 %v5536_v23  ;;  %v5665_v32 = vld [vmem:[#allocation2 + $0x1f78] sm:$0xff]  ;;  %v5662_v8 = vld [vmem:[#allocation2 + $0x1f60] sm:$0xff]  ;;  %v5664_v9 = vld [vmem:[#allocation2 + $0x1f70] sm:$0xff] }
 0xadd   :  { %6895 = vmatprep.subr.bf16.mxu0 %v5551_v31  ;;  %7059 = vmatprep.subr.bf16.mxu1 %v5553_v51  ;;  %v5679_v23 = vld [vmem:[#allocation2 + $0x1fe8] sm:$0xff]  ;;  %v5681_v31 = vld [vmem:[#allocation2 + $0x1ff8] sm:$0xff]  ;;  %v5678_v51 = vld [vmem:[#allocation2 + $0x1fe0] sm:$0xff] }
 0xae0   :  { %6896 = vmatpush1.bf16.msra.mxu0 %v5550_v35  ;;  %7060 = vmatpush1.bf16.msra.mxu1 %v5552_v15  ;;  %v5680_v35 = vld [vmem:[#allocation2 + $0x1ff0] sm:$0xff]  ;;  %v5745_v15 = vrot.slane %v9667_v18, %v9275_v50 }
 0xae1   :  { %6897 = vmatprep.subr.bf16.mxu0 %v5567_v42  ;;  %7061 = vmatprep.subr.bf16.mxu1 %v5569_v45  ;;  %v5753_v42 = vrot.slane %v9667_v18, %v9283_v58  ;;  %v5749_v45 = vrot.slane %v9667_v18, %v9281_v55 }
 0xae4   :  { %6898 = vmatpush1.bf16.msra.mxu0 %v5566_v1  ;;  %7062 = vmatpush1.bf16.msra.mxu1 %v5568_v11  ;;  %v5757_v1 = vrot.slane %v9667_v18, %v9293_v2 }
 0xae5   :  { %6899 = vmatprep.subr.bf16.mxu0 %v5583_v46  ;;  %7063 = vmatprep.subr.bf16.mxu1 %v5585_v56 }
 0xae8   :  { %6900 = vmatpush1.bf16.msra.mxu0 %v5582_v34  ;;  %7064 = vmatpush1.bf16.msra.mxu1 %v5584_v30 }
 0xae9   :  { %6901 = vmatprep.subr.bf16.mxu0 %v5599_v62  ;;  %7065 = vmatprep.subr.bf16.mxu1 %v5601_v48 }
 0xaec   :  { %6902 = vmatpush1.bf16.msra.mxu0 %v5598_v19  ;;  %7066 = vmatpush1.bf16.msra.mxu1 %v5600_v36 }
 0xaed   :  { %6903 = vmatprep.subr.bf16.mxu0 %v5615_v44  ;;  %7067 = vmatprep.subr.bf16.mxu1 %v5617_v54 }
 0xaf0   :  { %6904 = vmatpush1.bf16.msra.mxu0 %v5614_v61  ;;  %7068 = vmatpush1.bf16.msra.mxu1 %v5616_v24 }
 0xaf1   :  { %6905 = vmatprep.subr.bf16.mxu0 %v5631_v38  ;;  %7069 = vmatprep.subr.bf16.mxu1 %v5633_v4 }
 0xaf4   :  { %6906 = vmatpush1.bf16.msra.mxu0 %v5630_v57  ;;  %7070 = vmatpush1.bf16.msra.mxu1 %v5632_v59 }
 0xaf5   :  { %6907 = vmatprep.subr.bf16.mxu0 %v5647_v0  ;;  %7071 = vmatprep.subr.bf16.mxu1 %v5649_v40 }
 0xaf8   :  { %6908 = vmatpush1.bf16.msra.mxu0 %v5646_v14  ;;  %7072 = vmatpush1.bf16.msra.mxu1 %v5648_v22 }
 0xaf9   :  { %6909 = vmatprep.subr.bf16.mxu0 %v5663_v41  ;;  %7073 = vmatprep.subr.bf16.mxu1 %v5665_v32 }
 0xafc   :  { %6910 = vmatpush1.bf16.msra.mxu0 %v5662_v8  ;;  %7074 = vmatpush1.bf16.msra.mxu1 %v5664_v9 }
 0xafd   :  { %6911 = vmatprep.subr.bf16.mxu0 %v5679_v23  ;;  %7075 = vmatprep.subr.bf16.mxu1 %v5681_v31 }
 0xb00   :  { %6912 = vmatpush1.bf16.msra.mxu0 %v5678_v51  ;;  %7076 = vmatpush1.bf16.msra.mxu1 %v5680_v35 }
 0xb03   :  { %6914 = vmatmul.mubr.bf16.vlgmr.msra.gmra.mrb[28].mxu0 %v9585_v7  ;;  %7078 = vmatmul.mubr.bf16.vlgmr.msra.gmra.mrb[28].mxu1 %v9585_v7 }
 0xbd6   :  { %v6915_v11 = vpop.f32.mrb[28].mxu0  ;;  %v7079_v46 = vpop.f32.mrb[28].mxu1 }
 0xbd7   :  { %v9699_v56 = vadd.f32 %v6915_v11, %v5745_v15  ;;  %v9701_v34 = vadd.f32 %v7079_v46, %v5753_v42  ;;  %v6917_v30 = vpop.f32.mrb[29].mxu0  ;;  %v7081_v7 = vpop.f32.mrb[29].mxu1 }
 0xbd8   :  { %v9703_v62 = vadd.f32 %v6917_v30, %v5749_v45  ;;  %v9705_v50 = vadd.f32 %v7081_v7, %v5757_v1  ;;  %v6919_v48 = vpop.f32.mrb[30].mxu0  ;;  %v7083_v58 = vpop.f32.mrb[30].mxu1 }
 0xbd9   :  { %v7098_v19 = vmax.f32 %v9699_v56, 0.0  ;;  %v7100_v55 = vmax.f32 %v9701_v34, 0.0  ;;  %v6920_v36 = vpop.f32.mrb[31].mxu0  ;;  %v7084_v2 = vpop.f32.mrb[31].mxu1 }
 0xbda   :  { %v7099_v18 = vmax.f32 %v9703_v62, 0.0  ;;  %v7101_v44 = vmax.f32 %v9705_v50, 0.0 }
 0xbdb   :  { %8997 = dma.done.wait [#allocation4 + $0x1], 16384 }
 0xbdc   :  { %8998 = vsyncadd [#allocation4 + $0x1], 4294950912  ;;  %v7240_v54 = vpack.c.bf16 %v7087_v12, %v7087_v12  ;;  %v7242_v61 = vpack.c.bf16 %v7089_v25, %v7089_v25  ;;  %v7118_v24 = vld [vmem:[#allocation3 + $0x40] sm:$0xff]  ;;  %v7119_v59 = vld [vmem:[#allocation3 + $0x48] sm:$0xff]  ;;  %v7246_v21 = vpack.c.bf16 %v7093_v10, %v7093_v10  ;;  %v7250_v28 = vpack.c.bf16 %v7097_v27, %v7097_v27  ;;  %s9026_s11 = smov 96   ;;  %s9027_s20 = smov 112  }
 0xbdd   :  { %v7134_v38 = vld [vmem:[#allocation3 + $0xc0] sm:$0xff]  ;;  %8298 = vmatprep.subr.bf16.mxu0 %v7118_v24  ;;  %v7135_v0 = vld [vmem:[#allocation3 + $0xc8] sm:$0xff]  ;;  %v7120_v40 = vld [vmem:[#allocation3 + $0x50] sm:$0xff]  ;;  %v7241_v24 = vpack.c.bf16 %v7088_v63, %v7088_v63  ;;  %v7254_v37 = vpack.c.bf16 %v7101_v44, %v7101_v44  ;;  %vm7615_vm2 = vcmask 392448   ;;  %vm7605_vm3 = vcmask 130048   ;;  %s9028_s21 = smov 16  }
 0xbde   :  { %7293 = vmatprep.mubr.bf16.mxu0 %v7240_v54  ;;  %7333 = vmatprep.mubr.bf16.mxu1 %v7242_v61  ;;  %v7110_v4 = vld [vmem:[#allocation3] sm:$0xff]  ;;  %v7111_v53 = vld [vmem:[#allocation3 + $0x8] sm:$0xff]  ;;  %v7136_v16 = vld [vmem:[#allocation3 + $0xd0] sm:$0xff]  ;;  %v7239_v61 = vpack.c.bf16 %v7086_v43, %v7086_v43  ;;  %vm7620_vm4 = vcmask 523648   ;;  %vm7610_vm5 = vcmask 261248   ;;  %vm7630_vm6 = vcmask 786048  }
 0xbdf   :  { %8320 = vmatprep.subr.bf16.mxu1 %v7134_v38  ;;  %v7126_v57 = vld [vmem:[#allocation3 + $0x80] sm:$0xff]  ;;  %8299 = vmatpush3.bf16.msra.mxu0 %v7110_v4  ;;  %v7127_v12 = vld [vmem:[#allocation3 + $0x88] sm:$0xff]  ;;  %v7112_v25 = vld [vmem:[#allocation3 + $0x10] sm:$0xff]  ;;  %vm7625_vm7 = vcmask 654848   ;;  %vm7640_vm8 = vcmask 1048448   ;;  %vm7635_vm9 = vcmask 917248  }
 0xbe0   :  { %8321 = vmatpush3.bf16.msra.mxu1 %v7126_v57  ;;  %8300 = vmatprep.subr.bf16.mxu0 %v7119_v59  ;;  %v7128_v14 = vld [vmem:[#allocation3 + $0x90] sm:$0xff]  ;;  %v7121_v22 = vld [vmem:[#allocation3 + $0x58] sm:$0xff]  ;;  %v7122_v9 = vld [vmem:[#allocation3 + $0x60] sm:$0xff]  ;;  %vm7584_vm10 = vcmp.ge.s32.totalorder %v9310_v6, 16  ;;  %vm7585_vm11 = vcmp.lt.s32.totalorder %v9310_v6, 32  ;;  %vm7587_vm12 = vcmp.ge.s32.totalorder %v9310_v6, 32 }
 0xbe1   :  { %8322 = vmatprep.subr.bf16.mxu1 %v7135_v0  ;;  %v7137_v41 = vld [vmem:[#allocation3 + $0xd8] sm:$0xff]  ;;  %v7138_v23 = vld [vmem:[#allocation3 + $0xe0] sm:$0xff]  ;;  %v7123_v35 = vld [vmem:[#allocation3 + $0x68] sm:$0xff]  ;;  %v7244_v0 = vpack.c.bf16 %v7091_v49, %v7091_v49  ;;  %vm7588_vm13 = vcmp.lt.s32.totalorder %v9310_v6, 48  ;;  %vm7582_vm14 = vcmp.lt.s32.totalorder %v9310_v6, 16  ;;  %vm7590_vm15 = vcmp.ge.s32.totalorder %v9310_v6, 48 }
 0xbe2   :  { %v7113_v32 = vld [vmem:[#allocation3 + $0x18] sm:$0xff]  ;;  %v7114_v31 = vld [vmem:[#allocation3 + $0x20] sm:$0xff]  ;;  %v7139_v15 = vld [vmem:[#allocation3 + $0xe8] sm:$0xff]  ;;  %vm7591_vm0 = vcmp.lt.s32.totalorder %v9310_v6, 64  ;;  %s9029_s24 = smov 80   ;;  %s9030_s27 = smov 64  }
 0xbe3   :  { %8301 = vmatpush3.bf16.msra.mxu0 %v7111_v53  ;;  %v7129_v8 = vld [vmem:[#allocation3 + $0x98] sm:$0xff]  ;;  %v7130_v51 = vld [vmem:[#allocation3 + $0xa0] sm:$0xff]  ;;  %v7115_v42 = vld [vmem:[#allocation3 + $0x28] sm:$0xff]  ;;  %s9031_s12 = smov 48  }
 0xbe4   :  { %8323 = vmatpush3.bf16.msra.mxu1 %v7127_v12  ;;  %8302 = vmatprep.subr.bf16.mxu0 %v7120_v40  ;;  %v7131_v45 = vld [vmem:[#allocation3 + $0xa8] sm:$0xff]  ;;  %v7124_v1 = vld [vmem:[#allocation3 + $0x70] sm:$0xff]  ;;  %v7125_v7 = vld [vmem:[#allocation3 + $0x78] sm:$0xff] }
 0xbe5   :  { %8324 = vmatprep.subr.bf16.mxu1 %v7136_v16  ;;  %v7140_v11 = vld [vmem:[#allocation3 + $0xf0] sm:$0xff]  ;;  %v7141_v48 = vld [vmem:[#allocation3 + $0xf8] sm:$0xff]  ;;  %v7150_v2 = vld [vmem:[#allocation3 + $0x140] sm:$0xff] }
 0xbe6   :  { %v7116_v46 = vld [vmem:[#allocation3 + $0x30] sm:$0xff]  ;;  %v7117_v58 = vld [vmem:[#allocation3 + $0x38] sm:$0xff]  ;;  %v7166_v54 = vld [vmem:[#allocation3 + $0x1c0] sm:$0xff] }
 0xbe7   :  { %8303 = vmatpush3.bf16.msra.mxu0 %v7112_v25  ;;  %v7132_v30 = vld [vmem:[#allocation3 + $0xb0] sm:$0xff]  ;;  %v7133_v36 = vld [vmem:[#allocation3 + $0xb8] sm:$0xff]  ;;  %v7142_v38 = vld [vmem:[#allocation3 + $0x100] sm:$0xff] }
 0xbe8   :  { %8325 = vmatpush3.bf16.msra.mxu1 %v7128_v14  ;;  %8304 = vmatprep.subr.bf16.mxu0 %v7121_v22  ;;  %v7158_v4 = vld [vmem:[#allocation3 + $0x180] sm:$0xff]  ;;  %v7151_v57 = vld [vmem:[#allocation3 + $0x148] sm:$0xff]  ;;  %v7152_v63 = vld [vmem:[#allocation3 + $0x150] sm:$0xff] }
 0xbe9   :  { %8326 = vmatprep.subr.bf16.mxu1 %v7137_v41  ;;  %v7167_v59 = vld [vmem:[#allocation3 + $0x1c8] sm:$0xff]  ;;  %v7168_v53 = vld [vmem:[#allocation3 + $0x1d0] sm:$0xff]  ;;  %v7153_v49 = vld [vmem:[#allocation3 + $0x158] sm:$0xff] }
 0xbea   :  { %v7143_v17 = vld [vmem:[#allocation3 + $0x108] sm:$0xff]  ;;  %v7144_v60 = vld [vmem:[#allocation3 + $0x110] sm:$0xff]  ;;  %v7169_v10 = vld [vmem:[#allocation3 + $0x1d8] sm:$0xff] }
 0xbeb   :  { %8305 = vmatpush3.bf16.msra.mxu0 %v7113_v32  ;;  %v7159_v43 = vld [vmem:[#allocation3 + $0x188] sm:$0xff]  ;;  %v7160_v52 = vld [vmem:[#allocation3 + $0x190] sm:$0xff]  ;;  %v7145_v12 = vld [vmem:[#allocation3 + $0x118] sm:$0xff] }
 0xbec   :  { %8327 = vmatpush3.bf16.msra.mxu1 %v7129_v8  ;;  %8306 = vmatprep.subr.bf16.mxu0 %v7122_v9  ;;  %v7161_v40 = vld [vmem:[#allocation3 + $0x198] sm:$0xff]  ;;  %v7154_v16 = vld [vmem:[#allocation3 + $0x160] sm:$0xff]  ;;  %v7155_v41 = vld [vmem:[#allocation3 + $0x168] sm:$0xff] }
 0xbed   :  { %8328 = vmatprep.subr.bf16.mxu1 %v7138_v23  ;;  %v7170_v25 = vld [vmem:[#allocation3 + $0x1e0] sm:$0xff]  ;;  %v7171_v32 = vld [vmem:[#allocation3 + $0x1e8] sm:$0xff]  ;;  %v7156_v23 = vld [vmem:[#allocation3 + $0x170] sm:$0xff] }
 0xbee   :  { %v7146_v14 = vld [vmem:[#allocation3 + $0x120] sm:$0xff]  ;;  %v7147_v8 = vld [vmem:[#allocation3 + $0x128] sm:$0xff]  ;;  %v7176_v26 = vld [vmem:[#allocation3 + $0x210] sm:$0xff] }
 0xbef   :  { %8307 = vmatpush3.bf16.msra.mxu0 %v7114_v31  ;;  %v7162_v22 = vld [vmem:[#allocation3 + $0x1a0] sm:$0xff]  ;;  %v7163_v9 = vld [vmem:[#allocation3 + $0x1a8] sm:$0xff]  ;;  %v7172_v31 = vld [vmem:[#allocation3 + $0x1f0] sm:$0xff] }
 0xbf0   :  { %8329 = vmatpush3.bf16.msra.mxu1 %v7130_v51  ;;  %8308 = vmatprep.subr.bf16.mxu0 %v7123_v35  ;;  %v7148_v51 = vld [vmem:[#allocation3 + $0x130] sm:$0xff]  ;;  %v7175_v29 = vld [vmem:[#allocation3 + $0x208] sm:$0xff]  ;;  %v7201_v27 = vld [vmem:[#allocation3 + $0x2d8] sm:$0xff] }
 0xbf1   :  { %8330 = vmatprep.subr.bf16.mxu1 %v7139_v15  ;;  %v7164_v35 = vld [vmem:[#allocation3 + $0x1b0] sm:$0xff]  ;;  %v7157_v15 = vld [vmem:[#allocation3 + $0x178] sm:$0xff]  ;;  %v7207_v3 = vld [vmem:[#allocation3 + $0x308] sm:$0xff] }
 0xbf2   :  { %v7192_v39 = vld [vmem:[#allocation3 + $0x290] sm:$0xff]  ;;  %v7233_v44 = vld [vmem:[#allocation3 + $0x3d8] sm:$0xff]  ;;  %vm9781_vm1 = vmand %vm7584_vm10, %vm7585_vm11  ;;  %vm7599_vm10 = vcmp.ge.s32.totalorder %v9310_v6, 96  ;;  %vm7600_vm11 = vcmp.lt.s32.totalorder %v9310_v6, 112 }
 0xbf3   :  { %8309 = vmatpush3.bf16.msra.mxu0 %v7115_v42  ;;  %v7173_v42 = vld [vmem:[#allocation3 + $0x1f8] sm:$0xff]  ;;  %v7208_v62 = vld [vmem:[#allocation3 + $0x310] sm:$0xff] }
 0xbf4   :  { %8331 = vmatpush3.bf16.msra.mxu1 %v7131_v45  ;;  %8310 = vmatprep.subr.bf16.mxu0 %v7124_v1  ;;  %v7149_v45 = vld [vmem:[#allocation3 + $0x138] sm:$0xff]  ;;  %v7224_v50 = vld [vmem:[#allocation3 + $0x390] sm:$0xff] }
 0xbf5   :  { %8332 = vmatprep.subr.bf16.mxu1 %v7140_v11  ;;  %v7165_v1 = vld [vmem:[#allocation3 + $0x1b8] sm:$0xff]  ;;  %v7182_v11 = vld [vmem:[#allocation3 + $0x240] sm:$0xff] }
 0xbf7   :  { %8311 = vmatpush3.bf16.msra.mxu0 %v7116_v46  ;;  %v7198_v46 = vld [vmem:[#allocation3 + $0x2c0] sm:$0xff] }
 0xbf8   :  { %8333 = vmatpush3.bf16.msra.mxu1 %v7132_v30  ;;  %8312 = vmatprep.subr.bf16.mxu0 %v7125_v7  ;;  %v7243_v30 = vpack.c.bf16 %v7090_v5, %v7090_v5  ;;  %v7245_v7 = vpack.c.bf16 %v7092_v20, %v7092_v20  ;;  %v7191_v5 = vld [vmem:[#allocation3 + $0x288] sm:$0xff]  ;;  %v7184_v20 = vld [vmem:[#allocation3 + $0x250] sm:$0xff] }
 0xbf9   :  { %8334 = vmatprep.subr.bf16.mxu1 %v7141_v48  ;;  %v7174_v48 = vld [vmem:[#allocation3 + $0x200] sm:$0xff] }
 0xbfb   :  { %8313 = vmatpush3.bf16.msra.mxu0 %v7117_v58  ;;  %v7190_v58 = vld [vmem:[#allocation3 + $0x280] sm:$0xff] }
 0xbfc   :  { %8335 = vmatpush3.bf16.msra.mxu1 %v7133_v36  ;;  %8342 = vmatprep.subr.bf16.mxu0 %v7150_v2  ;;  %v7183_v36 = vld [vmem:[#allocation3 + $0x248] sm:$0xff] }
 0xbfd   :  { %8364 = vmatprep.subr.bf16.mxu1 %v7166_v54  ;;  %v7199_v2 = vld [vmem:[#allocation3 + $0x2c8] sm:$0xff]  ;;  %v7248_v54 = vpack.c.bf16 %v7095_v13, %v7095_v13  ;;  %v7185_v13 = vld [vmem:[#allocation3 + $0x258] sm:$0xff] }
 0xbfe   :  { %7294 = vmatmul.mubr.bf16.vlgmr.msra.gmra.mrb[32].mxu0 %v7239_v61  ;;  %v7200_v61 = vld [vmem:[#allocation3 + $0x2d0] sm:$0xff] }
 0xbff   :  { %7334 = vmatmul.mubr.bf16.vlgmr.msra.gmra.mrb[32].mxu1 %v7241_v24  ;;  %8343 = vmatpush3.bf16.msra.mxu0 %v7142_v38  ;;  %v7177_v24 = vld [vmem:[#allocation3 + $0x218] sm:$0xff] }
 0xc00   :  { %8365 = vmatpush3.bf16.msra.mxu1 %v7158_v4  ;;  %8344 = vmatprep.subr.bf16.mxu0 %v7151_v57  ;;  %v7193_v38 = vld [vmem:[#allocation3 + $0x298] sm:$0xff]  ;;  %v7186_v4 = vld [vmem:[#allocation3 + $0x260] sm:$0xff] }
 0xc01   :  { %8366 = vmatprep.subr.bf16.mxu1 %v7167_v59  ;;  %7373 = vmatprep.mubr.bf16.mxu0 %v7244_v0  ;;  %v7202_v57 = vld [vmem:[#allocation3 + $0x2e0] sm:$0xff] }
 0xc02   :  { %7413 = vmatprep.mubr.bf16.mxu1 %v7246_v21  ;;  %v7178_v59 = vld [vmem:[#allocation3 + $0x220] sm:$0xff]  ;;  %v7187_v21 = vld [vmem:[#allocation3 + $0x268] sm:$0xff] }
 0xc03   :  { %8345 = vmatpush3.bf16.msra.mxu0 %v7143_v17  ;;  %v7194_v0 = vld [vmem:[#allocation3 + $0x2a0] sm:$0xff]  ;;  %v7203_v17 = vld [vmem:[#allocation3 + $0x2e8] sm:$0xff] }
 0xc04   :  { %8367 = vmatpush3.bf16.msra.mxu1 %v7159_v43  ;;  %8346 = vmatprep.subr.bf16.mxu0 %v7152_v63  ;;  %v7179_v43 = vld [vmem:[#allocation3 + $0x228] sm:$0xff] }
 0xc05   :  { %8368 = vmatprep.subr.bf16.mxu1 %v7168_v53  ;;  %v7195_v63 = vld [vmem:[#allocation3 + $0x2a8] sm:$0xff]  ;;  %v7188_v53 = vld [vmem:[#allocation3 + $0x270] sm:$0xff] }
 0xc07   :  { %8347 = vmatpush3.bf16.msra.mxu0 %v7144_v60  ;;  %v7204_v60 = vld [vmem:[#allocation3 + $0x2f0] sm:$0xff] }
 0xc08   :  { %8369 = vmatpush3.bf16.msra.mxu1 %v7160_v52  ;;  %8348 = vmatprep.subr.bf16.mxu0 %v7153_v49  ;;  %v7180_v52 = vld [vmem:[#allocation3 + $0x230] sm:$0xff] }
 0xc09   :  { %8370 = vmatprep.subr.bf16.mxu1 %v7169_v10  ;;  %v7196_v49 = vld [vmem:[#allocation3 + $0x2b0] sm:$0xff]  ;;  %v7189_v10 = vld [vmem:[#allocation3 + $0x278] sm:$0xff] }
 0xc0b   :  { %8349 = vmatpush3.bf16.msra.mxu0 %v7145_v12  ;;  %v7205_v12 = vld [vmem:[#allocation3 + $0x2f8] sm:$0xff] }
 0xc0c   :  { %8371 = vmatpush3.bf16.msra.mxu1 %v7161_v40  ;;  %8350 = vmatprep.subr.bf16.mxu0 %v7154_v16  ;;  %v7181_v40 = vld [vmem:[#allocation3 + $0x238] sm:$0xff] }
 0xc0d   :  { %8372 = vmatprep.subr.bf16.mxu1 %v7170_v25  ;;  %v7197_v16 = vld [vmem:[#allocation3 + $0x2b8] sm:$0xff]  ;;  %v7214_v25 = vld [vmem:[#allocation3 + $0x340] sm:$0xff] }
 0xc0f   :  { %8351 = vmatpush3.bf16.msra.mxu0 %v7146_v14  ;;  %v7230_v14 = vld [vmem:[#allocation3 + $0x3c0] sm:$0xff] }
 0xc10   :  { %8373 = vmatpush3.bf16.msra.mxu1 %v7162_v22  ;;  %8352 = vmatprep.subr.bf16.mxu0 %v7155_v41  ;;  %v7247_v22 = vpack.c.bf16 %v7094_v33, %v7094_v33  ;;  %v7249_v41 = vpack.c.bf16 %v7096_v47, %v7096_v47  ;;  %v7223_v33 = vld [vmem:[#allocation3 + $0x388] sm:$0xff]  ;;  %v7216_v47 = vld [vmem:[#allocation3 + $0x350] sm:$0xff] }
 0xc11   :  { %8374 = vmatprep.subr.bf16.mxu1 %v7171_v32  ;;  %v7206_v32 = vld [vmem:[#allocation3 + $0x300] sm:$0xff] }
 0xc13   :  { %8353 = vmatpush3.bf16.msra.mxu0 %v7147_v8  ;;  %v7222_v8 = vld [vmem:[#allocation3 + $0x380] sm:$0xff] }
 0xc14   :  { %8375 = vmatpush3.bf16.msra.mxu1 %v7163_v9  ;;  %8354 = vmatprep.subr.bf16.mxu0 %v7156_v23  ;;  %v7215_v9 = vld [vmem:[#allocation3 + $0x348] sm:$0xff] }
 0xc15   :  { %8376 = vmatprep.subr.bf16.mxu1 %v7172_v31  ;;  %v7231_v23 = vld [vmem:[#allocation3 + $0x3c8] sm:$0xff]  ;;  %v7252_v31 = vpack.c.bf16 %v7099_v18, %v7099_v18  ;;  %v7217_v18 = vld [vmem:[#allocation3 + $0x358] sm:$0xff] }
 0xc17   :  { %8355 = vmatpush3.bf16.msra.mxu0 %v7148_v51  ;;  %v7232_v51 = vld [vmem:[#allocation3 + $0x3d0] sm:$0xff] }
 0xc18   :  { %8377 = vmatpush3.bf16.msra.mxu1 %v7164_v35  ;;  %8356 = vmatprep.subr.bf16.mxu0 %v7157_v15  ;;  %v7209_v35 = vld [vmem:[#allocation3 + $0x318] sm:$0xff] }
 0xc19   :  { %8378 = vmatprep.subr.bf16.mxu1 %v7173_v42  ;;  %v7225_v15 = vld [vmem:[#allocation3 + $0x398] sm:$0xff]  ;;  %v7218_v42 = vld [vmem:[#allocation3 + $0x360] sm:$0xff] }
 0xc1b   :  { %8357 = vmatpush3.bf16.msra.mxu0 %v7149_v45  ;;  %v7234_v45 = vld [vmem:[#allocation3 + $0x3e0] sm:$0xff] }
 0xc1c   :  { %8379 = vmatpush3.bf16.msra.mxu1 %v7165_v1  ;;  %8386 = vmatprep.subr.bf16.mxu0 %v7182_v11  ;;  %v7210_v1 = vld [vmem:[#allocation3 + $0x320] sm:$0xff] }
 0xc1d   :  { %8408 = vmatprep.subr.bf16.mxu1 %v7198_v46  ;;  %v7226_v11 = vld [vmem:[#allocation3 + $0x3a0] sm:$0xff]  ;;  %v7219_v46 = vld [vmem:[#allocation3 + $0x368] sm:$0xff] }
 0xc1e   :  { %7374 = vmatmul.mubr.bf16.vlgmr.msra.gmra.mrb[36].mxu0 %v7243_v30  ;;  %v7235_v30 = vld [vmem:[#allocation3 + $0x3e8] sm:$0xff] }
 0xc1f   :  { %7414 = vmatmul.mubr.bf16.vlgmr.msra.gmra.mrb[36].mxu1 %v7245_v7  ;;  %8387 = vmatpush3.bf16.msra.mxu0 %v7174_v48  ;;  %v7211_v7 = vld [vmem:[#allocation3 + $0x328] sm:$0xff] }
 0xc20   :  { %8409 = vmatpush3.bf16.msra.mxu1 %v7190_v58  ;;  %8388 = vmatprep.subr.bf16.mxu0 %v7183_v36  ;;  %v7227_v48 = vld [vmem:[#allocation3 + $0x3a8] sm:$0xff]  ;;  %v7220_v58 = vld [vmem:[#allocation3 + $0x370] sm:$0xff] }
 0xc21   :  { %8410 = vmatprep.subr.bf16.mxu1 %v7199_v2  ;;  %7453 = vmatprep.mubr.bf16.mxu0 %v7248_v54  ;;  %v7236_v36 = vld [vmem:[#allocation3 + $0x3f0] sm:$0xff] }
 0xc22   :  { %7493 = vmatprep.mubr.bf16.mxu1 %v7250_v28  ;;  %v7212_v2 = vld [vmem:[#allocation3 + $0x330] sm:$0xff]  ;;  %v7221_v28 = vld [vmem:[#allocation3 + $0x378] sm:$0xff] }
 0xc23   :  { %8389 = vmatpush3.bf16.msra.mxu0 %v7175_v29  ;;  %v7228_v54 = vld [vmem:[#allocation3 + $0x3b0] sm:$0xff]  ;;  %v7237_v29 = vld [vmem:[#allocation3 + $0x3f8] sm:$0xff] }
 0xc24   :  { %8411 = vmatpush3.bf16.msra.mxu1 %v7191_v5  ;;  %8390 = vmatprep.subr.bf16.mxu0 %v7184_v20  ;;  %v7213_v5 = vld [vmem:[#allocation3 + $0x338] sm:$0xff] }
 0xc25   :  { %8412 = vmatprep.subr.bf16.mxu1 %v7200_v61  ;;  %v7229_v20 = vld [vmem:[#allocation3 + $0x3b8] sm:$0xff]  ;;  %v7251_v61 = vpack.c.bf16 %v7098_v19, %v7098_v19 }
 0xc27   :  { %8391 = vmatpush3.bf16.msra.mxu0 %v7176_v26  ;;  %v7253_v26 = vpack.c.bf16 %v7100_v55, %v7100_v55 }
 0xc28   :  { %8413 = vmatpush3.bf16.msra.mxu1 %v7192_v39  ;;  %8392 = vmatprep.subr.bf16.mxu0 %v7185_v13 }
 0xc29   :  { %8414 = vmatprep.subr.bf16.mxu1 %v7201_v27  ;;  %v8295_v27 = vld [vmem:[#allocation22] ss:$0 sm:$0xff] }
 0xc2b   :  { %8393 = vmatpush3.bf16.msra.mxu0 %v7177_v24 }
 0xc2c   :  { %8415 = vmatpush3.bf16.msra.mxu1 %v7193_v38  ;;  %8394 = vmatprep.subr.bf16.mxu0 %v7186_v4 }
 0xc2d   :  { %8416 = vmatprep.subr.bf16.mxu1 %v7202_v57 }
 0xc2f   :  { %8395 = vmatpush3.bf16.msra.mxu0 %v7178_v59 }
 0xc30   :  { %8417 = vmatpush3.bf16.msra.mxu1 %v7194_v0  ;;  %8396 = vmatprep.subr.bf16.mxu0 %v7187_v21 }
 0xc31   :  { %8418 = vmatprep.subr.bf16.mxu1 %v7203_v17 }
 0xc33   :  { %8397 = vmatpush3.bf16.msra.mxu0 %v7179_v43 }
 0xc34   :  { %8419 = vmatpush3.bf16.msra.mxu1 %v7195_v63  ;;  %8398 = vmatprep.subr.bf16.mxu0 %v7188_v53 }
 0xc35   :  { %8420 = vmatprep.subr.bf16.mxu1 %v7204_v60 }
 0xc37   :  { %8399 = vmatpush3.bf16.msra.mxu0 %v7180_v52 }
 0xc38   :  { %8421 = vmatpush3.bf16.msra.mxu1 %v7196_v49  ;;  %8400 = vmatprep.subr.bf16.mxu0 %v7189_v10 }
 0xc39   :  { %8422 = vmatprep.subr.bf16.mxu1 %v7205_v12 }
 0xc3b   :  { %8401 = vmatpush3.bf16.msra.mxu0 %v7181_v40 }
 0xc3c   :  { %8423 = vmatpush3.bf16.msra.mxu1 %v7197_v16  ;;  %8430 = vmatprep.subr.bf16.mxu0 %v7214_v25 }
 0xc3d   :  { %8452 = vmatprep.subr.bf16.mxu1 %v7230_v14 }
 0xc3e   :  { %7454 = vmatmul.mubr.bf16.vlgmr.msra.gmra.mrb[40].mxu0 %v7247_v22 }
 0xc3f   :  { %7494 = vmatmul.mubr.bf16.vlgmr.msra.gmra.mrb[40].mxu1 %v7249_v41  ;;  %8431 = vmatpush3.bf16.msra.mxu0 %v7206_v32 }
 0xc40   :  { %8453 = vmatpush3.bf16.msra.mxu1 %v7222_v8  ;;  %8432 = vmatprep.subr.bf16.mxu0 %v7215_v9 }
 0xc41   :  { %8454 = vmatprep.subr.bf16.mxu1 %v7231_v23  ;;  %7533 = vmatprep.mubr.bf16.mxu0 %v7252_v31 }
 0xc42   :  { %7573 = vmatprep.mubr.bf16.mxu1 %v7254_v37 }
 0xc43   :  { %8433 = vmatpush3.bf16.msra.mxu0 %v7207_v3 }
 0xc44   :  { %8455 = vmatpush3.bf16.msra.mxu1 %v7223_v33  ;;  %8434 = vmatprep.subr.bf16.mxu0 %v7216_v47 }
 0xc45   :  { %8456 = vmatprep.subr.bf16.mxu1 %v7232_v51 }
 0xc47   :  { %8435 = vmatpush3.bf16.msra.mxu0 %v7208_v62 }
 0xc48   :  { %8457 = vmatpush3.bf16.msra.mxu1 %v7224_v50  ;;  %8436 = vmatprep.subr.bf16.mxu0 %v7217_v18 }
 0xc49   :  { %8458 = vmatprep.subr.bf16.mxu1 %v7233_v44 }
 0xc4b   :  { %8437 = vmatpush3.bf16.msra.mxu0 %v7209_v35 }
 0xc4c   :  { %8459 = vmatpush3.bf16.msra.mxu1 %v7225_v15  ;;  %8438 = vmatprep.subr.bf16.mxu0 %v7218_v42 }
 0xc4d   :  { %8460 = vmatprep.subr.bf16.mxu1 %v7234_v45 }
 0xc4f   :  { %8439 = vmatpush3.bf16.msra.mxu0 %v7210_v1 }
 0xc50   :  { %8461 = vmatpush3.bf16.msra.mxu1 %v7226_v11  ;;  %8440 = vmatprep.subr.bf16.mxu0 %v7219_v46 }
 0xc51   :  { %8462 = vmatprep.subr.bf16.mxu1 %v7235_v30 }
 0xc53   :  { %8441 = vmatpush3.bf16.msra.mxu0 %v7211_v7 }
 0xc54   :  { %8463 = vmatpush3.bf16.msra.mxu1 %v7227_v48  ;;  %8442 = vmatprep.subr.bf16.mxu0 %v7220_v58 }
 0xc55   :  { %8464 = vmatprep.subr.bf16.mxu1 %v7236_v36 }
 0xc57   :  { %8443 = vmatpush3.bf16.msra.mxu0 %v7212_v2 }
 0xc58   :  { %8465 = vmatpush3.bf16.msra.mxu1 %v7228_v54  ;;  %8444 = vmatprep.subr.bf16.mxu0 %v7221_v28 }
 0xc59   :  { %8466 = vmatprep.subr.bf16.mxu1 %v7237_v29 }
 0xc5b   :  { %8445 = vmatpush3.bf16.msra.mxu0 %v7213_v5 }
 0xc5c   :  { %8467 = vmatpush3.bf16.msra.mxu1 %v7229_v20 }
 0xc5e   :  { %7534 = vmatmul.mubr.bf16.vlgmr.msra.gmra.mrb[44].mxu0 %v7251_v61 }
 0xc5f   :  { %7574 = vmatmul.mubr.bf16.vlgmr.msra.gmra.mrb[44].mxu1 %v7253_v26 }
 0xcd1   :  { %v8314_v39 = vpop.f32.mrb[32].mxu0 }
 0xcd2   :  { %v8336_v13 = vpop.f32.mrb[32].mxu1  ;;  %v8315_v24 = vpop.f32.mrb[33].mxu0 }
 0xcd3   :  { %v8337_v38 = vpop.f32.mrb[33].mxu1  ;;  %v8316_v4 = vadd.f32 %v8315_v24, %v8314_v39  ;;  %v8317_v59 = vpop.f32.mrb[34].mxu0 }
 0xcd4   :  { %v8338_v57 = vadd.f32 %v8337_v38, %v8336_v13  ;;  %v8339_v0 = vpop.f32.mrb[34].mxu1  ;;  %v8318_v56 = vpop.f32.mrb[35].mxu0 }
 0xcd5   :  { %v8340_v21 = vpop.f32.mrb[35].mxu1  ;;  %v7296_v19 = vadd.f32 %v8316_v4, %v8295_v27 }
 0xcd7   :  { %v7336_v17 = vadd.f32 %v8338_v57, %v7296_v19 }
 0xcf1   :  { %v8358_v34 = vpop.f32.mrb[36].mxu0 }
 0xcf2   :  { %v8380_v43 = vpop.f32.mrb[36].mxu1  ;;  %v8359_v55 = vpop.f32.mrb[37].mxu0 }
 0xcf3   :  { %v8381_v63 = vpop.f32.mrb[37].mxu1  ;;  %v8360_v53 = vadd.f32 %v8359_v55, %v8358_v34  ;;  %v8361_v52 = vpop.f32.mrb[38].mxu0 }
 0xcf4   :  { %v8382_v60 = vadd.f32 %v8381_v63, %v8380_v43  ;;  %v8383_v49 = vpop.f32.mrb[38].mxu1  ;;  %v8362_v10 = vpop.f32.mrb[39].mxu0 }
 0xcf5   :  { %v8384_v12 = vpop.f32.mrb[39].mxu1  ;;  %v7376_v40 = vadd.f32 %v8360_v53, %v7336_v17 }
 0xcf7   :  { %v7416_v16 = vadd.f32 %v8382_v60, %v7376_v40 }
 0xd11   :  { %v8402_v25 = vpop.f32.mrb[40].mxu0 }
 0xd12   :  { %v8424_v14 = vpop.f32.mrb[40].mxu1  ;;  %v8403_v22 = vpop.f32.mrb[41].mxu0 }
 0xd13   :  { %v8425_v41 = vpop.f32.mrb[41].mxu1  ;;  %v8404_v32 = vadd.f32 %v8403_v22, %v8402_v25  ;;  %v8405_v9 = vpop.f32.mrb[42].mxu0 }
 0xd14   :  { %v8426_v8 = vadd.f32 %v8425_v41, %v8424_v14  ;;  %v8427_v23 = vpop.f32.mrb[42].mxu1  ;;  %v8406_v31 = vpop.f32.mrb[43].mxu0 }
 0xd15   :  { %v8428_v37 = vpop.f32.mrb[43].mxu1  ;;  %v7456_v3 = vadd.f32 %v8404_v32, %v7416_v16 }
 0xd17   :  { %v7496_v33 = vadd.f32 %v8426_v8, %v7456_v3 }
 0xd31   :  { %v8446_v47 = vpop.f32.mrb[44].mxu0 }
 0xd32   :  { %v8468_v51 = vpop.f32.mrb[44].mxu1  ;;  %v8447_v62 = vpop.f32.mrb[45].mxu0 }
 0xd33   :  { %v8469_v50 = vpop.f32.mrb[45].mxu1  ;;  %v8448_v18 = vadd.f32 %v8447_v62, %v8446_v47  ;;  %v8449_v35 = vpop.f32.mrb[46].mxu0 }
 0xd34   :  { %v8470_v44 = vadd.f32 %v8469_v50, %v8468_v51  ;;  %v8471_v15 = vpop.f32.mrb[46].mxu1  ;;  %v8450_v42 = vpop.f32.mrb[47].mxu0 }
 0xd35   :  { %v8472_v45 = vpop.f32.mrb[47].mxu1  ;;  %v7536_v1 = vadd.f32 %v8448_v18, %v7496_v33 }
 0xd37   :  { %v9759_v11 = vadd.f32 %v8470_v44, %v7536_v1 }
 0xd39   :  { %v7616_v46 = vsel %vm7615_vm2, %v9759_v11, -inf  ;;  %v7606_v30 = vsel %vm7605_vm3, %v9759_v11, -inf  ;;  %v7621_v7 = vsel %vm7620_vm4, %v9759_v11, -inf  ;;  %v7611_v48 = vsel %vm7610_vm5, %v9759_v11, -inf  ;;  %vm9785_vm2 = vmand %vm7587_vm12, %vm7588_vm13 }
 0xd3a   :  { %7617 = vmax.xlane.f32.xlu1 %v7616_v46  ;;  %7607 = vmax.xlane.f32.xlu0 %v7606_v30  ;;  %v7631_v58 = vsel %vm7630_vm6, %v9759_v11, -inf  ;;  %v7626_v36 = vsel %vm7625_vm7, %v9759_v11, -inf  ;;  %v7641_v2 = vsel %vm7640_vm8, %v9759_v11, -inf  ;;  %v7636_v54 = vsel %vm7635_vm9, %v9759_v11, -inf  ;;  %vm9798_vm6 = vmand %vm7590_vm15, %vm7591_vm0 }
 0xd3b   :  { %vm7593_vm4 = vcmp.ge.s32.totalorder %v9310_v6, 64  ;;  %vm7594_vm5 = vcmp.lt.s32.totalorder %v9310_v6, 80  ;;  %vm7596_vm8 = vcmp.ge.s32.totalorder %v9310_v6, 80  ;;  %vm7597_vm9 = vcmp.lt.s32.totalorder %v9310_v6, 96  ;;  %vm9830_vm13 = vmand %vm7599_vm10, %vm7600_vm11 }
 0xd3c   :  { %vm9808_vm7 = vmand %vm7593_vm4, %vm7594_vm5  ;;  %vm7602_vm15 = vcmp.ge.s32.totalorder %v9310_v6, 112 }
 0xd3d   :  { %vm9826_vm12 = vmand %vm7596_vm8, %vm7597_vm9 }
 0xd3e   :  { %7622 = vmax.xlane.f32.xlu1 %v7621_v7  ;;  %7612 = vmax.xlane.f32.xlu0 %v7611_v48 }
 0xd42   :  { %7632 = vmax.xlane.f32.xlu1 %v7631_v58  ;;  %7627 = vmax.xlane.f32.xlu0 %v7626_v36 }
 0xd46   :  { %7642 = vmax.xlane.f32.xlu1 %v7641_v2  ;;  %7637 = vmax.xlane.f32.xlu0 %v7636_v54 }
 0xdc7   :  { %v9772_v28 = vpop.xlane.xlu1 %7617  ;;  %v9774_v29 = vpop.xlane.xlu0 %7607 }
 0xdc8   :  { %v7609_v61 = vsel %vm7582_vm14, %v9774_v29, 0.0 }
 0xdcb   :  { %v9794_v26 = vpop.xlane.xlu1 %7622  ;;  %v9796_v39 = vpop.xlane.xlu0 %7612 }
 0xdcc   :  { %v7614_v27 = vsel %vm9781_vm1, %v9796_v39, %v7609_v61 }
 0xdcd   :  { %v7619_v24 = vsel %vm9785_vm2, %v9772_v28, %v7614_v27 }
 0xdce   :  { %v7624_v4 = vsel %vm9798_vm6, %v9794_v26, %v7619_v24 }
 0xdcf   :  { %v9819_v57 = vpop.xlane.xlu1 %7632  ;;  %v9821_v59 = vpop.xlane.xlu0 %7627 }
 0xdd0   :  { %v7629_v0 = vsel %vm9808_vm7, %v9821_v59, %v7624_v4 }
 0xdd1   :  { %v7634_v17 = vsel %vm9826_vm12, %v9819_v57, %v7629_v0 }
 0xdd3   :  { %v9835_v19 = vpop.xlane.xlu1 %7642  ;;  %v9840_v34 = vpop.xlane.xlu0 %7637 }
 0xdd4   :  { %v7639_v43 = vsel %vm9830_vm13, %v9840_v34, %v7634_v17 }
 0xdd5   :  { %v7644_v55 = vsel %vm7602_vm15, %v9835_v19, %v7639_v43 }
 0xdd6   :  { %v7645_v63 = vsub.f32 %v9759_v11, %v7644_v55 }
 0xdd8   :  { %v7646_v53 = vmul.f32 1.442695, %v7645_v63 }
 0xdda   :  { %8679 = vpow2.f32 %v7646_v53 }
 0xde4   :  { %v8680_v60 = vpop.eup %8679 }
 0xde5   :  { %7666 = vrot.lane.b32.xlu0 %v8680_v60, %s9026_s11  ;;  %7656 = vrot.lane.b32.xlu1 %v8680_v60, %s9027_s20  ;;  %v7648_v52 = vsel %vm7605_vm3, %v8680_v60, 0.0 }
 0xde9   :  { %7716 = vrot.lane.b32.xlu0 %v8680_v60, %s9028_s21  ;;  %7676 = vrot.lane.b32.xlu1 %v8680_v60, %s9029_s24 }
 0xded   :  { %7686 = vrot.lane.b32.xlu1 %v8680_v60, %s9030_s27 }
 0xdf1   :  { %7696 = vrot.lane.b32.xlu1 %v8680_v60, %s9031_s12 }
 0xdf5   :  { %7706 = vrot.lane.b32.xlu1 %v8680_v60, %s9003_s19  ;;  %s9032_s19 = smov [#allocation23]  }
 0xdf6   :  { %s7734_s18 = sshll.u32 %s9032_s19, 4  ;;  %s7735_s18 = int_to_ptr.vmem [resolvable:$true] %s7734_s18 }
 0xdf7   :  { %s8961_s25 = scalar_lea.vmem %s7735_s18, 128  ;;  %p8966_p13 = scmp.lt.s32.totalorder %s7735_s18, %s7735_s18 }
 0xdf8   :  { %p8962_p12 = scmp.ne.s32.totalorder %s7735_s18, %s8961_s25  ;;  %p8967_p0 = scmp.lt.s32.totalorder %s8961_s25, %s8961_s25 }
 0xdfa   :  { %p8968_p1 = por %p8967_p0, %p8966_p13 }
 0xdfc   :  { %p8969_p2 = pnand %p8968_p1, %p8962_p12 }
 0xe08   :  { %7649 = vadd.xlane.f32.xlu0 %v7648_v52 }
 0xe57   :  { %v7667_v49 = vpop.permute.xlu0 %7666  ;;  %v7657_v10 = vpop.permute.xlu1 %7656 }
 0xe58   :  { %v7669_v12 = vsel %vm7605_vm3, %v7667_v49, 0.0  ;;  %v7659_v40 = vsel %vm7605_vm3, %v7657_v10, 0.0 }
 0xe59   :  { %7670 = vadd.xlane.f32.xlu1 %v7669_v12  ;;  %7660 = vadd.xlane.f32.xlu0 %v7659_v40 }
 0xe5b   :  { %v7677_v16 = vpop.permute.xlu1 %7676  ;;  %v7717_v8 = vpop.permute.xlu0 %7716 }
 0xe5c   :  { %v7679_v25 = vsel %vm7605_vm3, %v7677_v16, 0.0  ;;  %v7719_v31 = vsel %vm7605_vm3, %v7717_v8, 0.0 }
 0xe5d   :  { %7680 = vadd.xlane.f32.xlu0 %v7679_v25 }
 0xe5f   :  { %v7687_v14 = vpop.permute.xlu1 %7686 }
 0xe60   :  { %v7689_v22 = vsel %vm7605_vm3, %v7687_v14, 0.0 }
 0xe61   :  { %7690 = vadd.xlane.f32.xlu0 %v7689_v22 }
 0xe63   :  { %v7697_v41 = vpop.permute.xlu1 %7696 }
 0xe64   :  { %v7699_v32 = vsel %vm7605_vm3, %v7697_v41, 0.0 }
 0xe65   :  { %7700 = vadd.xlane.f32.xlu0 %v7699_v32 }
 0xe67   :  { %v7707_v9 = vpop.permute.xlu1 %7706 }
 0xe68   :  { %v7709_v23 = vsel %vm7605_vm3, %v7707_v9, 0.0 }
 0xe69   :  { %7710 = vadd.xlane.f32.xlu1 %v7709_v23  ;;  %7720 = vadd.xlane.f32.xlu0 %v7719_v31 }
 0xe95   :  { %v7650_v37 = vpop.xlane.xlu0 %7649 }
 0xe96   :  { %8681 = vlog2.f32 %v7650_v37 }
 0xea0   :  { %v8682_v50 = vpop.eup %8681 }
 0xea1   :  { %v7652_v44 = vmul.f32 0.6931472, %v8682_v50 }
 0xea3   :  { %v7653_v30 = vadd.f32 %v7652_v44, %v9774_v29 }
 0xea5   :  { %v7654_v54 = vsel %vm7582_vm14, %v7653_v30, 0.0 }
 0xee6   :  { %v7661_v3 = vpop.xlane.xlu0 %7660  ;;  %v7671_v33 = vpop.xlane.xlu1 %7670 }
 0xee7   :  { %8683 = vlog2.f32 %v7661_v3 }
 0xee8   :  { %8685 = vlog2.f32 %v7671_v33 }
 0xeea   :  { %v7681_v47 = vpop.xlane.xlu0 %7680 }
 0xeeb   :  { %8687 = vlog2.f32 %v7681_v47 }
 0xeee   :  { %v7691_v51 = vpop.xlane.xlu0 %7690 }
 0xeef   :  { %8689 = vlog2.f32 %v7691_v51 }
 0xef1   :  { %v8684_v18 = vpop.eup %8683 }
 0xef2   :  { %v7701_v62 = vpop.xlane.xlu0 %7700  ;;  %v8686_v42 = vpop.eup %8685  ;;  %v7663_v45 = vmul.f32 0.6931472, %v8684_v18 }
 0xef3   :  { %8691 = vlog2.f32 %v7701_v62  ;;  %v7673_v7 = vmul.f32 0.6931472, %v8686_v42 }
 0xef4   :  { %v7664_v48 = vadd.f32 %v7663_v45, %v9796_v39 }
 0xef5   :  { %v8688_v1 = vpop.eup %8687  ;;  %v7674_v61 = vadd.f32 %v7673_v7, %v9772_v28 }
 0xef6   :  { %v7711_v35 = vpop.xlane.xlu1 %7710  ;;  %v7721_v15 = vpop.xlane.xlu0 %7720  ;;  %v7683_v58 = vmul.f32 0.6931472, %v8688_v1  ;;  %v7665_v24 = vsel %vm9781_vm1, %v7664_v48, %v7654_v54 }
 0xef7   :  { %8693 = vlog2.f32 %v7711_v35  ;;  %v7675_v43 = vsel %vm9785_vm2, %v7674_v61, %v7665_v24 }
 0xef8   :  { %8695 = vlog2.f32 %v7721_v15  ;;  %v7684_v4 = vadd.f32 %v7683_v58, %v9794_v26 }
 0xef9   :  { %v8690_v46 = vpop.eup %8689 }
 0xefa   :  { %v7693_v36 = vmul.f32 0.6931472, %v8690_v46  ;;  %v7685_v63 = vsel %vm9798_vm6, %v7684_v4, %v7675_v43 }
 0xefc   :  { %v7694_v0 = vadd.f32 %v7693_v36, %v9821_v59 }
 0xefd   :  { %v8692_v2 = vpop.eup %8691 }
 0xefe   :  { %v7703_v27 = vmul.f32 0.6931472, %v8692_v2  ;;  %v7695_v5 = vsel %vm9808_vm7, %v7694_v0, %v7685_v63 }
 0xf00   :  { %v7704_v17 = vadd.f32 %v7703_v27, %v9819_v57 }
 0xf01   :  { %v8694_v29 = vpop.eup %8693 }
 0xf02   :  { %v8696_v39 = vpop.eup %8695  ;;  %v7713_v55 = vmul.f32 0.6931472, %v8694_v29  ;;  %v7705_v59 = vsel %vm9826_vm12, %v7704_v17, %v7695_v5 }
 0xf03   :  { %v7723_v28 = vmul.f32 0.6931472, %v8696_v39 }
 0xf04   :  { %v7714_v53 = vadd.f32 %v7713_v55, %v9840_v34 }
 0xf05   :  { %v7724_v26 = vadd.f32 %v7723_v28, %v9835_v19 }
 0xf06   :  { %v7715_v20 = vsel %vm9830_vm13, %v7714_v53, %v7705_v59 }
 0xf07   :  { %v7725_v13 = vsel %vm7602_vm15, %v7724_v26, %v7715_v20 }
 0xf08   :  { %v7726_v57 = vsub.f32 %v9759_v11, %v7725_v13 }
 0xf0a   :  { %7727 = vst [vmem:[#allocation23] sm:$0xff] %v7726_v57 }
 0xf0b   :  { %8972 = shalt.err (!%p8969_p2)
}
 0xf0c   :  { %s8973_s10 = scalar_lea.hbm %s9908_s13, 128 }
 0xf0d   :  { %p8974_p3 = scmp.ne.s32.totalorder %s9908_s13, %s8973_s10  ;;  %p8977_p4 = scmp.lt.u32.totalorder %s8973_s10, %s9908_s13 }
 0xf0f   :  { %p8979_p5 = pnand %p8977_p4, %p8974_p3 }
 0xf11   :  { %8982 = shalt.err (!%p8979_p5)
}
 0xf12   :  { %7737 = dma.vmem_to_hbm [thread:$0]  %s7735_s18, 128, %s9908_s13, [#allocation7]  }
 0xf13   :  { %8999 = dma.done.wait [#allocation7], 128  }
 0xf14   :  { %9000 = vsyncadd [#allocation7], 4294967168 }
 0xf15   :  { %7741 = vsyncpa [#allocation6], 1 }
 0xf16   :  { %7742 = vsyncpa [#allocation9], 1 }
 0xf17   :  { %7743 = vsyncpa [#allocation12], 1 }
 0xf18   :  { %7744 = vsyncpa [#allocation15], 1 }
 0xf19   :  { %7745 = vsyncpa [#allocation18], 1 }
 0xf1a   :  { %7746 = vsyncpa [#allocation21], 1 }
 0xf1b   :  { %7747 = vsyncpa [#allocation7], 1 }
 0xf1c   :  { %7748 = vsyncmov [#allocation4] }
 0xf1f   :  { %s7749_s3 = vpop.sfrf %7748 }
 0xf20   :  { %p8296_p6 = scmp.ne.s32.totalorder %s7749_s3, 0 }
 0xf22   :  { %7753 = shalt.err (%p8296_p6)  }
 0xf23   :  { %7755 = vsyncmov [#allocation4 + $0x1] }
 0xf26   :  { %s7756_s23 = vpop.sfrf %7755 }
 0xf27   :  { %p8297_p7 = scmp.ne.s32.totalorder %s7756_s23, 0 }
 0xf29   :  { %7760 = shalt.err (%p8297_p7)  }

</bundles_post_ra>
